<compile_context>
chip_gen: v7x
topology: tpu7x:2x2x1
jax: 0.10.0
libtpu: 0.0.40
codegen_flags: <defaults>
</compile_context>

<pallas_src>
import functools

import jax
import jax.numpy as jnp
from jax.experimental import pallas as pl
from jax.experimental.pallas import tpu as pltpu


# ---------------------------------------------------------------------------
# Single fused kernel.  One grid step = B batch elements (B = whole batch on
# v5e/v6e, B = 1 on v7x); every layer runs on VMEM-resident data.
# ---------------------------------------------------------------------------
def _fused_forward_kernel(x_ref,
                          w2_ref, b2_ref, w3_ref, b3_ref, w4_ref, b4_ref,
                          w5_ref, b5_ref, w6_ref, b6_ref,
                          o_ref,
                          pad_a, col_a, pad_b, col_b, pad_c, col_c):
    f32 = jnp.float32

    def conv3x3_relu(pad_ref, col_ref, x_val, w_ref, b_ref):
        """3x3 'same' conv + ReLU as ONE large-K MXU matmul (im2col).

        x_val  : (B, H, W, Cin) value
        pad_ref: (B, H+2, W+2, Cin) VMEM scratch
        col_ref: (B*H*W, 9*Cin)     VMEM scratch
        w_ref  : (9*Cin, Cout),  b_ref: (1, Cout)
        Returns (B*H*W, Cout) f32.
        """
        B, H, W, Cin = x_val.shape
        # --- zero ONLY the 1-px halo; interior fully overwritten below ------
        pad_ref[:, 0, :, :] = jnp.zeros((B, W + 2, Cin), f32)
        pad_ref[:, H + 1, :, :] = jnp.zeros((B, W + 2, Cin), f32)
        pad_ref[:, :, 0, :] = jnp.zeros((B, H + 2, Cin), f32)
        pad_ref[:, :, W + 1, :] = jnp.zeros((B, H + 2, Cin), f32)
        pad_ref[:, 1:H + 1, 1:W + 1, :] = x_val
        # --- im2col: each tap streams ref -> scratch (no padded slab in vregs)
        for kh in range(3):                       # static -> fully unrolled
            for kw in range(3):
                t = kh * 3 + kw
                col_ref[:, t * Cin:(t + 1) * Cin] = (
                    pad_ref[:, kh:kh + H, kw:kw + W, :].reshape(B * H * W, Cin))
        # --- single K = 9*Cin MXU matmul + bias + ReLU -----------------------
        acc = jnp.dot(col_ref[...], w_ref[...], preferred_element_type=f32)
        return jnp.maximum(acc + b_ref[...], 0.0)

    def maxpool2(v):
        # 2x2 / stride-2 max pool on a live value.
        B, H, W, C = v.shape
        v = jnp.max(v.reshape(B, H, W // 2, 2, C), axis=3)
        v = jnp.max(v.reshape(B, H // 2, 2, W // 2, C), axis=2)
        return v

    def upsample2(v):
        # 2x nearest-neighbour.  Replicate H first (major-dim merge, layout
        # trivial), then W (single sublane interleave).  Lane (C) untouched.
        B, H, W, C = v.shape
        v = jnp.broadcast_to(v[:, :, None, :, :], (B, H, 2, W, C)).reshape(B, 2 * H, W, C)
        v = jnp.broadcast_to(v[:, :, :, None, :], (B, 2 * H, W, 2, C)).reshape(B, 2 * H, 2 * W, C)
        return v

    x = x_ref[...]                                           # (B, 16, 16, 64)
    B, H0, W0, _ = x.shape
    c2 = w2_ref.shape[1]
    c3 = w3_ref.shape[1]
    c6 = w6_ref.shape[1]
    H1, W1 = H0 // 2, W0 // 2
    H2, W2 = H1 // 2, W1 // 2

    y = conv3x3_relu(pad_a, col_a, x, w2_ref, b2_ref)        # (B*256, 64)
    y = maxpool2(y.reshape(B, H0, W0, c2))                   # (B, 8, 8, 64)
    y = conv3x3_relu(pad_b, col_b, y, w3_ref, b3_ref)        # (B*64, 128)
    concat0 = maxpool2(y.reshape(B, H1, W1, c3))             # (B, 4, 4, 128)

    y4 = conv3x3_relu(pad_c, col_c, concat0, w4_ref, b4_ref)  # (B*16, 128)
    # conv5 (1x1, 128->256) and conv6 (1x1, 256->128): chained MXU matmuls,
    # intermediates stay in vregs.
    y5 = jnp.maximum(jnp.dot(y4, w5_ref[...], preferred_element_type=f32)
                     + b5_ref[...], 0.0)                     # (B*16, 256)
    c1 = jnp.maximum(jnp.dot(y5, w6_ref[...], preferred_element_type=f32)
                     + b6_ref[...], 0.0)                     # (B*16, 128)
    concat1 = c1.reshape(B, H2, W2, c6)                      # (B, 4, 4, 128)

    # torch.cat((concat1, concat0), dim=C) + Upsample(2x, nearest):
    # two lane-aligned 128-wide stores into the channel halves of the output.
    o_ref[:, :, :, 0:c6] = upsample2(concat1)
    o_ref[:, :, :, c6:c6 + c3] = upsample2(concat0)


# ---------------------------------------------------------------------------
# Wrapper
# ---------------------------------------------------------------------------
def _batch_per_step(n_batch):
    """Batch elements per grid step: fold the whole batch on single-TC chips
    (v5e/v6e); keep a parallel batch axis on v7x so both TensorCores work."""
    try:
        kind = jax.devices()[0].device_kind.lower()
    except Exception:
        kind = ""
    single_tc = any(t in kind for t in ("v5 lite", "v5e", "v6 lite", "v6e"))
    return n_batch if single_tc else 1


def fused_forward_nhwc(x_nhwc, params):
    """x_nhwc: (N, H, W, 64) f32.  Returns NHWC (N, H//2, W//2, 256)."""
    N, H, W, C0 = x_nhwc.shape
    w2, b2 = params["conv2"]
    w3, b3 = params["conv3"]
    w4, b4 = params["conv4"]
    w5, b5 = params["conv5"]
    w6, b6 = params["conv6"]

    # HWIO (3,3,Cin,Cout) -> im2col weight matrix (9*Cin, Cout).
    # Flattening order (kh, kw, cin) matches the kernel's tap column layout.
    w2f = w2.reshape(-1, w2.shape[3])
    w3f = w3.reshape(-1, w3.shape[3])
    w4f = w4.reshape(-1, w4.shape[3])
    w5f = w5.reshape(w5.shape[2], w5.shape[3])
    w6f = w6.reshape(w6.shape[2], w6.shape[3])
    b2r, b3r, b4r = b2.reshape(1, -1), b3.reshape(1, -1), b4.reshape(1, -1)
    b5r, b6r = b5.reshape(1, -1), b6.reshape(1, -1)

    c2, c3, c4 = w2.shape[3], w3.shape[3], w4.shape[3]
    c5, c6 = w5.shape[3], w6.shape[3]
    H1, W1 = H // 2, W // 2
    H2, W2 = H // 4, W // 4
    Ho, Wo = 2 * H2, 2 * W2
    Cout = c6 + c3                                           # 128 + 128 = 256

    B = _batch_per_step(N)
    assert N % B == 0
    grid = (N // B,)

    flops = 2 * N * (H * W * (9 * C0) * c2
                     + H1 * W1 * (9 * c2) * c3
                     + H2 * W2 * (9 * c3) * c4
                     + H2 * W2 * c4 * c5
                     + H2 * W2 * c5 * c6)
    bytes_accessed = 4 * (x_nhwc.size + N * Ho * Wo * Cout
                          + w2f.size + w3f.size + w4f.size + w5f.size + w6f.size
                          + c2 + c3 + c4 + c5 + c6)

    def full(a):
        return pl.BlockSpec(a.shape, lambda n: (0,) * a.ndim)

    return pl.pallas_call(
        _fused_forward_kernel,
        out_shape=jax.ShapeDtypeStruct((N, Ho, Wo, Cout), jnp.float32),
        grid_spec=pltpu.PrefetchScalarGridSpec(
            num_scalar_prefetch=0,
            grid=grid,
            in_specs=[
                pl.BlockSpec((B, H, W, C0), lambda n: (n, 0, 0, 0)),
                full(w2f), full(b2r),
                full(w3f), full(b3r),
                full(w4f), full(b4r),
                full(w5f), full(b5r),
                full(w6f), full(b6r),
            ],
            out_specs=pl.BlockSpec((B, Ho, Wo, Cout), lambda n: (n, 0, 0, 0)),
            scratch_shapes=[
                pltpu.VMEM((B, H + 2, W + 2, C0), jnp.float32),     # conv2 pad
                pltpu.VMEM((B * H * W, 9 * C0), jnp.float32),       # conv2 im2col
                pltpu.VMEM((B, H1 + 2, W1 + 2, c2), jnp.float32),   # conv3 pad
                pltpu.VMEM((B * H1 * W1, 9 * c2), jnp.float32),     # conv3 im2col
                pltpu.VMEM((B, H2 + 2, W2 + 2, c3), jnp.float32),   # conv4 pad
                pltpu.VMEM((B * H2 * W2, 9 * c3), jnp.float32),     # conv4 im2col
            ],
        ),
        compiler_params=pltpu.CompilerParams(
            dimension_semantics=("parallel",)),
        cost_estimate=pl.CostEstimate(
            flops=flops, transcendentals=0, bytes_accessed=bytes_accessed),
    )(x_nhwc, w2f, b2r, w3f, b3r, w4f, b4r, w5f, b5r, w6f, b6r)


# ---------------------------------------------------------------------------
# Public forward matching TestModel.forward (conv0/conv1/conv7 are dead code
# in the PyTorch forward, so they are not instantiated).
# ---------------------------------------------------------------------------
def test_model_forward(x_nchw, params):
    # The kernel works internally in NHWC (channels -> lane dim; lane-dense
    # 256-wide output stores).  The boundary NCHW<->NHWC permutes are kept as
    # two tiny (<=128 KiB) XLA transposes.
    # TODO(synk): fold the NCHW->NHWC input permute into the kernel once the
    # Mosaic relayout for that major<->minor permutation is verified on all
    # target chips.
    x = jnp.transpose(x_nchw, (0, 2, 3, 1))                  # NCHW -> NHWC
    out = fused_forward_nhwc(x, params)                      # single pallas_call
    return jnp.transpose(out, (0, 3, 1, 2))                  # NHWC -> NCHW


# ---------------------------------------------------------------------------
# Parameters (deterministic init; only the layers used in forward()).
# Weights stored HWIO, biases (Cout,).
# ---------------------------------------------------------------------------
def init_params(key):
    def conv_p(k, kh, kw, cin, cout):
        kw_key, kb_key = jax.random.split(k)
        fan_in = kh * kw * cin
        w = jax.random.normal(kw_key, (kh, kw, cin, cout), jnp.float32)
        w = w * (1.0 / jnp.sqrt(jnp.float32(fan_in)))
        b = jax.random.normal(kb_key, (cout,), jnp.float32) * 0.01
        return w, b

    keys = jax.random.split(key, 5)
    return {
        "conv2": conv_p(keys[0], 3, 3, 64, 64),
        "conv3": conv_p(keys[1], 3, 3, 64, 128),
        "conv4": conv_p(keys[2], 3, 3, 128, 128),
        "conv5": conv_p(keys[3], 1, 1, 128, 256),
        "conv6": conv_p(keys[4], 1, 1, 256, 128),
    }


# ---------------------------------------------------------------------------
# Pure-JAX reference for validation.
# ---------------------------------------------------------------------------
def ref_forward(x_nchw, params):
    def conv_relu(x, w, b, pad):
        y = jax.lax.conv_general_dilated(
            x, w, window_strides=(1, 1),
            padding=[(pad, pad), (pad, pad)],
            dimension_numbers=("NCHW", "HWIO", "NCHW"))
        return jax.nn.relu(y + b[None, :, None, None])

    def maxpool(x):
        return jax.lax.reduce_window(x, -jnp.inf, jax.lax.max,
                                     (1, 1, 2, 2), (1, 1, 2, 2), "VALID")

    x = conv_relu(x_nchw, *params["conv2"], 1)
    x = maxpool(x)
    x = conv_relu(x, *params["conv3"], 1)
    c0 = maxpool(x)
    x = conv_relu(c0, *params["conv4"], 1)
    x = conv_relu(x, *params["conv5"], 0)
    c1 = conv_relu(x, *params["conv6"], 0)
    cat = jnp.concatenate([c1, c0], axis=1)
    return jnp.repeat(jnp.repeat(cat, 2, axis=2), 2, axis=3)


if __name__ == "__main__":
    key = jax.random.PRNGKey(0)
    k_in, k_par = jax.random.split(key)
    params = init_params(k_par)

    # forward() starts at conv2 which takes 64 input channels.
    x = jax.random.normal(k_in, (2, 64, 16, 16), jnp.float32)

    fwd = jax.jit(functools.partial(test_model_forward, params=params))
    out = fwd(x)
    jax.block_until_ready(out)

    ref = ref_forward(x, params)
    assert out.shape == (2, 256, 8, 8), out.shape
    err = float(jnp.max(jnp.abs(out - ref)))
    assert jnp.allclose(out, ref, atol=2e-3, rtol=2e-3), err

    print("KERNEL_OK")
</pallas_src>

<mosaic_0001>
module attributes {stable_mosaic.version = 11 : i64} {
  func.func @_fused_forward_kernel(%arg0: i32, %arg1: memref<1x16x16x64xf32, #tpu.memory_space<vmem>>, %arg2: memref<576x64xf32, #tpu.memory_space<vmem>>, %arg3: memref<1x64xf32, #tpu.memory_space<vmem>>, %arg4: memref<576x128xf32, #tpu.memory_space<vmem>>, %arg5: memref<1x128xf32, #tpu.memory_space<vmem>>, %arg6: memref<1152x128xf32, #tpu.memory_space<vmem>>, %arg7: memref<1x128xf32, #tpu.memory_space<vmem>>, %arg8: memref<128x256xf32, #tpu.memory_space<vmem>>, %arg9: memref<1x256xf32, #tpu.memory_space<vmem>>, %arg10: memref<256x128xf32, #tpu.memory_space<vmem>>, %arg11: memref<1x128xf32, #tpu.memory_space<vmem>>, %arg12: memref<1x8x8x256xf32, #tpu.memory_space<vmem>>, %arg13: memref<1x18x18x64xf32, #tpu.memory_space<vmem>>, %arg14: memref<256x576xf32, #tpu.memory_space<vmem>>, %arg15: memref<1x10x10x64xf32, #tpu.memory_space<vmem>>, %arg16: memref<64x576xf32, #tpu.memory_space<vmem>>, %arg17: memref<1x6x6x128xf32, #tpu.memory_space<vmem>>, %arg18: memref<16x1152xf32, #tpu.memory_space<vmem>>) attributes {dimension_semantics = [#tpu.dimension_semantics<parallel>], iteration_bounds = array<i64: 2>, scalar_prefetch = 0 : i64, scratch_operands = 6 : i64, tpu.core_type = #tpu.core_type<tc>, window_params = [{transform_indices = @transform_0, window_bounds = array<i64: 1, 16, 16, 64>}, {pipeline_mode = #tpu.pipeline_mode<synchronous>, transform_indices = @transform_1, window_bounds = array<i64: 576, 64>}, {pipeline_mode = #tpu.pipeline_mode<synchronous>, transform_indices = @transform_2, window_bounds = array<i64: 1, 64>}, {pipeline_mode = #tpu.pipeline_mode<synchronous>, transform_indices = @transform_3, window_bounds = array<i64: 576, 128>}, {pipeline_mode = #tpu.pipeline_mode<synchronous>, transform_indices = @transform_4, window_bounds = array<i64: 1, 128>}, {pipeline_mode = #tpu.pipeline_mode<synchronous>, transform_indices = @transform_5, window_bounds = array<i64: 1152, 128>}, {pipeline_mode = #tpu.pipeline_mode<synchronous>, transform_indices = @transform_6, window_bounds = array<i64: 1, 128>}, {pipeline_mode = #tpu.pipeline_mode<synchronous>, transform_indices = @transform_7, window_bounds = array<i64: 128, 256>}, {pipeline_mode = #tpu.pipeline_mode<synchronous>, transform_indices = @transform_8, window_bounds = array<i64: 1, 256>}, {pipeline_mode = #tpu.pipeline_mode<synchronous>, transform_indices = @transform_9, window_bounds = array<i64: 256, 128>}, {pipeline_mode = #tpu.pipeline_mode<synchronous>, transform_indices = @transform_10, window_bounds = array<i64: 1, 128>}, {transform_indices = @transform_11, window_bounds = array<i64: 1, 8, 8, 256>}]} {
    %c0 = arith.constant 0 : index
    %c0_0 = arith.constant 0 : index
    %c0_1 = arith.constant 0 : index
    %c0_2 = arith.constant 0 : index
    %0 = vector.load %arg1[%c0, %c0_0, %c0_1, %c0_2] : memref<1x16x16x64xf32, #tpu.memory_space<vmem>>, vector<1x16x16x64xf32>
    %cst = arith.constant 0.000000e+00 : f32
    %1 = vector.broadcast %cst : f32 to vector<1x18x64xf32>
    %c0_3 = arith.constant 0 : index
    %c0_4 = arith.constant 0 : index
    %c0_5 = arith.constant 0 : index
    %c0_6 = arith.constant 0 : index
    %2 = vector.load %arg13[%c0_3, %c0_4, %c0_5, %c0_6] : memref<1x18x18x64xf32, #tpu.memory_space<vmem>>, vector<1x1x18x64xf32>
    %3 = vector.shape_cast %2 : vector<1x1x18x64xf32> to vector<1x18x64xf32>
    %4 = vector.shape_cast %1 : vector<1x18x64xf32> to vector<1x1x18x64xf32>
    tpu.vector_store %arg13[%c0_3, %c0_4, %c0_5, %c0_6], %4 {strides = array<i32>} : memref<1x18x18x64xf32, #tpu.memory_space<vmem>>, vector<1x1x18x64xf32>,
    %cst_7 = arith.constant 0.000000e+00 : f32
    %5 = vector.broadcast %cst_7 : f32 to vector<1x18x64xf32>
    %c0_8 = arith.constant 0 : index
    %c17 = arith.constant 17 : index
    %c0_9 = arith.constant 0 : index
    %c0_10 = arith.constant 0 : index
    %6 = vector.load %arg13[%c0_8, %c17, %c0_9, %c0_10] : memref<1x18x18x64xf32, #tpu.memory_space<vmem>>, vector<1x1x18x64xf32>
    %7 = vector.shape_cast %6 : vector<1x1x18x64xf32> to vector<1x18x64xf32>
    %8 = vector.shape_cast %5 : vector<1x18x64xf32> to vector<1x1x18x64xf32>
    tpu.vector_store %arg13[%c0_8, %c17, %c0_9, %c0_10], %8 {strides = array<i32>} : memref<1x18x18x64xf32, #tpu.memory_space<vmem>>, vector<1x1x18x64xf32>,
    %cst_11 = arith.constant 0.000000e+00 : f32
    %9 = vector.broadcast %cst_11 : f32 to vector<1x18x64xf32>
    %c0_12 = arith.constant 0 : index
    %c0_13 = arith.constant 0 : index
    %c0_14 = arith.constant 0 : index
    %c0_15 = arith.constant 0 : index
    %10 = vector.load %arg13[%c0_12, %c0_13, %c0_14, %c0_15] : memref<1x18x18x64xf32, #tpu.memory_space<vmem>>, vector<1x18x1x64xf32>
    %11 = vector.shape_cast %10 : vector<1x18x1x64xf32> to vector<1x18x64xf32>
    %12 = vector.shape_cast %9 : vector<1x18x64xf32> to vector<1x18x1x64xf32>
    tpu.vector_store %arg13[%c0_12, %c0_13, %c0_14, %c0_15], %12 {strides = array<i32>} : memref<1x18x18x64xf32, #tpu.memory_space<vmem>>, vector<1x18x1x64xf32>,
    %cst_16 = arith.constant 0.000000e+00 : f32
    %13 = vector.broadcast %cst_16 : f32 to vector<1x18x64xf32>
    %c0_17 = arith.constant 0 : index
    %c0_18 = arith.constant 0 : index
    %c17_19 = arith.constant 17 : index
    %c0_20 = arith.constant 0 : index
    %14 = vector.load %arg13[%c0_17, %c0_18, %c17_19, %c0_20] : memref<1x18x18x64xf32, #tpu.memory_space<vmem>>, vector<1x18x1x64xf32>
    %15 = vector.shape_cast %14 : vector<1x18x1x64xf32> to vector<1x18x64xf32>
    %16 = vector.shape_cast %13 : vector<1x18x64xf32> to vector<1x18x1x64xf32>
    tpu.vector_store %arg13[%c0_17, %c0_18, %c17_19, %c0_20], %16 {strides = array<i32>} : memref<1x18x18x64xf32, #tpu.memory_space<vmem>>, vector<1x18x1x64xf32>,
    %c0_21 = arith.constant 0 : index
    %c1 = arith.constant 1 : index
    %c1_22 = arith.constant 1 : index
    %c0_23 = arith.constant 0 : index
    %17 = vector.load %arg13[%c0_21, %c1, %c1_22, %c0_23] : memref<1x18x18x64xf32, #tpu.memory_space<vmem>>, vector<1x16x16x64xf32>
    tpu.vector_store %arg13[%c0_21, %c1, %c1_22, %c0_23], %0 {strides = array<i32>} : memref<1x18x18x64xf32, #tpu.memory_space<vmem>>, vector<1x16x16x64xf32>,
    %c0_24 = arith.constant 0 : index
    %c0_25 = arith.constant 0 : index
    %c0_26 = arith.constant 0 : index
    %c0_27 = arith.constant 0 : index
    %18 = vector.load %arg13[%c0_24, %c0_25, %c0_26, %c0_27] : memref<1x18x18x64xf32, #tpu.memory_space<vmem>>, vector<1x16x16x64xf32>
    %19 = vector.shape_cast %18 : vector<1x16x16x64xf32> to vector<256x64xf32>
    %c0_28 = arith.constant 0 : index
    %c0_29 = arith.constant 0 : index
    %20 = vector.load %arg14[%c0_28, %c0_29] : memref<256x576xf32, #tpu.memory_space<vmem>>, vector<256x64xf32>
    tpu.vector_store %arg14[%c0_28, %c0_29], %19 {strides = array<i32>} : memref<256x576xf32, #tpu.memory_space<vmem>>, vector<256x64xf32>,
    %c0_30 = arith.constant 0 : index
    %c0_31 = arith.constant 0 : index
    %c1_32 = arith.constant 1 : index
    %c0_33 = arith.constant 0 : index
    %21 = vector.load %arg13[%c0_30, %c0_31, %c1_32, %c0_33] : memref<1x18x18x64xf32, #tpu.memory_space<vmem>>, vector<1x16x16x64xf32>
    %22 = vector.shape_cast %21 : vector<1x16x16x64xf32> to vector<256x64xf32>
    %c0_34 = arith.constant 0 : index
    %c64 = arith.constant 64 : index
    %23 = vector.load %arg14[%c0_34, %c64] : memref<256x576xf32, #tpu.memory_space<vmem>>, vector<256x64xf32>
    tpu.vector_store %arg14[%c0_34, %c64], %22 {strides = array<i32>} : memref<256x576xf32, #tpu.memory_space<vmem>>, vector<256x64xf32>,
    %c0_35 = arith.constant 0 : index
    %c0_36 = arith.constant 0 : index
    %c2 = arith.constant 2 : index
    %c0_37 = arith.constant 0 : index
    %24 = vector.load %arg13[%c0_35, %c0_36, %c2, %c0_37] : memref<1x18x18x64xf32, #tpu.memory_space<vmem>>, vector<1x16x16x64xf32>
    %25 = vector.shape_cast %24 : vector<1x16x16x64xf32> to vector<256x64xf32>
    %c0_38 = arith.constant 0 : index
    %c128 = arith.constant 128 : index
    %26 = vector.load %arg14[%c0_38, %c128] : memref<256x576xf32, #tpu.memory_space<vmem>>, vector<256x64xf32>
    tpu.vector_store %arg14[%c0_38, %c128], %25 {strides = array<i32>} : memref<256x576xf32, #tpu.memory_space<vmem>>, vector<256x64xf32>,
    %c0_39 = arith.constant 0 : index
    %c1_40 = arith.constant 1 : index
    %c0_41 = arith.constant 0 : index
    %c0_42 = arith.constant 0 : index
    %27 = vector.load %arg13[%c0_39, %c1_40, %c0_41, %c0_42] : memref<1x18x18x64xf32, #tpu.memory_space<vmem>>, vector<1x16x16x64xf32>
    %28 = vector.shape_cast %27 : vector<1x16x16x64xf32> to vector<256x64xf32>
    %c0_43 = arith.constant 0 : index
    %c192 = arith.constant 192 : index
    %29 = vector.load %arg14[%c0_43, %c192] : memref<256x576xf32, #tpu.memory_space<vmem>>, vector<256x64xf32>
    tpu.vector_store %arg14[%c0_43, %c192], %28 {strides = array<i32>} : memref<256x576xf32, #tpu.memory_space<vmem>>, vector<256x64xf32>,
    %c0_44 = arith.constant 0 : index
    %c1_45 = arith.constant 1 : index
    %c1_46 = arith.constant 1 : index
    %c0_47 = arith.constant 0 : index
    %30 = vector.load %arg13[%c0_44, %c1_45, %c1_46, %c0_47] : memref<1x18x18x64xf32, #tpu.memory_space<vmem>>, vector<1x16x16x64xf32>
    %31 = vector.shape_cast %30 : vector<1x16x16x64xf32> to vector<256x64xf32>
    %c0_48 = arith.constant 0 : index
    %c256 = arith.constant 256 : index
    %32 = vector.load %arg14[%c0_48, %c256] : memref<256x576xf32, #tpu.memory_space<vmem>>, vector<256x64xf32>
    tpu.vector_store %arg14[%c0_48, %c256], %31 {strides = array<i32>} : memref<256x576xf32, #tpu.memory_space<vmem>>, vector<256x64xf32>,
    %c0_49 = arith.constant 0 : index
    %c1_50 = arith.constant 1 : index
    %c2_51 = arith.constant 2 : index
    %c0_52 = arith.constant 0 : index
    %33 = vector.load %arg13[%c0_49, %c1_50, %c2_51, %c0_52] : memref<1x18x18x64xf32, #tpu.memory_space<vmem>>, vector<1x16x16x64xf32>
    %34 = vector.shape_cast %33 : vector<1x16x16x64xf32> to vector<256x64xf32>
    %c0_53 = arith.constant 0 : index
    %c320 = arith.constant 320 : index
    %35 = vector.load %arg14[%c0_53, %c320] : memref<256x576xf32, #tpu.memory_space<vmem>>, vector<256x64xf32>
    tpu.vector_store %arg14[%c0_53, %c320], %34 {strides = array<i32>} : memref<256x576xf32, #tpu.memory_space<vmem>>, vector<256x64xf32>,
    %c0_54 = arith.constant 0 : index
    %c2_55 = arith.constant 2 : index
    %c0_56 = arith.constant 0 : index
    %c0_57 = arith.constant 0 : index
    %36 = vector.load %arg13[%c0_54, %c2_55, %c0_56, %c0_57] : memref<1x18x18x64xf32, #tpu.memory_space<vmem>>, vector<1x16x16x64xf32>
    %37 = vector.shape_cast %36 : vector<1x16x16x64xf32> to vector<256x64xf32>
    %c0_58 = arith.constant 0 : index
    %c384 = arith.constant 384 : index
    %38 = vector.load %arg14[%c0_58, %c384] : memref<256x576xf32, #tpu.memory_space<vmem>>, vector<256x64xf32>
    tpu.vector_store %arg14[%c0_58, %c384], %37 {strides = array<i32>} : memref<256x576xf32, #tpu.memory_space<vmem>>, vector<256x64xf32>,
    %c0_59 = arith.constant 0 : index
    %c2_60 = arith.constant 2 : index
    %c1_61 = arith.constant 1 : index
    %c0_62 = arith.constant 0 : index
    %39 = vector.load %arg13[%c0_59, %c2_60, %c1_61, %c0_62] : memref<1x18x18x64xf32, #tpu.memory_space<vmem>>, vector<1x16x16x64xf32>
    %40 = vector.shape_cast %39 : vector<1x16x16x64xf32> to vector<256x64xf32>
    %c0_63 = arith.constant 0 : index
    %c448 = arith.constant 448 : index
    %41 = vector.load %arg14[%c0_63, %c448] : memref<256x576xf32, #tpu.memory_space<vmem>>, vector<256x64xf32>
    tpu.vector_store %arg14[%c0_63, %c448], %40 {strides = array<i32>} : memref<256x576xf32, #tpu.memory_space<vmem>>, vector<256x64xf32>,
    %c0_64 = arith.constant 0 : index
    %c2_65 = arith.constant 2 : index
    %c2_66 = arith.constant 2 : index
    %c0_67 = arith.constant 0 : index
    %42 = vector.load %arg13[%c0_64, %c2_65, %c2_66, %c0_67] : memref<1x18x18x64xf32, #tpu.memory_space<vmem>>, vector<1x16x16x64xf32>
    %43 = vector.shape_cast %42 : vector<1x16x16x64xf32> to vector<256x64xf32>
    %c0_68 = arith.constant 0 : index
    %c512 = arith.constant 512 : index
    %44 = vector.load %arg14[%c0_68, %c512] : memref<256x576xf32, #tpu.memory_space<vmem>>, vector<256x64xf32>
    tpu.vector_store %arg14[%c0_68, %c512], %43 {strides = array<i32>} : memref<256x576xf32, #tpu.memory_space<vmem>>, vector<256x64xf32>,
    %c0_69 = arith.constant 0 : index
    %c0_70 = arith.constant 0 : index
    %45 = vector.load %arg14[%c0_69, %c0_70] : memref<256x576xf32, #tpu.memory_space<vmem>>, vector<256x576xf32>
    %c0_71 = arith.constant 0 : index
    %c0_72 = arith.constant 0 : index
    %46 = vector.load %arg2[%c0_71, %c0_72] : memref<576x64xf32, #tpu.memory_space<vmem>>, vector<576x64xf32>
    %cst_73 = arith.constant dense<0.000000e+00> : vector<256x64xf32>
    %47 = tpu.matmul %45, %46, %cst_73 {dimension_numbers = #tpu.dot_dimension_numbers<[1], [0], [0], [1], [0, 0, 1, 1], [], []>} : vector<256x576xf32>, vector<576x64xf32>, vector<256x64xf32> -> vector<256x64xf32>
    %c0_74 = arith.constant 0 : index
    %c0_75 = arith.constant 0 : index
    %48 = vector.load %arg3[%c0_74, %c0_75] : memref<1x64xf32, #tpu.memory_space<vmem>>, vector<1x64xf32>
    %49 = vector.broadcast %48 : vector<1x64xf32> to vector<256x64xf32>
    %50 = arith.addf %47, %49 : vector<256x64xf32>
    %cst_76 = arith.constant 0.000000e+00 : f32
    %51 = vector.broadcast %cst_76 : f32 to vector<256x64xf32>
    %52 = arith.maximumf %50, %51 : vector<256x64xf32>
    %53 = vector.shape_cast %52 : vector<256x64xf32> to vector<1x16x16x64xf32>
    %54 = vector.shape_cast %53 : vector<1x16x16x64xf32> to vector<1x16x8x2x64xf32>
    %cst_77 = arith.constant dense<0xFF800000> : vector<1x16x8x64xf32>
    %55 = vector.multi_reduction <maximumf>, %54, %cst_77 [3] : vector<1x16x8x2x64xf32> to vector<1x16x8x64xf32>
    %56 = vector.shape_cast %55 : vector<1x16x8x64xf32> to vector<1x8x2x8x64xf32>
    %cst_78 = arith.constant dense<0xFF800000> : vector<1x8x8x64xf32>
    %57 = vector.multi_reduction <maximumf>, %56, %cst_78 [2] : vector<1x8x2x8x64xf32> to vector<1x8x8x64xf32>
    %cst_79 = arith.constant 0.000000e+00 : f32
    %58 = vector.broadcast %cst_79 : f32 to vector<1x10x64xf32>
    %c0_80 = arith.constant 0 : index
    %c0_81 = arith.constant 0 : index
    %c0_82 = arith.constant 0 : index
    %c0_83 = arith.constant 0 : index
    %59 = vector.load %arg15[%c0_80, %c0_81, %c0_82, %c0_83] : memref<1x10x10x64xf32, #tpu.memory_space<vmem>>, vector<1x1x10x64xf32>
    %60 = vector.shape_cast %59 : vector<1x1x10x64xf32> to vector<1x10x64xf32>
    %61 = vector.shape_cast %58 : vector<1x10x64xf32> to vector<1x1x10x64xf32>
    tpu.vector_store %arg15[%c0_80, %c0_81, %c0_82, %c0_83], %61 {strides = array<i32>} : memref<1x10x10x64xf32, #tpu.memory_space<vmem>>, vector<1x1x10x64xf32>,
    %cst_84 = arith.constant 0.000000e+00 : f32
    %62 = vector.broadcast %cst_84 : f32 to vector<1x10x64xf32>
    %c0_85 = arith.constant 0 : index
    %c9 = arith.constant 9 : index
    %c0_86 = arith.constant 0 : index
    %c0_87 = arith.constant 0 : index
    %63 = vector.load %arg15[%c0_85, %c9, %c0_86, %c0_87] : memref<1x10x10x64xf32, #tpu.memory_space<vmem>>, vector<1x1x10x64xf32>
    %64 = vector.shape_cast %63 : vector<1x1x10x64xf32> to vector<1x10x64xf32>
    %65 = vector.shape_cast %62 : vector<1x10x64xf32> to vector<1x1x10x64xf32>
    tpu.vector_store %arg15[%c0_85, %c9, %c0_86, %c0_87], %65 {strides = array<i32>} : memref<1x10x10x64xf32, #tpu.memory_space<vmem>>, vector<1x1x10x64xf32>,
    %cst_88 = arith.constant 0.000000e+00 : f32
    %66 = vector.broadcast %cst_88 : f32 to vector<1x10x64xf32>
    %c0_89 = arith.constant 0 : index
    %c0_90 = arith.constant 0 : index
    %c0_91 = arith.constant 0 : index
    %c0_92 = arith.constant 0 : index
    %67 = vector.load %arg15[%c0_89, %c0_90, %c0_91, %c0_92] : memref<1x10x10x64xf32, #tpu.memory_space<vmem>>, vector<1x10x1x64xf32>
    %68 = vector.shape_cast %67 : vector<1x10x1x64xf32> to vector<1x10x64xf32>
    %69 = vector.shape_cast %66 : vector<1x10x64xf32> to vector<1x10x1x64xf32>
    tpu.vector_store %arg15[%c0_89, %c0_90, %c0_91, %c0_92], %69 {strides = array<i32>} : memref<1x10x10x64xf32, #tpu.memory_space<vmem>>, vector<1x10x1x64xf32>,
    %cst_93 = arith.constant 0.000000e+00 : f32
    %70 = vector.broadcast %cst_93 : f32 to vector<1x10x64xf32>
    %c0_94 = arith.constant 0 : index
    %c0_95 = arith.constant 0 : index
    %c9_96 = arith.constant 9 : index
    %c0_97 = arith.constant 0 : index
    %71 = vector.load %arg15[%c0_94, %c0_95, %c9_96, %c0_97] : memref<1x10x10x64xf32, #tpu.memory_space<vmem>>, vector<1x10x1x64xf32>
    %72 = vector.shape_cast %71 : vector<1x10x1x64xf32> to vector<1x10x64xf32>
    %73 = vector.shape_cast %70 : vector<1x10x64xf32> to vector<1x10x1x64xf32>
    tpu.vector_store %arg15[%c0_94, %c0_95, %c9_96, %c0_97], %73 {strides = array<i32>} : memref<1x10x10x64xf32, #tpu.memory_space<vmem>>, vector<1x10x1x64xf32>,
    %c0_98 = arith.constant 0 : index
    %c1_99 = arith.constant 1 : index
    %c1_100 = arith.constant 1 : index
    %c0_101 = arith.constant 0 : index
    %74 = vector.load %arg15[%c0_98, %c1_99, %c1_100, %c0_101] : memref<1x10x10x64xf32, #tpu.memory_space<vmem>>, vector<1x8x8x64xf32>
    tpu.vector_store %arg15[%c0_98, %c1_99, %c1_100, %c0_101], %57 {strides = array<i32>} : memref<1x10x10x64xf32, #tpu.memory_space<vmem>>, vector<1x8x8x64xf32>,
    %c0_102 = arith.constant 0 : index
    %c0_103 = arith.constant 0 : index
    %c0_104 = arith.constant 0 : index
    %c0_105 = arith.constant 0 : index
    %75 = vector.load %arg15[%c0_102, %c0_103, %c0_104, %c0_105] : memref<1x10x10x64xf32, #tpu.memory_space<vmem>>, vector<1x8x8x64xf32>
    %76 = vector.shape_cast %75 : vector<1x8x8x64xf32> to vector<64x64xf32>
    %c0_106 = arith.constant 0 : index
    %c0_107 = arith.constant 0 : index
    %77 = vector.load %arg16[%c0_106, %c0_107] : memref<64x576xf32, #tpu.memory_space<vmem>>, vector<64x64xf32>
    tpu.vector_store %arg16[%c0_106, %c0_107], %76 {strides = array<i32>} : memref<64x576xf32, #tpu.memory_space<vmem>>, vector<64x64xf32>,
    %c0_108 = arith.constant 0 : index
    %c0_109 = arith.constant 0 : index
    %c1_110 = arith.constant 1 : index
    %c0_111 = arith.constant 0 : index
    %78 = vector.load %arg15[%c0_108, %c0_109, %c1_110, %c0_111] : memref<1x10x10x64xf32, #tpu.memory_space<vmem>>, vector<1x8x8x64xf32>
    %79 = vector.shape_cast %78 : vector<1x8x8x64xf32> to vector<64x64xf32>
    %c0_112 = arith.constant 0 : index
    %c64_113 = arith.constant 64 : index
    %80 = vector.load %arg16[%c0_112, %c64_113] : memref<64x576xf32, #tpu.memory_space<vmem>>, vector<64x64xf32>
    tpu.vector_store %arg16[%c0_112, %c64_113], %79 {strides = array<i32>} : memref<64x576xf32, #tpu.memory_space<vmem>>, vector<64x64xf32>,
    %c0_114 = arith.constant 0 : index
    %c0_115 = arith.constant 0 : index
    %c2_116 = arith.constant 2 : index
    %c0_117 = arith.constant 0 : index
    %81 = vector.load %arg15[%c0_114, %c0_115, %c2_116, %c0_117] : memref<1x10x10x64xf32, #tpu.memory_space<vmem>>, vector<1x8x8x64xf32>
    %82 = vector.shape_cast %81 : vector<1x8x8x64xf32> to vector<64x64xf32>
    %c0_118 = arith.constant 0 : index
    %c128_119 = arith.constant 128 : index
    %83 = vector.load %arg16[%c0_118, %c128_119] : memref<64x576xf32, #tpu.memory_space<vmem>>, vector<64x64xf32>
    tpu.vector_store %arg16[%c0_118, %c128_119], %82 {strides = array<i32>} : memref<64x576xf32, #tpu.memory_space<vmem>>, vector<64x64xf32>,
    %c0_120 = arith.constant 0 : index
    %c1_121 = arith.constant 1 : index
    %c0_122 = arith.constant 0 : index
    %c0_123 = arith.constant 0 : index
    %84 = vector.load %arg15[%c0_120, %c1_121, %c0_122, %c0_123] : memref<1x10x10x64xf32, #tpu.memory_space<vmem>>, vector<1x8x8x64xf32>
    %85 = vector.shape_cast %84 : vector<1x8x8x64xf32> to vector<64x64xf32>
    %c0_124 = arith.constant 0 : index
    %c192_125 = arith.constant 192 : index
    %86 = vector.load %arg16[%c0_124, %c192_125] : memref<64x576xf32, #tpu.memory_space<vmem>>, vector<64x64xf32>
    tpu.vector_store %arg16[%c0_124, %c192_125], %85 {strides = array<i32>} : memref<64x576xf32, #tpu.memory_space<vmem>>, vector<64x64xf32>,
    %c0_126 = arith.constant 0 : index
    %c1_127 = arith.constant 1 : index
    %c1_128 = arith.constant 1 : index
    %c0_129 = arith.constant 0 : index
    %87 = vector.load %arg15[%c0_126, %c1_127, %c1_128, %c0_129] : memref<1x10x10x64xf32, #tpu.memory_space<vmem>>, vector<1x8x8x64xf32>
    %88 = vector.shape_cast %87 : vector<1x8x8x64xf32> to vector<64x64xf32>
    %c0_130 = arith.constant 0 : index
    %c256_131 = arith.constant 256 : index
    %89 = vector.load %arg16[%c0_130, %c256_131] : memref<64x576xf32, #tpu.memory_space<vmem>>, vector<64x64xf32>
    tpu.vector_store %arg16[%c0_130, %c256_131], %88 {strides = array<i32>} : memref<64x576xf32, #tpu.memory_space<vmem>>, vector<64x64xf32>,
    %c0_132 = arith.constant 0 : index
    %c1_133 = arith.constant 1 : index
    %c2_134 = arith.constant 2 : index
    %c0_135 = arith.constant 0 : index
    %90 = vector.load %arg15[%c0_132, %c1_133, %c2_134, %c0_135] : memref<1x10x10x64xf32, #tpu.memory_space<vmem>>, vector<1x8x8x64xf32>
    %91 = vector.shape_cast %90 : vector<1x8x8x64xf32> to vector<64x64xf32>
    %c0_136 = arith.constant 0 : index
    %c320_137 = arith.constant 320 : index
    %92 = vector.load %arg16[%c0_136, %c320_137] : memref<64x576xf32, #tpu.memory_space<vmem>>, vector<64x64xf32>
    tpu.vector_store %arg16[%c0_136, %c320_137], %91 {strides = array<i32>} : memref<64x576xf32, #tpu.memory_space<vmem>>, vector<64x64xf32>,
    %c0_138 = arith.constant 0 : index
    %c2_139 = arith.constant 2 : index
    %c0_140 = arith.constant 0 : index
    %c0_141 = arith.constant 0 : index
    %93 = vector.load %arg15[%c0_138, %c2_139, %c0_140, %c0_141] : memref<1x10x10x64xf32, #tpu.memory_space<vmem>>, vector<1x8x8x64xf32>
    %94 = vector.shape_cast %93 : vector<1x8x8x64xf32> to vector<64x64xf32>
    %c0_142 = arith.constant 0 : index
    %c384_143 = arith.constant 384 : index
    %95 = vector.load %arg16[%c0_142, %c384_143] : memref<64x576xf32, #tpu.memory_space<vmem>>, vector<64x64xf32>
    tpu.vector_store %arg16[%c0_142, %c384_143], %94 {strides = array<i32>} : memref<64x576xf32, #tpu.memory_space<vmem>>, vector<64x64xf32>,
    %c0_144 = arith.constant 0 : index
    %c2_145 = arith.constant 2 : index
    %c1_146 = arith.constant 1 : index
    %c0_147 = arith.constant 0 : index
    %96 = vector.load %arg15[%c0_144, %c2_145, %c1_146, %c0_147] : memref<1x10x10x64xf32, #tpu.memory_space<vmem>>, vector<1x8x8x64xf32>
    %97 = vector.shape_cast %96 : vector<1x8x8x64xf32> to vector<64x64xf32>
    %c0_148 = arith.constant 0 : index
    %c448_149 = arith.constant 448 : index
    %98 = vector.load %arg16[%c0_148, %c448_149] : memref<64x576xf32, #tpu.memory_space<vmem>>, vector<64x64xf32>
    tpu.vector_store %arg16[%c0_148, %c448_149], %97 {strides = array<i32>} : memref<64x576xf32, #tpu.memory_space<vmem>>, vector<64x64xf32>,
    %c0_150 = arith.constant 0 : index
    %c2_151 = arith.constant 2 : index
    %c2_152 = arith.constant 2 : index
    %c0_153 = arith.constant 0 : index
    %99 = vector.load %arg15[%c0_150, %c2_151, %c2_152, %c0_153] : memref<1x10x10x64xf32, #tpu.memory_space<vmem>>, vector<1x8x8x64xf32>
    %100 = vector.shape_cast %99 : vector<1x8x8x64xf32> to vector<64x64xf32>
    %c0_154 = arith.constant 0 : index
    %c512_155 = arith.constant 512 : index
    %101 = vector.load %arg16[%c0_154, %c512_155] : memref<64x576xf32, #tpu.memory_space<vmem>>, vector<64x64xf32>
    tpu.vector_store %arg16[%c0_154, %c512_155], %100 {strides = array<i32>} : memref<64x576xf32, #tpu.memory_space<vmem>>, vector<64x64xf32>,
    %c0_156 = arith.constant 0 : index
    %c0_157 = arith.constant 0 : index
    %102 = vector.load %arg16[%c0_156, %c0_157] : memref<64x576xf32, #tpu.memory_space<vmem>>, vector<64x576xf32>
    %c0_158 = arith.constant 0 : index
    %c0_159 = arith.constant 0 : index
    %103 = vector.load %arg4[%c0_158, %c0_159] : memref<576x128xf32, #tpu.memory_space<vmem>>, vector<576x128xf32>
    %cst_160 = arith.constant dense<0.000000e+00> : vector<64x128xf32>
    %104 = tpu.matmul %102, %103, %cst_160 {dimension_numbers = #tpu.dot_dimension_numbers<[1], [0], [0], [1], [0, 0, 1, 1], [], []>} : vector<64x576xf32>, vector<576x128xf32>, vector<64x128xf32> -> vector<64x128xf32>
    %c0_161 = arith.constant 0 : index
    %c0_162 = arith.constant 0 : index
    %105 = vector.load %arg5[%c0_161, %c0_162] : memref<1x128xf32, #tpu.memory_space<vmem>>, vector<1x128xf32>
    %106 = vector.broadcast %105 : vector<1x128xf32> to vector<64x128xf32>
    %107 = arith.addf %104, %106 : vector<64x128xf32>
    %cst_163 = arith.constant 0.000000e+00 : f32
    %108 = vector.broadcast %cst_163 : f32 to vector<64x128xf32>
    %109 = arith.maximumf %107, %108 : vector<64x128xf32>
    %110 = vector.shape_cast %109 : vector<64x128xf32> to vector<1x8x8x128xf32>
    %111 = vector.shape_cast %110 : vector<1x8x8x128xf32> to vector<1x8x4x2x128xf32>
    %cst_164 = arith.constant dense<0xFF800000> : vector<1x8x4x128xf32>
    %112 = vector.multi_reduction <maximumf>, %111, %cst_164 [3] : vector<1x8x4x2x128xf32> to vector<1x8x4x128xf32>
    %113 = vector.shape_cast %112 : vector<1x8x4x128xf32> to vector<1x4x2x4x128xf32>
    %cst_165 = arith.constant dense<0xFF800000> : vector<1x4x4x128xf32>
    %114 = vector.multi_reduction <maximumf>, %113, %cst_165 [2] : vector<1x4x2x4x128xf32> to vector<1x4x4x128xf32>
    %cst_166 = arith.constant 0.000000e+00 : f32
    %115 = vector.broadcast %cst_166 : f32 to vector<1x6x128xf32>
    %c0_167 = arith.constant 0 : index
    %c0_168 = arith.constant 0 : index
    %c0_169 = arith.constant 0 : index
    %c0_170 = arith.constant 0 : index
    %116 = vector.load %arg17[%c0_167, %c0_168, %c0_169, %c0_170] : memref<1x6x6x128xf32, #tpu.memory_space<vmem>>, vector<1x1x6x128xf32>
    %117 = vector.shape_cast %116 : vector<1x1x6x128xf32> to vector<1x6x128xf32>
    %118 = vector.shape_cast %115 : vector<1x6x128xf32> to vector<1x1x6x128xf32>
    tpu.vector_store %arg17[%c0_167, %c0_168, %c0_169, %c0_170], %118 {strides = array<i32>} : memref<1x6x6x128xf32, #tpu.memory_space<vmem>>, vector<1x1x6x128xf32>,
    %cst_171 = arith.constant 0.000000e+00 : f32
    %119 = vector.broadcast %cst_171 : f32 to vector<1x6x128xf32>
    %c0_172 = arith.constant 0 : index
    %c5 = arith.constant 5 : index
    %c0_173 = arith.constant 0 : index
    %c0_174 = arith.constant 0 : index
    %120 = vector.load %arg17[%c0_172, %c5, %c0_173, %c0_174] : memref<1x6x6x128xf32, #tpu.memory_space<vmem>>, vector<1x1x6x128xf32>
    %121 = vector.shape_cast %120 : vector<1x1x6x128xf32> to vector<1x6x128xf32>
    %122 = vector.shape_cast %119 : vector<1x6x128xf32> to vector<1x1x6x128xf32>
    tpu.vector_store %arg17[%c0_172, %c5, %c0_173, %c0_174], %122 {strides = array<i32>} : memref<1x6x6x128xf32, #tpu.memory_space<vmem>>, vector<1x1x6x128xf32>,
    %cst_175 = arith.constant 0.000000e+00 : f32
    %123 = vector.broadcast %cst_175 : f32 to vector<1x6x128xf32>
    %c0_176 = arith.constant 0 : index
    %c0_177 = arith.constant 0 : index
    %c0_178 = arith.constant 0 : index
    %c0_179 = arith.constant 0 : index
    %124 = vector.load %arg17[%c0_176, %c0_177, %c0_178, %c0_179] : memref<1x6x6x128xf32, #tpu.memory_space<vmem>>, vector<1x6x1x128xf32>
    %125 = vector.shape_cast %124 : vector<1x6x1x128xf32> to vector<1x6x128xf32>
    %126 = vector.shape_cast %123 : vector<1x6x128xf32> to vector<1x6x1x128xf32>
    tpu.vector_store %arg17[%c0_176, %c0_177, %c0_178, %c0_179], %126 {strides = array<i32>} : memref<1x6x6x128xf32, #tpu.memory_space<vmem>>, vector<1x6x1x128xf32>,
    %cst_180 = arith.constant 0.000000e+00 : f32
    %127 = vector.broadcast %cst_180 : f32 to vector<1x6x128xf32>
    %c0_181 = arith.constant 0 : index
    %c0_182 = arith.constant 0 : index
    %c5_183 = arith.constant 5 : index
    %c0_184 = arith.constant 0 : index
    %128 = vector.load %arg17[%c0_181, %c0_182, %c5_183, %c0_184] : memref<1x6x6x128xf32, #tpu.memory_space<vmem>>, vector<1x6x1x128xf32>
    %129 = vector.shape_cast %128 : vector<1x6x1x128xf32> to vector<1x6x128xf32>
    %130 = vector.shape_cast %127 : vector<1x6x128xf32> to vector<1x6x1x128xf32>
    tpu.vector_store %arg17[%c0_181, %c0_182, %c5_183, %c0_184], %130 {strides = array<i32>} : memref<1x6x6x128xf32, #tpu.memory_space<vmem>>, vector<1x6x1x128xf32>,
    %c0_185 = arith.constant 0 : index
    %c1_186 = arith.constant 1 : index
    %c1_187 = arith.constant 1 : index
    %c0_188 = arith.constant 0 : index
    %131 = vector.load %arg17[%c0_185, %c1_186, %c1_187, %c0_188] : memref<1x6x6x128xf32, #tpu.memory_space<vmem>>, vector<1x4x4x128xf32>
    tpu.vector_store %arg17[%c0_185, %c1_186, %c1_187, %c0_188], %114 {strides = array<i32>} : memref<1x6x6x128xf32, #tpu.memory_space<vmem>>, vector<1x4x4x128xf32>,
    %c0_189 = arith.constant 0 : index
    %c0_190 = arith.constant 0 : index
    %c0_191 = arith.constant 0 : index
    %c0_192 = arith.constant 0 : index
    %132 = vector.load %arg17[%c0_189, %c0_190, %c0_191, %c0_192] : memref<1x6x6x128xf32, #tpu.memory_space<vmem>>, vector<1x4x4x128xf32>
    %133 = vector.shape_cast %132 : vector<1x4x4x128xf32> to vector<16x128xf32>
    %c0_193 = arith.constant 0 : index
    %c0_194 = arith.constant 0 : index
    %134 = vector.load %arg18[%c0_193, %c0_194] : memref<16x1152xf32, #tpu.memory_space<vmem>>, vector<16x128xf32>
    tpu.vector_store %arg18[%c0_193, %c0_194], %133 {strides = array<i32>} : memref<16x1152xf32, #tpu.memory_space<vmem>>, vector<16x128xf32>,
    %c0_195 = arith.constant 0 : index
    %c0_196 = arith.constant 0 : index
    %c1_197 = arith.constant 1 : index
    %c0_198 = arith.constant 0 : index
    %135 = vector.load %arg17[%c0_195, %c0_196, %c1_197, %c0_198] : memref<1x6x6x128xf32, #tpu.memory_space<vmem>>, vector<1x4x4x128xf32>
    %136 = vector.shape_cast %135 : vector<1x4x4x128xf32> to vector<16x128xf32>
    %c0_199 = arith.constant 0 : index
    %c128_200 = arith.constant 128 : index
    %137 = vector.load %arg18[%c0_199, %c128_200] : memref<16x1152xf32, #tpu.memory_space<vmem>>, vector<16x128xf32>
    tpu.vector_store %arg18[%c0_199, %c128_200], %136 {strides = array<i32>} : memref<16x1152xf32, #tpu.memory_space<vmem>>, vector<16x128xf32>,
    %c0_201 = arith.constant 0 : index
    %c0_202 = arith.constant 0 : index
    %c2_203 = arith.constant 2 : index
    %c0_204 = arith.constant 0 : index
    %138 = vector.load %arg17[%c0_201, %c0_202, %c2_203, %c0_204] : memref<1x6x6x128xf32, #tpu.memory_space<vmem>>, vector<1x4x4x128xf32>
    %139 = vector.shape_cast %138 : vector<1x4x4x128xf32> to vector<16x128xf32>
    %c0_205 = arith.constant 0 : index
    %c256_206 = arith.constant 256 : index
    %140 = vector.load %arg18[%c0_205, %c256_206] : memref<16x1152xf32, #tpu.memory_space<vmem>>, vector<16x128xf32>
    tpu.vector_store %arg18[%c0_205, %c256_206], %139 {strides = array<i32>} : memref<16x1152xf32, #tpu.memory_space<vmem>>, vector<16x128xf32>,
    %c0_207 = arith.constant 0 : index
    %c1_208 = arith.constant 1 : index
    %c0_209 = arith.constant 0 : index
    %c0_210 = arith.constant 0 : index
    %141 = vector.load %arg17[%c0_207, %c1_208, %c0_209, %c0_210] : memref<1x6x6x128xf32, #tpu.memory_space<vmem>>, vector<1x4x4x128xf32>
    %142 = vector.shape_cast %141 : vector<1x4x4x128xf32> to vector<16x128xf32>
    %c0_211 = arith.constant 0 : index
    %c384_212 = arith.constant 384 : index
    %143 = vector.load %arg18[%c0_211, %c384_212] : memref<16x1152xf32, #tpu.memory_space<vmem>>, vector<16x128xf32>
    tpu.vector_store %arg18[%c0_211, %c384_212], %142 {strides = array<i32>} : memref<16x1152xf32, #tpu.memory_space<vmem>>, vector<16x128xf32>,
    %c0_213 = arith.constant 0 : index
    %c1_214 = arith.constant 1 : index
    %c1_215 = arith.constant 1 : index
    %c0_216 = arith.constant 0 : index
    %144 = vector.load %arg17[%c0_213, %c1_214, %c1_215, %c0_216] : memref<1x6x6x128xf32, #tpu.memory_space<vmem>>, vector<1x4x4x128xf32>
    %145 = vector.shape_cast %144 : vector<1x4x4x128xf32> to vector<16x128xf32>
    %c0_217 = arith.constant 0 : index
    %c512_218 = arith.constant 512 : index
    %146 = vector.load %arg18[%c0_217, %c512_218] : memref<16x1152xf32, #tpu.memory_space<vmem>>, vector<16x128xf32>
    tpu.vector_store %arg18[%c0_217, %c512_218], %145 {strides = array<i32>} : memref<16x1152xf32, #tpu.memory_space<vmem>>, vector<16x128xf32>,
    %c0_219 = arith.constant 0 : index
    %c1_220 = arith.constant 1 : index
    %c2_221 = arith.constant 2 : index
    %c0_222 = arith.constant 0 : index
    %147 = vector.load %arg17[%c0_219, %c1_220, %c2_221, %c0_222] : memref<1x6x6x128xf32, #tpu.memory_space<vmem>>, vector<1x4x4x128xf32>
    %148 = vector.shape_cast %147 : vector<1x4x4x128xf32> to vector<16x128xf32>
    %c0_223 = arith.constant 0 : index
    %c640 = arith.constant 640 : index
    %149 = vector.load %arg18[%c0_223, %c640] : memref<16x1152xf32, #tpu.memory_space<vmem>>, vector<16x128xf32>
    tpu.vector_store %arg18[%c0_223, %c640], %148 {strides = array<i32>} : memref<16x1152xf32, #tpu.memory_space<vmem>>, vector<16x128xf32>,
    %c0_224 = arith.constant 0 : index
    %c2_225 = arith.constant 2 : index
    %c0_226 = arith.constant 0 : index
    %c0_227 = arith.constant 0 : index
    %150 = vector.load %arg17[%c0_224, %c2_225, %c0_226, %c0_227] : memref<1x6x6x128xf32, #tpu.memory_space<vmem>>, vector<1x4x4x128xf32>
    %151 = vector.shape_cast %150 : vector<1x4x4x128xf32> to vector<16x128xf32>
    %c0_228 = arith.constant 0 : index
    %c768 = arith.constant 768 : index
    %152 = vector.load %arg18[%c0_228, %c768] : memref<16x1152xf32, #tpu.memory_space<vmem>>, vector<16x128xf32>
    tpu.vector_store %arg18[%c0_228, %c768], %151 {strides = array<i32>} : memref<16x1152xf32, #tpu.memory_space<vmem>>, vector<16x128xf32>,
    %c0_229 = arith.constant 0 : index
    %c2_230 = arith.constant 2 : index
    %c1_231 = arith.constant 1 : index
    %c0_232 = arith.constant 0 : index
    %153 = vector.load %arg17[%c0_229, %c2_230, %c1_231, %c0_232] : memref<1x6x6x128xf32, #tpu.memory_space<vmem>>, vector<1x4x4x128xf32>
    %154 = vector.shape_cast %153 : vector<1x4x4x128xf32> to vector<16x128xf32>
    %c0_233 = arith.constant 0 : index
    %c896 = arith.constant 896 : index
    %155 = vector.load %arg18[%c0_233, %c896] : memref<16x1152xf32, #tpu.memory_space<vmem>>, vector<16x128xf32>
    tpu.vector_store %arg18[%c0_233, %c896], %154 {strides = array<i32>} : memref<16x1152xf32, #tpu.memory_space<vmem>>, vector<16x128xf32>,
    %c0_234 = arith.constant 0 : index
    %c2_235 = arith.constant 2 : index
    %c2_236 = arith.constant 2 : index
    %c0_237 = arith.constant 0 : index
    %156 = vector.load %arg17[%c0_234, %c2_235, %c2_236, %c0_237] : memref<1x6x6x128xf32, #tpu.memory_space<vmem>>, vector<1x4x4x128xf32>
    %157 = vector.shape_cast %156 : vector<1x4x4x128xf32> to vector<16x128xf32>
    %c0_238 = arith.constant 0 : index
    %c1024 = arith.constant 1024 : index
    %158 = vector.load %arg18[%c0_238, %c1024] : memref<16x1152xf32, #tpu.memory_space<vmem>>, vector<16x128xf32>
    tpu.vector_store %arg18[%c0_238, %c1024], %157 {strides = array<i32>} : memref<16x1152xf32, #tpu.memory_space<vmem>>, vector<16x128xf32>,
    %c0_239 = arith.constant 0 : index
    %c0_240 = arith.constant 0 : index
    %159 = vector.load %arg18[%c0_239, %c0_240] : memref<16x1152xf32, #tpu.memory_space<vmem>>, vector<16x1152xf32>
    %c0_241 = arith.constant 0 : index
    %c0_242 = arith.constant 0 : index
    %160 = vector.load %arg6[%c0_241, %c0_242] : memref<1152x128xf32, #tpu.memory_space<vmem>>, vector<1152x128xf32>
    %cst_243 = arith.constant dense<0.000000e+00> : vector<16x128xf32>
    %161 = tpu.matmul %159, %160, %cst_243 {dimension_numbers = #tpu.dot_dimension_numbers<[1], [0], [0], [1], [0, 0, 1, 1], [], []>} : vector<16x1152xf32>, vector<1152x128xf32>, vector<16x128xf32> -> vector<16x128xf32>
    %c0_244 = arith.constant 0 : index
    %c0_245 = arith.constant 0 : index
    %162 = vector.load %arg7[%c0_244, %c0_245] : memref<1x128xf32, #tpu.memory_space<vmem>>, vector<1x128xf32>
    %163 = vector.broadcast %162 : vector<1x128xf32> to vector<16x128xf32>
    %164 = arith.addf %161, %163 : vector<16x128xf32>
    %cst_246 = arith.constant 0.000000e+00 : f32
    %165 = vector.broadcast %cst_246 : f32 to vector<16x128xf32>
    %166 = arith.maximumf %164, %165 : vector<16x128xf32>
    %c0_247 = arith.constant 0 : index
    %c0_248 = arith.constant 0 : index
    %167 = vector.load %arg8[%c0_247, %c0_248] : memref<128x256xf32, #tpu.memory_space<vmem>>, vector<128x256xf32>
    %cst_249 = arith.constant dense<0.000000e+00> : vector<16x256xf32>
    %168 = tpu.matmul %166, %167, %cst_249 {dimension_numbers = #tpu.dot_dimension_numbers<[1], [0], [0], [1], [0, 0, 1, 1], [], []>} : vector<16x128xf32>, vector<128x256xf32>, vector<16x256xf32> -> vector<16x256xf32>
    %c0_250 = arith.constant 0 : index
    %c0_251 = arith.constant 0 : index
    %169 = vector.load %arg9[%c0_250, %c0_251] : memref<1x256xf32, #tpu.memory_space<vmem>>, vector<1x256xf32>
    %170 = vector.broadcast %169 : vector<1x256xf32> to vector<16x256xf32>
    %171 = arith.addf %168, %170 : vector<16x256xf32>
    %cst_252 = arith.constant 0.000000e+00 : f32
    %172 = vector.broadcast %cst_252 : f32 to vector<16x256xf32>
    %173 = arith.maximumf %171, %172 : vector<16x256xf32>
    %c0_253 = arith.constant 0 : index
    %c0_254 = arith.constant 0 : index
    %174 = vector.load %arg10[%c0_253, %c0_254] : memref<256x128xf32, #tpu.memory_space<vmem>>, vector<256x128xf32>
    %cst_255 = arith.constant dense<0.000000e+00> : vector<16x128xf32>
    %175 = tpu.matmul %173, %174, %cst_255 {dimension_numbers = #tpu.dot_dimension_numbers<[1], [0], [0], [1], [0, 0, 1, 1], [], []>} : vector<16x256xf32>, vector<256x128xf32>, vector<16x128xf32> -> vector<16x128xf32>
    %c0_256 = arith.constant 0 : index
    %c0_257 = arith.constant 0 : index
    %176 = vector.load %arg11[%c0_256, %c0_257] : memref<1x128xf32, #tpu.memory_space<vmem>>, vector<1x128xf32>
    %177 = vector.broadcast %176 : vector<1x128xf32> to vector<16x128xf32>
    %178 = arith.addf %175, %177 : vector<16x128xf32>
    %cst_258 = arith.constant 0.000000e+00 : f32
    %179 = vector.broadcast %cst_258 : f32 to vector<16x128xf32>
    %180 = arith.maximumf %178, %179 : vector<16x128xf32>
    %181 = vector.shape_cast %180 : vector<16x128xf32> to vector<1x4x4x128xf32>
    %182 = vector.shape_cast %181 : vector<1x4x4x128xf32> to vector<1x4x1x4x128xf32>
    %183 = vector.shape_cast %182 : vector<1x4x1x4x128xf32> to vector<1x4x1x4x128xf32>
    %184 = vector.broadcast %183 : vector<1x4x1x4x128xf32> to vector<1x4x2x4x128xf32>
    %185 = vector.shape_cast %184 : vector<1x4x2x4x128xf32> to vector<1x8x4x128xf32>
    %186 = vector.shape_cast %185 : vector<1x8x4x128xf32> to vector<1x8x4x1x128xf32>
    %187 = vector.shape_cast %186 : vector<1x8x4x1x128xf32> to vector<1x8x4x1x128xf32>
    %188 = vector.broadcast %187 : vector<1x8x4x1x128xf32> to vector<1x8x4x2x128xf32>
    %189 = vector.shape_cast %188 : vector<1x8x4x2x128xf32> to vector<1x8x8x128xf32>
    %c0_259 = arith.constant 0 : index
    %c0_260 = arith.constant 0 : index
    %c0_261 = arith.constant 0 : index
    %c0_262 = arith.constant 0 : index
    %190 = vector.load %arg12[%c0_259, %c0_260, %c0_261, %c0_262] : memref<1x8x8x256xf32, #tpu.memory_space<vmem>>, vector<1x8x8x128xf32>
    tpu.vector_store %arg12[%c0_259, %c0_260, %c0_261, %c0_262], %189 {strides = array<i32>} : memref<1x8x8x256xf32, #tpu.memory_space<vmem>>, vector<1x8x8x128xf32>,
    %191 = vector.shape_cast %114 : vector<1x4x4x128xf32> to vector<1x4x1x4x128xf32>
    %192 = vector.shape_cast %191 : vector<1x4x1x4x128xf32> to vector<1x4x1x4x128xf32>
    %193 = vector.broadcast %192 : vector<1x4x1x4x128xf32> to vector<1x4x2x4x128xf32>
    %194 = vector.shape_cast %193 : vector<1x4x2x4x128xf32> to vector<1x8x4x128xf32>
    %195 = vector.shape_cast %194 : vector<1x8x4x128xf32> to vector<1x8x4x1x128xf32>
    %196 = vector.shape_cast %195 : vector<1x8x4x1x128xf32> to vector<1x8x4x1x128xf32>
    %197 = vector.broadcast %196 : vector<1x8x4x1x128xf32> to vector<1x8x4x2x128xf32>
    %198 = vector.shape_cast %197 : vector<1x8x4x2x128xf32> to vector<1x8x8x128xf32>
    %c0_263 = arith.constant 0 : index
    %c0_264 = arith.constant 0 : index
    %c0_265 = arith.constant 0 : index
    %c128_266 = arith.constant 128 : index
    %199 = vector.load %arg12[%c0_263, %c0_264, %c0_265, %c128_266] : memref<1x8x8x256xf32, #tpu.memory_space<vmem>>, vector<1x8x8x128xf32>
    tpu.vector_store %arg12[%c0_263, %c0_264, %c0_265, %c128_266], %198 {strides = array<i32>} : memref<1x8x8x256xf32, #tpu.memory_space<vmem>>, vector<1x8x8x128xf32>,
    return
  }
  func.func @transform_0(%arg0: i32) -> (i32, i32, i32, i32) {
    %c0_i32 = arith.constant 0 : i32
    %c0_i32_0 = arith.constant 0 : i32
    %c0_i32_1 = arith.constant 0 : i32
    %c0_i32_2 = arith.constant 0 : i32
    return %arg0, %c0_i32, %c0_i32_0, %c0_i32_1 : i32, i32, i32, i32
  }
  func.func @transform_1(%arg0: i32) -> (i32, i32) {
    %c0_i32 = arith.constant 0 : i32
    %c0_i32_0 = arith.constant 0 : i32
    %c0_i32_1 = arith.constant 0 : i32
    return %c0_i32, %c0_i32_0 : i32, i32
  }
  func.func @transform_2(%arg0: i32) -> (i32, i32) {
    %c0_i32 = arith.constant 0 : i32
    %c0_i32_0 = arith.constant 0 : i32
    %c0_i32_1 = arith.constant 0 : i32
    return %c0_i32, %c0_i32_0 : i32, i32
  }
  func.func @transform_3(%arg0: i32) -> (i32, i32) {
    %c0_i32 = arith.constant 0 : i32
    %c0_i32_0 = arith.constant 0 : i32
    %c0_i32_1 = arith.constant 0 : i32
    return %c0_i32, %c0_i32_0 : i32, i32
  }
  func.func @transform_4(%arg0: i32) -> (i32, i32) {
    %c0_i32 = arith.constant 0 : i32
    %c0_i32_0 = arith.constant 0 : i32
    %c0_i32_1 = arith.constant 0 : i32
    return %c0_i32, %c0_i32_0 : i32, i32
  }
  func.func @transform_5(%arg0: i32) -> (i32, i32) {
    %c0_i32 = arith.constant 0 : i32
    %c0_i32_0 = arith.constant 0 : i32
    %c0_i32_1 = arith.constant 0 : i32
    return %c0_i32, %c0_i32_0 : i32, i32
  }
  func.func @transform_6(%arg0: i32) -> (i32, i32) {
    %c0_i32 = arith.constant 0 : i32
    %c0_i32_0 = arith.constant 0 : i32
    %c0_i32_1 = arith.constant 0 : i32
    return %c0_i32, %c0_i32_0 : i32, i32
  }
  func.func @transform_7(%arg0: i32) -> (i32, i32) {
    %c0_i32 = arith.constant 0 : i32
    %c0_i32_0 = arith.constant 0 : i32
    %c0_i32_1 = arith.constant 0 : i32
    return %c0_i32, %c0_i32_0 : i32, i32
  }
  func.func @transform_8(%arg0: i32) -> (i32, i32) {
    %c0_i32 = arith.constant 0 : i32
    %c0_i32_0 = arith.constant 0 : i32
    %c0_i32_1 = arith.constant 0 : i32
    return %c0_i32, %c0_i32_0 : i32, i32
  }
  func.func @transform_9(%arg0: i32) -> (i32, i32) {
    %c0_i32 = arith.constant 0 : i32
    %c0_i32_0 = arith.constant 0 : i32
    %c0_i32_1 = arith.constant 0 : i32
    return %c0_i32, %c0_i32_0 : i32, i32
  }
  func.func @transform_10(%arg0: i32) -> (i32, i32) {
    %c0_i32 = arith.constant 0 : i32
    %c0_i32_0 = arith.constant 0 : i32
    %c0_i32_1 = arith.constant 0 : i32
    return %c0_i32, %c0_i32_0 : i32, i32
  }
  func.func @transform_11(%arg0: i32) -> (i32, i32, i32, i32) {
    %c0_i32 = arith.constant 0 : i32
    %c0_i32_0 = arith.constant 0 : i32
    %c0_i32_1 = arith.constant 0 : i32
    %c0_i32_2 = arith.constant 0 : i32
    return %arg0, %c0_i32, %c0_i32_0, %c0_i32_1 : i32, i32, i32, i32
  }
}

</mosaic_0001>

<bundles_post_ra>
// kernel: test_model_forward.1
= control target key start
LH: loop header
LB: loop body
LE: loop exit
PB: predicated region body
PF: predicated region fallthrough
CT: control target
= control target key end

     0   :  { %s11440_s0 = inlined_call_operand.hbm [shape: f32[2,16,16,64], index: 0, kind: input, shape index: {}]   ;;  %s11441_s1 = inlined_call_operand.hbm [shape: f32[576,64], index: 1, kind: input, shape index: {}]   ;;  %s11442_s2 = inlined_call_operand.vmem [shape: f32[1,64], index: 2, kind: input, shape index: {}]   ;;  %s11443_s3 = inlined_call_operand.hbm [shape: f32[576,128], index: 3, kind: input, shape index: {}]   ;;  %s11444_s4 = inlined_call_operand.vmem [shape: f32[1,128], index: 4, kind: input, shape index: {}]   ;;  %s11445_s5 = inlined_call_operand.hbm [shape: f32[1152,128], index: 5, kind: input, shape index: {}]   ;;  %s11446_s6 = inlined_call_operand.vmem [shape: f32[1,128], index: 6, kind: input, shape index: {}]   ;;  %s11447_s7 = inlined_call_operand.hbm [shape: f32[128,256], index: 7, kind: input, shape index: {}]   ;;  %s11448_s8 = inlined_call_operand.vmem [shape: f32[1,256], index: 8, kind: input, shape index: {}]   ;;  %s11449_s9 = inlined_call_operand.hbm [shape: f32[256,128], index: 9, kind: input, shape index: {}]   ;;  %s11450_s10 = inlined_call_operand.vmem [shape: f32[1,128], index: 10, kind: input, shape index: {}]   ;;  %s11451_s11 = inlined_call_operand.hbm [shape: f32[2,8,8,256], index: 11, kind: output, shape index: {}]  }
   0x1   :  { %11472 = sst [smem:[#allocation32_spill]] %s11441_s1 }
   0x2   :  { %11473 = sst [smem:[#allocation33_spill]] %s11443_s3 }
   0x3   :  { %11474 = sst [smem:[#allocation34_spill]] %s11448_s8 }
   0x4   :  { %11475 = sst [smem:[#allocation35_spill]] %s11450_s10 }
   0x5   :  { %11476 = sst [smem:[#allocation36_spill]] %s11451_s11 }
   0x6   :  { %16 = vsyncpa [#allocation9], 0 }
   0x7   :  { %18 = vsyncpa [#allocation9 + $0x1], 0 }
   0x8   :  { %19 = vsyncpa [#allocation12], 0 }
   0x9   :  { %20 = vsyncpa [#allocation15], 0 }
   0xa   :  { %21 = vsyncpa [#allocation18], 0 }
   0xb   :  { %22 = vsyncpa [#allocation10], 0 }
   0xc   :  { %24 = vsyncpa [#allocation10 + $0x1], 0  ;;  %s8814_s17 = smov 0   ;;  %s8816_s18 = smov 0  }
   0xd   :  { %s8818_s19 = smov 0   ;;  %s8820_s20 = smov 0  }
   0xe LB: > { %s8736_s21 = smov [#allocation11]   ;;  %s8835_s23 = sadd.s32 4294967295, %s8734_s20   ;;  %s8734_s20 = sphi %s8820_s20, %s11538_s20   ;;  %s8730_s19 = sphi %s8818_s19, %s11537_s19   ;;  %s8726_s18 = sphi %s8816_s18, %s11536_s18   ;;  %s8722_s17 = sphi %s8814_s17, %s11535_s17  }
   0xf   : > { %s309_s22 = sshll.u32 %s8736_s21, 4  ;;  %p7264_p0 = scmp.ge.s32.totalorder %s8734_s20, 1  ;;  %s8840_s22 = int_to_ptr.vmem [resolvable:$true] %s309_s22 }
  0x10   : > { %p11453_p1 = scmp.eq.s32.totalorder %s8835_s23, 0  ;;  %p297_p2 = scmp.lt.s32.totalorder %s8734_s20, 3 }
  0x11   : > { %s8737_s25 = smov [#allocation14]   ;;  %s8738_s28 = smov [#allocation13]  }
  0x12   : > { %p8842_p3 = pnand %p7264_p0, %p297_p2  ;;  %s341_s26 = sshll.u32 %s8737_s25, 4  ;;  %s8855_s26 = int_to_ptr.vmem [resolvable:$true] %s341_s26 }
  0x13   : > { %s325_s29 = sshll.u32 %s8738_s28, 4  ;;  %s11479_s1 = sld [smem:[#allocation32_spill]]  ;;  %s8857_s29 = int_to_ptr.vmem [resolvable:$true] %s325_s29 }
  0x14   : > { %s11477_s24 = scalar_select %p8842_p3, 1, 0 }
  0x15   : > { %p8372_p5 = pneg %p8842_p3 }
  0x17   : > { %p8851_p6 = pnand %p8372_p5, %p11453_p1 }
  0x19   : > { %s8486_s13 = scalar_lea.hbm %s11479_s1, 9216  ;;  %p8867_p8 = pneg %p8851_p6 }
  0x1a   : > { %p8487_p7 = scmp.ne.s32.totalorder %s11479_s1, %s8486_s13  ;;  %p8493_p11 = scmp.lt.u32.totalorder %s8486_s13, %s11479_s1 }
  0x1c   : > { %p8489_p9 = pnand %p8867_p8, %p8487_p7 }
  0x1e   : > { %p8490_p10 = pneg %p8489_p9 }
  0x20   : > { %p8495_p12 = pnand %p8493_p11, %p8490_p10 }
  0x22   : > { %8498 = shalt.err (!%p8495_p12)
}
  0x23   : > { %s8499_s28 = scalar_lea.vmem %s8840_s22, 9216  ;;  %p8507_p5 = scmp.lt.s32.totalorder %s8840_s22, %s8840_s22 }
  0x24   : > { %p8500_p13 = scmp.ne.s32.totalorder %s8840_s22, %s8499_s28  ;;  %p8508_p4 = scmp.lt.s32.totalorder %s8499_s28, %s8499_s28 }
  0x26   : > { %p8502_p0 = pnand %p8500_p13, %p8867_p8  ;;  %p8509_p7 = por %p8508_p4, %p8507_p5 }
  0x28   : > { %p8503_p2 = pneg %p8502_p0 }
  0x2a   : > { %p8510_p9 = pnand %p8509_p7, %p8503_p2 }
  0x2c   : > { %8513 = shalt.err (!%p8510_p9)
}
  0x2d   : > { %s11455_s30 = smov 128   ;;  %s11457_s12 = smov 8  }
  0x2e   : > { %8375 = dma.hbm_to_vmem [thread:$0]  (!%p8851_p6), %s11479_s1, 9216, %s8840_s22, [#allocation12], %s11455_s30, %s11455_s30, %s11457_s12  }
  0x2f   : > { %s8514_s25 = scalar_lea.hbm %s11445_s5, 18432 }
  0x30   : > { %p8515_p4 = scmp.ne.s32.totalorder %s11445_s5, %s8514_s25  ;;  %p8521_p12 = scmp.lt.u32.totalorder %s8514_s25, %s11445_s5 }
  0x32   : > { %p8517_p10 = pnand %p8515_p4, %p8867_p8 }
  0x34   : > { %p8518_p11 = pneg %p8517_p10 }
  0x36   : > { %p8523_p13 = pnand %p8521_p12, %p8518_p11 }
  0x38   : > { %8526 = shalt.err (!%p8523_p13)
}
  0x39   : > { %s8527_s22 = scalar_lea.vmem %s8855_s26, 18432  ;;  %p8535_p7 = scmp.lt.s32.totalorder %s8855_s26, %s8855_s26 }
  0x3a   : > { %p8528_p0 = scmp.ne.s32.totalorder %s8855_s26, %s8527_s22  ;;  %p8536_p9 = scmp.lt.s32.totalorder %s8527_s22, %s8527_s22 }
  0x3c   : > { %p8530_p2 = pnand %p8528_p0, %p8867_p8  ;;  %p8537_p4 = por %p8536_p9, %p8535_p7 }
  0x3e   : > { %p8531_p5 = pneg %p8530_p2 }
  0x40   : > { %p8538_p10 = pnand %p8537_p4, %p8531_p5 }
  0x42   : > { %8541 = shalt.err (!%p8538_p10)
}
  0x43   : > { %8381 = dma.hbm_to_vmem [thread:$0]  (!%p8851_p6), %s11445_s5, 18432, %s8855_s26, [#allocation15], %s11455_s30, %s11455_s30, %s11457_s12  }
  0x44   : > { %s11481_s3 = sld [smem:[#allocation33_spill]] }
  0x4a   : > { %s8542_s14 = scalar_lea.hbm %s11481_s3, 9216 }
  0x4b   : > { %p8543_p11 = scmp.ne.s32.totalorder %s11481_s3, %s8542_s14  ;;  %p8549_p0 = scmp.lt.u32.totalorder %s8542_s14, %s11481_s3 }
  0x4d   : > { %p8545_p12 = pnand %p8543_p11, %p8867_p8 }
  0x4f   : > { %p8546_p13 = pneg %p8545_p12 }
  0x51   : > { %p8551_p2 = pnand %p8549_p0, %p8546_p13 }
  0x53   : > { %8554 = shalt.err (!%p8551_p2)
}
  0x54   : > { %s8555_s26 = scalar_lea.vmem %s8857_s29, 9216  ;;  %p8563_p4 = scmp.lt.s32.totalorder %s8857_s29, %s8857_s29 }
  0x55   : > { %p8556_p5 = scmp.ne.s32.totalorder %s8857_s29, %s8555_s26  ;;  %p8564_p10 = scmp.lt.s32.totalorder %s8555_s26, %s8555_s26 }
  0x57   : > { %p8558_p7 = pnand %p8556_p5, %p8867_p8  ;;  %p8565_p11 = por %p8564_p10, %p8563_p4 }
  0x59   : > { %p8559_p9 = pneg %p8558_p7 }
  0x5b   : > { %p8566_p12 = pnand %p8565_p11, %p8559_p9 }
  0x5d   : > { %8569 = shalt.err (!%p8566_p12)
}
  0x5e   : > { %8378 = dma.hbm_to_vmem [thread:$0]  (!%p8851_p6), %s11481_s3, 9216, %s8857_s29, [#allocation12], %s11455_s30, %s11455_s30, %s11457_s12  }
  0x5f   : > { %s8741_s10 = smov [#allocation16]   ;;  %s8570_s15 = scalar_lea.hbm %s11447_s7, 4096 }
  0x60   : > { %s357_s11 = sshll.u32 %s8741_s10, 4  ;;  %p8571_p13 = scmp.ne.s32.totalorder %s11447_s7, %s8570_s15  ;;  %s358_s11 = int_to_ptr.vmem [resolvable:$true] %s357_s11 }
  0x61   : > { %p8577_p5 = scmp.lt.u32.totalorder %s8570_s15, %s11447_s7 }
  0x62   : > { %p8573_p0 = pnand %p8571_p13, %p8867_p8 }
  0x64   : > { %p8574_p2 = pneg %p8573_p0 }
  0x66   : > { %p8579_p7 = pnand %p8577_p5, %p8574_p2 }
  0x68   : > { %8582 = shalt.err (!%p8579_p7)
}
  0x69   : > { %s8583_s29 = scalar_lea.vmem %s358_s11, 4096  ;;  %p8591_p11 = scmp.lt.s32.totalorder %s358_s11, %s358_s11 }
  0x6a   : > { %p8584_p9 = scmp.ne.s32.totalorder %s358_s11, %s8583_s29  ;;  %p8592_p12 = scmp.lt.s32.totalorder %s8583_s29, %s8583_s29 }
  0x6c   : > { %p8586_p4 = pnand %p8584_p9, %p8867_p8  ;;  %p8593_p1 = por %p8592_p12, %p8591_p11 }
  0x6e   : > { %p8587_p10 = pneg %p8586_p4 }
  0x70   : > { %p8594_p3 = pnand %p8593_p1, %p8587_p10 }
  0x72   : > { %8597 = shalt.err (!%p8594_p3)
}
  0x73   : > { %s8742_s22 = smov 256   ;;  %s8743_s8 = smov 16  }
  0x74   : > { %8384 = dma.hbm_to_vmem [thread:$0]  (!%p8851_p6), %s11447_s7, 4096, %s358_s11, [#allocation15], %s8742_s22, %s8742_s22, %s8743_s8  }
  0x75   : > { %s8744_s14 = smov [#allocation17]   ;;  %s8598_s28 = scalar_lea.hbm %s11449_s9, 4096 }
  0x76   : > { %s373_s15 = sshll.u32 %s8744_s14, 4  ;;  %p8599_p1 = scmp.ne.s32.totalorder %s11449_s9, %s8598_s28  ;;  %s374_s15 = int_to_ptr.vmem [resolvable:$true] %s373_s15 }
  0x77   : > { %p8605_p0 = scmp.lt.u32.totalorder %s8598_s28, %s11449_s9 }
  0x78   : > { %p8601_p3 = pnand %p8599_p1, %p8867_p8 }
  0x7a   : > { %p8602_p13 = pneg %p8601_p3 }
  0x7c   : > { %p8607_p2 = pnand %p8605_p0, %p8602_p13 }
  0x7e   : > { %8610 = shalt.err (!%p8607_p2)
}
  0x7f   : > { %s8611_s11 = scalar_lea.vmem %s374_s15, 4096  ;;  %p8619_p4 = scmp.lt.s32.totalorder %s374_s15, %s374_s15 }
  0x80   : > { %p8612_p5 = scmp.ne.s32.totalorder %s374_s15, %s8611_s11  ;;  %p8620_p10 = scmp.lt.s32.totalorder %s8611_s11, %s8611_s11 }
  0x82   : > { %p8614_p7 = pnand %p8612_p5, %p8867_p8  ;;  %p8621_p11 = por %p8620_p10, %p8619_p4 }
  0x84   : > { %p8615_p9 = pneg %p8614_p7 }
  0x86   : > { %p8622_p12 = pnand %p8621_p11, %p8615_p9 }
  0x88   : > { %8625 = shalt.err (!%p8622_p12)
}
  0x89   : > { %s11482_s22 = smov 8   ;;  %s11483_s8 = smov 128  }
  0x8a   : > { %8387 = dma.hbm_to_vmem [thread:$0]  (!%p8851_p6), %s11449_s9, 4096, %s374_s15, [#allocation18], %s11483_s8, %s11483_s8, %s11482_s22  }
  0x8b   : > { %s7263_s27 = sadd.s32 4294967294, %s8734_s20   ;;  %s8984_s16 = sadd.s32 1, %s8734_s20  }
  0x8c   : > { %s37_s10 = sadd.s32 1, %s8730_s19  ;;  %s34_s13 = ssub.s32 %s8734_s20, %s8984_s16 }
  0x8d   : > { %p44_p8 = scmp.ne.s32.totalorder %s8730_s19, %s8726_s18  ;;  %p35_p1 = scmp.eq.s32.totalorder %s34_s13, 0 }
  0x8e   : > { %p45_p3 = scmp.eq.s32.totalorder %s8734_s20, 0  ;;  %p50_p13 = scmp.ne.s32.totalorder %s8726_s18, %s8722_s17 }
  0x8f   : > { %p284_p0 = scmp.eq.s32.totalorder %s8835_s23, 1  ;;  %p11484_p5 = scmp.eq.s32.totalorder %s8835_s23, 0 }
  0x90   : > { %s8996_s14 = scalar_select %p35_p1, %s8730_s19, %s37_s10  }
  0x91   : > { %p46_p2 = por %p45_p3, %p44_p8  ;;  %p9000_p7 = por %p11484_p5, %p50_p13 }
  0x92   : > { %p9004_p6 = por %p284_p0, %p44_p8  ;;  %p290_p9 = scmp.eq.s32.totalorder %s7263_s27, 1 }
  0x93   : > { %p8401_p4 = scmp.lt.s32.totalorder %s8734_s20, 2  ;;  %s390_s25 = sand.u32 1, %s8730_s19  }
  0x94   : > { %s11486_s15 = scalar_select %p9004_p6, 1, 0 }
  0x95   : > { %p9010_p10 = por %p290_p9, %p50_p13  ;;  %s7271_s26 = sshll.u32 %s390_s25, 8 }
  0x96   : > { %s7331_s29 = sshll.u32 %s8734_s20, 12  ;;  %s394_s10 = scalar_lea.vmem [#allocation8], %s7271_s26 }
  0x97   : > { %s11487_s28 = scalar_select %p9010_p10, 1, 0 }
  0x98   : > { %s9018_s12 = scalar_lea.hbm %s11440_s0, %s7331_s29  ;;  %s401_s13 = sshll.u32 %s394_s10, 4  ;;  %s9024_s13 = int_to_ptr.vmem [resolvable:$true] %s401_s13 }
  0x99   : > { %p9020_p11 = pnand %p8401_p4, %p46_p2  ;;  %s9026_s1 = scalar_lea.sflag [#allocation9], %s390_s25 }
  0x9a   : > { %s8626_s3 = scalar_lea.hbm %s9018_s12, 4096  ;;  %s8631_s11 = scalar_lea.hbm %s11440_s0, 8192 }
  0x9b   : > { %p8627_p12 = scmp.ne.s32.totalorder %s9018_s12, %s8626_s3  ;;  %p8628_p8 = pneg %p9020_p11 }
  0x9c   : > { %p8632_p13 = scmp.lt.u32.totalorder %s9018_s12, %s11440_s0  ;;  %p8633_p0 = scmp.lt.u32.totalorder %s8631_s11, %s8626_s3 }
  0x9d   : > { %p8629_p1 = pnand %p8628_p8, %p8627_p12  ;;  %p8635_p5 = scmp.lt.u32.totalorder %s8626_s3, %s9018_s12 }
  0x9e   : > { %p8634_p2 = por %p8633_p0, %p8632_p13 }
  0x9f   : > { %p8630_p3 = pneg %p8629_p1 }
  0xa0   : > { %p8636_p9 = por %p8635_p5, %p8634_p2 }
  0xa2   : > { %p8637_p4 = pnand %p8636_p9, %p8630_p3 }
  0xa4   : > { %8640 = shalt.err (!%p8637_p4)
}
  0xa5   : > { %s8641_s25 = scalar_lea.vmem %s9024_s13, 4096  ;;  %s8745_s26 = smov [#allocation8]  }
  0xa6   : > { %p8642_p12 = scmp.ne.s32.totalorder %s9024_s13, %s8641_s25  ;;  %s8646_s29 = sshll.u32 %s8745_s26, 4  ;;  %s8647_s29 = int_to_ptr.vmem [resolvable:$false] %s8646_s29 }
  0xa7   : > { %s8648_s30 = scalar_lea.vmem %s8647_s29, 8192  ;;  %p8649_p6 = scmp.lt.s32.totalorder %s9024_s13, %s8647_s29 }
  0xa8   : > { %p8644_p1 = pnand %p8642_p12, %p8628_p8  ;;  %p8650_p13 = scmp.lt.s32.totalorder %s8648_s30, %s8641_s25 }
  0xaa   : > { %p8645_p10 = pneg %p8644_p1  ;;  %p8651_p0 = por %p8650_p13, %p8649_p6 }
  0xac   : > { %p8652_p2 = pnand %p8651_p0, %p8645_p10 }
  0xae   : > { %8655 = shalt.err (!%p8652_p2)
}
  0xaf   : > { %8391 = dma.hbm_to_vmem [thread:$0]  (!%p9020_p11), %s9018_s12, 4096, %s9024_s13, %s9026_s1, %s11483_s8, %s11483_s8, %s11482_s22  }
  0xb0   : > { %p11489_p8 = scmp.ne.s32.totalorder %s11477_s24, 0 }
  0xb2   : > { %413 = sbr.rel (%p11489_p8) target bundleno = 2340 (0x924), region = 64 }
  0xb9   : > { %s9060_s3 = sand.u32 1, %s8726_s18  }
  0xba   : > { %s7275_s11 = sshll.u32 %s9060_s3, 8  ;;  %s416_s10 = scalar_lea.sflag [#allocation9], %s9060_s3 }
  0xbb   : > { %s9064_s25 = scalar_lea.vmem [#allocation8], %s7275_s11 }
  0xbc   : > { %8701 = dma.done.wait (%p9000_p7), %s416_s10, 4096  }
  0xbd   : > { %8703 = vsyncadd (%p9000_p7), %s416_s10, 4294963200  ;;  %p11490_p6 = scmp.eq.s32.totalorder %s8835_s23, 0 }
  0xbf   : > { %8705 = dma.done.wait (%p11490_p6), [#allocation12], 18432   ;;  %p11491_p10 = pmov %p11490_p6 }
  0xc0   : > { %p11492_p11 = pmov %p11490_p6 }
  0xc1   : > { %8707 = vsyncadd (%p11491_p10), [#allocation12], 4294948864 }
  0xc2   : > { %8709 = dma.done.wait (%p11492_p11), [#allocation15], 22528   ;;  %p11493_p3 = pmov %p11490_p6 }
  0xc4   : > { %8711 = vsyncadd (%p11493_p3), [#allocation15], 4294944768  ;;  %p11494_p5 = pmov %p11493_p3 }
  0xc5   : > { %p11495_p9 = pmov %p11493_p3 }
  0xc6   : > { %8713 = dma.done.wait (%p11494_p5), [#allocation18], 4096  }
  0xc7   : > { %8715 = vsyncadd (%p11495_p9), [#allocation18], 4294963200  ;;  %vm510_vm0 = vcmask 523264   ;;  %vm519_vm1 = vcmask 516096   ;;  %v11460_v0 = vmov 0.0   ;;  %vm513_vm2 = vcmask 517120  }
  0xc8   : > { %521 = vst.msk [vmem:[#allocation2 + $0x18] sm:$0x1] %vm519_vm1, %v11460_v0  ;;  %522 = vst.msk [vmem:[#allocation2 + $0x30] sm:$0x1] %vm519_vm1, %v11460_v0  ;;  %v8747_v1 = vmov 0.0|0.0   ;;  %v478_v2 = vld [vmem:[%s9064_s25] sm:$0xff] }
  0xc9   : > { %511 = vst.msk [vmem:[#allocation2] sm:$0xff] %vm510_vm0, %v11460_v0  ;;  %512 = vst.msk [vmem:[#allocation2 + $0x8] sm:$0xff] %vm510_vm0, %v11460_v0  ;;  %7836 = vmatprep.subr.bf16.mxu0 %v8747_v1  ;;  %v479_v3 = vld [vmem:[%s9064_s25 + $0x8] sm:$0xff]  ;;  %v480_v4 = vld [vmem:[%s9064_s25 + $0x10] sm:$0xff]  ;;  %s8748_s1 = smov 64   ;;  %vm813_vm3 = vcmask 1048064  }
  0xca   : > { %516 = vst.msk [vmem:[#allocation2 + $0x198] sm:$0xff] %vm510_vm0, %v11460_v0  ;;  %517 = vst.msk [vmem:[#allocation2 + $0x1a0] sm:$0xff] %vm510_vm0, %v11460_v0  ;;  %v481_v5 = vld [vmem:[%s9064_s25 + $0x18] sm:$0xff]  ;;  %v482_v6 = vld [vmem:[%s9064_s25 + $0x20] sm:$0xff]  ;;  %vm4602_vm4 = vcmask 1041409   ;;  %vm4604_vm5 = vcmask 1042434  }
  0xcb   : > { %523 = vst.msk [vmem:[#allocation2 + $0x48] sm:$0x1] %vm519_vm1, %v11460_v0  ;;  %524 = vst.msk [vmem:[#allocation2 + $0x60] sm:$0x1] %vm519_vm1, %v11460_v0  ;;  %v483_v7 = vld [vmem:[%s9064_s25 + $0x28] sm:$0xff]  ;;  %v484_v8 = vld [vmem:[%s9064_s25 + $0x30] sm:$0xff] }
  0xcc   : > { %525 = vst.msk [vmem:[#allocation2 + $0x78] sm:$0x1] %vm519_vm1, %v11460_v0  ;;  %526 = vst.msk [vmem:[#allocation2 + $0x90] sm:$0x1] %vm519_vm1, %v11460_v0  ;;  %v485_v9 = vld [vmem:[%s9064_s25 + $0x38] sm:$0xff]  ;;  %v486_v10 = vld [vmem:[%s9064_s25 + $0x40] sm:$0xff] }
  0xcd   : > { %527 = vst.msk [vmem:[#allocation2 + $0xa8] sm:$0x1] %vm519_vm1, %v11460_v0  ;;  %528 = vst.msk [vmem:[#allocation2 + $0xc0] sm:$0x1] %vm519_vm1, %v11460_v0  ;;  %v487_v11 = vld [vmem:[%s9064_s25 + $0x48] sm:$0xff]  ;;  %v488_v12 = vld [vmem:[%s9064_s25 + $0x50] sm:$0xff] }
  0xce   : > { %529 = vst.msk [vmem:[#allocation2 + $0xd8] sm:$0x1] %vm519_vm1, %v11460_v0  ;;  %530 = vst.msk [vmem:[#allocation2 + $0xf0] sm:$0x1] %vm519_vm1, %v11460_v0  ;;  %v489_v13 = vld [vmem:[%s9064_s25 + $0x58] sm:$0xff]  ;;  %v490_v14 = vld [vmem:[%s9064_s25 + $0x60] sm:$0xff] }
  0xcf   : > { %531 = vst.msk [vmem:[#allocation2 + $0x108] sm:$0x1] %vm519_vm1, %v11460_v0  ;;  %532 = vst.msk [vmem:[#allocation2 + $0x120] sm:$0x1] %vm519_vm1, %v11460_v0  ;;  %v491_v15 = vld [vmem:[%s9064_s25 + $0x68] sm:$0xff]  ;;  %v492_v16 = vld [vmem:[%s9064_s25 + $0x70] sm:$0xff] }
  0xd0   : > { %533 = vst.msk [vmem:[#allocation2 + $0x138] sm:$0x1] %vm519_vm1, %v11460_v0  ;;  %534 = vst.msk [vmem:[#allocation2 + $0x150] sm:$0x1] %vm519_vm1, %v11460_v0  ;;  %v1839_v17 = vld [vmem:[#allocation11] sm:$0xff]  ;;  %v1840_v18 = vld [vmem:[#allocation11 + $0x8] sm:$0xff] }
  0xd1   : > { %535 = vst.msk [vmem:[#allocation2 + $0x168] sm:$0x1] %vm519_vm1, %v11460_v0  ;;  %536 = vst.msk [vmem:[#allocation2 + $0x180] sm:$0x1] %vm519_vm1, %v11460_v0  ;;  %v493_v19 = vld [vmem:[%s9064_s25 + $0x78] sm:$0xff]  ;;  %v7837_v20 = vpack.c.bf16 %v1840_v18, %v1839_v17  ;;  %v1841_v21 = vld [vmem:[#allocation11 + $0x10] sm:$0xff] }
  0xd2   : > { %539 = vst.msk [vmem:[#allocation2 + $0x29] sm:$0x1] %vm519_vm1, %v11460_v0  ;;  %540 = vst.msk [vmem:[#allocation2 + $0x41] sm:$0x1] %vm519_vm1, %v11460_v0  ;;  %v1842_v22 = vld [vmem:[#allocation11 + $0x18] sm:$0xff]  ;;  %v494_v23 = vld [vmem:[%s9064_s25 + $0x80] sm:$0xff] }
  0xd3   : > { %541 = vst.msk [vmem:[#allocation2 + $0x59] sm:$0x1] %vm519_vm1, %v11460_v0  ;;  %542 = vst.msk [vmem:[#allocation2 + $0x71] sm:$0x1] %vm519_vm1, %v11460_v0  ;;  %v653_v27 = vld [vmem:[#allocation2 + $0x1] sm:$0xff]  ;;  %7838 = vmatpush1.bf16.msra.mxu0 %v7837_v20  ;;  %v7840_v32 = vpack.c.bf16 %v1842_v22, %v1841_v21  ;;  %v1845_v50 = vld [vmem:[#allocation11 + $0x30] sm:$0xff] }
  0xd4   : > { %543 = vst.msk [vmem:[#allocation2 + $0x89] sm:$0x1] %vm519_vm1, %v11460_v0  ;;  %544 = vst.msk [vmem:[#allocation2 + $0xa1] sm:$0x1] %vm519_vm1, %v11460_v0  ;;  %7839 = vmatprep.subr.bf16.mxu0 %v8747_v1  ;;  %v1843_v43 = vld [vmem:[#allocation11 + $0x20] sm:$0xff]  ;;  %v1844_v47 = vld [vmem:[#allocation11 + $0x28] sm:$0xff] }
  0xd5   : > { %545 = vst.msk [vmem:[#allocation2 + $0xb9] sm:$0x1] %vm519_vm1, %v11460_v0  ;;  %546 = vst.msk [vmem:[#allocation2 + $0xd1] sm:$0x1] %vm519_vm1, %v11460_v0  ;;  %v7843_v48 = vpack.c.bf16 %v1844_v47, %v1843_v43  ;;  %v495_v49 = vld [vmem:[%s9064_s25 + $0x88] sm:$0xff]  ;;  %v1846_v51 = vld [vmem:[#allocation11 + $0x38] sm:$0xff] }
  0xd6   : > { %547 = vst.msk [vmem:[#allocation2 + $0xe9] sm:$0x1] %vm519_vm1, %v11460_v0  ;;  %548 = vst.msk [vmem:[#allocation2 + $0x101] sm:$0x1] %vm519_vm1, %v11460_v0  ;;  %v496_v52 = vld [vmem:[%s9064_s25 + $0x90] sm:$0xff]  ;;  %v497_v53 = vld [vmem:[%s9064_s25 + $0x98] sm:$0xff]  ;;  %v7846_v55 = vpack.c.bf16 %v1846_v51, %v1845_v50 }
  0xd7   : > { %549 = vst.msk [vmem:[#allocation2 + $0x119] sm:$0x1] %vm519_vm1, %v11460_v0  ;;  %550 = vst.msk [vmem:[#allocation2 + $0x131] sm:$0x1] %vm519_vm1, %v11460_v0  ;;  %7841 = vmatpush1.bf16.msra.mxu0 %v7840_v32  ;;  %v498_v56 = vld [vmem:[%s9064_s25 + $0xa0] sm:$0xff]  ;;  %v1848_v58 = vld [vmem:[#allocation11 + $0x48] sm:$0xff] }
  0xd8   : > { %551 = vst.msk [vmem:[#allocation2 + $0x149] sm:$0x1] %vm519_vm1, %v11460_v0  ;;  %552 = vst.msk [vmem:[#allocation2 + $0x161] sm:$0x1] %vm519_vm1, %v11460_v0  ;;  %7842 = vmatprep.subr.bf16.mxu0 %v8747_v1  ;;  %v1847_v57 = vld [vmem:[#allocation11 + $0x40] sm:$0xff]  ;;  %v499_v59 = vld [vmem:[%s9064_s25 + $0xa8] sm:$0xff] }
  0xd9   : > { %553 = vst.msk [vmem:[#allocation2 + $0x179] sm:$0x1] %vm519_vm1, %v11460_v0  ;;  %554 = vst.msk [vmem:[#allocation2 + $0x191] sm:$0x1] %vm519_vm1, %v11460_v0  ;;  %v500_v60 = vld [vmem:[%s9064_s25 + $0xb0] sm:$0xff]  ;;  %v501_v61 = vld [vmem:[%s9064_s25 + $0xb8] sm:$0xff]  ;;  %v7849_v63 = vpack.c.bf16 %v1848_v58, %v1847_v57 }
  0xda   : > { %4513 = vst.msk [vmem:[#allocation4] sm:$0xff] %vm510_vm0, %v11460_v0  ;;  %4516 = vst.msk [vmem:[#allocation4 + $0x90] sm:$0xff] %vm510_vm0, %v11460_v0  ;;  %v1853_v17 = vld [vmem:[#allocation11 + $0x70] sm:$0xff]  ;;  %v1854_v18 = vld [vmem:[#allocation11 + $0x78] sm:$0xff]  ;;  %vm4606_vm6 = vcmask 1043459   ;;  %vm4608_vm7 = vcmask 1044484  }
  0xdb   : > { %4519 = vst.msk [vmem:[#allocation4 + $0x10] sm:$0x1] %vm519_vm1, %v11460_v0  ;;  %4520 = vst.msk [vmem:[#allocation4 + $0x20] sm:$0x1] %vm519_vm1, %v11460_v0  ;;  %7844 = vmatpush1.bf16.msra.mxu0 %v7843_v48  ;;  %v846_v20 = vld [vmem:[#allocation2 + $0x2] sm:$0xff]  ;;  %v509_v32 = vld [vmem:[%s9064_s25 + $0xf8] sm:$0xff] }
  0xdc   : > { %4521 = vst.msk [vmem:[#allocation4 + $0x30] sm:$0x1] %vm519_vm1, %v11460_v0  ;;  %4522 = vst.msk [vmem:[#allocation4 + $0x40] sm:$0x1] %vm519_vm1, %v11460_v0  ;;  %7845 = vmatprep.subr.bf16.mxu0 %v8747_v1  ;;  %v506_v21 = vld [vmem:[%s9064_s25 + $0xe0] sm:$0xff]  ;;  %v1857_v43 = vld [vmem:[#allocation11 + $0x90] sm:$0xff] }
  0xdd   : > { %4523 = vst.msk [vmem:[#allocation4 + $0x50] sm:$0x1] %vm519_vm1, %v11460_v0  ;;  %4524 = vst.msk [vmem:[#allocation4 + $0x60] sm:$0x1] %vm519_vm1, %v11460_v0  ;;  %v1859_v51 = vld [vmem:[#allocation11 + $0xa0] sm:$0xff]  ;;  %vm4610_vm8 = vcmask 1045509  }
  0xde   : > { %4525 = vst.msk [vmem:[#allocation4 + $0x70] sm:$0x1] %vm519_vm1, %v11460_v0  ;;  %4526 = vst.msk [vmem:[#allocation4 + $0x80] sm:$0x1] %vm519_vm1, %v11460_v0  ;;  %vm4612_vm9 = vcmask 1046534   ;;  %vm4614_vm10 = vcmask 1047559  }
  0xdf   : > { %4529 = vst.msk [vmem:[#allocation4 + $0x19] sm:$0x1] %vm519_vm1, %v11460_v0  ;;  %4530 = vst.msk [vmem:[#allocation4 + $0x29] sm:$0x1] %vm519_vm1, %v11460_v0  ;;  %7847 = vmatpush1.bf16.msra.mxu0 %v7846_v55  ;;  %vm5597_vm11 = vcmask 1041408   ;;  %s7281_s29 = sshll.u32 %s9060_s3, 7 }
  0xe0   : > { %4531 = vst.msk [vmem:[#allocation4 + $0x39] sm:$0x1] %vm519_vm1, %v11460_v0  ;;  %4532 = vst.msk [vmem:[#allocation4 + $0x49] sm:$0x1] %vm519_vm1, %v11460_v0  ;;  %7848 = vmatprep.subr.bf16.mxu0 %v8747_v1  ;;  %s11202_s30 = scalar_lea.vmem [#allocation19], %s7281_s29  ;;  %s11529_s24 = sld [smem:[#allocation34_spill]] }
  0xe1   : > { %4533 = vst.msk [vmem:[#allocation4 + $0x59] sm:$0x1] %vm519_vm1, %v11460_v0  ;;  %4534 = vst.msk [vmem:[#allocation4 + $0x69] sm:$0x1] %vm519_vm1, %v11460_v0  ;;  %s11530_s21 = sld [smem:[#allocation35_spill]]  ;;  %s7332_s12 = sshll.u32 %s8835_s23, 11 }
  0xe2   : > { %4535 = vst.msk [vmem:[#allocation4 + $0x79] sm:$0x1] %vm519_vm1, %v11460_v0  ;;  %4536 = vst.msk [vmem:[#allocation4 + $0x89] sm:$0x1] %vm519_vm1, %v11460_v0  ;;  %s7142_s13 = sshll.u32 %s11202_s30, 4  ;;  %s11531_s29 = sld [smem:[#allocation36_spill]]  ;;  %s11394_s13 = int_to_ptr.vmem [resolvable:$true] %s7142_s13 }
  0xe3   : > { %5838 = vst [vmem:[#allocation6] sm:$0x3f] %v11460_v0  ;;  %5840 = vst [vmem:[#allocation6 + $0x28] sm:$0x3f] %v11460_v0  ;;  %7850 = vmatpush1.bf16.msra.mxu0 %v7849_v63  ;;  %s7129_s23 = scalar_lea.sflag [#allocation10], %s9060_s3  ;;  %s8656_s10 = scalar_lea.vmem %s11394_s13, 2048 }
  0xe4   : > { %5842 = vst [vmem:[#allocation6 + $0x8] sm:$0x1] %v11460_v0  ;;  %5843 = vst [vmem:[#allocation6 + $0x10] sm:$0x1] %v11460_v0  ;;  %7851 = vmatprep.subr.bf16.mxu0 %v8747_v1  ;;  %p8657_p7 = scmp.ne.s32.totalorder %s11394_s13, %s8656_s10  ;;  %p11532_p4 = scmp.ne.s32.totalorder %s11486_s15, 0 }
  0xe5   : > { %5844 = vst [vmem:[#allocation6 + $0x18] sm:$0x1] %v11460_v0  ;;  %5845 = vst [vmem:[#allocation6 + $0x20] sm:$0x1] %v11460_v0 }
  0xe6   : > { %5848 = vst [vmem:[#allocation6 + $0xd] sm:$0x1] %v11460_v0  ;;  %5849 = vst [vmem:[#allocation6 + $0x15] sm:$0x1] %v11460_v0  ;;  %p8658_p12 = pnand %p8657_p7, %p11532_p4 }
  0xe7   : > { %5850 = vst [vmem:[#allocation6 + $0x1d] sm:$0x1] %v11460_v0  ;;  %5851 = vst [vmem:[#allocation6 + $0x25] sm:$0x1] %v11460_v0 }
  0xe8   : > { %520 = vst.msk [vmem:[#allocation2] sm:$0x1] %vm519_vm1, %v11460_v0  ;;  %537 = vst.msk [vmem:[#allocation2 + $0x198] sm:$0x1] %vm519_vm1, %v11460_v0  ;;  %s11392_s11 = scalar_lea.hbm %s11531_s29, %s7332_s12  ;;  %p8659_p1 = pneg %p8658_p12 }
  0xe9   : > { %4518 = vst.msk [vmem:[#allocation4] sm:$0x1] %vm519_vm1, %v11460_v0  ;;  %4527 = vst.msk [vmem:[#allocation4 + $0x90] sm:$0x1] %vm519_vm1, %v11460_v0 }
  0xea   : > { %5841 = vst [vmem:[#allocation6] sm:$0x1] %v11460_v0  ;;  %5846 = vst [vmem:[#allocation6 + $0x28] sm:$0x1] %v11460_v0 }
  0xeb   : > { %5847 = vst [vmem:[#allocation6 + $0x5] sm:$0x1] %v11460_v0  ;;  %5852 = vst [vmem:[#allocation6 + $0x2d] sm:$0x1] %v11460_v0 }
  0xec   : > { %514 = vst.msk [vmem:[#allocation2 + $0x10] sm:$0x3] %vm513_vm2, %v11460_v0  ;;  %518 = vst.msk [vmem:[#allocation2 + $0x1a8] sm:$0x3] %vm513_vm2, %v11460_v0 }
  0xed   : > { %4514 = vst.msk [vmem:[#allocation4 + $0x8] sm:$0x3] %vm513_vm2, %v11460_v0  ;;  %4517 = vst.msk [vmem:[#allocation4 + $0x98] sm:$0x3] %vm513_vm2, %v11460_v0 }
  0xee   : > { %538 = vst.msk [vmem:[#allocation2 + $0x11] sm:$0x1] %vm519_vm1, %v11460_v0  ;;  %555 = vst.msk [vmem:[#allocation2 + $0x1a9] sm:$0x1] %vm519_vm1, %v11460_v0 }
  0xef   : > { %4528 = vst.msk [vmem:[#allocation4 + $0x9] sm:$0x1] %vm519_vm1, %v11460_v0  ;;  %4537 = vst.msk [vmem:[#allocation4 + $0x99] sm:$0x1] %vm519_vm1, %v11460_v0 }
  0xf0   : > { %557 = vst.msk [vmem:[#allocation2 + $0x19] sm:$0xff] %vm510_vm0, %v478_v2  ;;  %558 = vst.msk [vmem:[#allocation2 + $0x21] sm:$0xff] %vm510_vm0, %v479_v3  ;;  %v502_v2 = vld [vmem:[%s9064_s25 + $0xc0] sm:$0xff] }
  0xf1   : > { %559 = vst.msk [vmem:[#allocation2 + $0x31] sm:$0xff] %vm510_vm0, %v480_v4  ;;  %560 = vst.msk [vmem:[#allocation2 + $0x39] sm:$0xff] %vm510_vm0, %v481_v5  ;;  %v1849_v4 = vld [vmem:[#allocation11 + $0x50] sm:$0xff]  ;;  %v1850_v5 = vld [vmem:[#allocation11 + $0x58] sm:$0xff] }
  0xf2   : > { %561 = vst.msk [vmem:[#allocation2 + $0x49] sm:$0xff] %vm510_vm0, %v482_v6  ;;  %562 = vst.msk [vmem:[#allocation2 + $0x51] sm:$0xff] %vm510_vm0, %v483_v7 }
  0xf3   : > { %563 = vst.msk [vmem:[#allocation2 + $0x61] sm:$0xff] %vm510_vm0, %v484_v8  ;;  %564 = vst.msk [vmem:[#allocation2 + $0x69] sm:$0xff] %vm510_vm0, %v485_v9  ;;  %v654_v29 = vld [vmem:[#allocation2 + $0x9] sm:$0xff] }
  0xf4   : > { %565 = vst.msk [vmem:[#allocation2 + $0x79] sm:$0xff] %vm510_vm0, %v486_v10  ;;  %566 = vst.msk [vmem:[#allocation2 + $0x81] sm:$0xff] %vm510_vm0, %v487_v11  ;;  %v503_v8 = vld [vmem:[%s9064_s25 + $0xc8] sm:$0xff]  ;;  %v7852_v10 = vpack.c.bf16 %v1850_v5, %v1849_v4 }
  0xf5   : > { %567 = vst.msk [vmem:[#allocation2 + $0x91] sm:$0xff] %vm510_vm0, %v488_v12  ;;  %568 = vst.msk [vmem:[#allocation2 + $0x99] sm:$0xff] %vm510_vm0, %v489_v13  ;;  %v1851_v12 = vld [vmem:[#allocation11 + $0x60] sm:$0xff]  ;;  %v1852_v13 = vld [vmem:[#allocation11 + $0x68] sm:$0xff] }
  0xf6   : > { %569 = vst.msk [vmem:[#allocation2 + $0xa9] sm:$0xff] %vm510_vm0, %v490_v14  ;;  %570 = vst.msk [vmem:[#allocation2 + $0xb1] sm:$0xff] %vm510_vm0, %v491_v15  ;;  %v504_v14 = vld [vmem:[%s9064_s25 + $0xd0] sm:$0xff]  ;;  %7853 = vmatpush1.bf16.msra.mxu0 %v7852_v10  ;;  %v1864_v10 = vld [vmem:[#allocation11 + $0xc8] sm:$0xff] }
  0xf7   : > { %571 = vst.msk [vmem:[#allocation2 + $0xc1] sm:$0xff] %vm510_vm0, %v492_v16  ;;  %572 = vst.msk [vmem:[#allocation2 + $0xc9] sm:$0xff] %vm510_vm0, %v493_v19  ;;  %v910_v24 = vld [vmem:[#allocation2 + $0x18] sm:$0xff]  ;;  %v911_v25 = vld [vmem:[#allocation2 + $0x20] sm:$0xff]  ;;  %v7855_v16 = vpack.c.bf16 %v1852_v13, %v1851_v12  ;;  %7854 = vmatprep.subr.bf16.mxu0 %v8747_v1 }
  0xf8   : > { %v912_v26 = vld [vmem:[#allocation2 + $0x30] sm:$0xff]  ;;  %573 = vst.msk [vmem:[#allocation2 + $0xd9] sm:$0xff] %vm510_vm0, %v494_v23  ;;  %974 = vrot.lane.b32.xlu0 %v910_v24, %s8748_s1  ;;  %976 = vrot.lane.b32.xlu1 %v911_v25, %s8748_s1  ;;  %v913_v28 = vld [vmem:[#allocation2 + $0x38] sm:$0xff]  ;;  %623 = vst.msk [vmem:[#allocation3 + $0x50] sm:$0xff] %vm510_vm0, %v910_v24 }
  0xf9   : > { %624 = vst.msk [vmem:[#allocation3 + $0x78] sm:$0xff] %vm510_vm0, %v911_v25  ;;  %625 = vst.msk [vmem:[#allocation3 + $0xa0] sm:$0xff] %vm510_vm0, %v912_v26  ;;  %v914_v30 = vld [vmem:[#allocation2 + $0x48] sm:$0xff]  ;;  %v9268_v31 = vld [vmem:[#allocation2 + $0x50] sm:$0xff]  ;;  %v7858_v25 = vpack.c.bf16 %v1854_v18, %v1853_v17 }
  0xfa   : > { %626 = vst.msk [vmem:[#allocation3 + $0xc8] sm:$0xff] %vm510_vm0, %v913_v28  ;;  %v9271_v33 = vld [vmem:[#allocation2 + $0x60] sm:$0xff]  ;;  %627 = vst.msk [vmem:[#allocation3 + $0xf0] sm:$0xff] %vm510_vm0, %v914_v30  ;;  %v9277_v34 = vld [vmem:[#allocation2 + $0x68] sm:$0xff]  ;;  %7856 = vmatpush1.bf16.msra.mxu0 %v7855_v16 }
  0xfb   : > { %628 = vst.msk [vmem:[#allocation3 + $0x118] sm:$0xff] %vm510_vm0, %v9268_v31  ;;  %v9279_v35 = vld [vmem:[#allocation2 + $0x78] sm:$0xff]  ;;  %629 = vst.msk [vmem:[#allocation3 + $0x140] sm:$0xff] %vm510_vm0, %v9271_v33  ;;  %v9285_v36 = vld [vmem:[#allocation2 + $0x80] sm:$0xff]  ;;  %7857 = vmatprep.subr.bf16.mxu0 %v8747_v1 }
  0xfc   : > { %717 = vrot.lane.b32.xlu0 %v653_v27, %s8748_s1  ;;  %719 = vrot.lane.b32.xlu1 %v654_v29, %s8748_s1  ;;  %630 = vst.msk [vmem:[#allocation3 + $0x168] sm:$0xff] %vm510_vm0, %v9277_v34  ;;  %631 = vst.msk [vmem:[#allocation3 + $0x190] sm:$0xff] %vm510_vm0, %v9279_v35  ;;  %v655_v37 = vld [vmem:[#allocation2 + $0x19] sm:$0xff]  ;;  %v9291_v38 = vld [vmem:[#allocation2 + $0x90] sm:$0xff] }
  0xfd   : > { %v9293_v39 = vld [vmem:[#allocation2 + $0x98] sm:$0xff]  ;;  %632 = vst.msk [vmem:[#allocation3 + $0x1b8] sm:$0xff] %vm510_vm0, %v9285_v36  ;;  %v9297_v40 = vld [vmem:[#allocation2 + $0xa8] sm:$0xff]  ;;  %633 = vst.msk [vmem:[#allocation3 + $0x1e0] sm:$0xff] %vm510_vm0, %v9291_v38 }
  0xfe   : > { %634 = vst.msk [vmem:[#allocation3 + $0x208] sm:$0xff] %vm510_vm0, %v9293_v39  ;;  %v9304_v41 = vld [vmem:[#allocation2 + $0xb0] sm:$0xff]  ;;  %v9306_v42 = vld [vmem:[#allocation2 + $0xc0] sm:$0xff]  ;;  %635 = vst.msk [vmem:[#allocation3 + $0x230] sm:$0xff] %vm510_vm0, %v9297_v40  ;;  %7859 = vmatpush1.bf16.msra.mxu0 %v7858_v25 }
  0xff   : > { %v9312_v44 = vld [vmem:[#allocation2 + $0xc8] sm:$0xff]  ;;  %636 = vst.msk [vmem:[#allocation3 + $0x258] sm:$0xff] %vm510_vm0, %v9304_v41  ;;  %637 = vst.msk [vmem:[#allocation3 + $0x280] sm:$0xff] %vm510_vm0, %v9306_v42  ;;  %v9318_v46 = vld [vmem:[#allocation2 + $0xd8] sm:$0xff]  ;;  %7860 = vmatprep.subr.bf16.mxu0 %v8747_v1 }
 0x100   : > { %978 = vrot.lane.b32.xlu0 %v912_v26, %s8748_s1  ;;  %721 = vrot.lane.b32.xlu1 %v655_v37, %s8748_s1  ;;  %v656_v45 = vld [vmem:[#allocation2 + $0x21] sm:$0xff]  ;;  %638 = vst.msk [vmem:[#allocation3 + $0x2a8] sm:$0xff] %vm510_vm0, %v9312_v44  ;;  %639 = vst.msk [vmem:[#allocation3 + $0x2d0] sm:$0xff] %vm510_vm0, %v9318_v46  ;;  %v9331_v54 = vld [vmem:[#allocation2 + $0x31] sm:$0xff] }
 0x101   : > { %574 = vst.msk [vmem:[#allocation2 + $0xe1] sm:$0xff] %vm510_vm0, %v495_v49  ;;  %575 = vst.msk [vmem:[#allocation2 + $0xf1] sm:$0xff] %vm510_vm0, %v496_v52  ;;  %v9345_v62 = vld [vmem:[#allocation2 + $0x39] sm:$0xff]  ;;  %v9366_v9 = vld [vmem:[#allocation2 + $0x49] sm:$0xff] }
 0x102   : > { %576 = vst.msk [vmem:[#allocation2 + $0xf9] sm:$0xff] %vm510_vm0, %v497_v53  ;;  %577 = vst.msk [vmem:[#allocation2 + $0x109] sm:$0xff] %vm510_vm0, %v498_v56  ;;  %v9382_v15 = vld [vmem:[#allocation2 + $0x51] sm:$0xff]  ;;  %v589_v23 = vld [vmem:[#allocation2] sm:$0xff] }
 0x103   : > { %578 = vst.msk [vmem:[#allocation2 + $0x111] sm:$0xff] %vm510_vm0, %v499_v59  ;;  %579 = vst.msk [vmem:[#allocation2 + $0x121] sm:$0xff] %vm510_vm0, %v500_v60  ;;  %v505_v19 = vld [vmem:[%s9064_s25 + $0xd8] sm:$0xff]  ;;  %v847_v22 = vld [vmem:[#allocation2 + $0xa] sm:$0xff] }
 0x104   : > { %980 = vrot.lane.b32.xlu0 %v913_v28, %s8748_s1  ;;  %723 = vrot.lane.b32.xlu1 %v656_v45, %s8748_s1  ;;  %580 = vst.msk [vmem:[#allocation2 + $0x129] sm:$0xff] %vm510_vm0, %v501_v61  ;;  %581 = vst.msk [vmem:[#allocation2 + $0x139] sm:$0xff] %vm510_vm0, %v502_v2  ;;  %v9395_v24 = vld [vmem:[#allocation2 + $0x61] sm:$0xff]  ;;  %v1858_v45 = vld [vmem:[#allocation11 + $0x98] sm:$0xff] }
 0x105   : > { %582 = vst.msk [vmem:[#allocation2 + $0x141] sm:$0xff] %vm510_vm0, %v503_v8  ;;  %583 = vst.msk [vmem:[#allocation2 + $0x151] sm:$0xff] %vm510_vm0, %v504_v14  ;;  %v507_v26 = vld [vmem:[%s9064_s25 + $0xe8] sm:$0xff]  ;;  %v1855_v27 = vld [vmem:[#allocation11 + $0x80] sm:$0xff]  ;;  %v7864_v50 = vpack.c.bf16 %v1858_v45, %v1857_v43 }
 0x106   : > { %584 = vst.msk [vmem:[#allocation2 + $0x159] sm:$0xff] %vm510_vm0, %v505_v19  ;;  %878 = vst.msk [vmem:[#allocation3 + $0x8] sm:$0xff] %vm510_vm0, %v846_v20  ;;  %v1856_v28 = vld [vmem:[#allocation11 + $0x88] sm:$0xff]  ;;  %v9429_v47 = vld [vmem:[#allocation2 + $0x3a] sm:$0xff] }
 0x107   : > { %585 = vst.msk [vmem:[#allocation2 + $0x169] sm:$0xff] %vm510_vm0, %v506_v21  ;;  %879 = vst.msk [vmem:[#allocation3 + $0x30] sm:$0xff] %vm510_vm0, %v847_v22  ;;  %v590_v29 = vld [vmem:[#allocation2 + $0x8] sm:$0xff]  ;;  %v9433_v49 = vld [vmem:[#allocation2 + $0x79] sm:$0xff] }
 0x108   : > { %982 = vrot.lane.b32.xlu0 %v914_v30, %s8748_s1  ;;  %725 = vrot.lane.b32.xlu1 %v9331_v54, %s8748_s1  ;;  %v9349_v3 = vld [vmem:[#allocation2 + $0xe0] sm:$0xff]  ;;  %v9353_v6 = vld [vmem:[#allocation2 + $0xf0] sm:$0xff]  ;;  %621 = vst.msk [vmem:[#allocation3] sm:$0xff] %vm510_vm0, %v589_v23  ;;  %586 = vst.msk [vmem:[#allocation2 + $0x171] sm:$0xff] %vm510_vm0, %v507_v26 }
 0x109   : > { %640 = vst.msk [vmem:[#allocation3 + $0x2f8] sm:$0xff] %vm510_vm0, %v9349_v3  ;;  %v9361_v7 = vld [vmem:[#allocation2 + $0xf8] sm:$0xff]  ;;  %641 = vst.msk [vmem:[#allocation3 + $0x320] sm:$0xff] %vm510_vm0, %v9353_v6  ;;  %v9368_v11 = vld [vmem:[#allocation2 + $0x108] sm:$0xff] }
 0x10a   : > { %642 = vst.msk [vmem:[#allocation3 + $0x348] sm:$0xff] %vm510_vm0, %v9361_v7  ;;  %643 = vst.msk [vmem:[#allocation3 + $0x370] sm:$0xff] %vm510_vm0, %v9368_v11  ;;  %v508_v30 = vld [vmem:[%s9064_s25 + $0xf0] sm:$0xff]  ;;  %v9416_v37 = vld [vmem:[#allocation2 + $0x22] sm:$0xff]  ;;  %s8751_s25 = smov [#allocation19]  }
 0x10b   : > { %622 = vst.msk [vmem:[#allocation3 + $0x28] sm:$0xff] %vm510_vm0, %v590_v29  ;;  %587 = vst.msk [vmem:[#allocation2 + $0x181] sm:$0xff] %vm510_vm0, %v508_v30  ;;  %v9431_v48 = vld [vmem:[#allocation2 + $0x4a] sm:$0xff]  ;;  %v9440_v52 = vld [vmem:[#allocation2 + $0x52] sm:$0xff] }
 0x10c   : > { %984 = vrot.lane.b32.xlu0 %v9268_v31, %s8748_s1  ;;  %727 = vrot.lane.b32.xlu1 %v9345_v62, %s8748_s1  ;;  %v9408_v31 = vld [vmem:[#allocation2 + $0x1a] sm:$0xff]  ;;  %588 = vst.msk [vmem:[#allocation2 + $0x189] sm:$0xff] %vm510_vm0, %v509_v32  ;;  %881 = vst.msk [vmem:[#allocation3 + $0x80] sm:$0xff] %vm510_vm0, %v9416_v37  ;;  %v9442_v53 = vld [vmem:[#allocation2 + $0x62] sm:$0xff] }
 0x10d   : > { %880 = vst.msk [vmem:[#allocation3 + $0x58] sm:$0xff] %vm510_vm0, %v9408_v31  ;;  %883 = vst.msk [vmem:[#allocation3 + $0xd0] sm:$0xff] %vm510_vm0, %v9429_v47  ;;  %v9448_v55 = vld [vmem:[#allocation2 + $0x6a] sm:$0xff]  ;;  %v9456_v56 = vld [vmem:[#allocation2 + $0x7a] sm:$0xff] }
 0x10e   : > { %884 = vst.msk [vmem:[#allocation3 + $0xf8] sm:$0xff] %vm510_vm0, %v9431_v48  ;;  %885 = vst.msk [vmem:[#allocation3 + $0x120] sm:$0xff] %vm510_vm0, %v9440_v52  ;;  %v9458_v57 = vld [vmem:[#allocation2 + $0x81] sm:$0xff]  ;;  %v9464_v60 = vld [vmem:[#allocation2 + $0x92] sm:$0xff] }
 0x10f   : > { %886 = vst.msk [vmem:[#allocation3 + $0x148] sm:$0xff] %vm510_vm0, %v9442_v53  ;;  %887 = vst.msk [vmem:[#allocation3 + $0x170] sm:$0xff] %vm510_vm0, %v9448_v55  ;;  %v9462_v59 = vld [vmem:[#allocation2 + $0x82] sm:$0xff]  ;;  %v1862_v61 = vld [vmem:[#allocation11 + $0xb8] sm:$0xff] }
 0x110   : > { %986 = vrot.lane.b32.xlu0 %v9271_v33, %s8748_s1  ;;  %729 = vrot.lane.b32.xlu1 %v9366_v9, %s8748_s1  ;;  %v9411_v33 = vld [vmem:[#allocation2 + $0x69] sm:$0xff]  ;;  %888 = vst.msk [vmem:[#allocation3 + $0x198] sm:$0xff] %vm510_vm0, %v9456_v56  ;;  %889 = vst.msk [vmem:[#allocation3 + $0x1c0] sm:$0xff] %vm510_vm0, %v9462_v59  ;;  %v9471_v63 = vld [vmem:[#allocation2 + $0x9a] sm:$0xff] }
 0x111   : > { %890 = vst.msk [vmem:[#allocation3 + $0x1e8] sm:$0xff] %vm510_vm0, %v9464_v60  ;;  %891 = vst.msk [vmem:[#allocation3 + $0x210] sm:$0xff] %vm510_vm0, %v9471_v63  ;;  %v9475_v2 = vld [vmem:[#allocation2 + $0xaa] sm:$0xff]  ;;  %v1863_v8 = vld [vmem:[#allocation11 + $0xc0] sm:$0xff] }
 0x112   : > { %892 = vst.msk [vmem:[#allocation3 + $0x238] sm:$0xff] %vm510_vm0, %v9475_v2  ;;  %v9483_v4 = vld [vmem:[#allocation2 + $0x91] sm:$0xff]  ;;  %v7873_v13 = vpack.c.bf16 %v1864_v10, %v1863_v8  ;;  %v9497_v17 = vld [vmem:[#allocation2 + $0xc2] sm:$0xff]  ;;  %v9519_v26 = vld [vmem:[#allocation2 + $0xda] sm:$0xff] }
 0x113   : > { %v9486_v12 = vld [vmem:[#allocation2 + $0xb2] sm:$0xff]  ;;  %894 = vst.msk [vmem:[#allocation3 + $0x288] sm:$0xff] %vm510_vm0, %v9497_v17  ;;  %v1867_v19 = vld [vmem:[#allocation11 + $0xe0] sm:$0xff]  ;;  %v1868_v20 = vld [vmem:[#allocation11 + $0xe8] sm:$0xff] }
 0x114   : > { %988 = vrot.lane.b32.xlu0 %v9277_v34, %s8748_s1  ;;  %731 = vrot.lane.b32.xlu1 %v9382_v15, %s8748_s1  ;;  %v7861_v34 = vpack.c.bf16 %v1856_v28, %v1855_v27  ;;  %893 = vst.msk [vmem:[#allocation3 + $0x260] sm:$0xff] %vm510_vm0, %v9486_v12  ;;  %v1865_v14 = vld [vmem:[#allocation11 + $0xd0] sm:$0xff]  ;;  %v1866_v16 = vld [vmem:[#allocation11 + $0xd8] sm:$0xff]  ;;  %v7879_v22 = vpack.c.bf16 %v1868_v20, %v1867_v19  ;;  %896 = vst.msk [vmem:[#allocation3 + $0x2d8] sm:$0xff] %vm510_vm0, %v9519_v26 }
 0x115   : > { %v7876_v18 = vpack.c.bf16 %v1866_v16, %v1865_v14  ;;  %v9508_v21 = vld [vmem:[#allocation2 + $0xca] sm:$0xff]  ;;  %v1870_v25 = vld [vmem:[#allocation11 + $0xf8] sm:$0xff]  ;;  %v9530_v28 = vld [vmem:[#allocation2 + $0xe2] sm:$0xff] }
 0x116   : > { %7862 = vmatpush1.bf16.msra.mxu0 %v7861_v34  ;;  %895 = vst.msk [vmem:[#allocation3 + $0x2b0] sm:$0xff] %vm510_vm0, %v9508_v21  ;;  %v1869_v23 = vld [vmem:[#allocation11 + $0xf0] sm:$0xff]  ;;  %897 = vst.msk [vmem:[#allocation3 + $0x300] sm:$0xff] %vm510_vm0, %v9530_v28  ;;  %v9551_v30 = vld [vmem:[#allocation2 + $0xfa] sm:$0xff] }
 0x117   : > { %7863 = vmatprep.subr.bf16.mxu0 %v8747_v1  ;;  %v7882_v27 = vpack.c.bf16 %v1870_v25, %v1869_v23  ;;  %v9541_v29 = vld [vmem:[#allocation2 + $0xf2] sm:$0xff]  ;;  %899 = vst.msk [vmem:[#allocation3 + $0x350] sm:$0xff] %vm510_vm0, %v9551_v30  ;;  %v9559_v32 = vld [vmem:[#allocation2 + $0x10a] sm:$0xff]  ;;  %v9591_v8 = vld [vmem:[#allocation2 + $0x13a] sm:$0xff] }
 0x118   : > { %990 = vrot.lane.b32.xlu0 %v9279_v35, %s8748_s1  ;;  %733 = vrot.lane.b32.xlu1 %v9395_v24, %s8748_s1  ;;  %v9418_v35 = vld [vmem:[#allocation2 + $0x32] sm:$0xff]  ;;  %898 = vst.msk [vmem:[#allocation3 + $0x328] sm:$0xff] %vm510_vm0, %v9541_v29  ;;  %900 = vst.msk [vmem:[#allocation3 + $0x378] sm:$0xff] %vm510_vm0, %v9559_v32  ;;  %v677_v14 = vld [vmem:[#allocation2 + $0x121] sm:$0xff] }
 0x119   : > { %882 = vst.msk [vmem:[#allocation3 + $0xa8] sm:$0xff] %vm510_vm0, %v9418_v35  ;;  %v673_v34 = vld [vmem:[#allocation2 + $0xf1] sm:$0xff]  ;;  %v674_v45 = vld [vmem:[#allocation2 + $0xf9] sm:$0xff]  ;;  %904 = vst.msk [vmem:[#allocation3 + $0x418] sm:$0xff] %vm510_vm0, %v9591_v8 }
 0x11a   : > { %7865 = vmatpush1.bf16.msra.mxu0 %v7864_v50  ;;  %v9566_v43 = vld [vmem:[#allocation2 + $0x112] sm:$0xff]  ;;  %v9575_v50 = vld [vmem:[#allocation2 + $0x122] sm:$0xff]  ;;  %v1617_v0 = vld [vmem:[#allocation2 + $0x4a] sm:$0xff] }
 0x11b   : > { %7866 = vmatprep.subr.bf16.mxu0 %v8747_v1  ;;  %901 = vst.msk [vmem:[#allocation3 + $0x3a0] sm:$0xff] %vm510_vm0, %v9566_v43  ;;  %902 = vst.msk [vmem:[#allocation3 + $0x3c8] sm:$0xff] %vm510_vm0, %v9575_v50  ;;  %v615_v10 = vld [vmem:[#allocation2 + $0x138] sm:$0xff]  ;;  %v9599_v16 = vld [vmem:[#allocation2 + $0x142] sm:$0xff] }
 0x11c   : > { %992 = vrot.lane.b32.xlu0 %v9285_v36, %s8748_s1  ;;  %735 = vrot.lane.b32.xlu1 %v9411_v33, %s8748_s1  ;;  %v1860_v36 = vld [vmem:[#allocation11 + $0xa8] sm:$0xff]  ;;  %647 = vst.msk [vmem:[#allocation3 + $0x410] sm:$0xff] %vm510_vm0, %v615_v10  ;;  %1413 = vst.msk [vmem:[#allocation3 + $0x388] sm:$0xff] %vm510_vm0, %v615_v10  ;;  %v935_v19 = vld [vmem:[#allocation2 + $0x140] sm:$0xff] }
 0x11d   : > { %v7867_v58 = vpack.c.bf16 %v1860_v36, %v1859_v51  ;;  %v613_v51 = vld [vmem:[#allocation2 + $0x120] sm:$0xff]  ;;  %v675_v36 = vld [vmem:[#allocation2 + $0x109] sm:$0xff]  ;;  %905 = vst.msk [vmem:[#allocation3 + $0x440] sm:$0xff] %vm510_vm0, %v9599_v16  ;;  %v9631_v10 = vld [vmem:[#allocation2 + $0x172] sm:$0xff] }
 0x11e   : > { %645 = vst.msk [vmem:[#allocation3 + $0x3c0] sm:$0xff] %vm510_vm0, %v613_v51  ;;  %1411 = vst.msk [vmem:[#allocation3 + $0x338] sm:$0xff] %vm510_vm0, %v613_v51  ;;  %v678_v20 = vld [vmem:[#allocation2 + $0x129] sm:$0xff] }
 0x11f   : > { %7868 = vmatpush1.bf16.msra.mxu0 %v7867_v58  ;;  %v9583_v58 = vld [vmem:[#allocation2 + $0x12a] sm:$0xff]  ;;  %909 = vst.msk [vmem:[#allocation3 + $0x4e0] sm:$0xff] %vm510_vm0, %v9631_v10  ;;  %1674 = vst.msk [vmem:[#allocation3 + $0x458] sm:$0xff] %vm510_vm0, %v9631_v10 }
 0x120   : > { %994 = vrot.lane.b32.xlu0 %v9291_v38, %s8748_s1  ;;  %737 = vrot.lane.b32.xlu1 %v9433_v49, %s8748_s1  ;;  %v1861_v38 = vld [vmem:[#allocation11 + $0xb0] sm:$0xff]  ;;  %903 = vst.msk [vmem:[#allocation3 + $0x3f0] sm:$0xff] %vm510_vm0, %v9583_v58  ;;  %v619_v51 = vld [vmem:[#allocation2 + $0x168] sm:$0xff]  ;;  %1649 = vst.msk [vmem:[#allocation3 + $0x70] sm:$0xff] %vm510_vm0, %v1617_v0 }
 0x121   : > { %v7870_v5 = vpack.c.bf16 %v1862_v61, %v1861_v38  ;;  %7869 = vmatprep.subr.bf16.mxu0 %v8747_v1  ;;  %v614_v38 = vld [vmem:[#allocation2 + $0x128] sm:$0xff]  ;;  %v617_v23 = vld [vmem:[#allocation2 + $0x150] sm:$0xff]  ;;  %651 = vst.msk [vmem:[#allocation3 + $0x4b0] sm:$0xff] %vm510_vm0, %v619_v51  ;;  %1417 = vst.msk [vmem:[#allocation3 + $0x428] sm:$0xff] %vm510_vm0, %v619_v51 }
 0x122   : > { %646 = vst.msk [vmem:[#allocation3 + $0x3e8] sm:$0xff] %vm510_vm0, %v614_v38  ;;  %1412 = vst.msk [vmem:[#allocation3 + $0x360] sm:$0xff] %vm510_vm0, %v614_v38  ;;  %v933_v61 = vld [vmem:[#allocation2 + $0x128] sm:$0xff]  ;;  %v936_v25 = vld [vmem:[#allocation2 + $0x150] sm:$0xff] }
 0x123   : > { %7871 = vmatpush1.bf16.msra.mxu0 %v7870_v5  ;;  %v676_v5 = vld [vmem:[#allocation2 + $0x111] sm:$0xff]  ;;  %649 = vst.msk [vmem:[#allocation3 + $0x460] sm:$0xff] %vm510_vm0, %v617_v23  ;;  %1415 = vst.msk [vmem:[#allocation3 + $0x3d8] sm:$0xff] %vm510_vm0, %v617_v23  ;;  %v1903_v38 = vld [vmem:[#allocation11 + $0x200] sm:$0xff] }
 0x124   : > { %996 = vrot.lane.b32.xlu0 %v9293_v39, %s8748_s1  ;;  %739 = vrot.lane.b32.xlu1 %v9458_v57, %s8748_s1  ;;  %v9494_v39 = vld [vmem:[#allocation2 + $0x99] sm:$0xff]  ;;  %v1106_v0 = vld [vmem:[#allocation2 + $0x49] sm:$0xff] }
 0x125   : > { %7872 = vmatprep.subr.bf16.mxu0 %v8747_v1  ;;  %v1102_v51 = vld [vmem:[#allocation2 + $0x19] sm:$0xff]  ;;  %1138 = vst.msk [vmem:[#allocation3 + $0xb0] sm:$0xff] %vm510_vm0, %v1106_v0 }
 0x126   : > { %1134 = vst.msk [vmem:[#allocation3 + $0x10] sm:$0xff] %vm510_vm0, %v1102_v51  ;;  %v1909_v51 = vld [vmem:[#allocation11 + $0x230] sm:$0xff] }
 0x127   : > { %7874 = vmatpush1.bf16.msra.mxu0 %v7873_v13  ;;  %v934_v13 = vld [vmem:[#allocation2 + $0x138] sm:$0xff] }
 0x128   : > { %998 = vrot.lane.b32.xlu0 %v9297_v40, %s8748_s1  ;;  %741 = vrot.lane.b32.xlu1 %v9483_v4, %s8748_s1  ;;  %v9505_v40 = vld [vmem:[#allocation2 + $0xa9] sm:$0xff] }
 0x129   : > { %7875 = vmatprep.subr.bf16.mxu0 %v8747_v1 }
 0x12b   : > { %7877 = vmatpush1.bf16.msra.mxu0 %v7876_v18  ;;  %v616_v18 = vld [vmem:[#allocation2 + $0x140] sm:$0xff] }
 0x12c   : > { %1000 = vrot.lane.b32.xlu0 %v9304_v41, %s8748_s1  ;;  %743 = vrot.lane.b32.xlu1 %v9494_v39, %s8748_s1  ;;  %v9516_v41 = vld [vmem:[#allocation2 + $0xb1] sm:$0xff]  ;;  %648 = vst.msk [vmem:[#allocation3 + $0x438] sm:$0xff] %vm510_vm0, %v616_v18  ;;  %1414 = vst.msk [vmem:[#allocation3 + $0x3b0] sm:$0xff] %vm510_vm0, %v616_v18 }
 0x12d   : > { %7878 = vmatprep.subr.bf16.mxu0 %v8747_v1  ;;  %v939_v18 = vld [vmem:[#allocation2 + $0x170] sm:$0xff] }
 0x12f   : > { %7880 = vmatpush1.bf16.msra.mxu0 %v7879_v22  ;;  %v9607_v22 = vld [vmem:[#allocation2 + $0x152] sm:$0xff] }
 0x130   : > { %1002 = vrot.lane.b32.xlu0 %v9306_v42, %s8748_s1  ;;  %745 = vrot.lane.b32.xlu1 %v9505_v40, %s8748_s1  ;;  %v9527_v42 = vld [vmem:[#allocation2 + $0xc1] sm:$0xff]  ;;  %906 = vst.msk [vmem:[#allocation3 + $0x468] sm:$0xff] %vm510_vm0, %v9607_v22 }
 0x131   : > { %7881 = vmatprep.subr.bf16.mxu0 %v8747_v1 }
 0x133   : > { %7883 = vmatpush1.bf16.msra.mxu0 %v7882_v27  ;;  %v679_v27 = vld [vmem:[#allocation2 + $0x139] sm:$0xff] }
 0x134   : > { %1004 = vrot.lane.b32.xlu0 %v9312_v44, %s8748_s1  ;;  %747 = vrot.lane.b32.xlu1 %v9516_v41, %s8748_s1  ;;  %v9538_v44 = vld [vmem:[#allocation2 + $0xc9] sm:$0xff] }
 0x135   : > { %7884 = vmatprep.subr.bf16.mxu0 %v8747_v1 }
 0x138   : > { %1006 = vrot.lane.b32.xlu0 %v9318_v46, %s8748_s1  ;;  %749 = vrot.lane.b32.xlu1 %v9527_v42, %s8748_s1  ;;  %v9549_v46 = vld [vmem:[#allocation2 + $0xd9] sm:$0xff] }
 0x13c   : > { %1008 = vrot.lane.b32.xlu0 %v9349_v3, %s8748_s1  ;;  %751 = vrot.lane.b32.xlu1 %v9538_v44, %s8748_s1  ;;  %v672_v3 = vld [vmem:[#allocation2 + $0xe1] sm:$0xff] }
 0x140   : > { %1010 = vrot.lane.b32.xlu0 %v9353_v6, %s8748_s1  ;;  %753 = vrot.lane.b32.xlu1 %v9549_v46, %s8748_s1  ;;  %v612_v6 = vld [vmem:[#allocation2 + $0x110] sm:$0xff] }
 0x141   : > { %644 = vst.msk [vmem:[#allocation3 + $0x398] sm:$0xff] %vm510_vm0, %v612_v6  ;;  %1410 = vst.msk [vmem:[#allocation3 + $0x310] sm:$0xff] %vm510_vm0, %v612_v6  ;;  %v937_v6 = vld [vmem:[#allocation2 + $0x158] sm:$0xff] }
 0x144   : > { %1012 = vrot.lane.b32.xlu0 %v9361_v7, %s8748_s1  ;;  %755 = vrot.lane.b32.xlu1 %v672_v3, %s8748_s1  ;;  %v931_v7 = vld [vmem:[#allocation2 + $0x110] sm:$0xff]  ;;  %v9615_v3 = vld [vmem:[#allocation2 + $0x15a] sm:$0xff] }
 0x145   : > { %907 = vst.msk [vmem:[#allocation3 + $0x490] sm:$0xff] %vm510_vm0, %v9615_v3 }
 0x148   : > { %1014 = vrot.lane.b32.xlu0 %v9368_v11, %s8748_s1  ;;  %757 = vrot.lane.b32.xlu1 %v673_v34, %s8748_s1  ;;  %v932_v11 = vld [vmem:[#allocation2 + $0x120] sm:$0xff]  ;;  %v618_v34 = vld [vmem:[#allocation2 + $0x158] sm:$0xff] }
 0x149   : > { %650 = vst.msk [vmem:[#allocation3 + $0x488] sm:$0xff] %vm510_vm0, %v618_v34  ;;  %1416 = vst.msk [vmem:[#allocation3 + $0x400] sm:$0xff] %vm510_vm0, %v618_v34  ;;  %v1359_v34 = vld [vmem:[#allocation2 + $0x30] sm:$0xff] }
 0x14a   : > { %1391 = vst.msk [vmem:[#allocation3 + $0x18] sm:$0xff] %vm510_vm0, %v1359_v34  ;;  %v941_v34 = vld [vmem:[#allocation2 + $0x188] sm:$0xff] }
 0x14c   : > { %1016 = vrot.lane.b32.xlu0 %v931_v7, %s8748_s1  ;;  %759 = vrot.lane.b32.xlu1 %v674_v45, %s8748_s1  ;;  %v680_v7 = vld [vmem:[#allocation2 + $0x141] sm:$0xff]  ;;  %v9623_v45 = vld [vmem:[#allocation2 + $0x16a] sm:$0xff] }
 0x14d   : > { %908 = vst.msk [vmem:[#allocation3 + $0x4b8] sm:$0xff] %vm510_vm0, %v9623_v45 }
 0x150   : > { %1018 = vrot.lane.b32.xlu0 %v932_v11, %s8748_s1  ;;  %761 = vrot.lane.b32.xlu1 %v675_v36, %s8748_s1  ;;  %v681_v11 = vld [vmem:[#allocation2 + $0x151] sm:$0xff]  ;;  %v938_v36 = vld [vmem:[#allocation2 + $0x168] sm:$0xff] }
 0x154   : > { %1020 = vrot.lane.b32.xlu0 %v933_v61, %s8748_s1  ;;  %763 = vrot.lane.b32.xlu1 %v676_v5, %s8748_s1  ;;  %v1904_v61 = vld [vmem:[#allocation11 + $0x208] sm:$0xff] }
 0x155   : > { %v7932_v5 = vpack.c.bf16 %v1904_v61, %v1903_v38  ;;  %v1908_v38 = vld [vmem:[#allocation11 + $0x228] sm:$0xff] }
 0x157   : > { %7933 = vmatprep.subr.bf16.mxu1 %v7932_v5 }
 0x158   : > { %1022 = vrot.lane.b32.xlu0 %v934_v13, %s8748_s1  ;;  %765 = vrot.lane.b32.xlu1 %v677_v14, %s8748_s1  ;;  %v620_v13 = vld [vmem:[#allocation2 + $0x170] sm:$0xff]  ;;  %v682_v14 = vld [vmem:[#allocation2 + $0x159] sm:$0xff] }
 0x159   : > { %652 = vst.msk [vmem:[#allocation3 + $0x4d8] sm:$0xff] %vm510_vm0, %v620_v13  ;;  %1418 = vst.msk [vmem:[#allocation3 + $0x450] sm:$0xff] %vm510_vm0, %v620_v13  ;;  %7935 = vmatpush3.bf16.msra.mxu1 %v7932_v5 }
 0x15c   : > { %1024 = vrot.lane.b32.xlu0 %v935_v19, %s8748_s1  ;;  %767 = vrot.lane.b32.xlu1 %v678_v20, %s8748_s1  ;;  %v1905_v19 = vld [vmem:[#allocation11 + $0x210] sm:$0xff]  ;;  %v1906_v20 = vld [vmem:[#allocation11 + $0x218] sm:$0xff] }
 0x160   : > { %1026 = vrot.lane.b32.xlu0 %v936_v25, %s8748_s1  ;;  %769 = vrot.lane.b32.xlu1 %v679_v27, %s8748_s1  ;;  %v7936_v27 = vpack.c.bf16 %v1906_v20, %v1905_v19  ;;  %v1615_v19 = vld [vmem:[#allocation2 + $0x32] sm:$0xff]  ;;  %v1616_v20 = vld [vmem:[#allocation2 + $0x3a] sm:$0xff] }
 0x161   : > { %1647 = vst.msk [vmem:[#allocation3 + $0x20] sm:$0xff] %vm510_vm0, %v1615_v19  ;;  %1648 = vst.msk [vmem:[#allocation3 + $0x48] sm:$0xff] %vm510_vm0, %v1616_v20  ;;  %v1361_v19 = vld [vmem:[#allocation2 + $0x48] sm:$0xff]  ;;  %v1104_v20 = vld [vmem:[#allocation2 + $0x31] sm:$0xff] }
 0x162   : > { %7937 = vmatprep.subr.bf16.mxu1 %v7936_v27  ;;  %1393 = vst.msk [vmem:[#allocation3 + $0x68] sm:$0xff] %vm510_vm0, %v1361_v19  ;;  %1136 = vst.msk [vmem:[#allocation3 + $0x60] sm:$0xff] %vm510_vm0, %v1104_v20  ;;  %v1105_v20 = vld [vmem:[#allocation2 + $0x39] sm:$0xff] }
 0x163   : > { %7939 = vmatpush3.bf16.msra.mxu1 %v7936_v27  ;;  %v1103_v27 = vld [vmem:[#allocation2 + $0x21] sm:$0xff]  ;;  %1137 = vst.msk [vmem:[#allocation3 + $0x88] sm:$0xff] %vm510_vm0, %v1105_v20 }
 0x164   : > { %1028 = vrot.lane.b32.xlu0 %v937_v6, %s8748_s1  ;;  %771 = vrot.lane.b32.xlu1 %v680_v7, %s8748_s1  ;;  %v940_v6 = vld [vmem:[#allocation2 + $0x180] sm:$0xff]  ;;  %v683_v7 = vld [vmem:[#allocation2 + $0x169] sm:$0xff]  ;;  %1135 = vst.msk [vmem:[#allocation3 + $0x38] sm:$0xff] %vm510_vm0, %v1103_v27 }
 0x165   : > { %v1873_v27 = vld [vmem:[#allocation11 + $0x110] sm:$0xff] }
 0x168   : > { %1030 = vrot.lane.b32.xlu0 %v938_v36, %s8748_s1  ;;  %773 = vrot.lane.b32.xlu1 %v681_v11, %s8748_s1  ;;  %v9647_v11 = vld [vmem:[#allocation2 + $0x189] sm:$0xff]  ;;  %v1907_v36 = vld [vmem:[#allocation11 + $0x220] sm:$0xff] }
 0x169   : > { %v7940_v13 = vpack.c.bf16 %v1908_v38, %v1907_v36  ;;  %1165 = vst.msk [vmem:[#allocation3 + $0x4e8] sm:$0xff] %vm510_vm0, %v9647_v11  ;;  %v1910_v36 = vld [vmem:[#allocation11 + $0x238] sm:$0xff] }
 0x16a   : > { %v975_v23 = vpop.permute.xlu0 %974  ;;  %v977_v25 = vpop.permute.xlu1 %976 }
 0x16b   : > { %1070 = vst.msk [vmem:[#allocation3 + $0x8] sm:$0xff] %vm813_vm3, %v975_v23  ;;  %1071 = vst.msk [vmem:[#allocation3 + $0x30] sm:$0xff] %vm813_vm3, %v977_v25  ;;  %v1872_v23 = vld [vmem:[#allocation11 + $0x108] sm:$0xff]  ;;  %v684_v25 = vld [vmem:[#allocation2 + $0x171] sm:$0xff]  ;;  %7941 = vmatprep.subr.bf16.mxu1 %v7940_v13 }
 0x16c   : > { %1032 = vrot.lane.b32.xlu0 %v939_v18, %s8748_s1  ;;  %775 = vrot.lane.b32.xlu1 %v682_v14, %s8748_s1  ;;  %v1871_v14 = vld [vmem:[#allocation11 + $0x100] sm:$0xff]  ;;  %v1360_v18 = vld [vmem:[#allocation2 + $0x38] sm:$0xff] }
 0x16d   : > { %1392 = vst.msk [vmem:[#allocation3 + $0x40] sm:$0xff] %vm510_vm0, %v1360_v18  ;;  %7943 = vmatpush3.bf16.msra.mxu1 %v7940_v13  ;;  %v7885_v18 = vpack.c.bf16 %v1872_v23, %v1871_v14  ;;  %v1683_v14 = vld [vmem:[#allocation3 + $0x20] sm:$0xff]  ;;  %v1688_v23 = vld [vmem:[#allocation3 + $0x48] sm:$0xff] }
 0x16e   : > { %v718_v61 = vpop.permute.xlu0 %717  ;;  %v720_v5 = vpop.permute.xlu1 %719  ;;  %7725 = vmatprep.mubr.msk.f32.mxu1 %vm510_vm0, %v1683_v14 }
 0x16f   : > { %814 = vst.msk [vmem:[#allocation3] sm:$0xff] %vm813_vm3, %v718_v61  ;;  %815 = vst.msk [vmem:[#allocation3 + $0x28] sm:$0xff] %vm813_vm3, %v720_v5 }
 0x170   : > { %1034 = vrot.lane.b32.xlu0 %v940_v6, %s8748_s1  ;;  %777 = vrot.lane.b32.xlu1 %v683_v7, %s8748_s1  ;;  %v7944_v6 = vpack.c.bf16 %v1910_v36, %v1909_v51  ;;  %v9661_v7 = vld [vmem:[#allocation2 + $0x182] sm:$0xff]  ;;  %v1874_v51 = vld [vmem:[#allocation11 + $0x118] sm:$0xff] }
 0x171   : > { %1675 = vst.msk [vmem:[#allocation3 + $0x480] sm:$0xff] %vm510_vm0, %v9661_v7  ;;  %v7888_v19 = vpack.c.bf16 %v1874_v51, %v1873_v27 }
 0x172   : > { %v1680_v38 = vld [vmem:[#allocation3 + $0x8] sm:$0xff]  ;;  %v979_v61 = vpop.permute.xlu0 %978  ;;  %v722_v5 = vpop.permute.xlu1 %721  ;;  %v1685_v13 = vld [vmem:[#allocation3 + $0x30] sm:$0xff]  ;;  %7945 = vmatprep.subr.bf16.mxu1 %v7944_v6 }
 0x173   : > { %2078 = vmatprep.mubr.f32.mxu0 %v1680_v38  ;;  %1072 = vst.msk [vmem:[#allocation3 + $0x58] sm:$0xff] %vm813_vm3, %v979_v61  ;;  %816 = vst.msk [vmem:[#allocation3 + $0x50] sm:$0xff] %vm813_vm3, %v722_v5  ;;  %7947 = vmatpush3.bf16.msra.mxu1 %v7944_v6  ;;  %v1618_v6 = vld [vmem:[#allocation2 + $0x52] sm:$0xff] }
 0x174   : > { %1036 = vrot.lane.b32.xlu0 %v941_v34, %s8748_s1  ;;  %779 = vrot.lane.b32.xlu1 %v684_v25, %s8748_s1  ;;  %v9672_v25 = vld [vmem:[#allocation2 + $0x18a] sm:$0xff]  ;;  %1650 = vst.msk [vmem:[#allocation3 + $0x98] sm:$0xff] %vm510_vm0, %v1618_v6 }
 0x175   : > { %v1362_v34 = vld [vmem:[#allocation2 + $0x50] sm:$0xff]  ;;  %1676 = vst.msk [vmem:[#allocation3 + $0x4a8] sm:$0xff] %vm510_vm0, %v9672_v25 }
 0x176   : > { %v1679_v36 = vld [vmem:[#allocation3] sm:$0xff]  ;;  %v981_v38 = vpop.permute.xlu0 %980  ;;  %v724_v61 = vpop.permute.xlu1 %723  ;;  %v1684_v5 = vld [vmem:[#allocation3 + $0x28] sm:$0xff]  ;;  %1394 = vst.msk [vmem:[#allocation3 + $0x90] sm:$0xff] %vm510_vm0, %v1362_v34  ;;  %7726 = vmatmul.mubr.msk.f32.vlgmr.msra.gmra.mrb[0].mxu1 %vm510_vm0, %v1688_v23 }
 0x177   : > { %2079 = vmatmul.mubr.f32.vlgmr.msra.gmra.mrb[0].mxu0 %v1679_v36  ;;  %1073 = vst.msk [vmem:[#allocation3 + $0x80] sm:$0xff] %vm813_vm3, %v981_v38  ;;  %817 = vst.msk [vmem:[#allocation3 + $0x78] sm:$0xff] %vm813_vm3, %v724_v61  ;;  %v1875_v36 = vld [vmem:[#allocation11 + $0x120] sm:$0xff]  ;;  %v1876_v38 = vld [vmem:[#allocation11 + $0x128] sm:$0xff] }
 0x178   : > { %7886 = vmatpush1.bf16.msra.mxu0 %v7885_v18  ;;  %2083 = vmatprep.mubr.f32.mxu0 %v1685_v13  ;;  %v7891_v51 = vpack.c.bf16 %v1876_v38, %v1875_v36  ;;  %v1877_v61 = vld [vmem:[#allocation11 + $0x130] sm:$0xff]  ;;  %v1693_v36 = vld [vmem:[#allocation3 + $0x70] sm:$0xff] }
 0x179   : > { %1487 = vrot.lane.b32.xlu0 %v9331_v54, %s8748_s1  ;;  %1230 = vrot.lane.b32.xlu1 %v9408_v31, %s8748_s1  ;;  %v1363_v54 = vld [vmem:[#allocation2 + $0x60] sm:$0xff] }
 0x17a   : > { %v983_v18 = vpop.permute.xlu0 %982  ;;  %v1690_v13 = vld [vmem:[#allocation3 + $0x58] sm:$0xff]  ;;  %7887 = vmatprep.subr.bf16.mxu0 %v8747_v1  ;;  %v726_v27 = vpop.permute.xlu1 %725  ;;  %v1689_v31 = vld [vmem:[#allocation3 + $0x50] sm:$0xff]  ;;  %1395 = vst.msk [vmem:[#allocation3 + $0xb8] sm:$0xff] %vm510_vm0, %v1363_v54  ;;  %7728 = vmatprep.mubr.msk.f32.mxu1 %vm510_vm0, %v1693_v36 }
 0x17b   : > { %2084 = vmatmul.mubr.f32.gmra.mrb[2].mxu0 %v1684_v5  ;;  %1074 = vst.msk [vmem:[#allocation3 + $0xa8] sm:$0xff] %vm813_vm3, %v983_v18  ;;  %818 = vst.msk [vmem:[#allocation3 + $0xa0] sm:$0xff] %vm813_vm3, %v726_v27  ;;  %v1878_v5 = vld [vmem:[#allocation11 + $0x138] sm:$0xff]  ;;  %v1698_v38 = vld [vmem:[#allocation3 + $0x98] sm:$0xff] }
 0x17c   : > { %2088 = vmatprep.mubr.f32.mxu0 %v1690_v13  ;;  %7889 = vmatpush1.bf16.msra.mxu0 %v7888_v19  ;;  %v1619_v19 = vld [vmem:[#allocation2 + $0x62] sm:$0xff]  ;;  %v7894_v6 = vpack.c.bf16 %v1878_v5, %v1877_v61  ;;  %v1107_v18 = vld [vmem:[#allocation2 + $0x51] sm:$0xff] }
 0x17d   : > { %1489 = vrot.lane.b32.xlu0 %v9345_v62, %s8748_s1  ;;  %1232 = vrot.lane.b32.xlu1 %v9416_v37, %s8748_s1  ;;  %v1364_v62 = vld [vmem:[#allocation2 + $0x68] sm:$0xff]  ;;  %1651 = vst.msk [vmem:[#allocation3 + $0xc0] sm:$0xff] %vm510_vm0, %v1619_v19  ;;  %v1879_v13 = vld [vmem:[#allocation11 + $0x140] sm:$0xff]  ;;  %1139 = vst.msk [vmem:[#allocation3 + $0xd8] sm:$0xff] %vm510_vm0, %v1107_v18 }
 0x17e   : > { %v985_v14 = vpop.permute.xlu0 %984  ;;  %v728_v23 = vpop.permute.xlu1 %727  ;;  %v1695_v34 = vld [vmem:[#allocation3 + $0x80] sm:$0xff]  ;;  %7890 = vmatprep.subr.bf16.mxu0 %v8747_v1  ;;  %v1694_v20 = vld [vmem:[#allocation3 + $0x78] sm:$0xff]  ;;  %1396 = vst.msk [vmem:[#allocation3 + $0xe0] sm:$0xff] %vm510_vm0, %v1364_v62  ;;  %7729 = vmatmul.mubr.msk.f32.gmra.mrb[2].mxu1 %vm510_vm0, %v1698_v38  ;;  %v1366_v62 = vld [vmem:[#allocation2 + $0x80] sm:$0xff] }
 0x17f   : > { %2089 = vmatmul.mubr.f32.gmra.mrb[4].mxu0 %v1689_v31  ;;  %1075 = vst.msk [vmem:[#allocation3 + $0xd0] sm:$0xff] %vm813_vm3, %v985_v14  ;;  %819 = vst.msk [vmem:[#allocation3 + $0xc8] sm:$0xff] %vm813_vm3, %v728_v23  ;;  %v1620_v37 = vld [vmem:[#allocation2 + $0x6a] sm:$0xff]  ;;  %v1108_v61 = vld [vmem:[#allocation2 + $0x61] sm:$0xff] }
 0x180   : > { %2093 = vmatprep.mubr.f32.mxu0 %v1695_v34  ;;  %7892 = vmatpush1.bf16.msra.mxu0 %v7891_v51  ;;  %1652 = vst.msk [vmem:[#allocation3 + $0xe8] sm:$0xff] %vm510_vm0, %v1620_v37  ;;  %v1880_v27 = vld [vmem:[#allocation11 + $0x148] sm:$0xff]  ;;  %v1881_v5 = vld [vmem:[#allocation11 + $0x150] sm:$0xff]  ;;  %v1882_v14 = vld [vmem:[#allocation11 + $0x158] sm:$0xff] }
 0x181   : > { %1491 = vrot.lane.b32.xlu0 %v9366_v9, %s8748_s1  ;;  %1234 = vrot.lane.b32.xlu1 %v9418_v35, %s8748_s1  ;;  %v1365_v9 = vld [vmem:[#allocation2 + $0x78] sm:$0xff]  ;;  %v7897_v0 = vpack.c.bf16 %v1880_v27, %v1879_v13  ;;  %1140 = vst.msk [vmem:[#allocation3 + $0x100] sm:$0xff] %vm510_vm0, %v1108_v61  ;;  %1398 = vst.msk [vmem:[#allocation3 + $0x130] sm:$0xff] %vm510_vm0, %v1366_v62  ;;  %v1109_v36 = vld [vmem:[#allocation2 + $0x69] sm:$0xff] }
 0x182   : > { %v987_v54 = vpop.permute.xlu0 %986  ;;  %v730_v31 = vpop.permute.xlu1 %729  ;;  %v1700_v51 = vld [vmem:[#allocation3 + $0xa8] sm:$0xff]  ;;  %7893 = vmatprep.subr.bf16.mxu0 %v8747_v1  ;;  %v1699_v35 = vld [vmem:[#allocation3 + $0xa0] sm:$0xff]  ;;  %1397 = vst.msk [vmem:[#allocation3 + $0x108] sm:$0xff] %vm510_vm0, %v1365_v9  ;;  %v1622_v38 = vld [vmem:[#allocation2 + $0x82] sm:$0xff] }
 0x183   : > { %2094 = vmatmul.mubr.f32.gmra.mrb[6].mxu0 %v1694_v20  ;;  %1076 = vst.msk [vmem:[#allocation3 + $0xf8] sm:$0xff] %vm813_vm3, %v987_v54  ;;  %820 = vst.msk [vmem:[#allocation3 + $0xf0] sm:$0xff] %vm813_vm3, %v730_v31  ;;  %v1883_v18 = vld [vmem:[#allocation11 + $0x160] sm:$0xff]  ;;  %v1884_v13 = vld [vmem:[#allocation11 + $0x168] sm:$0xff] }
 0x184   : > { %2098 = vmatprep.mubr.f32.mxu0 %v1700_v51  ;;  %7895 = vmatpush1.bf16.msra.mxu0 %v7894_v6  ;;  %v1703_v20 = vld [vmem:[#allocation3 + $0xc0] sm:$0xff]  ;;  %v7900_v6 = vpack.c.bf16 %v1882_v14, %v1881_v5  ;;  %1141 = vst.msk [vmem:[#allocation3 + $0x128] sm:$0xff] %vm510_vm0, %v1109_v36  ;;  %1654 = vst.msk [vmem:[#allocation3 + $0x138] sm:$0xff] %vm510_vm0, %v1622_v38  ;;  %v7903_v51 = vpack.c.bf16 %v1884_v13, %v1883_v18  ;;  %v1110_v9 = vld [vmem:[#allocation2 + $0x79] sm:$0xff] }
 0x185   : > { %1493 = vrot.lane.b32.xlu0 %v9382_v15, %s8748_s1  ;;  %1236 = vrot.lane.b32.xlu1 %v9429_v47, %s8748_s1  ;;  %v1621_v47 = vld [vmem:[#allocation2 + $0x7a] sm:$0xff]  ;;  %1142 = vst.msk [vmem:[#allocation3 + $0x150] sm:$0xff] %vm510_vm0, %v1110_v9  ;;  %v1112_v13 = vld [vmem:[#allocation2 + $0x91] sm:$0xff] }
 0x186   : > { %v989_v23 = vpop.permute.xlu0 %988  ;;  %v732_v34 = vpop.permute.xlu1 %731  ;;  %v1705_v19 = vld [vmem:[#allocation3 + $0xd0] sm:$0xff]  ;;  %7896 = vmatprep.subr.bf16.mxu0 %v8747_v1  ;;  %7731 = vmatprep.mubr.msk.f32.mxu1 %vm510_vm0, %v1703_v20  ;;  %v1704_v37 = vld [vmem:[#allocation3 + $0xc8] sm:$0xff]  ;;  %1653 = vst.msk [vmem:[#allocation3 + $0x110] sm:$0xff] %vm510_vm0, %v1621_v47  ;;  %1144 = vst.msk [vmem:[#allocation3 + $0x1a0] sm:$0xff] %vm510_vm0, %v1112_v13 }
 0x187   : > { %2099 = vmatmul.mubr.f32.gmra.mrb[8].mxu0 %v1699_v35  ;;  %1077 = vst.msk [vmem:[#allocation3 + $0x120] sm:$0xff] %vm813_vm3, %v989_v23  ;;  %821 = vst.msk [vmem:[#allocation3 + $0x118] sm:$0xff] %vm813_vm3, %v732_v34  ;;  %v1708_v15 = vld [vmem:[#allocation3 + $0xe8] sm:$0xff]  ;;  %v1885_v35 = vld [vmem:[#allocation11 + $0x170] sm:$0xff] }
 0x188   : > { %2103 = vmatprep.mubr.f32.mxu0 %v1705_v19  ;;  %7898 = vmatpush1.bf16.msra.mxu0 %v7897_v0  ;;  %v1886_v0 = vld [vmem:[#allocation11 + $0x178] sm:$0xff]  ;;  %v1111_v62 = vld [vmem:[#allocation2 + $0x81] sm:$0xff]  ;;  %v1370_v9 = vld [vmem:[#allocation2 + $0xb0] sm:$0xff] }
 0x189   : > { %1495 = vrot.lane.b32.xlu0 %v9395_v24, %s8748_s1  ;;  %1238 = vrot.lane.b32.xlu1 %v9431_v48, %s8748_s1  ;;  %v1367_v24 = vld [vmem:[#allocation2 + $0x90] sm:$0xff]  ;;  %v7906_v20 = vpack.c.bf16 %v1886_v0, %v1885_v35  ;;  %v1887_v47 = vld [vmem:[#allocation11 + $0x180] sm:$0xff]  ;;  %1143 = vst.msk [vmem:[#allocation3 + $0x178] sm:$0xff] %vm510_vm0, %v1111_v62  ;;  %1402 = vst.msk [vmem:[#allocation3 + $0x1d0] sm:$0xff] %vm510_vm0, %v1370_v9 }
 0x18a   : > { %v991_v27 = vpop.permute.xlu0 %990  ;;  %v734_v54 = vpop.permute.xlu1 %733  ;;  %v1710_v31 = vld [vmem:[#allocation3 + $0xf8] sm:$0xff]  ;;  %7899 = vmatprep.subr.bf16.mxu0 %v8747_v1  ;;  %7732 = vmatmul.mubr.msk.f32.gmra.mrb[4].mxu1 %vm510_vm0, %v1708_v15  ;;  %v1709_v48 = vld [vmem:[#allocation3 + $0xf0] sm:$0xff]  ;;  %1399 = vst.msk [vmem:[#allocation3 + $0x158] sm:$0xff] %vm510_vm0, %v1367_v24  ;;  %v1623_v23 = vld [vmem:[#allocation2 + $0x92] sm:$0xff] }
 0x18b   : > { %2104 = vmatmul.mubr.f32.gmra.mrb[10].mxu0 %v1704_v37  ;;  %1078 = vst.msk [vmem:[#allocation3 + $0x148] sm:$0xff] %vm813_vm3, %v991_v27  ;;  %822 = vst.msk [vmem:[#allocation3 + $0x140] sm:$0xff] %vm813_vm3, %v734_v54  ;;  %v1718_v15 = vld [vmem:[#allocation3 + $0x138] sm:$0xff]  ;;  %v1889_v27 = vld [vmem:[#allocation11 + $0x190] sm:$0xff] }
 0x18c   : > { %2108 = vmatprep.mubr.f32.mxu0 %v1710_v31  ;;  %7901 = vmatpush1.bf16.msra.mxu0 %v7900_v6  ;;  %1655 = vst.msk [vmem:[#allocation3 + $0x160] sm:$0xff] %vm510_vm0, %v1623_v23  ;;  %v1888_v37 = vld [vmem:[#allocation11 + $0x188] sm:$0xff]  ;;  %v1890_v54 = vld [vmem:[#allocation11 + $0x198] sm:$0xff]  ;;  %v1897_v9 = vld [vmem:[#allocation11 + $0x1d0] sm:$0xff] }
 0x18d   : > { %1497 = vrot.lane.b32.xlu0 %v9411_v33, %s8748_s1  ;;  %1240 = vrot.lane.b32.xlu1 %v9440_v52, %s8748_s1  ;;  %v1713_v34 = vld [vmem:[#allocation3 + $0x110] sm:$0xff]  ;;  %v1368_v33 = vld [vmem:[#allocation2 + $0x98] sm:$0xff]  ;;  %v7909_v18 = vpack.c.bf16 %v1888_v37, %v1887_v47  ;;  %v7912_v0 = vpack.c.bf16 %v1890_v54, %v1889_v27  ;;  %v1892_v23 = vld [vmem:[#allocation11 + $0x1a8] sm:$0xff] }
 0x18e   : > { %v993_v61 = vpop.permute.xlu0 %992  ;;  %v736_v5 = vpop.permute.xlu1 %735  ;;  %v1715_v14 = vld [vmem:[#allocation3 + $0x120] sm:$0xff]  ;;  %7902 = vmatprep.subr.bf16.mxu0 %v8747_v1  ;;  %v1624_v52 = vld [vmem:[#allocation2 + $0x9a] sm:$0xff]  ;;  %v1714_v19 = vld [vmem:[#allocation3 + $0x118] sm:$0xff]  ;;  %1400 = vst.msk [vmem:[#allocation3 + $0x180] sm:$0xff] %vm510_vm0, %v1368_v33  ;;  %7734 = vmatprep.mubr.msk.f32.mxu1 %vm510_vm0, %v1713_v34 }
 0x18f   : > { %2109 = vmatmul.mubr.f32.gmra.mrb[12].mxu0 %v1709_v48  ;;  %1079 = vst.msk [vmem:[#allocation3 + $0x170] sm:$0xff] %vm813_vm3, %v993_v61  ;;  %823 = vst.msk [vmem:[#allocation3 + $0x168] sm:$0xff] %vm813_vm3, %v736_v5  ;;  %7735 = vmatmul.mubr.msk.f32.gmra.mrb[6].mxu1 %vm510_vm0, %v1718_v15  ;;  %v1113_v61 = vld [vmem:[#allocation2 + $0x99] sm:$0xff]  ;;  %v1893_v15 = vld [vmem:[#allocation11 + $0x1b0] sm:$0xff] }
 0x190   : > { %2113 = vmatprep.mubr.f32.mxu0 %v1715_v14  ;;  %7904 = vmatpush1.bf16.msra.mxu0 %v7903_v51  ;;  %1656 = vst.msk [vmem:[#allocation3 + $0x188] sm:$0xff] %vm510_vm0, %v1624_v52  ;;  %v1626_v5 = vld [vmem:[#allocation2 + $0xb2] sm:$0xff]  ;;  %v1891_v14 = vld [vmem:[#allocation11 + $0x1a0] sm:$0xff]  ;;  %1145 = vst.msk [vmem:[#allocation3 + $0x1c8] sm:$0xff] %vm510_vm0, %v1113_v61 }
 0x191   : > { %1499 = vrot.lane.b32.xlu0 %v9433_v49, %s8748_s1  ;;  %1242 = vrot.lane.b32.xlu1 %v9442_v53, %s8748_s1  ;;  %v1369_v49 = vld [vmem:[#allocation2 + $0xa8] sm:$0xff]  ;;  %1658 = vst.msk [vmem:[#allocation3 + $0x1d8] sm:$0xff] %vm510_vm0, %v1626_v5  ;;  %v1894_v62 = vld [vmem:[#allocation11 + $0x1b8] sm:$0xff]  ;;  %v1895_v27 = vld [vmem:[#allocation11 + $0x1c0] sm:$0xff] }
 0x192   : > { %v995_v6 = vpop.permute.xlu0 %994  ;;  %v738_v36 = vpop.permute.xlu1 %737  ;;  %v1720_v38 = vld [vmem:[#allocation3 + $0x148] sm:$0xff]  ;;  %7905 = vmatprep.subr.bf16.mxu0 %v8747_v1  ;;  %v1719_v53 = vld [vmem:[#allocation3 + $0x140] sm:$0xff]  ;;  %1401 = vst.msk [vmem:[#allocation3 + $0x1a8] sm:$0xff] %vm510_vm0, %v1369_v49  ;;  %v1896_v54 = vld [vmem:[#allocation11 + $0x1c8] sm:$0xff] }
 0x193   : > { %2114 = vmatmul.mubr.f32.gmra.mrb[14].mxu0 %v1714_v19  ;;  %1080 = vst.msk [vmem:[#allocation3 + $0x198] sm:$0xff] %vm813_vm3, %v995_v6  ;;  %824 = vst.msk [vmem:[#allocation3 + $0x190] sm:$0xff] %vm813_vm3, %v738_v36  ;;  %v1723_v51 = vld [vmem:[#allocation3 + $0x160] sm:$0xff]  ;;  %v7915_v19 = vpack.c.bf16 %v1892_v23, %v1891_v14  ;;  %v1627_v36 = vld [vmem:[#allocation2 + $0xc2] sm:$0xff] }
 0x194   : > { %2118 = vmatprep.mubr.f32.mxu0 %v1720_v38  ;;  %7907 = vmatpush1.bf16.msra.mxu0 %v7906_v20  ;;  %v1114_v20 = vld [vmem:[#allocation2 + $0xa9] sm:$0xff]  ;;  %1659 = vst.msk [vmem:[#allocation3 + $0x200] sm:$0xff] %vm510_vm0, %v1627_v36  ;;  %v1115_v13 = vld [vmem:[#allocation2 + $0xb1] sm:$0xff]  ;;  %v1374_v14 = vld [vmem:[#allocation2 + $0xe0] sm:$0xff] }
 0x195   : > { %1501 = vrot.lane.b32.xlu0 %v9458_v57, %s8748_s1  ;;  %1244 = vrot.lane.b32.xlu1 %v9448_v55, %s8748_s1  ;;  %v1625_v55 = vld [vmem:[#allocation2 + $0xaa] sm:$0xff]  ;;  %1146 = vst.msk [vmem:[#allocation3 + $0x1f0] sm:$0xff] %vm510_vm0, %v1114_v20  ;;  %1147 = vst.msk [vmem:[#allocation3 + $0x218] sm:$0xff] %vm510_vm0, %v1115_v13 }
 0x196   : > { %v997_v31 = vpop.permute.xlu0 %996  ;;  %v740_v24 = vpop.permute.xlu1 %739  ;;  %v1725_v48 = vld [vmem:[#allocation3 + $0x170] sm:$0xff]  ;;  %7908 = vmatprep.subr.bf16.mxu0 %v8747_v1  ;;  %7737 = vmatprep.mubr.msk.f32.mxu1 %vm510_vm0, %v1723_v51  ;;  %v1724_v35 = vld [vmem:[#allocation3 + $0x168] sm:$0xff]  ;;  %1657 = vst.msk [vmem:[#allocation3 + $0x1b0] sm:$0xff] %vm510_vm0, %v1625_v55  ;;  %v7921_v51 = vpack.c.bf16 %v1896_v54, %v1895_v27  ;;  %1406 = vst.msk [vmem:[#allocation3 + $0x270] sm:$0xff] %vm510_vm0, %v1374_v14 }
 0x197   : > { %2119 = vmatmul.mubr.f32.gmra.mrb[16].mxu0 %v1719_v53  ;;  %1081 = vst.msk [vmem:[#allocation3 + $0x1c0] sm:$0xff] %vm813_vm3, %v997_v31  ;;  %825 = vst.msk [vmem:[#allocation3 + $0x1b8] sm:$0xff] %vm813_vm3, %v740_v24  ;;  %v1728_v57 = vld [vmem:[#allocation3 + $0x188] sm:$0xff]  ;;  %v7918_v53 = vpack.c.bf16 %v1894_v62, %v1893_v15  ;;  %v1119_v27 = vld [vmem:[#allocation2 + $0xe1] sm:$0xff] }
 0x198   : > { %2123 = vmatprep.mubr.f32.mxu0 %v1725_v48  ;;  %7910 = vmatpush1.bf16.msra.mxu0 %v7909_v18  ;;  %v1738_v18 = vld [vmem:[#allocation3 + $0x1d8] sm:$0xff]  ;;  %v1898_v55 = vld [vmem:[#allocation11 + $0x1d8] sm:$0xff]  ;;  %1151 = vst.msk [vmem:[#allocation3 + $0x2b8] sm:$0xff] %vm510_vm0, %v1119_v27 }
 0x199   : > { %1503 = vrot.lane.b32.xlu0 %v9483_v4, %s8748_s1  ;;  %1246 = vrot.lane.b32.xlu1 %v9456_v56, %s8748_s1  ;;  %v1371_v4 = vld [vmem:[#allocation2 + $0xc0] sm:$0xff] }
 0x19a   : > { %v999_v34 = vpop.permute.xlu0 %998  ;;  %v742_v33 = vpop.permute.xlu1 %741  ;;  %v1730_v52 = vld [vmem:[#allocation3 + $0x198] sm:$0xff]  ;;  %7911 = vmatprep.subr.bf16.mxu0 %v8747_v1  ;;  %7738 = vmatmul.mubr.msk.f32.gmra.mrb[8].mxu1 %vm510_vm0, %v1728_v57  ;;  %v1729_v56 = vld [vmem:[#allocation3 + $0x190] sm:$0xff]  ;;  %1403 = vst.msk [vmem:[#allocation3 + $0x1f8] sm:$0xff] %vm510_vm0, %v1371_v4 }
 0x19b   : > { %2124 = vmatmul.mubr.f32.gmra.mrb[18].mxu0 %v1724_v35  ;;  %1082 = vst.msk [vmem:[#allocation3 + $0x1e8] sm:$0xff] %vm813_vm3, %v999_v34  ;;  %826 = vst.msk [vmem:[#allocation3 + $0x1e0] sm:$0xff] %vm813_vm3, %v742_v33  ;;  %v1116_v57 = vld [vmem:[#allocation2 + $0xc1] sm:$0xff]  ;;  %v1743_v5 = vld [vmem:[#allocation3 + $0x200] sm:$0xff]  ;;  %v7924_v34 = vpack.c.bf16 %v1898_v55, %v1897_v9 }
 0x19c   : > { %2128 = vmatprep.mubr.f32.mxu0 %v1730_v52  ;;  %7913 = vmatpush1.bf16.msra.mxu0 %v7912_v0  ;;  %1148 = vst.msk [vmem:[#allocation3 + $0x240] sm:$0xff] %vm510_vm0, %v1116_v57  ;;  %v1117_v33 = vld [vmem:[#allocation2 + $0xc9] sm:$0xff]  ;;  %v1899_v4 = vld [vmem:[#allocation11 + $0x1e0] sm:$0xff] }
 0x19d   : > { %1505 = vrot.lane.b32.xlu0 %v9494_v39, %s8748_s1  ;;  %1248 = vrot.lane.b32.xlu1 %v9462_v59, %s8748_s1  ;;  %v1733_v38 = vld [vmem:[#allocation3 + $0x1b0] sm:$0xff]  ;;  %v1372_v39 = vld [vmem:[#allocation2 + $0xc8] sm:$0xff]  ;;  %1149 = vst.msk [vmem:[#allocation3 + $0x268] sm:$0xff] %vm510_vm0, %v1117_v33 }
 0x19e   : > { %v1001_v47 = vpop.permute.xlu0 %1000  ;;  %v744_v37 = vpop.permute.xlu1 %743  ;;  %v1735_v6 = vld [vmem:[#allocation3 + $0x1c0] sm:$0xff]  ;;  %7914 = vmatprep.subr.bf16.mxu0 %v8747_v1  ;;  %v1734_v49 = vld [vmem:[#allocation3 + $0x1b8] sm:$0xff]  ;;  %1404 = vst.msk [vmem:[#allocation3 + $0x220] sm:$0xff] %vm510_vm0, %v1372_v39  ;;  %7740 = vmatprep.mubr.msk.f32.mxu1 %vm510_vm0, %v1733_v38 }
 0x19f   : > { %2129 = vmatmul.mubr.f32.gmra.mrb[20].mxu0 %v1729_v56  ;;  %1083 = vst.msk [vmem:[#allocation3 + $0x210] sm:$0xff] %vm813_vm3, %v1001_v47  ;;  %827 = vst.msk [vmem:[#allocation3 + $0x208] sm:$0xff] %vm813_vm3, %v744_v37  ;;  %v1628_v59 = vld [vmem:[#allocation2 + $0xca] sm:$0xff]  ;;  %7741 = vmatmul.mubr.msk.f32.gmra.mrb[10].mxu1 %vm510_vm0, %v1738_v18  ;;  %v1630_v52 = vld [vmem:[#allocation2 + $0xe2] sm:$0xff] }
 0x1a0   : > { %2133 = vmatprep.mubr.f32.mxu0 %v1735_v6  ;;  %7916 = vmatpush1.bf16.msra.mxu0 %v7915_v19  ;;  %1660 = vst.msk [vmem:[#allocation3 + $0x228] sm:$0xff] %vm510_vm0, %v1628_v59  ;;  %v1900_v56 = vld [vmem:[#allocation11 + $0x1e8] sm:$0xff]  ;;  %1662 = vst.msk [vmem:[#allocation3 + $0x278] sm:$0xff] %vm510_vm0, %v1630_v52  ;;  %v1118_v47 = vld [vmem:[#allocation2 + $0xd9] sm:$0xff] }
 0x1a1   : > { %1507 = vrot.lane.b32.xlu0 %v9505_v40, %s8748_s1  ;;  %1250 = vrot.lane.b32.xlu1 %v9464_v60, %s8748_s1  ;;  %v1373_v40 = vld [vmem:[#allocation2 + $0xd8] sm:$0xff]  ;;  %v7927_v62 = vpack.c.bf16 %v1900_v56, %v1899_v4  ;;  %v1901_v37 = vld [vmem:[#allocation11 + $0x1f0] sm:$0xff]  ;;  %1150 = vst.msk [vmem:[#allocation3 + $0x290] sm:$0xff] %vm510_vm0, %v1118_v47  ;;  %v1635_v4 = vld [vmem:[#allocation2 + $0x122] sm:$0xff] }
 0x1a2   : > { %v1003_v31 = vpop.permute.xlu0 %1002  ;;  %v746_v24 = vpop.permute.xlu1 %745  ;;  %v1740_v48 = vld [vmem:[#allocation3 + $0x1e8] sm:$0xff]  ;;  %7917 = vmatprep.subr.bf16.mxu0 %v8747_v1  ;;  %v1739_v60 = vld [vmem:[#allocation3 + $0x1e0] sm:$0xff]  ;;  %1405 = vst.msk [vmem:[#allocation3 + $0x248] sm:$0xff] %vm510_vm0, %v1373_v40  ;;  %7743 = vmatprep.mubr.msk.f32.mxu1 %vm510_vm0, %v1743_v5  ;;  %v8474_v40 = vld [vmem:[#allocation2 + $0xe1] sm:$0xff] }
 0x1a3   : > { %2134 = vmatmul.mubr.f32.gmra.mrb[22].mxu0 %v1734_v49  ;;  %1084 = vst.msk [vmem:[#allocation3 + $0x238] sm:$0xff] %vm813_vm3, %v1003_v31  ;;  %828 = vst.msk [vmem:[#allocation3 + $0x230] sm:$0xff] %vm813_vm3, %v746_v24  ;;  %v1902_v6 = vld [vmem:[#allocation11 + $0x1f8] sm:$0xff]  ;;  %v1633_v55 = vld [vmem:[#allocation2 + $0x10a] sm:$0xff] }
 0x1a4   : > { %2138 = vmatprep.mubr.f32.mxu0 %v1740_v48  ;;  %7919 = vmatpush1.bf16.msra.mxu0 %v7918_v53  ;;  %v1631_v59 = vld [vmem:[#allocation2 + $0xf2] sm:$0xff]  ;;  %v7930_v18 = vpack.c.bf16 %v1902_v6, %v1901_v37  ;;  %1665 = vst.msk [vmem:[#allocation3 + $0x2f0] sm:$0xff] %vm510_vm0, %v1633_v55  ;;  %1667 = vst.msk [vmem:[#allocation3 + $0x340] sm:$0xff] %vm510_vm0, %v1635_v4  ;;  %v1124_v6 = vld [vmem:[#allocation2 + $0x121] sm:$0xff] }
 0x1a5   : > { %1509 = vrot.lane.b32.xlu0 %v9516_v41, %s8748_s1  ;;  %1252 = vrot.lane.b32.xlu1 %v9471_v63, %s8748_s1  ;;  %v1629_v63 = vld [vmem:[#allocation2 + $0xda] sm:$0xff]  ;;  %1663 = vst.msk [vmem:[#allocation3 + $0x2a0] sm:$0xff] %vm510_vm0, %v1631_v59  ;;  %1156 = vst.msk [vmem:[#allocation3 + $0x380] sm:$0xff] %vm510_vm0, %v1124_v6  ;;  %v1388_v6 = vld [vmem:[#allocation2 + $0x188] sm:$0xff] }
 0x1a6   : > { %v1005_v35 = vpop.permute.xlu0 %1004  ;;  %v748_v0 = vpop.permute.xlu1 %747  ;;  %v1745_v61 = vld [vmem:[#allocation3 + $0x210] sm:$0xff]  ;;  %7920 = vmatprep.subr.bf16.mxu0 %v8747_v1  ;;  %v1744_v23 = vld [vmem:[#allocation3 + $0x208] sm:$0xff]  ;;  %1661 = vst.msk [vmem:[#allocation3 + $0x250] sm:$0xff] %vm510_vm0, %v1629_v63  ;;  %1420 = vst.msk [vmem:[#allocation3 + $0x4a0] sm:$0xff] %vm510_vm0, %v1388_v6 }
 0x1a7   : > { %2139 = vmatmul.mubr.f32.gmra.mrb[24].mxu0 %v1739_v60  ;;  %1085 = vst.msk [vmem:[#allocation3 + $0x260] sm:$0xff] %vm813_vm3, %v1005_v35  ;;  %829 = vst.msk [vmem:[#allocation3 + $0x258] sm:$0xff] %vm813_vm3, %v748_v0  ;;  %v1748_v41 = vld [vmem:[#allocation3 + $0x228] sm:$0xff]  ;;  %v1758_v13 = vld [vmem:[#allocation3 + $0x278] sm:$0xff] }
 0x1a8   : > { %2143 = vmatprep.mubr.f32.mxu0 %v1745_v61  ;;  %7922 = vmatpush1.bf16.msra.mxu0 %v7921_v51  ;;  %v1634_v35 = vld [vmem:[#allocation2 + $0x112] sm:$0xff] }
 0x1a9   : > { %1511 = vrot.lane.b32.xlu0 %v9527_v42, %s8748_s1  ;;  %1254 = vrot.lane.b32.xlu1 %v9475_v2, %s8748_s1  ;;  %v1375_v42 = vld [vmem:[#allocation2 + $0xf0] sm:$0xff]  ;;  %1666 = vst.msk [vmem:[#allocation3 + $0x318] sm:$0xff] %vm510_vm0, %v1634_v35 }
 0x1aa   : > { %v1007_v19 = vpop.permute.xlu0 %1006  ;;  %v750_v20 = vpop.permute.xlu1 %749  ;;  %v1750_v15 = vld [vmem:[#allocation3 + $0x238] sm:$0xff]  ;;  %7923 = vmatprep.subr.bf16.mxu0 %v8747_v1  ;;  %7744 = vmatmul.mubr.msk.f32.gmra.mrb[12].mxu1 %vm510_vm0, %v1748_v41  ;;  %v1749_v2 = vld [vmem:[#allocation3 + $0x230] sm:$0xff]  ;;  %1407 = vst.msk [vmem:[#allocation3 + $0x298] sm:$0xff] %vm510_vm0, %v1375_v42  ;;  %v8475_v61 = vld [vmem:[#allocation2 + $0xf1] sm:$0xff] }
 0x1ab   : > { %2144 = vmatmul.mubr.f32.gmra.mrb[26].mxu0 %v1744_v23  ;;  %1086 = vst.msk [vmem:[#allocation3 + $0x288] sm:$0xff] %vm813_vm3, %v1007_v19  ;;  %830 = vst.msk [vmem:[#allocation3 + $0x280] sm:$0xff] %vm813_vm3, %v750_v20  ;;  %v1122_v23 = vld [vmem:[#allocation2 + $0x109] sm:$0xff]  ;;  %v1773_v56 = vld [vmem:[#allocation3 + $0x2f0] sm:$0xff] }
 0x1ac   : > { %2148 = vmatprep.mubr.f32.mxu0 %v1750_v15  ;;  %7925 = vmatpush1.bf16.msra.mxu0 %v7924_v34  ;;  %v1763_v57 = vld [vmem:[#allocation3 + $0x2a0] sm:$0xff]  ;;  %v8476_v34 = vld [vmem:[#allocation2 + $0xf9] sm:$0xff]  ;;  %1154 = vst.msk [vmem:[#allocation3 + $0x330] sm:$0xff] %vm510_vm0, %v1122_v23 }
 0x1ad   : > { %1513 = vrot.lane.b32.xlu0 %v9538_v44, %s8748_s1  ;;  %1256 = vrot.lane.b32.xlu1 %v9486_v12, %s8748_s1  ;;  %v1753_v49 = vld [vmem:[#allocation3 + $0x250] sm:$0xff]  ;;  %v1376_v44 = vld [vmem:[#allocation2 + $0xf8] sm:$0xff]  ;;  %v1636_v20 = vld [vmem:[#allocation2 + $0x12a] sm:$0xff] }
 0x1ae   : > { %v1009_v36 = vpop.permute.xlu0 %1008  ;;  %v752_v38 = vpop.permute.xlu1 %751  ;;  %v1755_v39 = vld [vmem:[#allocation3 + $0x260] sm:$0xff]  ;;  %7926 = vmatprep.subr.bf16.mxu0 %v8747_v1  ;;  %v1632_v12 = vld [vmem:[#allocation2 + $0xfa] sm:$0xff]  ;;  %v1754_v53 = vld [vmem:[#allocation3 + $0x258] sm:$0xff]  ;;  %1408 = vst.msk [vmem:[#allocation3 + $0x2c0] sm:$0xff] %vm510_vm0, %v1376_v44  ;;  %7746 = vmatprep.mubr.msk.f32.mxu1 %vm510_vm0, %v1753_v49 }
 0x1af   : > { %2149 = vmatmul.mubr.f32.gmra.mrb[28].mxu0 %v1749_v2  ;;  %1087 = vst.msk [vmem:[#allocation3 + $0x2b0] sm:$0xff] %vm813_vm3, %v1009_v36  ;;  %831 = vst.msk [vmem:[#allocation3 + $0x2a8] sm:$0xff] %vm813_vm3, %v752_v38  ;;  %7747 = vmatmul.mubr.msk.f32.gmra.mrb[14].mxu1 %vm510_vm0, %v1758_v13  ;;  %v8477_v42 = vld [vmem:[#allocation2 + $0x109] sm:$0xff]  ;;  %v8478_v36 = vld [vmem:[#allocation2 + $0x111] sm:$0xff] }
 0x1b0   : > { %2153 = vmatprep.mubr.f32.mxu0 %v1755_v39  ;;  %7928 = vmatpush1.bf16.msra.mxu0 %v7927_v62  ;;  %1664 = vst.msk [vmem:[#allocation3 + $0x2c8] sm:$0xff] %vm510_vm0, %v1632_v12  ;;  %v1778_v19 = vld [vmem:[#allocation3 + $0x318] sm:$0xff]  ;;  %1668 = vst.msk [vmem:[#allocation3 + $0x368] sm:$0xff] %vm510_vm0, %v1636_v20  ;;  %v1783_v59 = vld [vmem:[#allocation3 + $0x340] sm:$0xff] }
 0x1b1   : > { %1515 = vrot.lane.b32.xlu0 %v9549_v46, %s8748_s1  ;;  %1258 = vrot.lane.b32.xlu1 %v9497_v17, %s8748_s1  ;;  %v1377_v46 = vld [vmem:[#allocation2 + $0x108] sm:$0xff]  ;;  %v1120_v17 = vld [vmem:[#allocation2 + $0xf1] sm:$0xff]  ;;  %v1637_v44 = vld [vmem:[#allocation2 + $0x13a] sm:$0xff] }
 0x1b2   : > { %v1011_v54 = vpop.permute.xlu0 %1010  ;;  %v754_v31 = vpop.permute.xlu1 %753  ;;  %v1760_v24 = vld [vmem:[#allocation3 + $0x288] sm:$0xff]  ;;  %7929 = vmatprep.subr.bf16.mxu0 %v8747_v1  ;;  %v1759_v48 = vld [vmem:[#allocation3 + $0x280] sm:$0xff]  ;;  %1409 = vst.msk [vmem:[#allocation3 + $0x2e8] sm:$0xff] %vm510_vm0, %v1377_v46  ;;  %1152 = vst.msk [vmem:[#allocation3 + $0x2e0] sm:$0xff] %vm510_vm0, %v1120_v17  ;;  %7749 = vmatprep.mubr.msk.f32.mxu1 %vm510_vm0, %v1763_v57 }
 0x1b3   : > { %2154 = vmatmul.mubr.f32.gmra.mrb[30].mxu0 %v1754_v53  ;;  %1088 = vst.msk [vmem:[#allocation3 + $0x2d8] sm:$0xff] %vm813_vm3, %v1011_v54  ;;  %832 = vst.msk [vmem:[#allocation3 + $0x2d0] sm:$0xff] %vm813_vm3, %v754_v31  ;;  %v1638_v12 = vld [vmem:[#allocation2 + $0x142] sm:$0xff] }
 0x1b4   : > { %2158 = vmatprep.mubr.f32.mxu0 %v1760_v24  ;;  %7931 = vmatpush1.bf16.msra.mxu0 %v7930_v18  ;;  %1669 = vst.msk [vmem:[#allocation3 + $0x390] sm:$0xff] %vm510_vm0, %v1637_v44  ;;  %1670 = vst.msk [vmem:[#allocation3 + $0x3b8] sm:$0xff] %vm510_vm0, %v1638_v12  ;;  %v8479_v18 = vld [vmem:[#allocation2 + $0x121] sm:$0xff]  ;;  %v1126_v24 = vld [vmem:[#allocation2 + $0x139] sm:$0xff] }
 0x1b5   : > { %1517 = vrot.lane.b32.xlu0 %v8474_v40, %s8748_s1  ;;  %1260 = vrot.lane.b32.xlu1 %v9508_v21, %s8748_s1  ;;  %v1121_v21 = vld [vmem:[#allocation2 + $0xf9] sm:$0xff]  ;;  %v8480_v46 = vld [vmem:[#allocation2 + $0x129] sm:$0xff]  ;;  %1158 = vst.msk [vmem:[#allocation3 + $0x3d0] sm:$0xff] %vm510_vm0, %v1126_v24  ;;  %v1132_v44 = vld [vmem:[#allocation2 + $0x181] sm:$0xff] }
 0x1b6   : > { %v1013_v1 = vpop.permute.xlu0 %1012  ;;  %v756_v60 = vpop.permute.xlu1 %755  ;;  %v1765_v51 = vld [vmem:[#allocation3 + $0x2b0] sm:$0xff]  ;;  %v1764_v0 = vld [vmem:[#allocation3 + $0x2a8] sm:$0xff]  ;;  %1153 = vst.msk [vmem:[#allocation3 + $0x308] sm:$0xff] %vm510_vm0, %v1121_v21  ;;  %1164 = vst.msk [vmem:[#allocation3 + $0x4c0] sm:$0xff] %vm510_vm0, %v1132_v44 }
 0x1b7   : > { %2159 = vmatmul.mubr.f32.gmra.mrb[32].mxu0 %v1759_v48  ;;  %1089 = vst.msk [vmem:[#allocation3 + $0x300] sm:$0xff] %vm813_vm3, %v1013_v1  ;;  %833 = vst.msk [vmem:[#allocation3 + $0x2f8] sm:$0xff] %vm813_vm3, %v756_v60  ;;  %v1768_v9 = vld [vmem:[#allocation3 + $0x2c8] sm:$0xff]  ;;  %v1446_v21 = vld [vmem:[#allocation2 + $0x141] sm:$0xff] }
 0x1b8   : > { %2163 = vmatprep.mubr.f32.mxu0 %v1765_v51  ;;  %7750 = vmatmul.mubr.msk.f32.gmra.mrb[16].mxu1 %vm510_vm0, %v1768_v9  ;;  %v1788_v49 = vld [vmem:[#allocation3 + $0x368] sm:$0xff]  ;;  %v1387_v20 = vld [vmem:[#allocation2 + $0x180] sm:$0xff] }
 0x1b9   : > { %1519 = vrot.lane.b32.xlu0 %v8475_v61, %s8748_s1  ;;  %1262 = vrot.lane.b32.xlu1 %v9519_v26, %s8748_s1  ;;  %v1639_v40 = vld [vmem:[#allocation2 + $0x152] sm:$0xff]  ;;  %v1640_v51 = vld [vmem:[#allocation2 + $0x15a] sm:$0xff]  ;;  %1419 = vst.msk [vmem:[#allocation3 + $0x478] sm:$0xff] %vm510_vm0, %v1387_v20 }
 0x1ba   : > { %v1015_v5 = vpop.permute.xlu0 %1014  ;;  %v758_v41 = vpop.permute.xlu1 %757  ;;  %v1770_v14 = vld [vmem:[#allocation3 + $0x2d8] sm:$0xff]  ;;  %v1769_v63 = vld [vmem:[#allocation3 + $0x2d0] sm:$0xff]  ;;  %7752 = vmatprep.mubr.msk.f32.mxu1 %vm510_vm0, %v1773_v56  ;;  %1671 = vst.msk [vmem:[#allocation3 + $0x3e0] sm:$0xff] %vm510_vm0, %v1639_v40  ;;  %1672 = vst.msk [vmem:[#allocation3 + $0x408] sm:$0xff] %vm510_vm0, %v1640_v51 }
 0x1bb   : > { %2164 = vmatmul.mubr.f32.gmra.mrb[34].mxu0 %v1764_v0  ;;  %1090 = vst.msk [vmem:[#allocation3 + $0x328] sm:$0xff] %vm813_vm3, %v1015_v5  ;;  %834 = vst.msk [vmem:[#allocation3 + $0x320] sm:$0xff] %vm813_vm3, %v758_v41  ;;  %v1793_v1 = vld [vmem:[#allocation3 + $0x390] sm:$0xff]  ;;  %v1798_v60 = vld [vmem:[#allocation3 + $0x3b8] sm:$0xff] }
 0x1bc   : > { %2168 = vmatprep.mubr.f32.mxu0 %v1770_v14  ;;  %7753 = vmatmul.mubr.msk.f32.gmra.mrb[18].mxu1 %vm510_vm0, %v1778_v19  ;;  %v8481_v9 = vld [vmem:[#allocation2 + $0x139] sm:$0xff]  ;;  %v1128_v5 = vld [vmem:[#allocation2 + $0x151] sm:$0xff] }
 0x1bd   : > { %1521 = vrot.lane.b32.xlu0 %v8476_v34, %s8748_s1  ;;  %1264 = vrot.lane.b32.xlu1 %v9530_v28, %s8748_s1  ;;  %v1123_v28 = vld [vmem:[#allocation2 + $0x111] sm:$0xff]  ;;  %1160 = vst.msk [vmem:[#allocation3 + $0x420] sm:$0xff] %vm510_vm0, %v1128_v5  ;;  %v1448_v19 = vld [vmem:[#allocation2 + $0x159] sm:$0xff] }
 0x1be   : > { %v1017_v26 = vpop.permute.xlu0 %1016  ;;  %v760_v33 = vpop.permute.xlu1 %759  ;;  %v1775_v52 = vld [vmem:[#allocation3 + $0x300] sm:$0xff]  ;;  %v1774_v15 = vld [vmem:[#allocation3 + $0x2f8] sm:$0xff]  ;;  %1155 = vst.msk [vmem:[#allocation3 + $0x358] sm:$0xff] %vm510_vm0, %v1123_v28  ;;  %7755 = vmatprep.mubr.msk.f32.mxu1 %vm510_vm0, %v1783_v59  ;;  %v1389_v59 = vld [vmem:[#allocation2 + $0x198] sm:$0xff] }
 0x1bf   : > { %2169 = vmatmul.mubr.f32.gmra.mrb[36].mxu0 %v1769_v63  ;;  %1091 = vst.msk [vmem:[#allocation3 + $0x350] sm:$0xff] %vm813_vm3, %v1017_v26  ;;  %835 = vst.msk [vmem:[#allocation3 + $0x348] sm:$0xff] %vm813_vm3, %v760_v33  ;;  %v1447_v63 = vld [vmem:[#allocation2 + $0x151] sm:$0xff]  ;;  %v1130_v28 = vld [vmem:[#allocation2 + $0x169] sm:$0xff] }
 0x1c0   : > { %2173 = vmatprep.mubr.f32.mxu0 %v1775_v52  ;;  %7756 = vmatmul.mubr.msk.f32.gmra.mrb[20].mxu1 %vm510_vm0, %v1788_v49  ;;  %v1641_v26 = vld [vmem:[#allocation2 + $0x16a] sm:$0xff]  ;;  %1162 = vst.msk [vmem:[#allocation3 + $0x470] sm:$0xff] %vm510_vm0, %v1130_v28  ;;  %1421 = vst.msk [vmem:[#allocation3 + $0x4c8] sm:$0xff] %vm510_vm0, %v1389_v59 }
 0x1c1   : > { %1523 = vrot.lane.b32.xlu0 %v8477_v42, %s8748_s1  ;;  %1266 = vrot.lane.b32.xlu1 %v9541_v29, %s8748_s1  ;;  %v1803_v23 = vld [vmem:[#allocation3 + $0x3e0] sm:$0xff]  ;;  %v1808_v34 = vld [vmem:[#allocation3 + $0x408] sm:$0xff]  ;;  %1673 = vst.msk [vmem:[#allocation3 + $0x430] sm:$0xff] %vm510_vm0, %v1641_v26 }
 0x1c2   : > { %v1019_v2 = vpop.permute.xlu0 %1018  ;;  %v762_v62 = vpop.permute.xlu1 %761  ;;  %v1780_v47 = vld [vmem:[#allocation3 + $0x328] sm:$0xff]  ;;  %v1779_v37 = vld [vmem:[#allocation3 + $0x320] sm:$0xff]  ;;  %7758 = vmatprep.mubr.msk.f32.mxu1 %vm510_vm0, %v1793_v1 }
 0x1c3   : > { %2174 = vmatmul.mubr.f32.gmra.mrb[38].mxu0 %v1774_v15  ;;  %1092 = vst.msk [vmem:[#allocation3 + $0x378] sm:$0xff] %vm813_vm3, %v1019_v2  ;;  %836 = vst.msk [vmem:[#allocation3 + $0x370] sm:$0xff] %vm813_vm3, %v762_v62  ;;  %v1449_v62 = vld [vmem:[#allocation2 + $0x169] sm:$0xff]  ;;  %v8482_v12 = vld [vmem:[#allocation2 + $0x171] sm:$0xff] }
 0x1c4   : > { %2178 = vmatprep.mubr.f32.mxu0 %v1780_v47  ;;  %7759 = vmatmul.mubr.msk.f32.gmra.mrb[22].mxu1 %vm510_vm0, %v1798_v60  ;;  %v1453_v60 = vld [vmem:[#allocation2 + $0x199] sm:$0xff] }
 0x1c5   : > { %1525 = vrot.lane.b32.xlu0 %v8478_v36, %s8748_s1  ;;  %1268 = vrot.lane.b32.xlu1 %v9551_v30, %s8748_s1  ;;  %v1125_v30 = vld [vmem:[#allocation2 + $0x129] sm:$0xff] }
 0x1c6   : > { %v1021_v29 = vpop.permute.xlu0 %1020  ;;  %v764_v38 = vpop.permute.xlu1 %763  ;;  %v1785_v39 = vld [vmem:[#allocation3 + $0x350] sm:$0xff]  ;;  %v1784_v53 = vld [vmem:[#allocation3 + $0x348] sm:$0xff]  ;;  %1157 = vst.msk [vmem:[#allocation3 + $0x3a8] sm:$0xff] %vm510_vm0, %v1125_v30  ;;  %7761 = vmatprep.mubr.msk.f32.mxu1 %vm510_vm0, %v1803_v23 }
 0x1c7   : > { %2179 = vmatmul.mubr.f32.gmra.mrb[40].mxu0 %v1779_v37  ;;  %1093 = vst.msk [vmem:[#allocation3 + $0x3a0] sm:$0xff] %vm813_vm3, %v1021_v29  ;;  %837 = vst.msk [vmem:[#allocation3 + $0x398] sm:$0xff] %vm813_vm3, %v764_v38  ;;  %v1818_v37 = vld [vmem:[#allocation3 + $0x458] sm:$0xff] }
 0x1c8   : > { %2183 = vmatprep.mubr.f32.mxu0 %v1785_v39  ;;  %7762 = vmatmul.mubr.msk.f32.gmra.mrb[24].mxu1 %vm510_vm0, %v1808_v34  ;;  %v1813_v47 = vld [vmem:[#allocation3 + $0x430] sm:$0xff] }
 0x1c9   : > { %1527 = vrot.lane.b32.xlu0 %v8479_v18, %s8748_s1  ;;  %1270 = vrot.lane.b32.xlu1 %v9559_v32, %s8748_s1 }
 0x1ca   : > { %v1023_v13 = vpop.permute.xlu0 %1022  ;;  %v766_v27 = vpop.permute.xlu1 %765  ;;  %v1790_v54 = vld [vmem:[#allocation3 + $0x378] sm:$0xff]  ;;  %v1789_v31 = vld [vmem:[#allocation3 + $0x370] sm:$0xff]  ;;  %7764 = vmatprep.mubr.msk.f32.mxu1 %vm510_vm0, %v1813_v47 }
 0x1cb   : > { %2184 = vmatmul.mubr.f32.gmra.mrb[42].mxu0 %v1784_v53  ;;  %1094 = vst.msk [vmem:[#allocation3 + $0x3c8] sm:$0xff] %vm813_vm3, %v1023_v13  ;;  %838 = vst.msk [vmem:[#allocation3 + $0x3c0] sm:$0xff] %vm813_vm3, %v766_v27  ;;  %v1451_v13 = vld [vmem:[#allocation2 + $0x181] sm:$0xff]  ;;  %v1823_v27 = vld [vmem:[#allocation3 + $0x480] sm:$0xff] }
 0x1cc   : > { %2188 = vmatprep.mubr.f32.mxu0 %v1790_v54  ;;  %7765 = vmatmul.mubr.msk.f32.gmra.mrb[26].mxu1 %vm510_vm0, %v1818_v37  ;;  %v1828_v54 = vld [vmem:[#allocation3 + $0x4a8] sm:$0xff] }
 0x1cd   : > { %1529 = vrot.lane.b32.xlu0 %v8480_v46, %s8748_s1  ;;  %1272 = vrot.lane.b32.xlu1 %v9566_v43, %s8748_s1  ;;  %v1127_v43 = vld [vmem:[#allocation2 + $0x141] sm:$0xff] }
 0x1ce   : > { %v1025_v32 = vpop.permute.xlu0 %1024  ;;  %v768_v48 = vpop.permute.xlu1 %767  ;;  %v1795_v17 = vld [vmem:[#allocation3 + $0x3a0] sm:$0xff]  ;;  %v1794_v57 = vld [vmem:[#allocation3 + $0x398] sm:$0xff]  ;;  %1159 = vst.msk [vmem:[#allocation3 + $0x3f8] sm:$0xff] %vm510_vm0, %v1127_v43  ;;  %7767 = vmatprep.mubr.msk.f32.mxu1 %vm510_vm0, %v1823_v27 }
 0x1cf   : > { %2189 = vmatmul.mubr.f32.gmra.mrb[44].mxu0 %v1789_v31  ;;  %1095 = vst.msk [vmem:[#allocation3 + $0x3f0] sm:$0xff] %vm813_vm3, %v1025_v32  ;;  %839 = vst.msk [vmem:[#allocation3 + $0x3e8] sm:$0xff] %vm813_vm3, %v768_v48  ;;  %v1390_v31 = vld [vmem:[#allocation2 + $0x1a0] sm:$0xff] }
 0x1d0   : > { %2193 = vmatprep.mubr.f32.mxu0 %v1795_v17  ;;  %7768 = vmatmul.mubr.msk.f32.gmra.mrb[28].mxu1 %vm510_vm0, %v1828_v54  ;;  %1422 = vst.msk [vmem:[#allocation3 + $0x4f0] sm:$0xff] %vm510_vm0, %v1390_v31 }
 0x1d1   : > { %1531 = vrot.lane.b32.xlu0 %v8481_v9, %s8748_s1  ;;  %1274 = vrot.lane.b32.xlu1 %v9575_v50, %s8748_s1 }
 0x1d2   : > { %v1027_v55 = vpop.permute.xlu0 %1026  ;;  %v770_v35 = vpop.permute.xlu1 %769  ;;  %v1800_v0 = vld [vmem:[#allocation3 + $0x3c8] sm:$0xff]  ;;  %v1799_v61 = vld [vmem:[#allocation3 + $0x3c0] sm:$0xff] }
 0x1d3   : > { %2194 = vmatmul.mubr.f32.gmra.mrb[46].mxu0 %v1794_v57  ;;  %1096 = vst.msk [vmem:[#allocation3 + $0x418] sm:$0xff] %vm813_vm3, %v1027_v55  ;;  %840 = vst.msk [vmem:[#allocation3 + $0x410] sm:$0xff] %vm813_vm3, %v770_v35 }
 0x1d4   : > { %2198 = vmatprep.mubr.f32.mxu0 %v1800_v0 }
 0x1d5   : > { %1533 = vrot.lane.b32.xlu0 %v1446_v21, %s8748_s1  ;;  %1276 = vrot.lane.b32.xlu1 %v9583_v58, %s8748_s1  ;;  %v1129_v58 = vld [vmem:[#allocation2 + $0x159] sm:$0xff] }
 0x1d6   : > { %v1029_v50 = vpop.permute.xlu0 %1028  ;;  %v772_v41 = vpop.permute.xlu1 %771  ;;  %v1805_v14 = vld [vmem:[#allocation3 + $0x3f0] sm:$0xff]  ;;  %v1804_v33 = vld [vmem:[#allocation3 + $0x3e8] sm:$0xff]  ;;  %1161 = vst.msk [vmem:[#allocation3 + $0x448] sm:$0xff] %vm510_vm0, %v1129_v58 }
 0x1d7   : > { %2199 = vmatmul.mubr.f32.gmra.mrb[48].mxu0 %v1799_v61  ;;  %1097 = vst.msk [vmem:[#allocation3 + $0x440] sm:$0xff] %vm813_vm3, %v1029_v50  ;;  %841 = vst.msk [vmem:[#allocation3 + $0x438] sm:$0xff] %vm813_vm3, %v772_v41 }
 0x1d8   : > { %2203 = vmatprep.mubr.f32.mxu0 %v1805_v14 }
 0x1d9   : > { %1535 = vrot.lane.b32.xlu0 %v1447_v63, %s8748_s1  ;;  %1278 = vrot.lane.b32.xlu1 %v9591_v8, %s8748_s1 }
 0x1da   : > { %v1031_v52 = vpop.permute.xlu0 %1030  ;;  %v774_v4 = vpop.permute.xlu1 %773  ;;  %v1810_v56 = vld [vmem:[#allocation3 + $0x418] sm:$0xff]  ;;  %v1809_v15 = vld [vmem:[#allocation3 + $0x410] sm:$0xff] }
 0x1db   : > { %2204 = vmatmul.mubr.f32.gmra.mrb[50].mxu0 %v1804_v33  ;;  %1098 = vst.msk [vmem:[#allocation3 + $0x468] sm:$0xff] %vm813_vm3, %v1031_v52  ;;  %842 = vst.msk [vmem:[#allocation3 + $0x460] sm:$0xff] %vm813_vm3, %v774_v4 }
 0x1dc   : > { %2208 = vmatprep.mubr.f32.mxu0 %v1810_v56 }
 0x1dd   : > { %1537 = vrot.lane.b32.xlu0 %v1448_v19, %s8748_s1  ;;  %1280 = vrot.lane.b32.xlu1 %v9599_v16, %s8748_s1  ;;  %v1131_v16 = vld [vmem:[#allocation2 + $0x171] sm:$0xff] }
 0x1de   : > { %v1033_v8 = vpop.permute.xlu0 %1032  ;;  %v776_v42 = vpop.permute.xlu1 %775  ;;  %v1815_v2 = vld [vmem:[#allocation3 + $0x440] sm:$0xff]  ;;  %v1814_v36 = vld [vmem:[#allocation3 + $0x438] sm:$0xff]  ;;  %1163 = vst.msk [vmem:[#allocation3 + $0x498] sm:$0xff] %vm510_vm0, %v1131_v16 }
 0x1df   : > { %2209 = vmatmul.mubr.f32.gmra.mrb[52].mxu0 %v1809_v15  ;;  %1099 = vst.msk [vmem:[#allocation3 + $0x490] sm:$0xff] %vm813_vm3, %v1033_v8  ;;  %843 = vst.msk [vmem:[#allocation3 + $0x488] sm:$0xff] %vm813_vm3, %v776_v42 }
 0x1e0   : > { %2213 = vmatprep.mubr.f32.mxu0 %v1815_v2 }
 0x1e1   : > { %1539 = vrot.lane.b32.xlu0 %v1449_v62, %s8748_s1  ;;  %1282 = vrot.lane.b32.xlu1 %v9607_v22, %s8748_s1  ;;  %v1645_v22 = vld [vmem:[#allocation2 + $0x19a] sm:$0xff] }
 0x1e2   : > { %v1035_v29 = vpop.permute.xlu0 %1034  ;;  %v778_v38 = vpop.permute.xlu1 %777  ;;  %v1820_v39 = vld [vmem:[#allocation3 + $0x468] sm:$0xff]  ;;  %v1819_v49 = vld [vmem:[#allocation3 + $0x460] sm:$0xff]  ;;  %1677 = vst.msk [vmem:[#allocation3 + $0x4d0] sm:$0xff] %vm510_vm0, %v1645_v22 }
 0x1e3   : > { %2214 = vmatmul.mubr.f32.gmra.mrb[54].mxu0 %v1814_v36  ;;  %1100 = vst.msk [vmem:[#allocation3 + $0x4b8] sm:$0xff] %vm813_vm3, %v1035_v29  ;;  %844 = vst.msk [vmem:[#allocation3 + $0x4b0] sm:$0xff] %vm813_vm3, %v778_v38 }
 0x1e4   : > { %2218 = vmatprep.mubr.f32.mxu0 %v1820_v39 }
 0x1e5   : > { %1541 = vrot.lane.b32.xlu0 %v8482_v12, %s8748_s1  ;;  %1284 = vrot.lane.b32.xlu1 %v9615_v3, %s8748_s1  ;;  %v1646_v3 = vld [vmem:[#allocation2 + $0x1a2] sm:$0xff] }
 0x1e6   : > { %v1037_v53 = vpop.permute.xlu0 %1036  ;;  %v780_v30 = vpop.permute.xlu1 %779  ;;  %v1825_v18 = vld [vmem:[#allocation3 + $0x490] sm:$0xff]  ;;  %v1824_v24 = vld [vmem:[#allocation3 + $0x488] sm:$0xff]  ;;  %1678 = vst.msk [vmem:[#allocation3 + $0x4f8] sm:$0xff] %vm510_vm0, %v1646_v3 }
 0x1e7   : > { %2219 = vmatmul.mubr.f32.gmra.mrb[56].mxu0 %v1819_v49  ;;  %1101 = vst.msk [vmem:[#allocation3 + $0x4e0] sm:$0xff] %vm813_vm3, %v1037_v53  ;;  %845 = vst.msk [vmem:[#allocation3 + $0x4d8] sm:$0xff] %vm813_vm3, %v780_v30 }
 0x1e8   : > { %2223 = vmatprep.mubr.f32.mxu0 %v1825_v18 }
 0x1e9   : > { %1543 = vrot.lane.b32.xlu0 %v1451_v13, %s8748_s1  ;;  %1286 = vrot.lane.b32.xlu1 %v9623_v45, %s8748_s1  ;;  %v1833_v40 = vld [vmem:[#allocation3 + $0x4d0] sm:$0xff] }
 0x1ea   : > { %v1830_v46 = vld [vmem:[#allocation3 + $0x4b8] sm:$0xff]  ;;  %v1829_v17 = vld [vmem:[#allocation3 + $0x4b0] sm:$0xff]  ;;  %7770 = vmatprep.mubr.msk.f32.mxu1 %vm510_vm0, %v1833_v40 }
 0x1eb   : > { %2224 = vmatmul.mubr.f32.gmra.mrb[58].mxu0 %v1824_v24  ;;  %v1488_v32 = vpop.permute.xlu0 %1487  ;;  %v1231_v48 = vpop.permute.xlu1 %1230 }
 0x1ec   : > { %1583 = vst.msk [vmem:[#allocation3 + $0x18] sm:$0xff] %vm813_vm3, %v1488_v32  ;;  %1326 = vst.msk [vmem:[#allocation3 + $0x10] sm:$0xff] %vm813_vm3, %v1231_v48  ;;  %2228 = vmatprep.mubr.f32.mxu0 %v1830_v46 }
 0x1ed   : > { %1545 = vrot.lane.b32.xlu0 %v9647_v11, %s8748_s1  ;;  %1288 = vrot.lane.b32.xlu1 %v9631_v10, %s8748_s1  ;;  %v1838_v57 = vld [vmem:[#allocation3 + $0x4f8] sm:$0xff] }
 0x1ee   : > { %v1835_v1 = vld [vmem:[#allocation3 + $0x4e0] sm:$0xff]  ;;  %v1834_v43 = vld [vmem:[#allocation3 + $0x4d8] sm:$0xff]  ;;  %7771 = vmatmul.mubr.msk.f32.gmra.mrb[30].mxu1 %vm510_vm0, %v1838_v57 }
 0x1ef   : > { %2229 = vmatmul.mubr.f32.gmra.mrb[60].mxu0 %v1829_v17  ;;  %v1490_v45 = vpop.permute.xlu0 %1489  ;;  %v1233_v51 = vpop.permute.xlu1 %1232  ;;  %v1454_v10 = vld [vmem:[#allocation2 + $0x1a1] sm:$0xff] }
 0x1f0   : > { %1584 = vst.msk [vmem:[#allocation3 + $0x40] sm:$0xff] %vm813_vm3, %v1490_v45  ;;  %1327 = vst.msk [vmem:[#allocation3 + $0x38] sm:$0xff] %vm813_vm3, %v1233_v51  ;;  %2233 = vmatprep.mubr.f32.mxu0 %v1835_v1 }
 0x1f1   : > { %1547 = vrot.lane.b32.xlu0 %v1453_v60, %s8748_s1  ;;  %1290 = vrot.lane.b32.xlu1 %v9661_v7, %s8748_s1 }
 0x1f3   : > { %2234 = vmatmul.mubr.f32.gmra.mrb[62].mxu0 %v1834_v43  ;;  %v1492_v11 = vpop.permute.xlu0 %1491  ;;  %v1235_v9 = vpop.permute.xlu1 %1234  ;;  %v1682_v55 = vld [vmem:[#allocation3 + $0x18] sm:$0xff]  ;;  %v1681_v35 = vld [vmem:[#allocation3 + $0x10] sm:$0xff] }
 0x1f4   : > { %1585 = vst.msk [vmem:[#allocation3 + $0x68] sm:$0xff] %vm813_vm3, %v1492_v11  ;;  %1328 = vst.msk [vmem:[#allocation3 + $0x60] sm:$0xff] %vm813_vm3, %v1235_v9  ;;  %2303 = vmatprep.mubr.f32.mxu0 %v1682_v55 }
 0x1f5   : > { %1549 = vrot.lane.b32.xlu0 %v1454_v10, %s8748_s1  ;;  %1292 = vrot.lane.b32.xlu1 %v9672_v25, %s8748_s1 }
 0x1f7   : > { %2304 = vmatmul.mubr.f32.vlgmr.msra.gmra.mrb[0].mxu0 %v1681_v35  ;;  %v1494_v0 = vpop.permute.xlu0 %1493  ;;  %v1237_v21 = vpop.permute.xlu1 %1236  ;;  %v1687_v7 = vld [vmem:[#allocation3 + $0x40] sm:$0xff]  ;;  %v1686_v61 = vld [vmem:[#allocation3 + $0x38] sm:$0xff] }
 0x1f8   : > { %1586 = vst.msk [vmem:[#allocation3 + $0x90] sm:$0xff] %vm813_vm3, %v1494_v0  ;;  %1329 = vst.msk [vmem:[#allocation3 + $0x88] sm:$0xff] %vm813_vm3, %v1237_v21  ;;  %2308 = vmatprep.mubr.f32.mxu0 %v1687_v7 }
 0x1fb   : > { %2309 = vmatmul.mubr.f32.gmra.mrb[2].mxu0 %v1686_v61  ;;  %v1496_v5 = vpop.permute.xlu0 %1495  ;;  %v1239_v50 = vpop.permute.xlu1 %1238  ;;  %v1692_v41 = vld [vmem:[#allocation3 + $0x68] sm:$0xff]  ;;  %v1691_v25 = vld [vmem:[#allocation3 + $0x60] sm:$0xff] }
 0x1fc   : > { %1587 = vst.msk [vmem:[#allocation3 + $0xb8] sm:$0xff] %vm813_vm3, %v1496_v5  ;;  %1330 = vst.msk [vmem:[#allocation3 + $0xb0] sm:$0xff] %vm813_vm3, %v1239_v50  ;;  %2313 = vmatprep.mubr.f32.mxu0 %v1692_v41 }
 0x1ff   : > { %2314 = vmatmul.mubr.f32.gmra.mrb[4].mxu0 %v1691_v25  ;;  %v1498_v14 = vpop.permute.xlu0 %1497  ;;  %v1241_v63 = vpop.permute.xlu1 %1240  ;;  %v1697_v23 = vld [vmem:[#allocation3 + $0x90] sm:$0xff]  ;;  %v1696_v34 = vld [vmem:[#allocation3 + $0x88] sm:$0xff] }
 0x200   : > { %1588 = vst.msk [vmem:[#allocation3 + $0xe0] sm:$0xff] %vm813_vm3, %v1498_v14  ;;  %1331 = vst.msk [vmem:[#allocation3 + $0xd8] sm:$0xff] %vm813_vm3, %v1241_v63  ;;  %2318 = vmatprep.mubr.f32.mxu0 %v1697_v23 }
 0x203   : > { %2319 = vmatmul.mubr.f32.gmra.mrb[6].mxu0 %v1696_v34  ;;  %v1500_v26 = vpop.permute.xlu0 %1499  ;;  %v1243_v33 = vpop.permute.xlu1 %1242  ;;  %v1702_v58 = vld [vmem:[#allocation3 + $0xb8] sm:$0xff]  ;;  %v1701_v52 = vld [vmem:[#allocation3 + $0xb0] sm:$0xff] }
 0x204   : > { %1589 = vst.msk [vmem:[#allocation3 + $0x108] sm:$0xff] %vm813_vm3, %v1500_v26  ;;  %1332 = vst.msk [vmem:[#allocation3 + $0x100] sm:$0xff] %vm813_vm3, %v1243_v33  ;;  %2323 = vmatprep.mubr.f32.mxu0 %v1702_v58 }
 0x207   : > { %2324 = vmatmul.mubr.f32.gmra.mrb[8].mxu0 %v1701_v52  ;;  %v1502_v4 = vpop.permute.xlu0 %1501  ;;  %v1245_v56 = vpop.permute.xlu1 %1244  ;;  %v1707_v19 = vld [vmem:[#allocation3 + $0xe0] sm:$0xff]  ;;  %v1706_v20 = vld [vmem:[#allocation3 + $0xd8] sm:$0xff] }
 0x208   : > { %1590 = vst.msk [vmem:[#allocation3 + $0x130] sm:$0xff] %vm813_vm3, %v1502_v4  ;;  %1333 = vst.msk [vmem:[#allocation3 + $0x128] sm:$0xff] %vm813_vm3, %v1245_v56  ;;  %2328 = vmatprep.mubr.f32.mxu0 %v1707_v19 }
 0x20b   : > { %2329 = vmatmul.mubr.f32.gmra.mrb[10].mxu0 %v1706_v20  ;;  %v1504_v15 = vpop.permute.xlu0 %1503  ;;  %v1247_v28 = vpop.permute.xlu1 %1246  ;;  %v1712_v8 = vld [vmem:[#allocation3 + $0x108] sm:$0xff]  ;;  %v1711_v42 = vld [vmem:[#allocation3 + $0x100] sm:$0xff] }
 0x20c   : > { %1591 = vst.msk [vmem:[#allocation3 + $0x158] sm:$0xff] %vm813_vm3, %v1504_v15  ;;  %1334 = vst.msk [vmem:[#allocation3 + $0x150] sm:$0xff] %vm813_vm3, %v1247_v28  ;;  %2333 = vmatprep.mubr.f32.mxu0 %v1712_v8 }
 0x20f   : > { %2334 = vmatmul.mubr.f32.gmra.mrb[12].mxu0 %v1711_v42  ;;  %v1506_v2 = vpop.permute.xlu0 %1505  ;;  %v1249_v62 = vpop.permute.xlu1 %1248  ;;  %v1717_v47 = vld [vmem:[#allocation3 + $0x130] sm:$0xff]  ;;  %v1716_v37 = vld [vmem:[#allocation3 + $0x128] sm:$0xff] }
 0x210   : > { %1592 = vst.msk [vmem:[#allocation3 + $0x180] sm:$0xff] %vm813_vm3, %v1506_v2  ;;  %1335 = vst.msk [vmem:[#allocation3 + $0x178] sm:$0xff] %vm813_vm3, %v1249_v62  ;;  %2338 = vmatprep.mubr.f32.mxu0 %v1717_v47 }
 0x213   : > { %2339 = vmatmul.mubr.f32.gmra.mrb[14].mxu0 %v1716_v37  ;;  %v1508_v6 = vpop.permute.xlu0 %1507  ;;  %v1251_v36 = vpop.permute.xlu1 %1250  ;;  %v1722_v16 = vld [vmem:[#allocation3 + $0x158] sm:$0xff]  ;;  %v1721_v29 = vld [vmem:[#allocation3 + $0x150] sm:$0xff] }
 0x214   : > { %1593 = vst.msk [vmem:[#allocation3 + $0x1a8] sm:$0xff] %vm813_vm3, %v1508_v6  ;;  %1336 = vst.msk [vmem:[#allocation3 + $0x1a0] sm:$0xff] %vm813_vm3, %v1251_v36  ;;  %2343 = vmatprep.mubr.f32.mxu0 %v1722_v16 }
 0x217   : > { %2344 = vmatmul.mubr.f32.gmra.mrb[16].mxu0 %v1721_v29  ;;  %v1510_v38 = vpop.permute.xlu0 %1509  ;;  %v1253_v39 = vpop.permute.xlu1 %1252  ;;  %v1727_v59 = vld [vmem:[#allocation3 + $0x180] sm:$0xff]  ;;  %v1726_v49 = vld [vmem:[#allocation3 + $0x178] sm:$0xff] }
 0x218   : > { %1594 = vst.msk [vmem:[#allocation3 + $0x1d0] sm:$0xff] %vm813_vm3, %v1510_v38  ;;  %1337 = vst.msk [vmem:[#allocation3 + $0x1c8] sm:$0xff] %vm813_vm3, %v1253_v39  ;;  %2348 = vmatprep.mubr.f32.mxu0 %v1727_v59 }
 0x21b   : > { %2349 = vmatmul.mubr.f32.gmra.mrb[18].mxu0 %v1726_v49  ;;  %v1512_v44 = vpop.permute.xlu0 %1511  ;;  %v1255_v12 = vpop.permute.xlu1 %1254  ;;  %v1732_v22 = vld [vmem:[#allocation3 + $0x1a8] sm:$0xff]  ;;  %v1731_v53 = vld [vmem:[#allocation3 + $0x1a0] sm:$0xff] }
 0x21c   : > { %1595 = vst.msk [vmem:[#allocation3 + $0x1f8] sm:$0xff] %vm813_vm3, %v1512_v44  ;;  %1338 = vst.msk [vmem:[#allocation3 + $0x1f0] sm:$0xff] %vm813_vm3, %v1255_v12  ;;  %2353 = vmatprep.mubr.f32.mxu0 %v1732_v22 }
 0x21f   : > { %2354 = vmatmul.mubr.f32.gmra.mrb[20].mxu0 %v1731_v53  ;;  %v1514_v30 = vpop.permute.xlu0 %1513  ;;  %v1257_v18 = vpop.permute.xlu1 %1256  ;;  %v1737_v13 = vld [vmem:[#allocation3 + $0x1d0] sm:$0xff]  ;;  %v1736_v27 = vld [vmem:[#allocation3 + $0x1c8] sm:$0xff] }
 0x220   : > { %1596 = vst.msk [vmem:[#allocation3 + $0x220] sm:$0xff] %vm813_vm3, %v1514_v30  ;;  %1339 = vst.msk [vmem:[#allocation3 + $0x218] sm:$0xff] %vm813_vm3, %v1257_v18  ;;  %2358 = vmatprep.mubr.f32.mxu0 %v1737_v13 }
 0x223   : > { %2359 = vmatmul.mubr.f32.gmra.mrb[22].mxu0 %v1736_v27  ;;  %v1516_v54 = vpop.permute.xlu0 %1515  ;;  %v1259_v31 = vpop.permute.xlu1 %1258  ;;  %v1742_v3 = vld [vmem:[#allocation3 + $0x1f8] sm:$0xff]  ;;  %v1741_v24 = vld [vmem:[#allocation3 + $0x1f0] sm:$0xff] }
 0x224   : > { %1597 = vst.msk [vmem:[#allocation3 + $0x248] sm:$0xff] %vm813_vm3, %v1516_v54  ;;  %1340 = vst.msk [vmem:[#allocation3 + $0x240] sm:$0xff] %vm813_vm3, %v1259_v31  ;;  %2363 = vmatprep.mubr.f32.mxu0 %v1742_v3 }
 0x227   : > { %2364 = vmatmul.mubr.f32.gmra.mrb[24].mxu0 %v1741_v24  ;;  %v1518_v46 = vpop.permute.xlu0 %1517  ;;  %v1261_v32 = vpop.permute.xlu1 %1260  ;;  %v1747_v48 = vld [vmem:[#allocation3 + $0x220] sm:$0xff]  ;;  %v1746_v17 = vld [vmem:[#allocation3 + $0x218] sm:$0xff] }
 0x228   : > { %1598 = vst.msk [vmem:[#allocation3 + $0x270] sm:$0xff] %vm813_vm3, %v1518_v46  ;;  %1341 = vst.msk [vmem:[#allocation3 + $0x268] sm:$0xff] %vm813_vm3, %v1261_v32  ;;  %2368 = vmatprep.mubr.f32.mxu0 %v1747_v48 }
 0x22b   : > { %2369 = vmatmul.mubr.f32.gmra.mrb[26].mxu0 %v1746_v17  ;;  %v1520_v40 = vpop.permute.xlu0 %1519  ;;  %v1263_v1 = vpop.permute.xlu1 %1262  ;;  %v1752_v60 = vld [vmem:[#allocation3 + $0x248] sm:$0xff]  ;;  %v1751_v45 = vld [vmem:[#allocation3 + $0x240] sm:$0xff] }
 0x22c   : > { %1599 = vst.msk [vmem:[#allocation3 + $0x298] sm:$0xff] %vm813_vm3, %v1520_v40  ;;  %1342 = vst.msk [vmem:[#allocation3 + $0x290] sm:$0xff] %vm813_vm3, %v1263_v1  ;;  %2373 = vmatprep.mubr.f32.mxu0 %v1752_v60 }
 0x22f   : > { %2374 = vmatmul.mubr.f32.gmra.mrb[28].mxu0 %v1751_v45  ;;  %v1522_v51 = vpop.permute.xlu0 %1521  ;;  %v1265_v57 = vpop.permute.xlu1 %1264  ;;  %v1757_v43 = vld [vmem:[#allocation3 + $0x270] sm:$0xff]  ;;  %v1756_v10 = vld [vmem:[#allocation3 + $0x268] sm:$0xff] }
 0x230   : > { %1600 = vst.msk [vmem:[#allocation3 + $0x2c0] sm:$0xff] %vm813_vm3, %v1522_v51  ;;  %1343 = vst.msk [vmem:[#allocation3 + $0x2b8] sm:$0xff] %vm813_vm3, %v1265_v57  ;;  %2378 = vmatprep.mubr.f32.mxu0 %v1757_v43 }
 0x233   : > { %2379 = vmatmul.mubr.f32.gmra.mrb[30].mxu0 %v1756_v10  ;;  %v1524_v11 = vpop.permute.xlu0 %1523  ;;  %v1267_v9 = vpop.permute.xlu1 %1266  ;;  %v1762_v55 = vld [vmem:[#allocation3 + $0x298] sm:$0xff]  ;;  %v1761_v35 = vld [vmem:[#allocation3 + $0x290] sm:$0xff] }
 0x234   : > { %1601 = vst.msk [vmem:[#allocation3 + $0x2e8] sm:$0xff] %vm813_vm3, %v1524_v11  ;;  %1344 = vst.msk [vmem:[#allocation3 + $0x2e0] sm:$0xff] %vm813_vm3, %v1267_v9  ;;  %2383 = vmatprep.mubr.f32.mxu0 %v1762_v55  ;;  %v11496_v55 = vmov 0.0  }
 0x237   : > { %2384 = vmatmul.mubr.f32.gmra.mrb[32].mxu0 %v1761_v35  ;;  %v1526_v0 = vpop.permute.xlu0 %1525  ;;  %v1269_v21 = vpop.permute.xlu1 %1268  ;;  %v1767_v7 = vld [vmem:[#allocation3 + $0x2c0] sm:$0xff]  ;;  %v1766_v61 = vld [vmem:[#allocation3 + $0x2b8] sm:$0xff] }
 0x238   : > { %1602 = vst.msk [vmem:[#allocation3 + $0x310] sm:$0xff] %vm813_vm3, %v1526_v0  ;;  %1345 = vst.msk [vmem:[#allocation3 + $0x308] sm:$0xff] %vm813_vm3, %v1269_v21  ;;  %2388 = vmatprep.mubr.f32.mxu0 %v1767_v7 }
 0x23b   : > { %2389 = vmatmul.mubr.f32.gmra.mrb[34].mxu0 %v1766_v61  ;;  %v1528_v5 = vpop.permute.xlu0 %1527  ;;  %v1271_v50 = vpop.permute.xlu1 %1270  ;;  %v1772_v41 = vld [vmem:[#allocation3 + $0x2e8] sm:$0xff]  ;;  %v1771_v25 = vld [vmem:[#allocation3 + $0x2e0] sm:$0xff] }
 0x23c   : > { %1603 = vst.msk [vmem:[#allocation3 + $0x338] sm:$0xff] %vm813_vm3, %v1528_v5  ;;  %1346 = vst.msk [vmem:[#allocation3 + $0x330] sm:$0xff] %vm813_vm3, %v1271_v50  ;;  %2393 = vmatprep.mubr.f32.mxu0 %v1772_v41  ;;  %v4698_v50 = vld [vmem:[#allocation4 + $0x1] sm:$0xff]  ;;  %v8749_v41 = vmov 1983009808  }
 0x23d   : > { %4714 = vrot.lane.b32.xlu1 %v4698_v50, %s8748_s1 }
 0x23f   : > { %2394 = vmatmul.mubr.f32.gmra.mrb[36].mxu0 %v1771_v25  ;;  %v1530_v14 = vpop.permute.xlu0 %1529  ;;  %v1273_v63 = vpop.permute.xlu1 %1272  ;;  %v1777_v23 = vld [vmem:[#allocation3 + $0x310] sm:$0xff]  ;;  %v1776_v34 = vld [vmem:[#allocation3 + $0x308] sm:$0xff]  ;;  %v2755_v25 = vunpack.c.l.s4 %v8749_v41 }
 0x240   : > { %1604 = vst.msk [vmem:[#allocation3 + $0x360] sm:$0xff] %vm813_vm3, %v1530_v14  ;;  %1347 = vst.msk [vmem:[#allocation3 + $0x358] sm:$0xff] %vm813_vm3, %v1273_v63  ;;  %2398 = vmatprep.mubr.f32.mxu0 %v1777_v23  ;;  %v2757_v14 = vlaneseq }
 0x243   : > { %2399 = vmatmul.mubr.f32.gmra.mrb[38].mxu0 %v1776_v34  ;;  %v1532_v26 = vpop.permute.xlu0 %1531  ;;  %v1275_v33 = vpop.permute.xlu1 %1274  ;;  %v1782_v58 = vld [vmem:[#allocation3 + $0x338] sm:$0xff]  ;;  %v1781_v52 = vld [vmem:[#allocation3 + $0x330] sm:$0xff] }
 0x244   : > { %1605 = vst.msk [vmem:[#allocation3 + $0x388] sm:$0xff] %vm813_vm3, %v1532_v26  ;;  %1348 = vst.msk [vmem:[#allocation3 + $0x380] sm:$0xff] %vm813_vm3, %v1275_v33  ;;  %2403 = vmatprep.mubr.f32.mxu0 %v1782_v58  ;;  %v10062_v34 = vld [vmem:[%s11442_s2] ss:$0 sm:$0xff]  ;;  %v2756_v26 = vunpack.c.0.s8 %v2755_v25  ;;  %v10064_v33 = vshrl.u32 %v2757_v14, 7 }
 0x246   : > { %11497 = vst [vmem:[#allocation25_spill] sm:$0xff] %v10064_v33 }
 0x247   : > { %2404 = vmatmul.mubr.f32.gmra.mrb[40].mxu0 %v1781_v52  ;;  %v1534_v4 = vpop.permute.xlu0 %1533  ;;  %v1277_v56 = vpop.permute.xlu1 %1276  ;;  %v1787_v19 = vld [vmem:[#allocation3 + $0x360] sm:$0xff]  ;;  %v1786_v20 = vld [vmem:[#allocation3 + $0x358] sm:$0xff] }
 0x248   : > { %1606 = vst.msk [vmem:[#allocation3 + $0x3b0] sm:$0xff] %vm813_vm3, %v1534_v4  ;;  %1349 = vst.msk [vmem:[#allocation3 + $0x3a8] sm:$0xff] %vm813_vm3, %v1277_v56  ;;  %2408 = vmatprep.mubr.f32.mxu0 %v1787_v19  ;;  %v10069_v19 = vsub.s32 %v2756_v26, %v10064_v33 }
 0x249   : > { %v10015_v2 = vpop.f32.mrb[0].mxu1 }
 0x24a   : > { %v10017_v62 = vpop.f32.mrb[1].mxu1 }
 0x24b   : > { %2409 = vmatmul.mubr.f32.gmra.mrb[42].mxu0 %v1786_v20  ;;  %v1536_v15 = vpop.permute.xlu0 %1535  ;;  %v1279_v28 = vpop.permute.xlu1 %1278  ;;  %v1792_v8 = vld [vmem:[#allocation3 + $0x388] sm:$0xff]  ;;  %v1791_v42 = vld [vmem:[#allocation3 + $0x380] sm:$0xff] }
 0x24c   : > { %1607 = vst.msk [vmem:[#allocation3 + $0x3d8] sm:$0xff] %vm813_vm3, %v1536_v15  ;;  %1350 = vst.msk [vmem:[#allocation3 + $0x3d0] sm:$0xff] %vm813_vm3, %v1279_v28  ;;  %2413 = vmatprep.mubr.f32.mxu0 %v1792_v8 }
 0x24f   : > { %2414 = vmatmul.mubr.f32.gmra.mrb[44].mxu0 %v1791_v42  ;;  %v1538_v47 = vpop.permute.xlu0 %1537  ;;  %v1281_v37 = vpop.permute.xlu1 %1280  ;;  %v1797_v6 = vld [vmem:[#allocation3 + $0x3b0] sm:$0xff]  ;;  %v1796_v36 = vld [vmem:[#allocation3 + $0x3a8] sm:$0xff] }
 0x250   : > { %1608 = vst.msk [vmem:[#allocation3 + $0x400] sm:$0xff] %vm813_vm3, %v1538_v47  ;;  %1351 = vst.msk [vmem:[#allocation3 + $0x3f8] sm:$0xff] %vm813_vm3, %v1281_v37  ;;  %2418 = vmatprep.mubr.f32.mxu0 %v1797_v6 }
 0x251   : > { %v10023_v59 = vpop.f32.mrb[2].mxu1 }
 0x252   : > { %v10027_v53 = vpop.f32.mrb[3].mxu1 }
 0x253   : > { %2419 = vmatmul.mubr.f32.gmra.mrb[46].mxu0 %v1796_v36  ;;  %v1540_v16 = vpop.permute.xlu0 %1539  ;;  %v1283_v29 = vpop.permute.xlu1 %1282  ;;  %v1802_v38 = vld [vmem:[#allocation3 + $0x3d8] sm:$0xff]  ;;  %v1801_v39 = vld [vmem:[#allocation3 + $0x3d0] sm:$0xff] }
 0x254   : > { %1609 = vst.msk [vmem:[#allocation3 + $0x428] sm:$0xff] %vm813_vm3, %v1540_v16  ;;  %1352 = vst.msk [vmem:[#allocation3 + $0x420] sm:$0xff] %vm813_vm3, %v1283_v29  ;;  %2423 = vmatprep.mubr.f32.mxu0 %v1802_v38 }
 0x257   : > { %2424 = vmatmul.mubr.f32.gmra.mrb[48].mxu0 %v1801_v39  ;;  %v1542_v49 = vpop.permute.xlu0 %1541  ;;  %v1285_v44 = vpop.permute.xlu1 %1284  ;;  %v1807_v12 = vld [vmem:[#allocation3 + $0x400] sm:$0xff]  ;;  %v1806_v22 = vld [vmem:[#allocation3 + $0x3f8] sm:$0xff] }
 0x258   : > { %1610 = vst.msk [vmem:[#allocation3 + $0x450] sm:$0xff] %vm813_vm3, %v1542_v49  ;;  %1353 = vst.msk [vmem:[#allocation3 + $0x448] sm:$0xff] %vm813_vm3, %v1285_v44  ;;  %2428 = vmatprep.mubr.f32.mxu0 %v1807_v12 }
 0x25b   : > { %2429 = vmatmul.mubr.f32.gmra.mrb[50].mxu0 %v1806_v22  ;;  %v1544_v30 = vpop.permute.xlu0 %1543  ;;  %v1287_v18 = vpop.permute.xlu1 %1286  ;;  %v1812_v13 = vld [vmem:[#allocation3 + $0x428] sm:$0xff]  ;;  %v1811_v27 = vld [vmem:[#allocation3 + $0x420] sm:$0xff] }
 0x25c   : > { %1611 = vst.msk [vmem:[#allocation3 + $0x478] sm:$0xff] %vm813_vm3, %v1544_v30  ;;  %1354 = vst.msk [vmem:[#allocation3 + $0x470] sm:$0xff] %vm813_vm3, %v1287_v18  ;;  %2433 = vmatprep.mubr.f32.mxu0 %v1812_v13 }
 0x25d   : > { %v10037_v57 = vpop.f32.mrb[4].mxu1 }
 0x25e   : > { %v10039_v10 = vpop.f32.mrb[5].mxu1 }
 0x25f   : > { %2434 = vmatmul.mubr.f32.gmra.mrb[52].mxu0 %v1811_v27  ;;  %v1546_v54 = vpop.permute.xlu0 %1545  ;;  %v1289_v31 = vpop.permute.xlu1 %1288  ;;  %v1817_v3 = vld [vmem:[#allocation3 + $0x450] sm:$0xff]  ;;  %v1816_v24 = vld [vmem:[#allocation3 + $0x448] sm:$0xff] }
 0x260   : > { %1612 = vst.msk [vmem:[#allocation3 + $0x4a0] sm:$0xff] %vm813_vm3, %v1546_v54  ;;  %1355 = vst.msk [vmem:[#allocation3 + $0x498] sm:$0xff] %vm813_vm3, %v1289_v31  ;;  %2438 = vmatprep.mubr.f32.mxu0 %v1817_v3 }
 0x262   : > { %v10042_v35 = vpop.f32.mrb[6].mxu1 }
 0x263   : > { %2439 = vmatmul.mubr.f32.gmra.mrb[54].mxu0 %v1816_v24  ;;  %v1548_v46 = vpop.permute.xlu0 %1547  ;;  %v1291_v32 = vpop.permute.xlu1 %1290  ;;  %v1822_v48 = vld [vmem:[#allocation3 + $0x478] sm:$0xff]  ;;  %v1821_v17 = vld [vmem:[#allocation3 + $0x470] sm:$0xff] }
 0x264   : > { %1613 = vst.msk [vmem:[#allocation3 + $0x4c8] sm:$0xff] %vm813_vm3, %v1548_v46  ;;  %1356 = vst.msk [vmem:[#allocation3 + $0x4c0] sm:$0xff] %vm813_vm3, %v1291_v32  ;;  %2443 = vmatprep.mubr.f32.mxu0 %v1822_v48  ;;  %v10044_v0 = vpop.f32.mrb[7].mxu1 }
 0x267   : > { %2444 = vmatmul.mubr.f32.gmra.mrb[56].mxu0 %v1821_v17  ;;  %v1550_v40 = vpop.permute.xlu0 %1549  ;;  %v1293_v1 = vpop.permute.xlu1 %1292  ;;  %v1827_v60 = vld [vmem:[#allocation3 + $0x4a0] sm:$0xff]  ;;  %v1826_v45 = vld [vmem:[#allocation3 + $0x498] sm:$0xff] }
 0x268   : > { %1614 = vst.msk [vmem:[#allocation3 + $0x4f0] sm:$0xff] %vm813_vm3, %v1550_v40  ;;  %1357 = vst.msk [vmem:[#allocation3 + $0x4e8] sm:$0xff] %vm813_vm3, %v1293_v1  ;;  %2448 = vmatprep.mubr.f32.mxu0 %v1827_v60 }
 0x26b   : > { %2449 = vmatmul.mubr.f32.gmra.mrb[58].mxu0 %v1826_v45  ;;  %v1832_v51 = vld [vmem:[#allocation3 + $0x4c8] sm:$0xff]  ;;  %v1831_v43 = vld [vmem:[#allocation3 + $0x4c0] sm:$0xff] }
 0x26c   : > { %2453 = vmatprep.mubr.f32.mxu0 %v1832_v51 }
 0x26d   : > { %v10046_v21 = vpop.f32.mrb[8].mxu1 }
 0x26e   : > { %v10048_v7 = vpop.f32.mrb[9].mxu1 }
 0x26f   : > { %2454 = vmatmul.mubr.f32.gmra.mrb[60].mxu0 %v1831_v43  ;;  %v1837_v11 = vld [vmem:[#allocation3 + $0x4f0] sm:$0xff]  ;;  %v1836_v9 = vld [vmem:[#allocation3 + $0x4e8] sm:$0xff] }
 0x270   : > { %2458 = vmatprep.mubr.f32.mxu0 %v1837_v11 }
 0x272   : > { %v10050_v61 = vpop.f32.mrb[10].mxu1 }
 0x273   : > { %2459 = vmatmul.mubr.f32.gmra.mrb[62].mxu0 %v1836_v9  ;;  %v10052_v5 = vpop.f32.mrb[11].mxu1 }
 0x274   : > { %6671 = vmatprep.mubr.f32.mxu0 %v11496_v55 }
 0x27d   : > { %v10055_v63 = vpop.f32.mrb[12].mxu1 }
 0x27e   : > { %v10057_v23 = vpop.f32.mrb[13].mxu1 }
 0x2ca   : > { %v2305_v58 = vpop.f32.mrb[0].mxu0 }
 0x2cb   : > { %v8252_v52 = vadd.f32 %v10062_v34, %v2305_v58  ;;  %v2307_v4 = vpop.f32.mrb[1].mxu0 }
 0x2cd   : > { %v2531_v56 = vadd.f32 %v8252_v52, %v10017_v62 }
 0x2ce   : > { %v2310_v20 = vpop.f32.mrb[2].mxu0 }
 0x2cf   : > { %v2689_v15 = vmax.f32 %v2531_v56, 0.0  ;;  %v8253_v28 = vadd.f32 %v10062_v34, %v2310_v20  ;;  %v2312_v8 = vpop.f32.mrb[3].mxu0 }
 0x2d1   : > { %v2753_v42 = vcombine.high %v2689_v15, %v2689_v15  ;;  %v2760_v47 = vrot.slane %v2689_v15, %v10069_v19  ;;  %v2536_v37 = vadd.f32 %v8253_v28, %v10015_v2 }
 0x2d2   : > { %v2315_v6 = vpop.f32.mrb[4].mxu0 }
 0x2d3   : > { %v2767_v36 = vrot.slane %v2753_v42, %v10069_v19  ;;  %v2768_v16 = vcombine.high %v2760_v47, %v2760_v47  ;;  %v3425_v29 = vsel %vm513_vm2, %v2760_v47, -inf  ;;  %v2690_v62 = vmax.f32 %v2536_v37, 0.0  ;;  %v2317_v38 = vpop.f32.mrb[5].mxu0 }
 0x2d4   : > { %v3426_v39 = vrot.slane %v3425_v29, 4  ;;  %v8254_v49 = vadd.f32 %v10062_v34, %v2315_v6 }
 0x2d5   : > { %v2769_v44 = vcombine.high %v2767_v36, %v2767_v36  ;;  %v3432_v12 = vsel %vm513_vm2, %v2768_v16, -inf  ;;  %v3439_v22 = vsel %vm513_vm2, %v2767_v36, -inf  ;;  %v2770_v30 = vcombine.high %v2690_v62, %v2690_v62 }
 0x2d6   : > { %v3427_v18 = vmax.f32 %v3425_v29, %v3426_v39  ;;  %v3433_v13 = vrot.slane %v3432_v12, 4  ;;  %v3440_v2 = vrot.slane %v3439_v22, 4  ;;  %v2777_v27 = vrot.slane %v2690_v62, %v10069_v19  ;;  %v2320_v54 = vpop.f32.mrb[6].mxu0 }
 0x2d7   : > { %v3446_v31 = vsel %vm513_vm2, %v2769_v44, -inf  ;;  %v2784_v3 = vrot.slane %v2770_v30, %v10069_v19  ;;  %v2541_v24 = vadd.f32 %v8254_v49, %v10027_v53  ;;  %v8255_v46 = vadd.f32 %v10062_v34, %v2320_v54  ;;  %v2322_v32 = vpop.f32.mrb[7].mxu0 }
 0x2d8   : > { %v3428_v48 = vrot.slane %v3427_v18, 2  ;;  %v3434_v17 = vmax.f32 %v3432_v12, %v3433_v13  ;;  %v3441_v40 = vmax.f32 %v3439_v22, %v3440_v2  ;;  %v3447_v1 = vrot.slane %v3446_v31, 4 }
 0x2d9   : > { %v2785_v60 = vcombine.high %v2777_v27, %v2777_v27  ;;  %v2786_v45 = vcombine.high %v2784_v3, %v2784_v3  ;;  %v3453_v51 = vsel %vm513_vm2, %v2777_v27, -inf  ;;  %v3467_v43 = vsel %vm513_vm2, %v2784_v3, -inf }
 0x2da   : > { %v3429_v11 = vmax.f32 %v3427_v18, %v3428_v48  ;;  %v3435_v9 = vrot.slane %v3434_v17, 2  ;;  %v3442_v50 = vrot.slane %v3441_v40, 2  ;;  %v3448_v41 = vmax.f32 %v3446_v31, %v3447_v1  ;;  %v10086_v25 = vpop.f32.mrb[8].mxu0 }
 0x2db   : > { %v3454_v53 = vrot.slane %v3453_v51, 4  ;;  %v3460_v14 = vsel %vm513_vm2, %v2785_v60, -inf  ;;  %v3468_v26 = vrot.slane %v3467_v43, 4  ;;  %v3474_v58 = vsel %vm513_vm2, %v2786_v45, -inf  ;;  %v2327_v52 = vpop.f32.mrb[9].mxu0 }
 0x2dc   : > { %v3430_v4 = vrot.slane %v3429_v11, 1  ;;  %v3436_v56 = vmax.f32 %v3434_v17, %v3435_v9  ;;  %v3443_v20 = vmax.f32 %v3441_v40, %v3442_v50  ;;  %v3449_v15 = vrot.slane %v3448_v41, 2  ;;  %v10103_v40 = vpop.f32.mrb[14].mxu1 }
 0x2dd   : > { %v3455_v28 = vmax.f32 %v3453_v51, %v3454_v53  ;;  %v3461_v8 = vrot.slane %v3460_v14, 4  ;;  %v3469_v42 = vmax.f32 %v3467_v43, %v3468_v26  ;;  %v3475_v47 = vrot.slane %v3474_v58, 4 }
 0x2de   : > { %v3431_v37 = vmax.f32 %v3429_v11, %v3430_v4  ;;  %v3437_v6 = vrot.slane %v3436_v56, 1  ;;  %v3444_v36 = vrot.slane %v3443_v20, 1  ;;  %v3450_v16 = vmax.f32 %v3448_v41, %v3449_v15  ;;  %v10090_v29 = vpop.f32.mrb[10].mxu0  ;;  %v10105_v11 = vpop.f32.mrb[15].mxu1 }
 0x2df   : > { %v3456_v62 = vrot.slane %v3455_v28, 2  ;;  %v3462_v38 = vmax.f32 %v3460_v14, %v3461_v8  ;;  %v3470_v39 = vrot.slane %v3469_v42, 2  ;;  %v3476_v49 = vmax.f32 %v3474_v58, %v3475_v47  ;;  %v2332_v44 = vpop.f32.mrb[11].mxu0 }
 0x2e0   : > { %v3438_v12 = vmax.f32 %v3436_v56, %v3437_v6  ;;  %v3445_v22 = vmax.f32 %v3443_v20, %v3444_v36  ;;  %v3451_v30 = vrot.slane %v3450_v16, 1  ;;  %v10093_v18 = vsel %vm510_vm0, %v3431_v37, -inf }
 0x2e1   : > { %v3457_v13 = vmax.f32 %v3455_v28, %v3456_v62  ;;  %v3463_v2 = vrot.slane %v3462_v38, 2  ;;  %v3471_v27 = vmax.f32 %v3469_v42, %v3470_v39  ;;  %v3477_v54 = vrot.slane %v3476_v49, 2 }
 0x2e2   : > { %v3452_v31 = vmax.f32 %v3450_v16, %v3451_v30  ;;  %v10096_v3 = vsel %vm510_vm0, %v3438_v12, -inf  ;;  %v10099_v32 = vsel %vm510_vm0, %v3445_v22, -inf  ;;  %v2691_v48 = vmax.f32 %v2541_v24, 0.0  ;;  %v10101_v17 = vpop.f32.mrb[12].mxu0 }
 0x2e3   : > { %v3458_v1 = vrot.slane %v3457_v13, 1  ;;  %v3464_v60 = vmax.f32 %v3462_v38, %v3463_v2  ;;  %v3472_v45 = vrot.slane %v3471_v27, 1  ;;  %v3478_v51 = vmax.f32 %v3476_v49, %v3477_v54  ;;  %v2337_v43 = vpop.f32.mrb[13].mxu0 }
 0x2e4   : > { %v10108_v9 = vsel %vm510_vm0, %v3452_v31, -inf  ;;  %v2787_v50 = vcombine.high %v2691_v48, %v2691_v48  ;;  %v2794_v41 = vrot.slane %v2691_v48, %v10069_v19  ;;  %v2546_v53 = vadd.f32 %v8255_v46, %v10023_v59 }
 0x2e5   : > { %v3459_v24 = vmax.f32 %v3457_v13, %v3458_v1  ;;  %v3465_v14 = vrot.slane %v3464_v60, 1  ;;  %v3473_v26 = vmax.f32 %v3471_v27, %v3472_v45  ;;  %v3479_v58 = vrot.slane %v3478_v51, 1 }
 0x2e6   : > { %v2801_v52 = vrot.slane %v2787_v50, %v10069_v19  ;;  %v2802_v4 = vcombine.high %v2794_v41, %v2794_v41  ;;  %v3481_v56 = vsel %vm513_vm2, %v2794_v41, -inf  ;;  %v2692_v20 = vmax.f32 %v2546_v53, 0.0  ;;  %v10114_v15 = vpop.f32.mrb[14].mxu0  ;;  %v10140_v53 = vpop.f32.mrb[16].mxu1 }
 0x2e7   : > { %v3466_v28 = vmax.f32 %v3464_v60, %v3465_v14  ;;  %v3480_v8 = vmax.f32 %v3478_v51, %v3479_v58  ;;  %v10117_v42 = vsel %vm510_vm0, %v3459_v24, -inf  ;;  %v10120_v47 = vsel %vm510_vm0, %v3473_v26, -inf  ;;  %v2342_v59 = vpop.f32.mrb[15].mxu0 }
 0x2e8   : > { %v2803_v46 = vcombine.high %v2801_v52, %v2801_v52  ;;  %v3482_v37 = vrot.slane %v3481_v56, 4  ;;  %v3488_v6 = vsel %vm513_vm2, %v2802_v4, -inf  ;;  %v3495_v36 = vsel %vm513_vm2, %v2801_v52, -inf  ;;  %v10146_v52 = vpop.f32.mrb[17].mxu1 }
 0x2e9   : > { %v10125_v16 = vsel %vm510_vm0, %v3466_v28, -inf  ;;  %v10128_v62 = vsel %vm510_vm0, %v3480_v8, -inf  ;;  %v3489_v38 = vrot.slane %v3488_v6, 4  ;;  %v3496_v39 = vrot.slane %v3495_v36, 4 }
 0x2ea   : > { %v3483_v49 = vmax.f32 %v3481_v56, %v3482_v37  ;;  %v3502_v44 = vsel %vm513_vm2, %v2803_v46, -inf  ;;  %v2804_v12 = vcombine.high %v2692_v20, %v2692_v20  ;;  %v2811_v22 = vrot.slane %v2692_v20, %v10069_v19  ;;  %v10132_v30 = vpop.f32.mrb[16].mxu0 }
 0x2eb   : > { %v3490_v13 = vmax.f32 %v3488_v6, %v3489_v38  ;;  %v3497_v2 = vmax.f32 %v3495_v36, %v3496_v39  ;;  %v3503_v27 = vrot.slane %v3502_v44, 4  ;;  %v10136_v54 = vadd.f32 %v10062_v34, %v10086_v25  ;;  %v2347_v31 = vpop.f32.mrb[17].mxu0 }
 0x2ec   : > { %v3484_v48 = vrot.slane %v3483_v49, 2  ;;  %v2818_v1 = vrot.slane %v2804_v12, %v10069_v19  ;;  %v2819_v60 = vcombine.high %v2811_v22, %v2811_v22  ;;  %v3509_v45 = vsel %vm513_vm2, %v2811_v22, -inf }
 0x2ed   : > { %v3491_v51 = vrot.slane %v3490_v13, 2  ;;  %v3498_v43 = vrot.slane %v3497_v2, 2  ;;  %v3504_v50 = vmax.f32 %v3502_v44, %v3503_v27  ;;  %v3510_v41 = vrot.slane %v3509_v45, 4 }
 0x2ee   : > { %v3485_v24 = vmax.f32 %v3483_v49, %v3484_v48  ;;  %v2820_v14 = vcombine.high %v2818_v1, %v2818_v1  ;;  %v3516_v25 = vsel %vm513_vm2, %v2819_v60, -inf  ;;  %v3523_v26 = vsel %vm513_vm2, %v2818_v1, -inf  ;;  %v10144_v58 = vpop.f32.mrb[18].mxu0 }
 0x2ef   : > { %v3492_v4 = vmax.f32 %v3490_v13, %v3491_v51  ;;  %v3499_v56 = vmax.f32 %v3497_v2, %v3498_v43  ;;  %v3505_v20 = vrot.slane %v3504_v50, 2  ;;  %v3511_v28 = vmax.f32 %v3509_v45, %v3510_v41  ;;  %v2352_v8 = vpop.f32.mrb[19].mxu0 }
 0x2f0   : > { %v3486_v59 = vrot.slane %v3485_v24, 1  ;;  %v3517_v46 = vrot.slane %v3516_v25, 4  ;;  %v3524_v37 = vrot.slane %v3523_v26, 4  ;;  %v3530_v6 = vsel %vm513_vm2, %v2820_v14, -inf }
 0x2f1   : > { %v3493_v36 = vrot.slane %v3492_v4, 1  ;;  %v3500_v38 = vrot.slane %v3499_v56, 1  ;;  %v3506_v39 = vmax.f32 %v3504_v50, %v3505_v20  ;;  %v3512_v49 = vrot.slane %v3511_v28, 2 }
 0x2f2   : > { %v3487_v44 = vmax.f32 %v3485_v24, %v3486_v59  ;;  %v3518_v12 = vmax.f32 %v3516_v25, %v3517_v46  ;;  %v3525_v22 = vmax.f32 %v3523_v26, %v3524_v37  ;;  %v3531_v27 = vrot.slane %v3530_v6, 4  ;;  %v10149_v13 = vpop.f32.mrb[20].mxu0 }
 0x2f3   : > { %v3494_v2 = vmax.f32 %v3492_v4, %v3493_v36  ;;  %v3501_v31 = vmax.f32 %v3499_v56, %v3500_v38  ;;  %v3507_v48 = vrot.slane %v3506_v39, 1  ;;  %v3513_v1 = vmax.f32 %v3511_v28, %v3512_v49  ;;  %v2357_v60 = vpop.f32.mrb[21].mxu0 }
 0x2f4   : > { %v4322_v45 = vsel %vm510_vm0, %v3487_v44, -inf  ;;  %v3519_v51 = vrot.slane %v3518_v12, 2  ;;  %v3526_v43 = vrot.slane %v3525_v22, 2  ;;  %v3532_v41 = vmax.f32 %v3530_v6, %v3531_v27 }
 0x2f5   : > { %v3508_v50 = vmax.f32 %v3506_v39, %v3507_v48  ;;  %v4323_v24 = vmax.f32 %v10093_v18, %v4322_v45  ;;  %v4325_v14 = vsel %vm510_vm0, %v3494_v2, -inf  ;;  %v4328_v25 = vsel %vm510_vm0, %v3501_v31, -inf }
 0x2f6   : > { %v4326_v26 = vmax.f32 %v10096_v3, %v4325_v14  ;;  %v4329_v4 = vmax.f32 %v10099_v32, %v4328_v25  ;;  %v3514_v56 = vrot.slane %v3513_v1, 1  ;;  %v3520_v20 = vmax.f32 %v3518_v12, %v3519_v51  ;;  %v10157_v28 = vpop.f32.mrb[22].mxu0 }
 0x2f7   : > { %v4331_v8 = vsel %vm510_vm0, %v3508_v50, -inf  ;;  %v3527_v59 = vmax.f32 %v3525_v22, %v3526_v43  ;;  %v3533_v46 = vrot.slane %v3532_v41, 2  ;;  %v2551_v18 = vadd.f32 %v10136_v54, %v10039_v10  ;;  %v2362_v37 = vpop.f32.mrb[23].mxu0 }
 0x2f8   : > { %v4332_v6 = vmax.f32 %v10108_v9, %v4331_v8  ;;  %v4603_v36 = vsel %vm4602_vm4, %v4326_v26, %v4323_v24  ;;  %v3515_v3 = vmax.f32 %v3513_v1, %v3514_v56  ;;  %v3521_v38 = vrot.slane %v3520_v20, 1 }
 0x2f9   : > { %v4605_v32 = vsel %vm4604_vm5, %v4329_v4, %v4603_v36  ;;  %v3528_v39 = vrot.slane %v3527_v59, 1  ;;  %v3534_v49 = vmax.f32 %v3532_v41, %v3533_v46  ;;  %v2693_v44 = vmax.f32 %v2551_v18, 0.0 }
 0x2fa   : > { %v4607_v12 = vsel %vm4606_vm6, %v4332_v6, %v4605_v32  ;;  %v3522_v22 = vmax.f32 %v3520_v20, %v3521_v38  ;;  %v4334_v27 = vsel %vm510_vm0, %v3515_v3, -inf  ;;  %v8257_v10 = vadd.f32 %v10062_v34, %v10090_v29  ;;  %v10169_v54 = vpop.f32.mrb[24].mxu0 }
 0x2fb   : > { %v3529_v9 = vmax.f32 %v3527_v59, %v3528_v39  ;;  %v3535_v2 = vrot.slane %v3534_v49, 1  ;;  %v4335_v31 = vmax.f32 %v10117_v42, %v4334_v27  ;;  %v2821_v48 = vcombine.high %v2693_v44, %v2693_v44  ;;  %v2367_v1 = vpop.f32.mrb[25].mxu0 }
 0x2fc   : > { %v4337_v60 = vsel %vm510_vm0, %v3522_v22, -inf  ;;  %v2828_v45 = vrot.slane %v2693_v44, %v10069_v19  ;;  %v2556_v51 = vadd.f32 %v8257_v10, %v10037_v57  ;;  %v8258_v43 = vadd.f32 %v10062_v34, %v10101_v17 }
 0x2fd   : > { %v3536_v41 = vmax.f32 %v3534_v49, %v3535_v2  ;;  %v4338_v29 = vmax.f32 %v10125_v16, %v4337_v60  ;;  %v4340_v50 = vsel %vm510_vm0, %v3529_v9, -inf  ;;  %v4609_v24 = vsel %vm4608_vm7, %v4335_v31, %v4607_v12 }
 0x2fe   : > { %v4341_v42 = vmax.f32 %v10120_v47, %v4340_v50  ;;  %v2835_v14 = vrot.slane %v2821_v48, %v10069_v19  ;;  %v2836_v25 = vcombine.high %v2828_v45, %v2828_v45  ;;  %v3537_v26 = vsel %vm513_vm2, %v2828_v45, -inf  ;;  %v10183_v4 = vpop.f32.mrb[26].mxu0 }
 0x2ff   : > { %v4343_v57 = vsel %vm510_vm0, %v3536_v41, -inf  ;;  %v4611_v17 = vsel %vm4610_vm8, %v4338_v29, %v4609_v24  ;;  %v3538_v56 = vrot.slane %v3537_v26, 4  ;;  %v2694_v20 = vmax.f32 %v2556_v51, 0.0  ;;  %v2372_v16 = vpop.f32.mrb[27].mxu0 }
 0x300   : > { %v4344_v8 = vmax.f32 %v10128_v62, %v4343_v57  ;;  %v4613_v59 = vsel %vm4612_vm9, %v4341_v42, %v4611_v17  ;;  %v2837_v46 = vcombine.high %v2835_v14, %v2835_v14  ;;  %v3544_v47 = vsel %vm513_vm2, %v2836_v25, -inf }
 0x301   : > { %v3539_v18 = vmax.f32 %v3537_v26, %v3538_v56  ;;  %v3545_v37 = vrot.slane %v3544_v47, 4  ;;  %v3551_v6 = vsel %vm513_vm2, %v2835_v14, -inf  ;;  %v2838_v36 = vcombine.high %v2694_v20, %v2694_v20 }
 0x302   : > { %v4615_v3 = vsel %vm4614_vm10, %v4344_v8, %v4613_v59  ;;  %v3552_v38 = vrot.slane %v3551_v6, 4  ;;  %v3558_v32 = vsel %vm513_vm2, %v2837_v46, -inf  ;;  %v2845_v39 = vrot.slane %v2694_v20, %v10069_v19  ;;  %v10194_v49 = vpop.f32.mrb[28].mxu0  ;;  %v10205_v20 = vpop.f32.mrb[18].mxu1 }
 0x303   : > { %4674 = vst.msk [vmem:[#allocation4 + $0x11] sm:$0xff] %vm510_vm0, %v4615_v3  ;;  %v3540_v62 = vrot.slane %v3539_v18, 2  ;;  %v3546_v44 = vmax.f32 %v3544_v47, %v3545_v37  ;;  %v3559_v12 = vrot.slane %v3558_v32, 4  ;;  %v2852_v22 = vrot.slane %v2838_v36, %v10069_v19  ;;  %v2377_v27 = vpop.f32.mrb[29].mxu0  ;;  %v10207_v47 = vpop.f32.mrb[19].mxu1 }
 0x304   : > { %v3553_v10 = vmax.f32 %v3551_v6, %v3552_v38  ;;  %v2853_v9 = vcombine.high %v2845_v39, %v2845_v39  ;;  %v3565_v2 = vsel %vm513_vm2, %v2845_v39, -inf  ;;  %v2561_v31 = vadd.f32 %v8258_v43, %v10044_v0 }
 0x305   : > { %v3541_v48 = vmax.f32 %v3539_v18, %v3540_v62  ;;  %v3547_v1 = vrot.slane %v3546_v44, 2  ;;  %v3560_v60 = vmax.f32 %v3558_v32, %v3559_v12  ;;  %v2854_v45 = vcombine.high %v2852_v22, %v2852_v22 }
 0x306   : > { %v3554_v51 = vrot.slane %v3553_v10, 2  ;;  %v3566_v41 = vrot.slane %v3565_v2, 4  ;;  %v3572_v29 = vsel %vm513_vm2, %v2853_v9, -inf  ;;  %v3579_v50 = vsel %vm513_vm2, %v2852_v22, -inf  ;;  %v10202_v24 = vpop.f32.mrb[30].mxu0 }
 0x307   : > { %v3542_v42 = vrot.slane %v3541_v48, 1  ;;  %v3548_v14 = vmax.f32 %v3546_v44, %v3547_v1  ;;  %v3561_v25 = vrot.slane %v3560_v60, 2  ;;  %v3573_v26 = vrot.slane %v3572_v29, 4  ;;  %v2382_v57 = vpop.f32.mrb[31].mxu0 }
 0x308   : > { %v3555_v17 = vmax.f32 %v3553_v10, %v3554_v51  ;;  %v3567_v56 = vmax.f32 %v3565_v2, %v3566_v41  ;;  %v3580_v0 = vrot.slane %v3579_v50, 4  ;;  %v3586_v43 = vsel %vm513_vm2, %v2854_v45, -inf }
 0x309   : > { %v3543_v16 = vmax.f32 %v3541_v48, %v3542_v42  ;;  %v3549_v8 = vrot.slane %v3548_v14, 1  ;;  %v3562_v59 = vmax.f32 %v3560_v60, %v3561_v25  ;;  %v3574_v46 = vmax.f32 %v3572_v29, %v3573_v26 }
 0x30a   : > { %v3556_v18 = vrot.slane %v3555_v17, 1  ;;  %v3568_v37 = vrot.slane %v3567_v56, 2  ;;  %v3581_v6 = vmax.f32 %v3579_v50, %v3580_v0  ;;  %v3587_v36 = vrot.slane %v3586_v43, 4  ;;  %v4762_v3 = vld [vmem:[#allocation4 + $0x10] sm:$0xff]  ;;  %v10209_v32 = vpop.f32.mrb[32].mxu0 }
 0x30b   : > { %v4699_v38 = vld [vmem:[#allocation4 + $0x11] sm:$0xff]  ;;  %v3550_v39 = vmax.f32 %v3548_v14, %v3549_v8  ;;  %v3563_v62 = vrot.slane %v3562_v59, 1  ;;  %v10212_v44 = vsel %vm510_vm0, %v3543_v16, -inf  ;;  %v3575_v12 = vrot.slane %v3574_v46, 2  ;;  %4778 = vrot.lane.b32.xlu0 %v4762_v3, %s8748_s1  ;;  %v2387_v22 = vpop.f32.mrb[33].mxu0 }
 0x30c   : > { %4716 = vrot.lane.b32.xlu1 %v4699_v38, %s8748_s1  ;;  %v3557_v27 = vmax.f32 %v3555_v17, %v3556_v18  ;;  %v3569_v10 = vmax.f32 %v3567_v56, %v3568_v37  ;;  %v3582_v9 = vrot.slane %v3581_v6, 2  ;;  %v3588_v2 = vmax.f32 %v3586_v43, %v3587_v36 }
 0x30d   : > { %v3564_v48 = vmax.f32 %v3562_v59, %v3563_v62  ;;  %v10217_v1 = vsel %vm510_vm0, %v3550_v39, -inf  ;;  %v3576_v60 = vmax.f32 %v3574_v46, %v3575_v12  ;;  %v2695_v45 = vmax.f32 %v2561_v31, 0.0 }
 0x30e   : > { %v10220_v51 = vsel %vm510_vm0, %v3557_v27, -inf  ;;  %v3570_v41 = vrot.slane %v3569_v10, 1  ;;  %v3583_v29 = vmax.f32 %v3581_v6, %v3582_v9  ;;  %v3589_v50 = vrot.slane %v3588_v2, 2  ;;  %v10222_v42 = vpop.f32.mrb[34].mxu0 }
 0x30f   : > { %v10225_v14 = vsel %vm510_vm0, %v3564_v48, -inf  ;;  %v3577_v25 = vrot.slane %v3576_v60, 1  ;;  %v2855_v26 = vcombine.high %v2695_v45, %v2695_v45  ;;  %v2862_v57 = vrot.slane %v2695_v45, %v10069_v19  ;;  %v2392_v17 = vpop.f32.mrb[35].mxu0 }
 0x310   : > { %v3571_v56 = vmax.f32 %v3569_v10, %v3570_v41  ;;  %v3584_v0 = vrot.slane %v3583_v29, 1  ;;  %v3590_v43 = vmax.f32 %v3588_v2, %v3589_v50  ;;  %v8259_v31 = vadd.f32 %v10062_v34, %v10114_v15 }
 0x311   : > { %v3578_v16 = vmax.f32 %v3576_v60, %v3577_v25  ;;  %v2869_v8 = vrot.slane %v2855_v26, %v10069_v19  ;;  %v2870_v59 = vcombine.high %v2862_v57, %v2862_v57  ;;  %v3593_v46 = vsel %vm513_vm2, %v2862_v57, -inf }
 0x312   : > { %v3585_v18 = vmax.f32 %v3583_v29, %v3584_v0  ;;  %v3591_v37 = vrot.slane %v3590_v43, 1  ;;  %v10233_v6 = vsel %vm510_vm0, %v3571_v56, -inf  ;;  %v3594_v36 = vrot.slane %v3593_v46, 4  ;;  %v10235_v3 = vpop.f32.mrb[36].mxu0 }
 0x313   : > { %v10238_v38 = vsel %vm510_vm0, %v3578_v16, -inf  ;;  %v2871_v39 = vcombine.high %v2869_v8, %v2869_v8  ;;  %v3600_v15 = vsel %vm513_vm2, %v2870_v59, -inf  ;;  %v3607_v62 = vsel %vm513_vm2, %v2869_v8, -inf  ;;  %v2397_v12 = vpop.f32.mrb[37].mxu0 }
 0x314   : > { %v3592_v22 = vmax.f32 %v3590_v43, %v3591_v37  ;;  %v10243_v27 = vsel %vm510_vm0, %v3585_v18, -inf  ;;  %v3595_v10 = vmax.f32 %v3593_v46, %v3594_v36  ;;  %v3601_v9 = vrot.slane %v3600_v15, 4 }
 0x315   : > { %v3608_v2 = vrot.slane %v3607_v62, 4  ;;  %v3614_v48 = vsel %vm513_vm2, %v2871_v39, -inf  ;;  %v2566_v60 = vadd.f32 %v8259_v31, %v10042_v35  ;;  %v8260_v45 = vadd.f32 %v10062_v34, %v10132_v30 }
 0x316   : > { %v10250_v41 = vsel %vm510_vm0, %v3592_v22, -inf  ;;  %v3596_v29 = vrot.slane %v3595_v10, 2  ;;  %v3602_v50 = vmax.f32 %v3600_v15, %v3601_v9  ;;  %v3615_v25 = vrot.slane %v3614_v48, 4  ;;  %v10252_v26 = vpop.f32.mrb[38].mxu0 }
 0x317   : > { %v3609_v57 = vmax.f32 %v3607_v62, %v3608_v2  ;;  %v2696_v17 = vmax.f32 %v2566_v60, 0.0  ;;  %v2571_v56 = vadd.f32 %v8260_v45, %v10048_v7  ;;  %v8261_v0 = vadd.f32 %v10062_v34, %v10144_v58  ;;  %v2402_v43 = vpop.f32.mrb[39].mxu0  ;;  %v10267_v60 = vpop.f32.mrb[20].mxu1 }
 0x318   : > { %v3597_v35 = vmax.f32 %v3595_v10, %v3596_v29  ;;  %v3603_v31 = vrot.slane %v3602_v50, 2  ;;  %v3616_v16 = vmax.f32 %v3614_v48, %v3615_v25  ;;  %v10259_v30 = vadd.f32 %v10062_v34, %v10149_v13  ;;  %v10271_v25 = vpop.f32.mrb[21].mxu1 }
 0x319   : > { %v3610_v8 = vrot.slane %v3609_v57, 2  ;;  %v2872_v59 = vcombine.high %v2696_v17, %v2696_v17  ;;  %v2879_v46 = vrot.slane %v2696_v17, %v10069_v19  ;;  %v2697_v18 = vmax.f32 %v2571_v56, 0.0 }
 0x31a   : > { %v3598_v37 = vrot.slane %v3597_v35, 1  ;;  %v3604_v36 = vmax.f32 %v3602_v50, %v3603_v31  ;;  %v3617_v39 = vrot.slane %v3616_v16, 2  ;;  %v2576_v7 = vadd.f32 %v8261_v0, %v10046_v21  ;;  %v10265_v22 = vpop.f32.mrb[40].mxu0 }
 0x31b   : > { %v3611_v15 = vmax.f32 %v3609_v57, %v3610_v8  ;;  %v2886_v58 = vrot.slane %v2872_v59, %v10069_v19  ;;  %v2887_v62 = vcombine.high %v2879_v46, %v2879_v46  ;;  %v3621_v12 = vsel %vm513_vm2, %v2879_v46, -inf  ;;  %v2407_v48 = vpop.f32.mrb[41].mxu0 }
 0x31c   : > { %v3599_v13 = vmax.f32 %v3597_v35, %v3598_v37  ;;  %v3605_v10 = vrot.slane %v3604_v36, 1  ;;  %v3618_v9 = vmax.f32 %v3616_v16, %v3617_v39  ;;  %v3622_v2 = vrot.slane %v3621_v12, 4 }
 0x31d   : > { %v3612_v45 = vrot.slane %v3611_v15, 1  ;;  %v2888_v29 = vcombine.high %v2886_v58, %v2886_v58  ;;  %v3628_v50 = vsel %vm513_vm2, %v2887_v62, -inf  ;;  %v3635_v21 = vsel %vm513_vm2, %v2886_v58, -inf }
 0x31e   : > { %v3606_v57 = vmax.f32 %v3604_v36, %v3605_v10  ;;  %v3619_v17 = vrot.slane %v3618_v9, 1  ;;  %v4346_v56 = vsel %vm510_vm0, %v3599_v13, -inf  ;;  %v3623_v0 = vmax.f32 %v3621_v12, %v3622_v2 }
 0x31f   : > { %v3613_v43 = vmax.f32 %v3611_v15, %v3612_v45  ;;  %v4347_v35 = vmax.f32 %v10212_v44, %v4346_v56  ;;  %v3629_v31 = vrot.slane %v3628_v50, 4  ;;  %v3636_v16 = vrot.slane %v3635_v21, 4 }
 0x320   : > { %v3620_v8 = vmax.f32 %v3618_v9, %v3619_v17  ;;  %v4349_v59 = vsel %vm510_vm0, %v3606_v57, -inf  ;;  %v3624_v46 = vrot.slane %v3623_v0, 2  ;;  %v3642_v37 = vsel %vm513_vm2, %v2888_v29, -inf }
 0x321   : > { %v4350_v39 = vmax.f32 %v10217_v1, %v4349_v59  ;;  %v4352_v58 = vsel %vm510_vm0, %v3613_v43, -inf  ;;  %v3630_v36 = vmax.f32 %v3628_v50, %v3629_v31  ;;  %v3637_v62 = vmax.f32 %v3635_v21, %v3636_v16  ;;  %v10288_v59 = vpop.f32.mrb[42].mxu0 }
 0x322   : > { %v4353_v13 = vmax.f32 %v10220_v51, %v4352_v58  ;;  %v4355_v15 = vsel %vm510_vm0, %v3620_v8, -inf  ;;  %v3625_v12 = vmax.f32 %v3623_v0, %v3624_v46  ;;  %v3643_v44 = vrot.slane %v3642_v37, 4 }
 0x323   : > { %v4356_v10 = vmax.f32 %v10225_v14, %v4355_v15  ;;  %v4616_v9 = vsel %vm4602_vm4, %v4350_v39, %v4347_v35  ;;  %v3631_v2 = vrot.slane %v3630_v36, 2  ;;  %v3638_v48 = vrot.slane %v3637_v62, 2 }
 0x324   : > { %v4617_v45 = vsel %vm4604_vm5, %v4353_v13, %v4616_v9  ;;  %v3626_v29 = vrot.slane %v3625_v12, 1  ;;  %v3644_v1 = vmax.f32 %v3642_v37, %v3643_v44  ;;  %v2889_v57 = vcombine.high %v2697_v18, %v2697_v18 }
 0x325   : > { %v4618_v50 = vsel %vm4606_vm6, %v4356_v10, %v4617_v45  ;;  %v3632_v21 = vmax.f32 %v3630_v36, %v3631_v2  ;;  %v3639_v17 = vmax.f32 %v3637_v62, %v3638_v48  ;;  %v2896_v51 = vrot.slane %v2697_v18, %v10069_v19  ;;  %v2412_v36 = vpop.f32.mrb[43].mxu0 }
 0x326   : > { %v3627_v56 = vmax.f32 %v3625_v12, %v3626_v29  ;;  %v3645_v0 = vrot.slane %v3644_v1, 2  ;;  %v2903_v43 = vrot.slane %v2889_v57, %v10069_v19  ;;  %v2698_v14 = vmax.f32 %v2576_v7, 0.0 }
 0x327   : > { %v3633_v31 = vrot.slane %v3632_v21, 1  ;;  %v3640_v35 = vrot.slane %v3639_v17, 1  ;;  %v2904_v16 = vcombine.high %v2896_v51, %v2896_v51  ;;  %v3649_v8 = vsel %vm513_vm2, %v2896_v51, -inf }
 0x328   : > { %v3646_v46 = vmax.f32 %v3644_v1, %v3645_v0  ;;  %v4358_v37 = vsel %vm510_vm0, %v3627_v56, -inf  ;;  %v2905_v39 = vcombine.high %v2903_v43, %v2903_v43  ;;  %v3650_v58 = vrot.slane %v3649_v8, 4 }
 0x329   : > { %v3634_v62 = vmax.f32 %v3632_v21, %v3633_v31  ;;  %v3641_v18 = vmax.f32 %v3639_v17, %v3640_v35  ;;  %v4359_v13 = vmax.f32 %v10233_v6, %v4358_v37  ;;  %v3656_v15 = vsel %vm513_vm2, %v2904_v16, -inf }
 0x32a   : > { %v3647_v7 = vrot.slane %v3646_v46, 1  ;;  %v3651_v12 = vmax.f32 %v3649_v8, %v3650_v58  ;;  %v3657_v44 = vrot.slane %v3656_v15, 4  ;;  %v3663_v10 = vsel %vm513_vm2, %v2903_v43, -inf }
 0x32b   : > { %v4361_v9 = vsel %vm510_vm0, %v3634_v62, -inf  ;;  %v4364_v2 = vsel %vm510_vm0, %v3641_v18, -inf  ;;  %v4619_v48 = vsel %vm4608_vm7, %v4359_v13, %v4618_v50  ;;  %v3664_v45 = vrot.slane %v3663_v10, 4 }
 0x32c   : > { %v3648_v29 = vmax.f32 %v3646_v46, %v3647_v7  ;;  %v4362_v1 = vmax.f32 %v10238_v38, %v4361_v9  ;;  %v4365_v57 = vmax.f32 %v10243_v27, %v4364_v2  ;;  %v3652_v6 = vrot.slane %v3651_v12, 2 }
 0x32d   : > { %v3658_v21 = vmax.f32 %v3656_v15, %v3657_v44  ;;  %v3665_v17 = vmax.f32 %v3663_v10, %v3664_v45  ;;  %v3670_v51 = vsel %vm513_vm2, %v2905_v39, -inf  ;;  %v2906_v56 = vcombine.high %v2698_v14, %v2698_v14 }
 0x32e   : > { %v4367_v0 = vsel %vm510_vm0, %v3648_v29, -inf  ;;  %v4620_v43 = vsel %vm4610_vm8, %v4362_v1, %v4619_v48  ;;  %v3653_v31 = vmax.f32 %v3651_v12, %v3652_v6  ;;  %v3671_v35 = vrot.slane %v3670_v51, 4 }
 0x32f   : > { %v4368_v50 = vmax.f32 %v10250_v41, %v4367_v0  ;;  %v4621_v16 = vsel %vm4612_vm9, %v4365_v57, %v4620_v43  ;;  %v3659_v8 = vrot.slane %v3658_v21, 2  ;;  %v3666_v38 = vrot.slane %v3665_v17, 2 }
 0x330   : > { %v3654_v46 = vrot.slane %v3653_v31, 1  ;;  %v3672_v27 = vmax.f32 %v3670_v51, %v3671_v35  ;;  %v2913_v37 = vrot.slane %v2698_v14, %v10069_v19  ;;  %v2920_v58 = vrot.slane %v2906_v56, %v10069_v19 }
 0x331   : > { %v4622_v39 = vsel %vm4614_vm10, %v4368_v50, %v4621_v16  ;;  %v3660_v36 = vmax.f32 %v3658_v21, %v3659_v8  ;;  %v3667_v62 = vmax.f32 %v3665_v17, %v3666_v38  ;;  %v2581_v18 = vadd.f32 %v10259_v30, %v10052_v5  ;;  %v10316_v5 = vpop.f32.mrb[44].mxu0  ;;  %v10318_v21 = vpop.f32.mrb[22].mxu1 }
 0x332   : > { %4675 = vst.msk [vmem:[#allocation4 + $0x21] sm:$0xff] %vm510_vm0, %v4622_v39  ;;  %v3655_v41 = vmax.f32 %v3653_v31, %v3654_v46  ;;  %v3673_v13 = vrot.slane %v3672_v27, 2  ;;  %v2921_v15 = vcombine.high %v2913_v37, %v2913_v37  ;;  %v2922_v7 = vcombine.high %v2920_v58, %v2920_v58  ;;  %v2417_v6 = vpop.f32.mrb[45].mxu0  ;;  %v10321_v43 = vpop.f32.mrb[23].mxu1 }
 0x333   : > { %v3661_v12 = vrot.slane %v3660_v36, 1  ;;  %v3668_v44 = vrot.slane %v3667_v62, 1  ;;  %v3677_v10 = vsel %vm513_vm2, %v2913_v37, -inf  ;;  %v3691_v14 = vsel %vm513_vm2, %v2920_v58, -inf }
 0x334   : > { %v3674_v9 = vmax.f32 %v3672_v27, %v3673_v13  ;;  %v10313_v2 = vsel %vm510_vm0, %v3655_v41, -inf  ;;  %v3678_v48 = vrot.slane %v3677_v10, 4  ;;  %v3684_v45 = vsel %vm513_vm2, %v2921_v15, -inf }
 0x335   : > { %v3662_v30 = vmax.f32 %v3660_v36, %v3661_v12  ;;  %v3669_v29 = vmax.f32 %v3667_v62, %v3668_v44  ;;  %v3685_v1 = vrot.slane %v3684_v45, 4  ;;  %v3692_v57 = vrot.slane %v3691_v14, 4  ;;  %v10338_v12 = vpop.f32.mrb[46].mxu0 }
 0x336   : > { %v3675_v17 = vrot.slane %v3674_v9, 1  ;;  %v3679_v51 = vmax.f32 %v3677_v10, %v3678_v48  ;;  %v3698_v56 = vsel %vm513_vm2, %v2922_v7, -inf  ;;  %v2699_v0 = vmax.f32 %v2581_v18, 0.0 }
 0x337   : > { %v10324_v31 = vsel %vm510_vm0, %v3662_v30, -inf  ;;  %v10327_v35 = vsel %vm510_vm0, %v3669_v29, -inf  ;;  %v3686_v50 = vmax.f32 %v3684_v45, %v3685_v1  ;;  %v3693_v16 = vmax.f32 %v3691_v14, %v3692_v57 }
 0x338   : > { %v3676_v8 = vmax.f32 %v3674_v9, %v3675_v17  ;;  %v3680_v38 = vrot.slane %v3679_v51, 2  ;;  %v3699_v46 = vrot.slane %v3698_v56, 4  ;;  %v2923_v27 = vcombine.high %v2699_v0, %v2699_v0 }
 0x339   : > { %v3687_v37 = vrot.slane %v3686_v50, 2  ;;  %v3694_v58 = vrot.slane %v3693_v16, 2  ;;  %v2930_v39 = vrot.slane %v2699_v0, %v10069_v19  ;;  %v8263_v36 = vadd.f32 %v10062_v34, %v10157_v28  ;;  %v4763_v62 = vld [vmem:[#allocation4 + $0x20] sm:$0xff]  ;;  %v2422_v28 = vpop.f32.mrb[47].mxu0 }
 0x33a   : > { %v4700_v18 = vld [vmem:[#allocation4 + $0x21] sm:$0xff]  ;;  %v10333_v41 = vsel %vm510_vm0, %v3676_v8, -inf  ;;  %v3681_v13 = vmax.f32 %v3679_v51, %v3680_v38  ;;  %v3700_v15 = vmax.f32 %v3698_v56, %v3699_v46  ;;  %v2937_v7 = vrot.slane %v2923_v27, %v10069_v19  ;;  %4780 = vrot.lane.b32.xlu0 %v4763_v62, %s8748_s1  ;;  %v10357_v28 = vld [vmem:[%s11442_s2] ss:$0 sm:$0xff] }
 0x33b   : > { %4718 = vrot.lane.b32.xlu1 %v4700_v18, %s8748_s1  ;;  %v3688_v44 = vmax.f32 %v3686_v50, %v3687_v37  ;;  %v3695_v10 = vmax.f32 %v3693_v16, %v3694_v58  ;;  %v2938_v14 = vcombine.high %v2930_v39, %v2930_v39  ;;  %v3705_v34 = vsel %vm513_vm2, %v2930_v39, -inf }
 0x33c   : > { %v3682_v9 = vrot.slane %v3681_v13, 1  ;;  %v3701_v48 = vrot.slane %v3700_v15, 2  ;;  %v2939_v45 = vcombine.high %v2937_v7, %v2937_v7  ;;  %v3706_v30 = vrot.slane %v3705_v34, 4 }
 0x33d   : > { %v3689_v29 = vrot.slane %v3688_v44, 1  ;;  %v3696_v1 = vrot.slane %v3695_v10, 1  ;;  %v3712_v57 = vsel %vm513_vm2, %v2938_v14, -inf  ;;  %v3719_v6 = vsel %vm513_vm2, %v2937_v7, -inf }
 0x33e   : > { %v3683_v17 = vmax.f32 %v3681_v13, %v3682_v9  ;;  %v3702_v51 = vmax.f32 %v3700_v15, %v3701_v48  ;;  %v3707_v56 = vmax.f32 %v3705_v34, %v3706_v30  ;;  %v3713_v0 = vrot.slane %v3712_v57, 4 }
 0x33f   : > { %v3690_v50 = vmax.f32 %v3688_v44, %v3689_v29  ;;  %v3697_v16 = vmax.f32 %v3695_v10, %v3696_v1  ;;  %v3720_v8 = vrot.slane %v3719_v6, 4  ;;  %v3726_v38 = vsel %vm513_vm2, %v2939_v45, -inf }
 0x340   : > { %v3703_v46 = vrot.slane %v3702_v51, 1  ;;  %v10345_v27 = vsel %vm510_vm0, %v3683_v17, -inf  ;;  %v3708_v37 = vrot.slane %v3707_v56, 2  ;;  %v3714_v58 = vmax.f32 %v3712_v57, %v3713_v0 }
 0x341   : > { %v10348_v39 = vsel %vm510_vm0, %v3690_v50, -inf  ;;  %v10351_v62 = vsel %vm510_vm0, %v3697_v16, -inf  ;;  %v3721_v18 = vmax.f32 %v3719_v6, %v3720_v8  ;;  %v3727_v13 = vrot.slane %v3726_v38, 4  ;;  %v10371_v8 = vpop.f32.mrb[48].mxu0 }
 0x342   : > { %v3704_v15 = vmax.f32 %v3702_v51, %v3703_v46  ;;  %v3709_v7 = vmax.f32 %v3707_v56, %v3708_v37  ;;  %v3715_v44 = vrot.slane %v3714_v58, 2  ;;  %v2586_v10 = vadd.f32 %v8263_v36, %v10050_v61 }
 0x343   : > { %v3722_v14 = vrot.slane %v3721_v18, 2  ;;  %v3728_v34 = vmax.f32 %v3726_v38, %v3727_v13  ;;  %v8264_v9 = vadd.f32 %v10357_v28, %v10169_v54  ;;  %v8265_v48 = vadd.f32 %v10357_v28, %v10183_v4 }
 0x344   : > { %v10364_v45 = vsel %vm510_vm0, %v3704_v15, -inf  ;;  %v3710_v30 = vrot.slane %v3709_v7, 1  ;;  %v3716_v29 = vmax.f32 %v3714_v58, %v3715_v44  ;;  %v2700_v1 = vmax.f32 %v2586_v10, 0.0  ;;  %v2427_v58 = vpop.f32.mrb[49].mxu0 }
 0x345   : > { %v3723_v61 = vmax.f32 %v3721_v18, %v3722_v14  ;;  %v3729_v36 = vrot.slane %v3728_v34, 2  ;;  %v2591_v57 = vadd.f32 %v8264_v9, %v10057_v23  ;;  %v2596_v6 = vadd.f32 %v8265_v48, %v10055_v63  ;;  %v4683_v58 = vld [vmem:[#allocation4 + $0x10] sm:$0xff] }
 0x346   : > { %v3711_v17 = vmax.f32 %v3709_v7, %v3710_v30  ;;  %v3717_v51 = vrot.slane %v3716_v29, 1  ;;  %v2940_v56 = vcombine.high %v2700_v1, %v2700_v1  ;;  %v2947_v54 = vrot.slane %v2700_v1, %v10069_v19  ;;  %4691 = vst.msk [vmem:[#allocation5 + $0x28] sm:$0xff] %vm510_vm0, %v4683_v58 }
 0x347   : > { %v3724_v0 = vrot.slane %v3723_v61, 1  ;;  %v3730_v50 = vmax.f32 %v3728_v34, %v3729_v36  ;;  %v2701_v4 = vmax.f32 %v2591_v57, 0.0  ;;  %v10369_v16 = vmax.f32 %v2596_v6, 0.0  ;;  %v10379_v34 = vpop.f32.mrb[24].mxu1 }
 0x348   : > { %v3718_v38 = vmax.f32 %v3716_v29, %v3717_v51  ;;  %v4370_v46 = vsel %vm510_vm0, %v3711_v17, -inf  ;;  %v2954_v37 = vrot.slane %v2940_v56, %v10069_v19  ;;  %v2955_v23 = vcombine.high %v2947_v54, %v2947_v54  ;;  %v10383_v1 = vpop.f32.mrb[25].mxu1 }
 0x349   : > { %v3725_v63 = vmax.f32 %v3723_v61, %v3724_v0  ;;  %v3731_v18 = vrot.slane %v3730_v50, 1  ;;  %v4371_v13 = vmax.f32 %v10313_v2, %v4370_v46  ;;  %v3733_v15 = vsel %vm513_vm2, %v2947_v54, -inf }
 0x34a   : > { %v4373_v7 = vsel %vm510_vm0, %v3718_v38, -inf  ;;  %v2956_v44 = vcombine.high %v2954_v37, %v2954_v37  ;;  %v3734_v10 = vrot.slane %v3733_v15, 4  ;;  %v3740_v14 = vsel %vm513_vm2, %v2955_v23, -inf }
 0x34b   : > { %v3732_v9 = vmax.f32 %v3730_v50, %v3731_v18  ;;  %v4374_v48 = vmax.f32 %v10324_v31, %v4373_v7  ;;  %v4376_v30 = vsel %vm510_vm0, %v3725_v63, -inf  ;;  %v3741_v29 = vrot.slane %v3740_v14, 4  ;;  %v4810_v63 = vld [vmem:[#allocation4 + $0x11] sm:$0xff] }
 0x34c   : > { %v4377_v2 = vmax.f32 %v10327_v35, %v4376_v30  ;;  %v3735_v61 = vmax.f32 %v3733_v15, %v3734_v10  ;;  %v3747_v36 = vsel %vm513_vm2, %v2954_v37, -inf  ;;  %v3754_v57 = vsel %vm513_vm2, %v2956_v44, -inf  ;;  %v10393_v37 = vld [vmem:[#allocation4 + $0x12] sm:$0xff]  ;;  %4818 = vst.msk [vmem:[#allocation5 + $0x10] sm:$0xff] %vm510_vm0, %v4810_v63 }
 0x34d   : > { %v4379_v6 = vsel %vm510_vm0, %v3732_v9, -inf  ;;  %v4623_v17 = vsel %vm4602_vm4, %v4374_v48, %v4371_v13  ;;  %v3742_v51 = vmax.f32 %v3740_v14, %v3741_v29  ;;  %v3748_v56 = vrot.slane %v3747_v36, 4  ;;  %11498 = vst [vmem:[#allocation26_spill] sm:$0xff] %v10393_v37  ;;  %4755 = vst.msk [vmem:[#allocation5 + $0x30] sm:$0xff] %vm510_vm0, %v10393_v37 }
 0x34e   : > { %v4380_v31 = vmax.f32 %v10333_v41, %v4379_v6  ;;  %v4624_v54 = vsel %vm4604_vm5, %v4377_v2, %v4623_v17  ;;  %v3736_v0 = vrot.slane %v3735_v61, 2  ;;  %v3755_v50 = vrot.slane %v3754_v57, 4 }
 0x34f   : > { %v3743_v38 = vrot.slane %v3742_v51, 2  ;;  %v3749_v46 = vmax.f32 %v3747_v36, %v3748_v56  ;;  %v2957_v35 = vcombine.high %v2701_v4, %v2701_v4  ;;  %v2964_v23 = vrot.slane %v2701_v4, %v10069_v19 }
 0x350   : > { %v4625_v18 = vsel %vm4606_vm6, %v4380_v31, %v4624_v54  ;;  %v3737_v13 = vmax.f32 %v3735_v61, %v3736_v0  ;;  %v3756_v15 = vmax.f32 %v3754_v57, %v3755_v50  ;;  %v2974_v41 = vcombine.high %v10369_v16, %v10369_v16  ;;  %v10408_v50 = vpop.f32.mrb[50].mxu0 }
 0x351   : > { %v3744_v7 = vmax.f32 %v3742_v51, %v3743_v38  ;;  %v3750_v4 = vrot.slane %v3749_v46, 2  ;;  %v2971_v44 = vrot.slane %v2957_v35, %v10069_v19  ;;  %v2972_v10 = vcombine.high %v2964_v23, %v2964_v23 }
 0x352   : > { %v3738_v14 = vrot.slane %v3737_v13, 1  ;;  %v3757_v9 = vrot.slane %v3756_v15, 2  ;;  %v3761_v48 = vsel %vm513_vm2, %v2964_v23, -inf  ;;  %v2981_v30 = vrot.slane %v10369_v16, %v10069_v19  ;;  %v2432_v23 = vpop.f32.mrb[51].mxu0 }
 0x353   : > { %v3745_v29 = vrot.slane %v3744_v7, 1  ;;  %v3751_v2 = vmax.f32 %v3749_v46, %v3750_v4  ;;  %v2973_v61 = vcombine.high %v2971_v44, %v2971_v44  ;;  %v3762_v36 = vrot.slane %v3761_v48, 4  ;;  %v10426_v23 = vpop.f32.mrb[26].mxu1 }
 0x354   : > { %v3739_v57 = vmax.f32 %v3737_v13, %v3738_v14  ;;  %v3758_v6 = vmax.f32 %v3756_v15, %v3757_v9  ;;  %v3768_v17 = vsel %vm513_vm2, %v2972_v10, -inf  ;;  %v3775_v51 = vsel %vm513_vm2, %v2971_v44, -inf }
 0x355   : > { %v3746_v56 = vmax.f32 %v3744_v7, %v3745_v29  ;;  %v3752_v31 = vrot.slane %v3751_v2, 1  ;;  %v3763_v54 = vmax.f32 %v3761_v48, %v3762_v36  ;;  %v3769_v0 = vrot.slane %v3768_v17, 4 }
 0x356   : > { %v3759_v38 = vrot.slane %v3758_v6, 1  ;;  %v4382_v35 = vsel %vm510_vm0, %v3739_v57, -inf  ;;  %v3776_v16 = vrot.slane %v3775_v51, 4  ;;  %v3782_v46 = vsel %vm513_vm2, %v2973_v61, -inf }
 0x357   : > { %v3753_v58 = vmax.f32 %v3751_v2, %v3752_v31  ;;  %v4383_v63 = vmax.f32 %v10345_v27, %v4382_v35  ;;  %v4385_v13 = vsel %vm510_vm0, %v3746_v56, -inf  ;;  %v3764_v15 = vrot.slane %v3763_v54, 2 }
 0x358   : > { %v3760_v4 = vmax.f32 %v3758_v6, %v3759_v38  ;;  %v4386_v7 = vmax.f32 %v10348_v39, %v4385_v13  ;;  %v3770_v44 = vmax.f32 %v3768_v17, %v3769_v0  ;;  %v3777_v10 = vmax.f32 %v3775_v51, %v3776_v16 }
 0x359   : > { %v4388_v14 = vsel %vm510_vm0, %v3753_v58, -inf  ;;  %v4626_v9 = vsel %vm4608_vm7, %v4383_v63, %v4625_v18  ;;  %v3765_v48 = vmax.f32 %v3763_v54, %v3764_v15  ;;  %v3783_v29 = vrot.slane %v3782_v46, 4  ;;  %v10423_v54 = vpop.f32.mrb[52].mxu0 }
 0x35a   : > { %v4389_v61 = vmax.f32 %v10351_v62, %v4388_v14  ;;  %v4391_v2 = vsel %vm510_vm0, %v3760_v4, -inf  ;;  %v4627_v27 = vsel %vm4610_vm8, %v4386_v7, %v4626_v9  ;;  %v3771_v36 = vrot.slane %v3770_v44, 2  ;;  %v2437_v16 = vpop.f32.mrb[53].mxu0  ;;  %v4684_v14 = vld [vmem:[#allocation4 + $0x20] sm:$0xff] }
 0x35b   : > { %v4392_v57 = vmax.f32 %v10364_v45, %v4391_v2  ;;  %v3766_v6 = vrot.slane %v3765_v48, 1  ;;  %v3778_v56 = vrot.slane %v3777_v10, 2  ;;  %v3784_v39 = vmax.f32 %v3782_v46, %v3783_v29  ;;  %4692 = vst.msk [vmem:[#allocation5 + $0x50] sm:$0xff] %vm510_vm0, %v4684_v14  ;;  %4883 = vst.msk [vmem:[#allocation5 + $0x18] sm:$0xff] %vm510_vm0, %v4684_v14 }
 0x35c   : > { %v4628_v17 = vsel %vm4612_vm9, %v4389_v61, %v4627_v27  ;;  %v3772_v51 = vmax.f32 %v3770_v44, %v3771_v36  ;;  %v2988_v31 = vrot.slane %v2974_v41, %v10069_v19  ;;  %v2989_v18 = vcombine.high %v2981_v30, %v2981_v30  ;;  %v10431_v41 = vpop.f32.mrb[27].mxu1  ;;  %v10436_v44 = vld [vmem:[#allocation4 + $0x22] sm:$0xff] }
 0x35d   : > { %v4629_v62 = vsel %vm4614_vm10, %v4392_v57, %v4628_v17  ;;  %v3767_v0 = vmax.f32 %v3765_v48, %v3766_v6  ;;  %v3779_v38 = vmax.f32 %v3777_v10, %v3778_v56  ;;  %v3785_v35 = vrot.slane %v3784_v39, 2  ;;  %11499 = vst [vmem:[#allocation27_spill] sm:$0xff] %v10436_v44  ;;  %v10438_v10 = vld [vmem:[#allocation4 + $0x21] sm:$0xff]  ;;  %4756 = vst.msk [vmem:[#allocation5 + $0x58] sm:$0xff] %vm510_vm0, %v10436_v44 }
 0x35e   : > { %4676 = vst.msk [vmem:[#allocation4 + $0x31] sm:$0xff] %vm510_vm0, %v4629_v62  ;;  %v3773_v45 = vrot.slane %v3772_v51, 1  ;;  %v2990_v46 = vcombine.high %v2988_v31, %v2988_v31  ;;  %v3789_v58 = vsel %vm513_vm2, %v2981_v30, -inf  ;;  %v3796_v63 = vsel %vm513_vm2, %v2989_v18, -inf  ;;  %11500 = vst [vmem:[#allocation28_spill] sm:$0xff] %v10438_v10 }
 0x35f   : > { %v3780_v13 = vrot.slane %v3779_v38, 1  ;;  %v3786_v15 = vmax.f32 %v3784_v39, %v3785_v35  ;;  %v10434_v4 = vsel %vm510_vm0, %v3767_v0, -inf  ;;  %v3790_v7 = vrot.slane %v3789_v58, 4  ;;  %4819 = vst.msk [vmem:[#allocation5 + $0x38] sm:$0xff] %vm510_vm0, %v10438_v10  ;;  %4947 = vst.msk [vmem:[#allocation5 + $0x20] sm:$0xff] %vm510_vm0, %v10436_v44  ;;  %v10516_v10 = vpop.f32.mrb[28].mxu1 }
 0x360   : > { %v3774_v9 = vmax.f32 %v3772_v51, %v3773_v45  ;;  %v3797_v48 = vrot.slane %v3796_v63, 4  ;;  %v3803_v29 = vsel %vm513_vm2, %v2988_v31, -inf  ;;  %v3810_v30 = vsel %vm513_vm2, %v2990_v46, -inf }
 0x361   : > { %v3781_v61 = vmax.f32 %v3779_v38, %v3780_v13  ;;  %v3787_v2 = vrot.slane %v3786_v15, 1  ;;  %v3791_v27 = vmax.f32 %v3789_v58, %v3790_v7  ;;  %v3804_v36 = vrot.slane %v3803_v29, 4 }
 0x362   : > { %v10451_v57 = vsel %vm510_vm0, %v3774_v9, -inf  ;;  %v3798_v6 = vmax.f32 %v3796_v63, %v3797_v48  ;;  %v3811_v56 = vrot.slane %v3810_v30, 4  ;;  %v8266_v39 = vadd.f32 %v10357_v28, %v10194_v49 }
 0x363   : > { %v3788_v17 = vmax.f32 %v3786_v15, %v3787_v2  ;;  %v10456_v51 = vsel %vm510_vm0, %v3781_v61, -inf  ;;  %v3792_v31 = vrot.slane %v3791_v27, 2  ;;  %v3805_v18 = vmax.f32 %v3803_v29, %v3804_v36 }
 0x364   : > { %v3799_v62 = vrot.slane %v3798_v6, 2  ;;  %v3812_v0 = vmax.f32 %v3810_v30, %v3811_v56  ;;  %v2601_v38 = vadd.f32 %v8266_v39, %v10105_v11  ;;  %v8267_v35 = vadd.f32 %v10357_v28, %v10202_v24 }
 0x365   : > { %v10462_v16 = vsel %vm510_vm0, %v3788_v17, -inf  ;;  %v3793_v45 = vmax.f32 %v3791_v27, %v3792_v31  ;;  %v3806_v46 = vrot.slane %v3805_v18, 2  ;;  %v8268_v49 = vadd.f32 %v10357_v28, %v10209_v32  ;;  %v4764_v58 = vld [vmem:[#allocation4 + $0x30] sm:$0xff]  ;;  %v10474_v32 = vpop.f32.mrb[54].mxu0 }
 0x366   : > { %v4701_v63 = vld [vmem:[#allocation4 + $0x31] sm:$0xff]  ;;  %v3800_v13 = vmax.f32 %v3798_v6, %v3799_v62  ;;  %v3813_v15 = vrot.slane %v3812_v0, 2  ;;  %v2703_v7 = vmax.f32 %v2601_v38, 0.0  ;;  %v2606_v14 = vadd.f32 %v8267_v35, %v10103_v40  ;;  %4782 = vrot.lane.b32.xlu0 %v4764_v58, %s8748_s1  ;;  %v2442_v40 = vpop.f32.mrb[55].mxu0 }
 0x367   : > { %4720 = vrot.lane.b32.xlu1 %v4701_v63, %s8748_s1  ;;  %v3794_v11 = vrot.slane %v3793_v45, 1  ;;  %v3807_v24 = vmax.f32 %v3805_v18, %v3806_v46  ;;  %v2611_v9 = vadd.f32 %v8268_v49, %v10146_v52  ;;  %v10472_v48 = vadd.f32 %v10357_v28, %v10222_v42  ;;  %v4685_v40 = vld [vmem:[#allocation4 + $0x30] sm:$0xff] }
 0x368   : > { %v3801_v29 = vrot.slane %v3800_v13, 1  ;;  %v3814_v30 = vmax.f32 %v3812_v0, %v3813_v15  ;;  %v2991_v61 = vcombine.high %v2703_v7, %v2703_v7  ;;  %v2998_v2 = vrot.slane %v2703_v7, %v10069_v19  ;;  %4693 = vst.msk [vmem:[#allocation5 + $0x78] sm:$0xff] %vm510_vm0, %v4685_v40  ;;  %4884 = vst.msk [vmem:[#allocation5 + $0x40] sm:$0xff] %vm510_vm0, %v4685_v40 }
 0x369   : > { %v3795_v27 = vmax.f32 %v3793_v45, %v3794_v11  ;;  %v3808_v36 = vrot.slane %v3807_v24, 1  ;;  %v2704_v6 = vmax.f32 %v2606_v14, 0.0  ;;  %v10477_v56 = vmax.f32 %v2611_v9, 0.0 }
 0x36a   : > { %v3802_v39 = vmax.f32 %v3800_v13, %v3801_v29  ;;  %v3815_v17 = vrot.slane %v3814_v30, 1  ;;  %v3005_v52 = vrot.slane %v2991_v61, %v10069_v19  ;;  %v3006_v31 = vcombine.high %v2998_v2, %v2998_v2  ;;  %v10499_v61 = vld [vmem:[#allocation4 + $0x32] sm:$0xff] }
 0x36b   : > { %v3809_v42 = vmax.f32 %v3807_v24, %v3808_v36  ;;  %v10481_v18 = vsel %vm510_vm0, %v3795_v27, -inf  ;;  %v3817_v62 = vsel %vm513_vm2, %v2998_v2, -inf  ;;  %v3008_v0 = vcombine.high %v2704_v6, %v2704_v6  ;;  %11501 = vst [vmem:[#allocation29_spill] sm:$0xff] %v10499_v61  ;;  %v10501_v2 = vld [vmem:[#allocation4 + $0x31] sm:$0xff]  ;;  %4757 = vst.msk [vmem:[#allocation5 + $0x80] sm:$0xff] %vm510_vm0, %v10499_v61 }
 0x36c   : > { %v3816_v38 = vmax.f32 %v3814_v30, %v3815_v17  ;;  %v10485_v35 = vsel %vm510_vm0, %v3802_v39, -inf  ;;  %v3007_v45 = vcombine.high %v3005_v52, %v3005_v52  ;;  %v3818_v46 = vrot.slane %v3817_v62, 4  ;;  %11502 = vst [vmem:[#allocation30_spill] sm:$0xff] %v10501_v2  ;;  %4820 = vst.msk [vmem:[#allocation5 + $0x60] sm:$0xff] %vm510_vm0, %v10501_v2 }
 0x36d   : > { %v10488_v49 = vsel %vm510_vm0, %v3809_v42, -inf  ;;  %v3824_v58 = vsel %vm513_vm2, %v3006_v31, -inf  ;;  %v3831_v63 = vsel %vm513_vm2, %v3005_v52, -inf  ;;  %v3015_v13 = vrot.slane %v2704_v6, %v10069_v19  ;;  %4948 = vst.msk [vmem:[#allocation5 + $0x48] sm:$0xff] %vm510_vm0, %v10499_v61  ;;  %v10518_v61 = vpop.f32.mrb[29].mxu1 }
 0x36e   : > { %v10494_v15 = vsel %vm510_vm0, %v3816_v38, -inf  ;;  %v3819_v7 = vmax.f32 %v3817_v62, %v3818_v46  ;;  %v3825_v14 = vrot.slane %v3824_v58, 4  ;;  %v3832_v11 = vrot.slane %v3831_v63, 4 }
 0x36f   : > { %v3838_v24 = vsel %vm513_vm2, %v3007_v45, -inf  ;;  %v3022_v9 = vrot.slane %v3008_v0, %v10069_v19  ;;  %v3023_v29 = vcombine.high %v3015_v13, %v3015_v13  ;;  %v3845_v30 = vsel %vm513_vm2, %v3015_v13, -inf }
 0x370   : > { %v3820_v27 = vrot.slane %v3819_v7, 2  ;;  %v3826_v36 = vmax.f32 %v3824_v58, %v3825_v14  ;;  %v3833_v6 = vmax.f32 %v3831_v63, %v3832_v11  ;;  %v3839_v39 = vrot.slane %v3838_v24, 4  ;;  %v10514_v14 = vpop.f32.mrb[56].mxu0 }
 0x371   : > { %v3024_v17 = vcombine.high %v3022_v9, %v3022_v9  ;;  %v3846_v52 = vrot.slane %v3845_v30, 4  ;;  %v3852_v31 = vsel %vm513_vm2, %v3023_v29, -inf  ;;  %v3859_v42 = vsel %vm513_vm2, %v3022_v9, -inf  ;;  %11503 = vst [vmem:[#allocation31_spill] sm:$0xff] %v10514_v14  ;;  %v2447_v2 = vpop.f32.mrb[57].mxu0 }
 0x372   : > { %v3821_v62 = vmax.f32 %v3819_v7, %v3820_v27  ;;  %v3827_v0 = vrot.slane %v3826_v36, 2  ;;  %v3834_v38 = vrot.slane %v3833_v6, 2  ;;  %v3840_v45 = vmax.f32 %v3838_v24, %v3839_v39 }
 0x373   : > { %v3847_v46 = vmax.f32 %v3845_v30, %v3846_v52  ;;  %v3853_v58 = vrot.slane %v3852_v31, 4  ;;  %v3860_v63 = vrot.slane %v3859_v42, 4  ;;  %v3866_v13 = vsel %vm513_vm2, %v3024_v17, -inf }
 0x374   : > { %v3822_v11 = vrot.slane %v3821_v62, 1  ;;  %v3828_v40 = vmax.f32 %v3826_v36, %v3827_v0  ;;  %v3835_v33 = vmax.f32 %v3833_v6, %v3834_v38  ;;  %v3841_v55 = vrot.slane %v3840_v45, 2 }
 0x375   : > { %v3848_v29 = vrot.slane %v3847_v46, 2  ;;  %v3854_v9 = vmax.f32 %v3852_v31, %v3853_v58  ;;  %v3861_v7 = vmax.f32 %v3859_v42, %v3860_v63  ;;  %v3867_v27 = vrot.slane %v3866_v13, 4 }
 0x376   : > { %v3823_v24 = vmax.f32 %v3821_v62, %v3822_v11  ;;  %v3829_v30 = vrot.slane %v3828_v40, 1  ;;  %v3836_v39 = vrot.slane %v3835_v33, 1  ;;  %v3842_v52 = vmax.f32 %v3840_v45, %v3841_v55 }
 0x377   : > { %v3849_v17 = vmax.f32 %v3847_v46, %v3848_v29  ;;  %v3855_v44 = vrot.slane %v3854_v9, 2  ;;  %v3862_v37 = vrot.slane %v3861_v7, 2  ;;  %v3868_v14 = vmax.f32 %v3866_v13, %v3867_v27 }
 0x378   : > { %v3830_v36 = vmax.f32 %v3828_v40, %v3829_v30  ;;  %v3837_v6 = vmax.f32 %v3835_v33, %v3836_v39  ;;  %v3843_v0 = vrot.slane %v3842_v52, 1  ;;  %v4394_v2 = vsel %vm510_vm0, %v3823_v24, -inf }
 0x379   : > { %v4395_v38 = vmax.f32 %v10434_v4, %v4394_v2  ;;  %v3850_v31 = vrot.slane %v3849_v17, 1  ;;  %v3856_v42 = vmax.f32 %v3854_v9, %v3855_v44  ;;  %v3863_v58 = vmax.f32 %v3861_v7, %v3862_v37 }
 0x37a   : > { %v3844_v63 = vmax.f32 %v3842_v52, %v3843_v0  ;;  %v4397_v62 = vsel %vm510_vm0, %v3830_v36, -inf  ;;  %v4400_v11 = vsel %vm510_vm0, %v3837_v6, -inf  ;;  %v3869_v55 = vrot.slane %v3868_v14, 2 }
 0x37b   : > { %v4398_v45 = vmax.f32 %v10451_v57, %v4397_v62  ;;  %v4401_v46 = vmax.f32 %v10456_v51, %v4400_v11  ;;  %v3851_v13 = vmax.f32 %v3849_v17, %v3850_v31  ;;  %v3857_v33 = vrot.slane %v3856_v42, 1  ;;  %v10539_v17 = vpop.f32.mrb[58].mxu0 }
 0x37c   : > { %v4403_v40 = vsel %vm510_vm0, %v3844_v63, -inf  ;;  %v3864_v29 = vrot.slane %v3863_v58, 1  ;;  %v3870_v27 = vmax.f32 %v3868_v14, %v3869_v55  ;;  %v3025_v4 = vcombine.high %v10477_v56, %v10477_v56 }
 0x37d   : > { %v4404_v37 = vmax.f32 %v10462_v16, %v4403_v40  ;;  %v4630_v44 = vsel %vm4602_vm4, %v4398_v45, %v4395_v38  ;;  %v3858_v9 = vmax.f32 %v3856_v42, %v3857_v33  ;;  %v4406_v7 = vsel %vm510_vm0, %v3851_v13, -inf  ;;  %v2452_v38 = vpop.f32.mrb[59].mxu0 }
 0x37e   : > { %v4631_v57 = vsel %vm4604_vm5, %v4401_v46, %v4630_v44  ;;  %v3865_v24 = vmax.f32 %v3863_v58, %v3864_v29  ;;  %v3871_v51 = vrot.slane %v3870_v27, 1  ;;  %v4407_v30 = vmax.f32 %v10481_v18, %v4406_v7  ;;  %v10571_v38 = vpop.f32.mrb[30].mxu1 }
 0x37f   : > { %v4632_v39 = vsel %vm4606_vm6, %v4404_v37, %v4631_v57  ;;  %v4409_v14 = vsel %vm510_vm0, %v3858_v9, -inf  ;;  %v3032_v52 = vrot.slane %v10477_v56, %v10069_v19  ;;  %v3039_v16 = vrot.slane %v3025_v4, %v10069_v19 }
 0x380   : > { %v3872_v36 = vmax.f32 %v3870_v27, %v3871_v51  ;;  %v4410_v6 = vmax.f32 %v10485_v35, %v4409_v14  ;;  %v4412_v0 = vsel %vm510_vm0, %v3865_v24, -inf  ;;  %v4633_v2 = vsel %vm4608_vm7, %v4407_v30, %v4632_v39 }
 0x381   : > { %v4413_v18 = vmax.f32 %v10488_v49, %v4412_v0  ;;  %v3040_v31 = vcombine.high %v3032_v52, %v3032_v52  ;;  %v3041_v42 = vcombine.high %v3039_v16, %v3039_v16  ;;  %v3873_v58 = vsel %vm513_vm2, %v3032_v52, -inf }
 0x382   : > { %v4415_v56 = vsel %vm510_vm0, %v3872_v36, -inf  ;;  %v4634_v63 = vsel %vm4610_vm8, %v4410_v6, %v4633_v2  ;;  %v3874_v62 = vrot.slane %v3873_v58, 4  ;;  %v3887_v11 = vsel %vm513_vm2, %v3039_v16, -inf }
 0x383   : > { %v4416_v35 = vmax.f32 %v10494_v15, %v4415_v56  ;;  %v4635_v55 = vsel %vm4612_vm9, %v4413_v18, %v4634_v63  ;;  %v3880_v45 = vsel %vm513_vm2, %v3040_v31, -inf  ;;  %v3888_v46 = vrot.slane %v3887_v11, 4  ;;  %v10574_v56 = vpop.f32.mrb[31].mxu1 }
 0x384   : > { %v3875_v13 = vmax.f32 %v3873_v58, %v3874_v62  ;;  %v3881_v49 = vrot.slane %v3880_v45, 4  ;;  %v3894_v33 = vsel %vm513_vm2, %v3041_v42, -inf  ;;  %v2616_v40 = vadd.f32 %v10472_v48, %v10140_v53 }
 0x385   : > { %v4636_v29 = vsel %vm4614_vm10, %v4416_v35, %v4635_v55  ;;  %v3889_v27 = vmax.f32 %v3887_v11, %v3888_v46  ;;  %v3895_v4 = vrot.slane %v3894_v33, 4  ;;  %v8270_v37 = vadd.f32 %v10357_v28, %v10235_v3 }
 0x386   : > { %4677 = vst.msk [vmem:[#allocation4 + $0x41] sm:$0xff] %vm510_vm0, %v4636_v29  ;;  %v3876_v15 = vrot.slane %v3875_v13, 2  ;;  %v3882_v44 = vmax.f32 %v3880_v45, %v3881_v49  ;;  %v2706_v9 = vmax.f32 %v2616_v40, 0.0  ;;  %v8271_v7 = vadd.f32 %v10357_v28, %v10252_v26 }
 0x387   : > { %v3890_v57 = vrot.slane %v3889_v27, 2  ;;  %v3896_v24 = vmax.f32 %v3894_v33, %v3895_v4  ;;  %v2621_v51 = vadd.f32 %v8270_v37, %v10207_v47  ;;  %v10564_v53 = vadd.f32 %v10357_v28, %v10265_v22  ;;  %v10569_v47 = vpop.f32.mrb[60].mxu0 }
 0x388   : > { %v3877_v48 = vmax.f32 %v3875_v13, %v3876_v15  ;;  %v3883_v30 = vrot.slane %v3882_v44, 2  ;;  %v3042_v39 = vcombine.high %v2706_v9, %v2706_v9  ;;  %v3049_v3 = vrot.slane %v2706_v9, %v10069_v19  ;;  %v2457_v58 = vpop.f32.mrb[61].mxu0 }
 0x389   : > { %v3891_v14 = vmax.f32 %v3889_v27, %v3890_v57  ;;  %v3897_v52 = vrot.slane %v3896_v24, 2  ;;  %v2707_v16 = vmax.f32 %v2621_v51, 0.0  ;;  %v2626_v36 = vadd.f32 %v8271_v7, %v10205_v20 }
 0x38a   : > { %v3878_v6 = vrot.slane %v3877_v48, 1  ;;  %v3884_v26 = vmax.f32 %v3882_v44, %v3883_v30  ;;  %v3056_v0 = vrot.slane %v3042_v39, %v10069_v19  ;;  %v3057_v2 = vcombine.high %v3049_v3, %v3049_v3 }
 0x38b   : > { %v3892_v22 = vrot.slane %v3891_v14, 1  ;;  %v3898_v18 = vmax.f32 %v3896_v24, %v3897_v52  ;;  %v3901_v31 = vsel %vm513_vm2, %v3049_v3, -inf  ;;  %v3059_v42 = vcombine.high %v2707_v16, %v2707_v16 }
 0x38c   : > { %v3879_v63 = vmax.f32 %v3877_v48, %v3878_v6  ;;  %v3885_v62 = vrot.slane %v3884_v26, 1  ;;  %v3058_v20 = vcombine.high %v3056_v0, %v3056_v0  ;;  %v3902_v11 = vrot.slane %v3901_v31, 4 }
 0x38d   : > { %v3893_v35 = vmax.f32 %v3891_v14, %v3892_v22  ;;  %v3899_v55 = vrot.slane %v3898_v18, 1  ;;  %v3908_v45 = vsel %vm513_vm2, %v3057_v2, -inf  ;;  %v3915_v46 = vsel %vm513_vm2, %v3056_v0, -inf  ;;  %v4765_v13 = vld [vmem:[#allocation4 + $0x40] sm:$0xff] }
 0x38e   : > { %v4702_v49 = vld [vmem:[#allocation4 + $0x41] sm:$0xff]  ;;  %v3886_v40 = vmax.f32 %v3884_v26, %v3885_v62  ;;  %v10581_v29 = vsel %vm510_vm0, %v3879_v63, -inf  ;;  %v3903_v27 = vmax.f32 %v3901_v31, %v3902_v11  ;;  %v3909_v4 = vrot.slane %v3908_v45, 4  ;;  %4784 = vrot.lane.b32.xlu0 %v4765_v13, %s8748_s1  ;;  %4694 = vst.msk [vmem:[#allocation5 + $0xa0] sm:$0xff] %vm510_vm0, %v4765_v13  ;;  %v10605_v63 = vpop.f32.mrb[62].mxu0 }
 0x38f   : > { %v10578_v33 = vld [vmem:[#allocation4 + $0x42] sm:$0xff]  ;;  %4722 = vrot.lane.b32.xlu1 %v4702_v49, %s8748_s1  ;;  %v3900_v44 = vmax.f32 %v3898_v18, %v3899_v55  ;;  %v10591_v9 = vsel %vm510_vm0, %v3893_v35, -inf  ;;  %v3916_v7 = vrot.slane %v3915_v46, 4  ;;  %v3922_v57 = vsel %vm513_vm2, %v3058_v20, -inf  ;;  %v2462_v55 = vpop.f32.mrb[63].mxu0 }
 0x390   : > { %4758 = vst.msk [vmem:[#allocation5 + $0xa8] sm:$0xff] %vm510_vm0, %v10578_v33  ;;  %v4813_v37 = vld [vmem:[#allocation4 + $0x41] sm:$0xff]  ;;  %4949 = vst.msk [vmem:[#allocation5 + $0x70] sm:$0xff] %vm510_vm0, %v10578_v33  ;;  %v10597_v24 = vsel %vm510_vm0, %v3886_v40, -inf  ;;  %v3904_v51 = vrot.slane %v3903_v27, 2  ;;  %v3910_v48 = vmax.f32 %v3908_v45, %v3909_v4  ;;  %v3923_v30 = vrot.slane %v3922_v57, 4 }
 0x391   : > { %v4877_v15 = vld [vmem:[#allocation4 + $0x40] sm:$0xff]  ;;  %4821 = vst.msk [vmem:[#allocation5 + $0x88] sm:$0xff] %vm510_vm0, %v4813_v37  ;;  %v10600_v39 = vsel %vm510_vm0, %v3900_v44, -inf  ;;  %v3917_v3 = vmax.f32 %v3915_v46, %v3916_v7  ;;  %v3066_v14 = vrot.slane %v2707_v16, %v10069_v19  ;;  %v3073_v52 = vrot.slane %v3059_v42, %v10069_v19 }
 0x392   : > { %4885 = vst.msk [vmem:[#allocation5 + $0x68] sm:$0xff] %vm510_vm0, %v4877_v15  ;;  %v3905_v6 = vmax.f32 %v3903_v27, %v3904_v51  ;;  %v3911_v26 = vrot.slane %v3910_v48, 2  ;;  %v3924_v0 = vmax.f32 %v3922_v57, %v3923_v30  ;;  %v2708_v2 = vmax.f32 %v2626_v36, 0.0 }
 0x393   : > { %v3918_v22 = vrot.slane %v3917_v3, 2  ;;  %v3074_v18 = vcombine.high %v3066_v14, %v3066_v14  ;;  %v3075_v31 = vcombine.high %v3073_v52, %v3073_v52  ;;  %v3929_v58 = vsel %vm513_vm2, %v3066_v14, -inf }
 0x394   : > { %v3906_v62 = vrot.slane %v3905_v6, 1  ;;  %v3912_v20 = vmax.f32 %v3910_v48, %v3911_v26  ;;  %v3925_v11 = vrot.slane %v3924_v0, 2  ;;  %v3930_v35 = vrot.slane %v3929_v58, 4 }
 0x395   : > { %v3919_v45 = vmax.f32 %v3917_v3, %v3918_v22  ;;  %v3936_v16 = vsel %vm513_vm2, %v3074_v18, -inf  ;;  %v3943_v42 = vsel %vm513_vm2, %v3073_v52, -inf  ;;  %v3950_v46 = vsel %vm513_vm2, %v3075_v31, -inf }
 0x396   : > { %v3907_v36 = vmax.f32 %v3905_v6, %v3906_v62  ;;  %v3913_v13 = vrot.slane %v3912_v20, 1  ;;  %v3926_v49 = vmax.f32 %v3924_v0, %v3925_v11  ;;  %v3931_v40 = vmax.f32 %v3929_v58, %v3930_v35 }
 0x397   : > { %v3920_v27 = vrot.slane %v3919_v45, 1  ;;  %v3937_v4 = vrot.slane %v3936_v16, 4  ;;  %v3944_v37 = vrot.slane %v3943_v42, 4  ;;  %v3951_v15 = vrot.slane %v3950_v46, 4 }
 0x398   : > { %v3914_v44 = vmax.f32 %v3912_v20, %v3913_v13  ;;  %v3927_v7 = vrot.slane %v3926_v49, 1  ;;  %v10611_v57 = vsel %vm510_vm0, %v3907_v36, -inf  ;;  %v3932_v51 = vrot.slane %v3931_v40, 2 }
 0x399   : > { %v3921_v48 = vmax.f32 %v3919_v45, %v3920_v27  ;;  %v3938_v30 = vmax.f32 %v3936_v16, %v3937_v4  ;;  %v3945_v3 = vmax.f32 %v3943_v42, %v3944_v37  ;;  %v3952_v14 = vmax.f32 %v3950_v46, %v3951_v15 }
 0x39a   : > { %v3928_v52 = vmax.f32 %v3926_v49, %v3927_v7  ;;  %v10614_v6 = vsel %vm510_vm0, %v3914_v44, -inf  ;;  %v3933_v26 = vmax.f32 %v3931_v40, %v3932_v51  ;;  %v3076_v0 = vcombine.high %v2708_v2, %v2708_v2 }
 0x39b   : > { %v10617_v22 = vsel %vm510_vm0, %v3921_v48, -inf  ;;  %v3939_v18 = vrot.slane %v3938_v30, 2  ;;  %v3946_v31 = vrot.slane %v3945_v3, 2  ;;  %v3953_v58 = vrot.slane %v3952_v14, 2 }
 0x39c   : > { %v10620_v62 = vsel %vm510_vm0, %v3928_v52, -inf  ;;  %v3934_v20 = vrot.slane %v3933_v26, 1  ;;  %v3083_v11 = vrot.slane %v2708_v2, %v10069_v19  ;;  %v3090_v35 = vrot.slane %v3076_v0, %v10069_v19 }
 0x39d   : > { %v3940_v55 = vmax.f32 %v3938_v30, %v3939_v18  ;;  %v3947_v45 = vmax.f32 %v3945_v3, %v3946_v31  ;;  %v3954_v16 = vmax.f32 %v3952_v14, %v3953_v58  ;;  %v2631_v42 = vadd.f32 %v10564_v53, %v10271_v25 }
 0x39e   : > { %v3935_v46 = vmax.f32 %v3933_v26, %v3934_v20  ;;  %v3091_v36 = vcombine.high %v3083_v11, %v3083_v11  ;;  %v3092_v13 = vcombine.high %v3090_v35, %v3090_v35  ;;  %v3957_v49 = vsel %vm513_vm2, %v3083_v11, -inf }
 0x39f   : > { %v3941_v40 = vrot.slane %v3940_v55, 1  ;;  %v3948_v27 = vrot.slane %v3947_v45, 1  ;;  %v3955_v4 = vrot.slane %v3954_v16, 1  ;;  %v3958_v37 = vrot.slane %v3957_v49, 4 }
 0x3a0   : > { %v4418_v15 = vsel %vm510_vm0, %v3935_v46, -inf  ;;  %v3964_v2 = vsel %vm513_vm2, %v3091_v36, -inf  ;;  %v3971_v44 = vsel %vm513_vm2, %v3090_v35, -inf  ;;  %v3978_v7 = vsel %vm513_vm2, %v3092_v13, -inf }
 0x3a1   : > { %v3942_v51 = vmax.f32 %v3940_v55, %v3941_v40  ;;  %v3949_v48 = vmax.f32 %v3947_v45, %v3948_v27  ;;  %v3956_v25 = vmax.f32 %v3954_v16, %v3955_v4  ;;  %v4419_v53 = vmax.f32 %v10581_v29, %v4418_v15 }
 0x3a2   : > { %v3959_v30 = vmax.f32 %v3957_v49, %v3958_v37  ;;  %v3965_v3 = vrot.slane %v3964_v2, 4  ;;  %v3972_v14 = vrot.slane %v3971_v44, 4  ;;  %v3979_v52 = vrot.slane %v3978_v7, 4 }
 0x3a3   : > { %v4421_v26 = vsel %vm510_vm0, %v3942_v51, -inf  ;;  %v4424_v0 = vsel %vm510_vm0, %v3949_v48, -inf  ;;  %v4427_v18 = vsel %vm510_vm0, %v3956_v25, -inf  ;;  %v2709_v31 = vmax.f32 %v2631_v42, 0.0 }
 0x3a4   : > { %v4422_v58 = vmax.f32 %v10597_v24, %v4421_v26  ;;  %v4425_v20 = vmax.f32 %v10591_v9, %v4424_v0  ;;  %v4428_v11 = vmax.f32 %v10600_v39, %v4427_v18  ;;  %v3960_v35 = vrot.slane %v3959_v30, 2 }
 0x3a5   : > { %v3966_v55 = vmax.f32 %v3964_v2, %v3965_v3  ;;  %v3973_v29 = vmax.f32 %v3971_v44, %v3972_v14  ;;  %v3980_v45 = vmax.f32 %v3978_v7, %v3979_v52  ;;  %v3093_v16 = vcombine.high %v2709_v31, %v2709_v31 }
 0x3a6   : > { %v4637_v46 = vsel %vm4602_vm4, %v4422_v58, %v4419_v53  ;;  %v3961_v36 = vmax.f32 %v3959_v30, %v3960_v35  ;;  %v3100_v13 = vrot.slane %v2709_v31, %v10069_v19  ;;  %v8273_v49 = vadd.f32 %v10357_v28, %v10288_v59 }
 0x3a7   : > { %v4638_v42 = vsel %vm4604_vm5, %v4425_v20, %v4637_v46  ;;  %v3967_v24 = vrot.slane %v3966_v55, 2  ;;  %v3974_v40 = vrot.slane %v3973_v29, 2  ;;  %v3981_v9 = vrot.slane %v3980_v45, 2 }
 0x3a8   : > { %v4639_v39 = vsel %vm4606_vm6, %v4428_v11, %v4638_v42  ;;  %v3962_v27 = vrot.slane %v3961_v36, 1  ;;  %v3107_v4 = vrot.slane %v3093_v16, %v10069_v19  ;;  %v3108_v37 = vcombine.high %v3100_v13, %v3100_v13 }
 0x3a9   : > { %v3968_v15 = vmax.f32 %v3966_v55, %v3967_v24  ;;  %v3975_v2 = vmax.f32 %v3973_v29, %v3974_v40  ;;  %v3982_v44 = vmax.f32 %v3980_v45, %v3981_v9  ;;  %v3985_v7 = vsel %vm513_vm2, %v3100_v13, -inf }
 0x3aa   : > { %v3963_v51 = vmax.f32 %v3961_v36, %v3962_v27  ;;  %v3109_v48 = vcombine.high %v3107_v4, %v3107_v4  ;;  %v3986_v25 = vrot.slane %v3985_v7, 4  ;;  %v3992_v59 = vsel %vm513_vm2, %v3108_v37, -inf }
 0x3ab   : > { %v3969_v53 = vrot.slane %v3968_v15, 1  ;;  %v3976_v30 = vrot.slane %v3975_v2, 1  ;;  %v3983_v3 = vrot.slane %v3982_v44, 1  ;;  %v3993_v14 = vrot.slane %v3992_v59, 4 }
 0x3ac   : > { %v4430_v52 = vsel %vm510_vm0, %v3963_v51, -inf  ;;  %v3987_v26 = vmax.f32 %v3985_v7, %v3986_v25  ;;  %v3999_v0 = vsel %vm513_vm2, %v3107_v4, -inf  ;;  %v4006_v18 = vsel %vm513_vm2, %v3109_v48, -inf }
 0x3ad   : > { %v3970_v31 = vmax.f32 %v3968_v15, %v3969_v53  ;;  %v3977_v58 = vmax.f32 %v3975_v2, %v3976_v30  ;;  %v3984_v20 = vmax.f32 %v3982_v44, %v3983_v3  ;;  %v4431_v11 = vmax.f32 %v10611_v57, %v4430_v52 }
 0x3ae   : > { %v3988_v35 = vrot.slane %v3987_v26, 2  ;;  %v3994_v55 = vmax.f32 %v3992_v59, %v3993_v14  ;;  %v4000_v29 = vrot.slane %v3999_v0, 4  ;;  %v4007_v45 = vrot.slane %v4006_v18, 4 }
 0x3af   : > { %v4433_v16 = vsel %vm510_vm0, %v3970_v31, -inf  ;;  %v4436_v46 = vsel %vm510_vm0, %v3977_v58, -inf  ;;  %v4439_v36 = vsel %vm510_vm0, %v3984_v20, -inf  ;;  %v4640_v13 = vsel %vm4608_vm7, %v4431_v11, %v4639_v39 }
 0x3b0   : > { %v4434_v42 = vmax.f32 %v10614_v6, %v4433_v16  ;;  %v4437_v24 = vmax.f32 %v10617_v22, %v4436_v46  ;;  %v4440_v40 = vmax.f32 %v10620_v62, %v4439_v36  ;;  %v3989_v9 = vmax.f32 %v3987_v26, %v3988_v35  ;;  %v4715_v36 = vpop.permute.xlu1 %4714 }
 0x3b1   : > { %v3995_v57 = vrot.slane %v3994_v55, 2  ;;  %v4001_v27 = vmax.f32 %v3999_v0, %v4000_v29  ;;  %v4008_v4 = vmax.f32 %v4006_v18, %v4007_v45  ;;  %v2636_v37 = vadd.f32 %v8273_v49, %v10267_v60 }
 0x3b2   : > { %v4641_v15 = vsel %vm4610_vm8, %v4434_v42, %v4640_v13  ;;  %v3990_v2 = vrot.slane %v3989_v9, 1  ;;  %v8274_v44 = vadd.f32 %v10357_v28, %v10316_v5  ;;  %v8275_v39 = vadd.f32 %v10357_v28, %v10338_v12 }
 0x3b3   : > { %v4642_v6 = vsel %vm4612_vm9, %v4437_v24, %v4641_v15  ;;  %v3996_v22 = vmax.f32 %v3994_v55, %v3995_v57  ;;  %v4002_v7 = vrot.slane %v4001_v27, 2  ;;  %v4009_v62 = vrot.slane %v4008_v4, 2  ;;  %v4682_v55 = vld [vmem:[#allocation4] sm:$0xff] }
 0x3b4   : > { %v4643_v51 = vsel %vm4614_vm10, %v4440_v40, %v4642_v6  ;;  %v3991_v48 = vmax.f32 %v3989_v9, %v3990_v2  ;;  %v2710_v25 = vmax.f32 %v2636_v37, 0.0  ;;  %v2641_v60 = vadd.f32 %v8274_v44, %v10321_v43  ;;  %4690 = vst.msk [vmem:[#allocation5] sm:$0xff] %vm510_vm0, %v4682_v55 }
 0x3b5   : > { %4678 = vst.msk [vmem:[#allocation4 + $0x51] sm:$0xff] %vm510_vm0, %v4643_v51  ;;  %v3997_v49 = vrot.slane %v3996_v22, 1  ;;  %v4003_v59 = vmax.f32 %v4001_v27, %v4002_v7  ;;  %v4010_v53 = vmax.f32 %v4008_v4, %v4009_v62  ;;  %v2646_v5 = vadd.f32 %v8275_v39, %v10318_v21 }
 0x3b6   : > { %v10670_v12 = vsel %vm510_vm0, %v3991_v48, -inf  ;;  %v3110_v28 = vcombine.high %v2710_v25, %v2710_v25  ;;  %v3117_v30 = vrot.slane %v2710_v25, %v10069_v19  ;;  %v2711_v3 = vmax.f32 %v2641_v60, 0.0  ;;  %4738 = vst.msk [vmem:[#allocation5] sm:$0xff] %vm813_vm3, %v4715_v36 }
 0x3b7   : > { %v3998_v14 = vmax.f32 %v3996_v22, %v3997_v49  ;;  %v4004_v52 = vrot.slane %v4003_v59, 1  ;;  %v4011_v26 = vrot.slane %v4010_v53, 1  ;;  %v10673_v0 = vmax.f32 %v2646_v5, 0.0 }
 0x3b8   : > { %v3124_v43 = vrot.slane %v3110_v28, %v10069_v19  ;;  %v3125_v18 = vcombine.high %v3117_v30, %v3117_v30  ;;  %v4013_v31 = vsel %vm513_vm2, %v3117_v30, -inf  ;;  %v3127_v58 = vcombine.high %v2711_v3, %v2711_v3 }
 0x3b9   : > { %v4005_v20 = vmax.f32 %v4003_v59, %v4004_v52  ;;  %v4012_v21 = vmax.f32 %v4010_v53, %v4011_v26  ;;  %v10678_v11 = vsel %vm510_vm0, %v3998_v14, -inf  ;;  %v4014_v35 = vrot.slane %v4013_v31, 4  ;;  %v4779_v14 = vpop.permute.xlu0 %4778  ;;  %v4717_v52 = vpop.permute.xlu1 %4716 }
 0x3ba   : > { %v3126_v29 = vcombine.high %v3124_v43, %v3124_v43  ;;  %v4020_v45 = vsel %vm513_vm2, %v3125_v18, -inf  ;;  %v4027_v16 = vsel %vm513_vm2, %v3124_v43, -inf  ;;  %v3134_v46 = vrot.slane %v2711_v3, %v10069_v19  ;;  %v4746_v3 = vld [vmem:[#allocation4 + $0x2] sm:$0xff]  ;;  %4739 = vst.msk [vmem:[#allocation5 + $0x28] sm:$0xff] %vm813_vm3, %v4717_v52 }
 0x3bb   : > { %v10685_v13 = vsel %vm510_vm0, %v4005_v20, -inf  ;;  %v10688_v42 = vsel %vm510_vm0, %v4012_v21, -inf  ;;  %v4015_v24 = vmax.f32 %v4013_v31, %v4014_v35  ;;  %v4021_v40 = vrot.slane %v4020_v45, 4  ;;  %4754 = vst.msk [vmem:[#allocation5 + $0x8] sm:$0xff] %vm510_vm0, %v4746_v3 }
 0x3bc   : > { %v4028_v9 = vrot.slane %v4027_v16, 4  ;;  %v4034_v57 = vsel %vm513_vm2, %v3126_v29, -inf  ;;  %v3141_v27 = vrot.slane %v3127_v58, %v10069_v19  ;;  %v3142_v4 = vcombine.high %v3134_v46, %v3134_v46  ;;  %v4766_v37 = vld [vmem:[#allocation4 + $0x50] sm:$0xff]  ;;  %4802 = vst.msk [vmem:[#allocation5 + $0x8] sm:$0xff] %vm813_vm3, %v4779_v14 }
 0x3bd   : > { %v10693_v15 = vld [vmem:[#allocation4 + $0x51] sm:$0xff]  ;;  %v4016_v44 = vrot.slane %v4015_v24, 2  ;;  %v4022_v39 = vmax.f32 %v4020_v45, %v4021_v40  ;;  %v4035_v6 = vrot.slane %v4034_v57, 4  ;;  %v4041_v22 = vsel %vm513_vm2, %v3134_v46, -inf  ;;  %4786 = vrot.lane.b32.xlu0 %v4766_v37, %s8748_s1  ;;  %4695 = vst.msk [vmem:[#allocation5 + $0xc8] sm:$0xff] %vm510_vm0, %v4766_v37  ;;  %4886 = vst.msk [vmem:[#allocation5 + $0x90] sm:$0xff] %vm510_vm0, %v4766_v37 }
 0x3be   : > { %v10695_v2 = vld [vmem:[#allocation4 + $0x52] sm:$0xff]  ;;  %4724 = vrot.lane.b32.xlu1 %v10693_v15, %s8748_s1  ;;  %4822 = vst.msk [vmem:[#allocation5 + $0xb0] sm:$0xff] %vm510_vm0, %v10693_v15  ;;  %v4029_v7 = vmax.f32 %v4027_v16, %v4028_v9  ;;  %v3143_v62 = vcombine.high %v3141_v27, %v3141_v27  ;;  %v4042_v51 = vrot.slane %v4041_v22, 4  ;;  %v4048_v48 = vsel %vm513_vm2, %v3142_v4, -inf }
 0x3bf   : > { %4759 = vst.msk [vmem:[#allocation5 + $0xd0] sm:$0xff] %vm510_vm0, %v10695_v2  ;;  %4950 = vst.msk [vmem:[#allocation5 + $0x98] sm:$0xff] %vm510_vm0, %v10695_v2  ;;  %v4017_v25 = vmax.f32 %v4015_v24, %v4016_v44  ;;  %v4023_v60 = vrot.slane %v4022_v39, 2  ;;  %v4036_v49 = vmax.f32 %v4034_v57, %v4035_v6  ;;  %v4049_v59 = vrot.slane %v4048_v48, 4 }
 0x3c0   : > { %v4030_v53 = vrot.slane %v4029_v7, 2  ;;  %v4043_v5 = vmax.f32 %v4041_v22, %v4042_v51  ;;  %v4055_v28 = vsel %vm513_vm2, %v3141_v27, -inf  ;;  %v4062_v30 = vsel %vm513_vm2, %v3143_v62, -inf }
 0x3c1   : > { %v4018_v26 = vrot.slane %v4017_v25, 1  ;;  %v4024_v43 = vmax.f32 %v4022_v39, %v4023_v60  ;;  %v4037_v18 = vrot.slane %v4036_v49, 2  ;;  %v4050_v31 = vmax.f32 %v4048_v48, %v4049_v59 }
 0x3c2   : > { %v4031_v58 = vmax.f32 %v4029_v7, %v4030_v53  ;;  %v4044_v20 = vrot.slane %v4043_v5, 2  ;;  %v4056_v21 = vrot.slane %v4055_v28, 4  ;;  %v4063_v35 = vrot.slane %v4062_v30, 4 }
 0x3c3   : > { %v4019_v55 = vmax.f32 %v4017_v25, %v4018_v26  ;;  %v4025_v29 = vrot.slane %v4024_v43, 1  ;;  %v4038_v45 = vmax.f32 %v4036_v49, %v4037_v18  ;;  %v4051_v16 = vrot.slane %v4050_v31, 2  ;;  %v10736_v26 = vld [vmem:[%s11442_s2] ss:$0 sm:$0xff] }
 0x3c4   : > { %v4032_v46 = vrot.slane %v4031_v58, 1  ;;  %v4045_v36 = vmax.f32 %v4043_v5, %v4044_v20  ;;  %v4057_v24 = vmax.f32 %v4055_v28, %v4056_v21  ;;  %v4064_v40 = vmax.f32 %v4062_v30, %v4063_v35  ;;  %v4956_v30 = vld [vmem:[#allocation5 + $0x8] sm:$0xff] }
 0x3c5   : > { %v4026_v9 = vmax.f32 %v4024_v43, %v4025_v29  ;;  %v4039_v57 = vrot.slane %v4038_v45, 1  ;;  %v10716_v27 = vsel %vm510_vm0, %v4019_v55, -inf  ;;  %v4052_v4 = vmax.f32 %v4050_v31, %v4051_v16  ;;  %5162 = vmatprep.mubr.f32.mxu1 %v4956_v30 }
 0x3c6   : > { %v4033_v37 = vmax.f32 %v4031_v58, %v4032_v46  ;;  %v4046_v44 = vrot.slane %v4045_v36, 1  ;;  %v4058_v39 = vrot.slane %v4057_v24, 2  ;;  %v4065_v6 = vrot.slane %v4064_v40, 2 }
 0x3c7   : > { %v4040_v22 = vmax.f32 %v4038_v45, %v4039_v57  ;;  %v10719_v7 = vsel %vm510_vm0, %v4026_v9, -inf  ;;  %v4053_v62 = vrot.slane %v4052_v4, 1  ;;  %v3144_v51 = vcombine.high %v10673_v0, %v10673_v0 }
 0x3c8   : > { %v10724_v48 = vsel %vm510_vm0, %v4033_v37, -inf  ;;  %v4047_v25 = vmax.f32 %v4045_v36, %v4046_v44  ;;  %v4059_v60 = vmax.f32 %v4057_v24, %v4058_v39  ;;  %v4066_v49 = vmax.f32 %v4064_v40, %v4065_v6  ;;  %v4781_v6 = vpop.permute.xlu0 %4780 }
 0x3c9   : > { %v10727_v59 = vsel %vm510_vm0, %v4040_v22, -inf  ;;  %v4054_v53 = vmax.f32 %v4052_v4, %v4053_v62  ;;  %v3151_v5 = vrot.slane %v10673_v0, %v10069_v19  ;;  %v3158_v28 = vrot.slane %v3144_v51, %v10069_v19  ;;  %v4719_v22 = vpop.permute.xlu1 %4718  ;;  %4803 = vst.msk [vmem:[#allocation5 + $0x30] sm:$0xff] %vm813_vm3, %v4781_v6 }
 0x3ca   : > { %v4060_v3 = vrot.slane %v4059_v60, 1  ;;  %v4067_v14 = vrot.slane %v4066_v49, 1  ;;  %v4442_v52 = vsel %vm510_vm0, %v4047_v25, -inf  ;;  %v8276_v43 = vadd.f32 %v10736_v26, %v10371_v8  ;;  %4740 = vst.msk [vmem:[#allocation5 + $0x50] sm:$0xff] %vm813_vm3, %v4719_v22 }
 0x3cb   : > { %v4443_v18 = vmax.f32 %v10670_v12, %v4442_v52  ;;  %v4445_v0 = vsel %vm510_vm0, %v4054_v53, -inf  ;;  %v3159_v31 = vcombine.high %v3151_v5, %v3151_v5  ;;  %v3160_v58 = vcombine.high %v3158_v28, %v3158_v28 }
 0x3cc   : > { %v4061_v20 = vmax.f32 %v4059_v60, %v4060_v3  ;;  %v4068_v21 = vmax.f32 %v4066_v49, %v4067_v14  ;;  %v4446_v35 = vmax.f32 %v10678_v11, %v4445_v0  ;;  %v4069_v55 = vsel %vm513_vm2, %v3151_v5, -inf }
 0x3cd   : > { %v4070_v29 = vrot.slane %v4069_v55, 4  ;;  %v4076_v45 = vsel %vm513_vm2, %v3159_v31, -inf  ;;  %v4083_v16 = vsel %vm513_vm2, %v3158_v28, -inf  ;;  %v4090_v8 = vsel %vm513_vm2, %v3160_v58, -inf }
 0x3ce   : > { %v4448_v46 = vsel %vm510_vm0, %v4061_v20, -inf  ;;  %v4451_v12 = vsel %vm510_vm0, %v4068_v21, -inf  ;;  %v4644_v36 = vsel %vm4602_vm4, %v4446_v35, %v4443_v18  ;;  %v4077_v24 = vrot.slane %v4076_v45, 4 }
 0x3cf   : > { %v4449_v40 = vmax.f32 %v10685_v13, %v4448_v46  ;;  %v4452_v11 = vmax.f32 %v10688_v42, %v4451_v12  ;;  %v4071_v9 = vmax.f32 %v4069_v55, %v4070_v29  ;;  %v4084_v57 = vrot.slane %v4083_v16, 4 }
 0x3d0   : > { %v4078_v4 = vmax.f32 %v4076_v45, %v4077_v24  ;;  %v4091_v37 = vrot.slane %v4090_v8, 4  ;;  %v2651_v44 = vadd.f32 %v8276_v43, %v10383_v1  ;;  %v8277_v39 = vadd.f32 %v10736_v26, %v10408_v50 }
 0x3d1   : > { %v4645_v62 = vsel %vm4604_vm5, %v4449_v40, %v4644_v36  ;;  %v4072_v51 = vrot.slane %v4071_v9, 2  ;;  %v4085_v25 = vmax.f32 %v4083_v16, %v4084_v57  ;;  %v8278_v13 = vadd.f32 %v10736_v26, %v10423_v54 }
 0x3d2   : > { %v4646_v42 = vsel %vm4606_vm6, %v4452_v11, %v4645_v62  ;;  %v4079_v60 = vrot.slane %v4078_v4, 2  ;;  %v4092_v1 = vmax.f32 %v4090_v8, %v4091_v37  ;;  %v2713_v49 = vmax.f32 %v2651_v44, 0.0 }
 0x3d3   : > { %v4073_v53 = vmax.f32 %v4071_v9, %v4072_v51  ;;  %v4086_v50 = vrot.slane %v4085_v25, 2  ;;  %v2656_v5 = vadd.f32 %v8277_v39, %v10379_v34  ;;  %v2661_v28 = vadd.f32 %v8278_v13, %v10431_v41 }
 0x3d4   : > { %v4080_v30 = vmax.f32 %v4078_v4, %v4079_v60  ;;  %v4093_v3 = vrot.slane %v4092_v1, 2  ;;  %v3161_v14 = vcombine.high %v2713_v49, %v2713_v49  ;;  %v3168_v54 = vrot.slane %v2713_v49, %v10069_v19 }
 0x3d5   : > { %v4074_v52 = vrot.slane %v4073_v53, 1  ;;  %v4087_v43 = vmax.f32 %v4085_v25, %v4086_v50  ;;  %v2714_v18 = vmax.f32 %v2656_v5, 0.0  ;;  %v10764_v0 = vmax.f32 %v2661_v28, 0.0 }
 0x3d6   : > { %v4081_v31 = vrot.slane %v4080_v30, 1  ;;  %v4094_v58 = vmax.f32 %v4092_v1, %v4093_v3  ;;  %v3175_v20 = vrot.slane %v3161_v14, %v10069_v19  ;;  %v3176_v21 = vcombine.high %v3168_v54, %v3168_v54 }
 0x3d7   : > { %v4075_v35 = vmax.f32 %v4073_v53, %v4074_v52  ;;  %v4088_v55 = vrot.slane %v4087_v43, 1  ;;  %v4097_v34 = vsel %vm513_vm2, %v3168_v54, -inf  ;;  %v3178_v41 = vcombine.high %v2714_v18, %v2714_v18 }
 0x3d8   : > { %v4082_v29 = vmax.f32 %v4080_v30, %v4081_v31  ;;  %v4095_v45 = vrot.slane %v4094_v58, 1  ;;  %v3177_v16 = vcombine.high %v3175_v20, %v3175_v20  ;;  %v4098_v8 = vrot.slane %v4097_v34, 4  ;;  %v4783_v14 = vpop.permute.xlu0 %4782 }
 0x3d9   : > { %v4089_v46 = vmax.f32 %v4087_v43, %v4088_v55  ;;  %v4454_v12 = vsel %vm510_vm0, %v4075_v35, -inf  ;;  %v4104_v36 = vsel %vm513_vm2, %v3176_v21, -inf  ;;  %v4111_v24 = vsel %vm513_vm2, %v3175_v20, -inf  ;;  %v4721_v54 = vpop.permute.xlu1 %4720  ;;  %4804 = vst.msk [vmem:[#allocation5 + $0x58] sm:$0xff] %vm813_vm3, %v4783_v14 }
 0x3da   : > { %v4096_v40 = vmax.f32 %v4094_v58, %v4095_v45  ;;  %v4455_v11 = vmax.f32 %v10716_v27, %v4454_v12  ;;  %v4457_v9 = vsel %vm510_vm0, %v4082_v29, -inf  ;;  %v4099_v57 = vmax.f32 %v4097_v34, %v4098_v8  ;;  %4741 = vst.msk [vmem:[#allocation5 + $0x78] sm:$0xff] %vm813_vm3, %v4721_v54 }
 0x3db   : > { %v4458_v4 = vmax.f32 %v10719_v7, %v4457_v9  ;;  %v4460_v37 = vsel %vm510_vm0, %v4089_v46, -inf  ;;  %v4105_v44 = vrot.slane %v4104_v36, 4  ;;  %v4112_v39 = vrot.slane %v4111_v24, 4 }
 0x3dc   : > { %v4461_v6 = vmax.f32 %v10724_v48, %v4460_v37  ;;  %v4463_v22 = vsel %vm510_vm0, %v4096_v40, -inf  ;;  %v4647_v62 = vsel %vm4608_vm7, %v4455_v11, %v4646_v42  ;;  %v4100_v51 = vrot.slane %v4099_v57, 2 }
 0x3dd   : > { %v4464_v25 = vmax.f32 %v10727_v59, %v4463_v22  ;;  %v4648_v27 = vsel %vm4610_vm8, %v4458_v4, %v4647_v62  ;;  %v4106_v13 = vmax.f32 %v4104_v36, %v4105_v44  ;;  %v4113_v60 = vmax.f32 %v4111_v24, %v4112_v39 }
 0x3de   : > { %v4649_v1 = vsel %vm4612_vm9, %v4461_v6, %v4648_v27  ;;  %v4101_v7 = vmax.f32 %v4099_v57, %v4100_v51  ;;  %v4118_v49 = vsel %vm513_vm2, %v3177_v16, -inf  ;;  %v3185_v53 = vrot.slane %v2714_v18, %v10069_v19 }
 0x3df   : > { %v4650_v48 = vsel %vm4614_vm10, %v4464_v25, %v4649_v1  ;;  %v4107_v50 = vrot.slane %v4106_v13, 2  ;;  %v4114_v5 = vrot.slane %v4113_v60, 2  ;;  %v4119_v28 = vrot.slane %v4118_v49, 4 }
 0x3e0   : > { %4679 = vst.msk [vmem:[#allocation4 + $0x61] sm:$0xff] %vm510_vm0, %v4650_v48  ;;  %v4102_v42 = vrot.slane %v4101_v7, 1  ;;  %v3192_v59 = vrot.slane %v3178_v41, %v10069_v19  ;;  %v3193_v30 = vcombine.high %v3185_v53, %v3185_v53  ;;  %v4125_v3 = vsel %vm513_vm2, %v3185_v53, -inf }
 0x3e1   : > { %v4108_v52 = vmax.f32 %v4106_v13, %v4107_v50  ;;  %v4115_v43 = vmax.f32 %v4113_v60, %v4114_v5  ;;  %v4120_v31 = vmax.f32 %v4118_v49, %v4119_v28  ;;  %v4126_v58 = vrot.slane %v4125_v3, 4 }
 0x3e2   : > { %v4103_v18 = vmax.f32 %v4101_v7, %v4102_v42  ;;  %v3194_v20 = vcombine.high %v3192_v59, %v3192_v59  ;;  %v4132_v21 = vsel %vm513_vm2, %v3193_v30, -inf  ;;  %v4139_v35 = vsel %vm513_vm2, %v3192_v59, -inf }
 0x3e3   : > { %v4109_v55 = vrot.slane %v4108_v52, 1  ;;  %v4116_v34 = vrot.slane %v4115_v43, 1  ;;  %v4121_v41 = vrot.slane %v4120_v31, 2  ;;  %v4127_v29 = vmax.f32 %v4125_v3, %v4126_v58 }
 0x3e4   : > { %v10792_v45 = vsel %vm510_vm0, %v4103_v18, -inf  ;;  %v4133_v16 = vrot.slane %v4132_v21, 4  ;;  %v4140_v8 = vrot.slane %v4139_v35, 4  ;;  %v4146_v46 = vsel %vm513_vm2, %v3194_v20, -inf }
 0x3e5   : > { %v4110_v12 = vmax.f32 %v4108_v52, %v4109_v55  ;;  %v4117_v36 = vmax.f32 %v4115_v43, %v4116_v34  ;;  %v4122_v24 = vmax.f32 %v4120_v31, %v4121_v41  ;;  %v4128_v40 = vrot.slane %v4127_v29, 2 }
 0x3e6   : > { %v4134_v11 = vmax.f32 %v4132_v21, %v4133_v16  ;;  %v4141_v9 = vmax.f32 %v4139_v35, %v4140_v8  ;;  %v4147_v57 = vrot.slane %v4146_v46, 4  ;;  %v3195_v4 = vcombine.high %v10764_v0, %v10764_v0 }
 0x3e7   : > { %v4123_v37 = vrot.slane %v4122_v24, 1  ;;  %v10798_v44 = vsel %vm510_vm0, %v4110_v12, -inf  ;;  %v10801_v39 = vsel %vm510_vm0, %v4117_v36, -inf  ;;  %v4129_v6 = vmax.f32 %v4127_v29, %v4128_v40  ;;  %v4767_v22 = vld [vmem:[#allocation4 + $0x60] sm:$0xff] }
 0x3e8   : > { %v10803_v62 = vld [vmem:[#allocation4 + $0x61] sm:$0xff]  ;;  %v4135_v25 = vrot.slane %v4134_v11, 2  ;;  %v4142_v27 = vrot.slane %v4141_v9, 2  ;;  %v4148_v13 = vmax.f32 %v4146_v46, %v4147_v57  ;;  %v3202_v60 = vrot.slane %v10764_v0, %v10069_v19  ;;  %4788 = vrot.lane.b32.xlu0 %v4767_v22, %s8748_s1  ;;  %4696 = vst.msk [vmem:[#allocation5 + $0xf0] sm:$0xff] %vm510_vm0, %v4767_v22  ;;  %4887 = vst.msk [vmem:[#allocation5 + $0xb8] sm:$0xff] %vm510_vm0, %v4767_v22 }
 0x3e9   : > { %v10805_v51 = vld [vmem:[#allocation4 + $0x62] sm:$0xff]  ;;  %4726 = vrot.lane.b32.xlu1 %v10803_v62, %s8748_s1  ;;  %4823 = vst.msk [vmem:[#allocation5 + $0xd8] sm:$0xff] %vm510_vm0, %v10803_v62  ;;  %v4124_v1 = vmax.f32 %v4122_v24, %v4123_v37  ;;  %v4130_v0 = vrot.slane %v4129_v6, 1  ;;  %v3209_v7 = vrot.slane %v3195_v4, %v10069_v19  ;;  %v8279_v49 = vadd.f32 %v10736_v26, %v10474_v32 }
 0x3ea   : > { %4760 = vst.msk [vmem:[#allocation5 + $0xf8] sm:$0xff] %vm510_vm0, %v10805_v51  ;;  %4951 = vst.msk [vmem:[#allocation5 + $0xc0] sm:$0xff] %vm510_vm0, %v10805_v51  ;;  %v4136_v53 = vmax.f32 %v4134_v11, %v4135_v25  ;;  %v4143_v48 = vmax.f32 %v4141_v9, %v4142_v27  ;;  %v4149_v50 = vrot.slane %v4148_v13, 2  ;;  %v3210_v5 = vcombine.high %v3202_v60, %v3202_v60  ;;  %v11504_v4 = vld [vmem:[#allocation31_spill] sm:$0xff] }
 0x3eb   : > { %v10824_v28 = vsel %vm510_vm0, %v4124_v1, -inf  ;;  %v4131_v42 = vmax.f32 %v4129_v6, %v4130_v0  ;;  %v3211_v59 = vcombine.high %v3209_v7, %v3209_v7  ;;  %v4153_v30 = vsel %vm513_vm2, %v3202_v60, -inf }
 0x3ec   : > { %v4137_v3 = vrot.slane %v4136_v53, 1  ;;  %v4144_v14 = vrot.slane %v4143_v48, 1  ;;  %v4150_v54 = vmax.f32 %v4148_v13, %v4149_v50  ;;  %v4154_v52 = vrot.slane %v4153_v30, 4 }
 0x3ed   : > { %v10828_v43 = vsel %vm510_vm0, %v4131_v42, -inf  ;;  %v4160_v32 = vsel %vm513_vm2, %v3210_v5, -inf  ;;  %v4167_v31 = vsel %vm513_vm2, %v3209_v7, -inf  ;;  %v4174_v58 = vsel %vm513_vm2, %v3211_v59, -inf }
 0x3ee   : > { %v4138_v18 = vmax.f32 %v4136_v53, %v4137_v3  ;;  %v4145_v20 = vmax.f32 %v4143_v48, %v4144_v14  ;;  %v4151_v21 = vrot.slane %v4150_v54, 1  ;;  %v4155_v35 = vmax.f32 %v4153_v30, %v4154_v52 }
 0x3ef   : > { %v4161_v55 = vrot.slane %v4160_v32, 4  ;;  %v4168_v34 = vrot.slane %v4167_v31, 4  ;;  %v4175_v41 = vrot.slane %v4174_v58, 4  ;;  %v2666_v29 = vadd.f32 %v8279_v49, %v10426_v23 }
 0x3f0   : > { %v4152_v16 = vmax.f32 %v4150_v54, %v4151_v21  ;;  %v10835_v8 = vsel %vm510_vm0, %v4138_v18, -inf  ;;  %v10838_v46 = vsel %vm510_vm0, %v4145_v20, -inf  ;;  %v4156_v12 = vrot.slane %v4155_v35, 2 }
 0x3f1   : > { %v4162_v36 = vmax.f32 %v4160_v32, %v4161_v55  ;;  %v4169_v24 = vmax.f32 %v4167_v31, %v4168_v34  ;;  %v4176_v40 = vmax.f32 %v4174_v58, %v4175_v41  ;;  %v2716_v11 = vmax.f32 %v2666_v29, 0.0 }
 0x3f2   : > { %v10841_v9 = vsel %vm510_vm0, %v4152_v16, -inf  ;;  %v4157_v57 = vmax.f32 %v4155_v35, %v4156_v12  ;;  %v8280_v37 = vadd.f32 %v10736_v26, %v11504_v4  ;;  %v8281_v23 = vadd.f32 %v10736_v26, %v10539_v17 }
 0x3f3   : > { %v4163_v6 = vrot.slane %v4162_v36, 2  ;;  %v4170_v22 = vrot.slane %v4169_v24, 2  ;;  %v4177_v25 = vrot.slane %v4176_v40, 2  ;;  %v3212_v27 = vcombine.high %v2716_v11, %v2716_v11 }
 0x3f4   : > { %v4158_v13 = vrot.slane %v4157_v57, 1  ;;  %v3219_v60 = vrot.slane %v2716_v11, %v10069_v19  ;;  %v2671_v1 = vadd.f32 %v8280_v37, %v10518_v61  ;;  %v2676_v0 = vadd.f32 %v8281_v23, %v10516_v10 }
 0x3f5   : > { %v4164_v7 = vmax.f32 %v4162_v36, %v4163_v6  ;;  %v4171_v49 = vmax.f32 %v4169_v24, %v4170_v22  ;;  %v4178_v53 = vmax.f32 %v4176_v40, %v4177_v25  ;;  %v3226_v48 = vrot.slane %v3212_v27, %v10069_v19 }
 0x3f6   : > { %v4159_v50 = vmax.f32 %v4157_v57, %v4158_v13  ;;  %v3227_v5 = vcombine.high %v3219_v60, %v3219_v60  ;;  %v4181_v17 = vsel %vm513_vm2, %v3219_v60, -inf  ;;  %v2717_v42 = vmax.f32 %v2671_v1, 0.0 }
 0x3f7   : > { %v4165_v59 = vrot.slane %v4164_v7, 1  ;;  %v4172_v30 = vrot.slane %v4171_v49, 1  ;;  %v4179_v3 = vrot.slane %v4178_v53, 1  ;;  %v3228_v14 = vcombine.high %v3226_v48, %v3226_v48 }
 0x3f8   : > { %v4466_v54 = vsel %vm510_vm0, %v4159_v50, -inf  ;;  %v4182_v52 = vrot.slane %v4181_v17, 4  ;;  %v4188_v61 = vsel %vm513_vm2, %v3227_v5, -inf  ;;  %v4195_v10 = vsel %vm513_vm2, %v3226_v48, -inf }
 0x3f9   : > { %v4166_v32 = vmax.f32 %v4164_v7, %v4165_v59  ;;  %v4173_v31 = vmax.f32 %v4171_v49, %v4172_v30  ;;  %v4180_v58 = vmax.f32 %v4178_v53, %v4179_v3  ;;  %v4467_v18 = vmax.f32 %v10792_v45, %v4466_v54 }
 0x3fa   : > { %v4183_v20 = vmax.f32 %v4181_v17, %v4182_v52  ;;  %v4189_v21 = vrot.slane %v4188_v61, 4  ;;  %v4196_v35 = vrot.slane %v4195_v10, 4  ;;  %v4202_v55 = vsel %vm513_vm2, %v3228_v14, -inf }
 0x3fb   : > { %v4469_v34 = vsel %vm510_vm0, %v4166_v32, -inf  ;;  %v4472_v41 = vsel %vm510_vm0, %v4173_v31, -inf  ;;  %v4475_v29 = vsel %vm510_vm0, %v4180_v58, -inf  ;;  %v4203_v16 = vrot.slane %v4202_v55, 4 }
 0x3fc   : > { %v4470_v12 = vmax.f32 %v10798_v44, %v4469_v34  ;;  %v4473_v36 = vmax.f32 %v10801_v39, %v4472_v41  ;;  %v4476_v24 = vmax.f32 %v10824_v28, %v4475_v29  ;;  %v4184_v40 = vrot.slane %v4183_v20, 2 }
 0x3fd   : > { %v4190_v45 = vmax.f32 %v4188_v61, %v4189_v21  ;;  %v4197_v11 = vmax.f32 %v4195_v10, %v4196_v35  ;;  %v4204_v57 = vmax.f32 %v4202_v55, %v4203_v16  ;;  %v3229_v4 = vcombine.high %v2717_v42, %v2717_v42 }
 0x3fe   : > { %v4651_v37 = vsel %vm4602_vm4, %v4470_v12, %v4467_v18  ;;  %v4185_v23 = vmax.f32 %v4183_v20, %v4184_v40  ;;  %v3236_v6 = vrot.slane %v2717_v42, %v10069_v19  ;;  %v2718_v22 = vmax.f32 %v2676_v0, 0.0 }
 0x3ff   : > { %v4652_v25 = vsel %vm4604_vm5, %v4473_v36, %v4651_v37  ;;  %v4191_v27 = vrot.slane %v4190_v45, 2  ;;  %v4198_v13 = vrot.slane %v4197_v11, 2  ;;  %v4205_v44 = vrot.slane %v4204_v57, 2 }
 0x400   : > { %v4653_v39 = vsel %vm4606_vm6, %v4476_v24, %v4652_v25  ;;  %v4186_v60 = vrot.slane %v4185_v23, 1  ;;  %v3243_v28 = vrot.slane %v3229_v4, %v10069_v19  ;;  %v3244_v1 = vcombine.high %v3236_v6, %v3236_v6  ;;  %v4785_v7 = vpop.permute.xlu0 %4784 }
 0x401   : > { %v4723_v49 = vpop.permute.xlu1 %4722  ;;  %v4192_v53 = vmax.f32 %v4190_v45, %v4191_v27  ;;  %v4199_v48 = vmax.f32 %v4197_v11, %v4198_v13  ;;  %v4206_v50 = vmax.f32 %v4204_v57, %v4205_v44  ;;  %v4209_v5 = vsel %vm513_vm2, %v3236_v6, -inf  ;;  %4805 = vst.msk [vmem:[#allocation5 + $0x80] sm:$0xff] %vm813_vm3, %v4785_v7 }
 0x402   : > { %4742 = vst.msk [vmem:[#allocation5 + $0xa0] sm:$0xff] %vm813_vm3, %v4723_v49  ;;  %v4187_v0 = vmax.f32 %v4185_v23, %v4186_v60  ;;  %v3245_v17 = vcombine.high %v3243_v28, %v3243_v28  ;;  %v4210_v42 = vrot.slane %v4209_v5, 4  ;;  %v4216_v59 = vsel %vm513_vm2, %v3244_v1, -inf }
 0x403   : > { %v4193_v30 = vrot.slane %v4192_v53, 1  ;;  %v4200_v3 = vrot.slane %v4199_v48, 1  ;;  %v4207_v14 = vrot.slane %v4206_v50, 1  ;;  %v4217_v54 = vrot.slane %v4216_v59, 4 }
 0x404   : > { %v4478_v52 = vsel %vm510_vm0, %v4187_v0, -inf  ;;  %v4211_v61 = vmax.f32 %v4209_v5, %v4210_v42  ;;  %v4223_v10 = vsel %vm513_vm2, %v3243_v28, -inf  ;;  %v4230_v32 = vsel %vm513_vm2, %v3245_v17, -inf }
 0x405   : > { %v4194_v31 = vmax.f32 %v4192_v53, %v4193_v30  ;;  %v4201_v58 = vmax.f32 %v4199_v48, %v4200_v3  ;;  %v4208_v18 = vmax.f32 %v4206_v50, %v4207_v14  ;;  %v4479_v20 = vmax.f32 %v10828_v43, %v4478_v52 }
 0x406   : > { %v4212_v21 = vrot.slane %v4211_v61, 2  ;;  %v4218_v35 = vmax.f32 %v4216_v59, %v4217_v54  ;;  %v4224_v55 = vrot.slane %v4223_v10, 4  ;;  %v4231_v34 = vrot.slane %v4230_v32, 4 }
 0x407   : > { %v4481_v41 = vsel %vm510_vm0, %v4194_v31, -inf  ;;  %v4484_v29 = vsel %vm510_vm0, %v4201_v58, -inf  ;;  %v4487_v16 = vsel %vm510_vm0, %v4208_v18, -inf  ;;  %v4654_v12 = vsel %vm4608_vm7, %v4479_v20, %v4653_v39 }
 0x408   : > { %v4482_v36 = vmax.f32 %v10835_v8, %v4481_v41  ;;  %v4485_v24 = vmax.f32 %v10838_v46, %v4484_v29  ;;  %v4488_v40 = vmax.f32 %v10841_v9, %v4487_v16  ;;  %v4213_v45 = vmax.f32 %v4211_v61, %v4212_v21 }
 0x409   : > { %v4219_v43 = vrot.slane %v4218_v35, 2  ;;  %v4225_v11 = vmax.f32 %v4223_v10, %v4224_v55  ;;  %v4232_v57 = vmax.f32 %v4230_v32, %v4231_v34  ;;  %v3246_v4 = vcombine.high %v2718_v22, %v2718_v22 }
 0x40a   : > { %v4655_v37 = vsel %vm4610_vm8, %v4482_v36, %v4654_v12  ;;  %v3253_v23 = vrot.slane %v2718_v22, %v10069_v19  ;;  %v8282_v9 = vadd.f32 %v10736_v26, %v10569_v47  ;;  %v4214_v39 = vrot.slane %v4213_v45, 1 }
 0x40b   : > { %v4656_v6 = vsel %vm4612_vm9, %v4485_v24, %v4655_v37  ;;  %v4220_v25 = vmax.f32 %v4218_v35, %v4219_v43  ;;  %v4226_v27 = vrot.slane %v4225_v11, 2  ;;  %v4233_v13 = vrot.slane %v4232_v57, 2 }
 0x40c   : > { %v4657_v8 = vsel %vm4614_vm10, %v4488_v40, %v4656_v6  ;;  %v3260_v46 = vrot.slane %v3246_v4, %v10069_v19  ;;  %v3261_v44 = vcombine.high %v3253_v23, %v3253_v23  ;;  %v4237_v28 = vsel %vm513_vm2, %v3253_v23, -inf }
 0x40d   : > { %4680 = vst.msk [vmem:[#allocation4 + $0x71] sm:$0xff] %vm510_vm0, %v4657_v8  ;;  %v4227_v60 = vmax.f32 %v4225_v11, %v4226_v27  ;;  %v4238_v1 = vrot.slane %v4237_v28, 4  ;;  %v4221_v49 = vrot.slane %v4220_v25, 1  ;;  %v4234_v53 = vmax.f32 %v4232_v57, %v4233_v13 }
 0x40e   : > { %v3262_v22 = vcombine.high %v3260_v46, %v3260_v46  ;;  %v4244_v7 = vsel %vm513_vm2, %v3261_v44, -inf  ;;  %v4251_v5 = vsel %vm513_vm2, %v3260_v46, -inf  ;;  %v2681_v47 = vadd.f32 %v8282_v9, %v10574_v56 }
 0x40f   : > { %v4245_v48 = vrot.slane %v4244_v7, 4  ;;  %v4239_v50 = vmax.f32 %v4237_v28, %v4238_v1  ;;  %v4215_v17 = vmax.f32 %v4213_v45, %v4214_v39  ;;  %v4228_v42 = vrot.slane %v4227_v60, 1 }
 0x410   : > { %v4258_v0 = vsel %vm513_vm2, %v3262_v22, -inf  ;;  %v4252_v3 = vrot.slane %v4251_v5, 4  ;;  %v2719_v54 = vmax.f32 %v2681_v47, 0.0  ;;  %v4222_v52 = vmax.f32 %v4220_v25, %v4221_v49  ;;  %v11505_v25 = vld [vmem:[#allocation26_spill] sm:$0xff]  ;;  %v11506_v47 = vld [vmem:[#allocation27_spill] sm:$0xff] }
 0x411   : > { %v4246_v59 = vmax.f32 %v4244_v7, %v4245_v48  ;;  %v4240_v30 = vrot.slane %v4239_v50, 2  ;;  %v4259_v14 = vrot.slane %v4258_v0, 4  ;;  %v4235_v61 = vrot.slane %v4234_v53, 1 }
 0x412   : > { %v8283_v32 = vadd.f32 %v10736_v26, %v10605_v63  ;;  %v4253_v58 = vmax.f32 %v4251_v5, %v4252_v3  ;;  %v3263_v20 = vcombine.high %v2719_v54, %v2719_v54  ;;  %v10903_v55 = vsel %vm510_vm0, %v4215_v17, -inf  ;;  %v5011_v5 = vld [vmem:[#allocation13 + $0x80] sm:$0xff] }
 0x413   : > { %v4247_v10 = vrot.slane %v4246_v59, 2  ;;  %v4241_v31 = vmax.f32 %v4239_v50, %v4240_v30  ;;  %v4260_v18 = vmax.f32 %v4258_v0, %v4259_v14  ;;  %v3270_v41 = vrot.slane %v2719_v54, %v10069_v19  ;;  %v5012_v0 = vld [vmem:[#allocation13 + $0x88] sm:$0xff] }
 0x414   : > { %v4768_v21 = vld [vmem:[#allocation4 + $0x70] sm:$0xff]  ;;  %v2686_v29 = vadd.f32 %v8283_v32, %v10571_v38  ;;  %v4229_v63 = vmax.f32 %v4227_v60, %v4228_v42  ;;  %v4254_v38 = vrot.slane %v4253_v58, 2  ;;  %v3277_v16 = vrot.slane %v3263_v20, %v10069_v19 }
 0x415   : > { %v10898_v35 = vld [vmem:[#allocation4 + $0x71] sm:$0xff]  ;;  %v4248_v34 = vmax.f32 %v4246_v59, %v4247_v10  ;;  %4790 = vrot.lane.b32.xlu0 %v4768_v21, %s8748_s1  ;;  %4697 = vst.msk [vmem:[#allocation5 + $0x118] sm:$0xff] %vm510_vm0, %v4768_v21  ;;  %4888 = vst.msk [vmem:[#allocation5 + $0xe0] sm:$0xff] %vm510_vm0, %v4768_v21  ;;  %v4261_v26 = vrot.slane %v4260_v18, 2  ;;  %v4236_v12 = vmax.f32 %v4234_v53, %v4235_v61  ;;  %v10920_v36 = vsel %vm510_vm0, %v4222_v52, -inf }
 0x416   : > { %v10900_v56 = vld [vmem:[#allocation4 + $0x72] sm:$0xff]  ;;  %4728 = vrot.lane.b32.xlu1 %v10898_v35, %s8748_s1  ;;  %4824 = vst.msk [vmem:[#allocation5 + $0x100] sm:$0xff] %vm510_vm0, %v10898_v35  ;;  %v3278_v24 = vcombine.high %v3270_v41, %v3270_v41  ;;  %v4265_v40 = vsel %vm513_vm2, %v3270_v41, -inf  ;;  %v4242_v45 = vrot.slane %v4241_v31, 1  ;;  %v4255_v11 = vmax.f32 %v4253_v58, %v4254_v38 }
 0x417   : > { %4761 = vst.msk [vmem:[#allocation5 + $0x120] sm:$0xff] %vm510_vm0, %v10900_v56  ;;  %4952 = vst.msk [vmem:[#allocation5 + $0xe8] sm:$0xff] %vm510_vm0, %v10900_v56  ;;  %v4249_v43 = vrot.slane %v4248_v34, 1  ;;  %v3279_v57 = vcombine.high %v3277_v16, %v3277_v16  ;;  %v4266_v4 = vrot.slane %v4265_v40, 4  ;;  %v4279_v23 = vsel %vm513_vm2, %v3277_v16, -inf }
 0x418   : > { %v4272_v37 = vsel %vm513_vm2, %v3278_v24, -inf  ;;  %v2720_v6 = vmax.f32 %v2686_v29, 0.0  ;;  %v10928_v27 = vsel %vm510_vm0, %v4229_v63, -inf  ;;  %v4256_v13 = vrot.slane %v4255_v11, 1 }
 0x419   : > { %v10930_v8 = vmax.f32 %v4260_v18, %v4261_v26  ;;  %v4273_v46 = vrot.slane %v4272_v37, 4  ;;  %v10933_v44 = vsel %vm510_vm0, %v4236_v12, -inf  ;;  %v4267_v9 = vmax.f32 %v4265_v40, %v4266_v4 }
 0x41a   : > { %4842 = vrot.lane.b32.xlu1 %v11505_v25, %s8748_s1  ;;  %v4280_v39 = vrot.slane %v4279_v23, 4  ;;  %v4286_v60 = vsel %vm513_vm2, %v3279_v57, -inf  ;;  %v10936_v28 = vmax.f32 %v4241_v31, %v4242_v45  ;;  %v10938_v22 = vmax.f32 %v4248_v34, %v4249_v43  ;;  %v11507_v34 = vld [vmem:[#allocation29_spill] sm:$0xff] }
 0x41b   : > { %v4274_v1 = vmax.f32 %v4272_v37, %v4273_v46  ;;  %v4287_v7 = vrot.slane %v4286_v60, 4  ;;  %v4268_v49 = vrot.slane %v4267_v9, 2  ;;  %v3280_v48 = vcombine.high %v2720_v6, %v2720_v6 }
 0x41c   : > { %v4281_v53 = vmax.f32 %v4279_v23, %v4280_v39  ;;  %v3287_v50 = vrot.slane %v2720_v6, %v10069_v19  ;;  %v10943_v17 = vmax.f32 %v4255_v11, %v4256_v13  ;;  %v4263_v42 = vrot.slane %v10930_v8, 1 }
 0x41d   : > { %v4275_v59 = vrot.slane %v4274_v1, 2  ;;  %v4288_v30 = vmax.f32 %v4286_v60, %v4287_v7  ;;  %v4269_v3 = vmax.f32 %v4267_v9, %v4268_v49  ;;  %v3294_v54 = vrot.slane %v3280_v48, %v10069_v19  ;;  %v4995_v7 = vld [vmem:[#allocation13] sm:$0xff]  ;;  %v4996_v49 = vld [vmem:[#allocation13 + $0x8] sm:$0xff] }
 0x41e   : > { %4844 = vrot.lane.b32.xlu1 %v11506_v47, %s8748_s1  ;;  %v4282_v14 = vrot.slane %v4281_v53, 2  ;;  %v3295_v52 = vcombine.high %v3287_v50, %v3287_v50  ;;  %v4293_v32 = vsel %vm513_vm2, %v3287_v50, -inf  ;;  %v7948_v31 = vpack.c.bf16 %v5012_v0, %v5011_v5  ;;  %v5013_v5 = vld [vmem:[#allocation13 + $0x90] sm:$0xff]  ;;  %v5014_v0 = vld [vmem:[#allocation13 + $0x98] sm:$0xff] }
 0x41f   : > { %v4276_v61 = vmax.f32 %v4274_v1, %v4275_v59  ;;  %v4289_v10 = vrot.slane %v4288_v30, 2  ;;  %v4270_v58 = vrot.slane %v4269_v3, 1  ;;  %v3296_v20 = vcombine.high %v3294_v54, %v3294_v54 }
 0x420   : > { %v4283_v18 = vmax.f32 %v4281_v53, %v4282_v14  ;;  %v4294_v21 = vrot.slane %v4293_v32, 4  ;;  %v4300_v63 = vsel %vm513_vm2, %v3295_v52, -inf  ;;  %v4307_v38 = vsel %vm513_vm2, %v3294_v54, -inf  ;;  %7949 = vmatprep.subr.bf16.mxu1 %v7948_v31 }
 0x421   : > { %v4277_v41 = vrot.slane %v4276_v61, 1  ;;  %v4290_v29 = vmax.f32 %v4288_v30, %v4289_v10  ;;  %v4271_v26 = vmax.f32 %v4269_v3, %v4270_v58  ;;  %v4301_v24 = vrot.slane %v4300_v63, 4  ;;  %v4997_v30 = vld [vmem:[#allocation13 + $0x10] sm:$0xff]  ;;  %v4998_v3 = vld [vmem:[#allocation13 + $0x18] sm:$0xff]  ;;  %v5016_v10 = vld [vmem:[#allocation13 + $0xa8] sm:$0xff] }
 0x422   : > { %4846 = vrot.lane.b32.xlu1 %v11507_v34, %s8748_s1  ;;  %v4284_v16 = vrot.slane %v4283_v18, 1  ;;  %v4295_v12 = vmax.f32 %v4293_v32, %v4294_v21  ;;  %v4308_v43 = vrot.slane %v4307_v38, 4  ;;  %v4314_v11 = vsel %vm513_vm2, %v3296_v20, -inf  ;;  %v4999_v34 = vld [vmem:[#allocation13 + $0x20] sm:$0xff] }
 0x423   : > { %v4278_v40 = vmax.f32 %v4276_v61, %v4277_v41  ;;  %v4291_v45 = vrot.slane %v4290_v29, 1  ;;  %v4490_v4 = vsel %vm510_vm0, %v4271_v26, -inf  ;;  %v4302_v23 = vmax.f32 %v4300_v63, %v4301_v24  ;;  %v5015_v61 = vld [vmem:[#allocation13 + $0xa0] sm:$0xff]  ;;  %v5000_v41 = vld [vmem:[#allocation13 + $0x28] sm:$0xff] }
 0x424   : > { %v4285_v57 = vmax.f32 %v4283_v18, %v4284_v16  ;;  %v4296_v37 = vrot.slane %v4295_v12, 2  ;;  %v4491_v25 = vmax.f32 %v10903_v55, %v4490_v4  ;;  %v4309_v46 = vmax.f32 %v4307_v38, %v4308_v43 }
 0x425   : > { %v4292_v6 = vmax.f32 %v4290_v29, %v4291_v45  ;;  %v4493_v13 = vsel %vm510_vm0, %v4278_v40, -inf  ;;  %v4303_v1 = vrot.slane %v4302_v23, 2  ;;  %v7950_v52 = vpack.c.bf16 %v4996_v49, %v4995_v7  ;;  %v5017_v40 = vld [vmem:[#allocation13 + $0xb0] sm:$0xff]  ;;  %v5018_v45 = vld [vmem:[#allocation13 + $0xb8] sm:$0xff] }
 0x426   : > { %4848 = vrot.lane.b32.xlu1 %v10578_v33, %s8748_s1  ;;  %v4494_v9 = vmax.f32 %v10920_v36, %v4493_v13  ;;  %v4496_v39 = vsel %vm510_vm0, %v4285_v57, -inf  ;;  %v4297_v60 = vmax.f32 %v4295_v12, %v4296_v37  ;;  %v4310_v50 = vrot.slane %v4309_v46, 2 }
 0x427   : > { %v4497_v53 = vmax.f32 %v10928_v27, %v4496_v39  ;;  %v4499_v48 = vsel %vm510_vm0, %v4292_v6, -inf  ;;  %v4315_v33 = vrot.slane %v4314_v11, 4  ;;  %v4304_v36 = vmax.f32 %v4302_v23, %v4303_v1  ;;  %7951 = vmatpush3.bf16.msra.mxu1 %v7950_v52  ;;  %v5020_v39 = vld [vmem:[#allocation13 + $0xc8] sm:$0xff] }
 0x428   : > { %v4500_v55 = vmax.f32 %v10933_v44, %v4499_v48  ;;  %v4658_v47 = vsel %vm4602_vm4, %v4494_v9, %v4491_v25  ;;  %v4298_v59 = vrot.slane %v4297_v60, 1  ;;  %v4311_v27 = vmax.f32 %v4309_v46, %v4310_v50  ;;  %v5002_v25 = vld [vmem:[#allocation13 + $0x38] sm:$0xff]  ;;  %v5019_v9 = vld [vmem:[#allocation13 + $0xc0] sm:$0xff]  ;;  %v5008_v52 = vld [vmem:[#allocation13 + $0x68] sm:$0xff] }
 0x429   : > { %v4659_v14 = vsel %vm4604_vm5, %v4497_v53, %v4658_v47  ;;  %v4316_v54 = vmax.f32 %v4314_v11, %v4315_v33  ;;  %v4305_v44 = vrot.slane %v4304_v36, 1  ;;  %v7952_v58 = vpack.c.bf16 %v5014_v0, %v5013_v5  ;;  %v5003_v50 = vld [vmem:[#allocation13 + $0x40] sm:$0xff]  ;;  %v5004_v33 = vld [vmem:[#allocation13 + $0x48] sm:$0xff]  ;;  %v5021_v5 = vld [vmem:[#allocation13 + $0xd0] sm:$0xff] }
 0x42a   : > { %4850 = vrot.lane.b32.xlu1 %v10695_v2, %s8748_s1  ;;  %v4660_v32 = vsel %vm4606_vm6, %v4500_v55, %v4659_v14  ;;  %v4299_v31 = vmax.f32 %v4297_v60, %v4298_v59  ;;  %v4312_v18 = vrot.slane %v4311_v27, 1  ;;  %v7954_v21 = vpack.c.bf16 %v4998_v3, %v4997_v30  ;;  %v5005_v59 = vld [vmem:[#allocation13 + $0x50] sm:$0xff]  ;;  %v5023_v30 = vld [vmem:[#allocation13 + $0xe0] sm:$0xff]  ;;  %v5024_v3 = vld [vmem:[#allocation13 + $0xe8] sm:$0xff] }
 0x42b   : > { %v4317_v20 = vrot.slane %v4316_v54, 2  ;;  %v4501_v2 = vsel %vm510_vm0, %v10936_v28, -inf  ;;  %v4306_v29 = vmax.f32 %v4304_v36, %v4305_v44  ;;  %7953 = vmatprep.subr.bf16.mxu1 %v7952_v58  ;;  %v7956_v38 = vpack.c.bf16 %v5016_v10, %v5015_v61  ;;  %v5006_v36 = vld [vmem:[#allocation13 + $0x58] sm:$0xff]  ;;  %v5025_v61 = vld [vmem:[#allocation13 + $0xf0] sm:$0xff] }
 0x42c   : > { %v4502_v63 = vsel %vm510_vm0, %v4299_v31, -inf  ;;  %v4504_v26 = vsel %vm510_vm0, %v10938_v22, -inf  ;;  %v4313_v16 = vmax.f32 %v4311_v27, %v4312_v18  ;;  %v4264_v28 = vmax.f32 %v10930_v8, %v4263_v42  ;;  %7955 = vmatpush3.bf16.msra.mxu1 %v7954_v21  ;;  %v5026_v10 = vld [vmem:[#allocation13 + $0xf8] sm:$0xff] }
 0x42d   : > { %v4318_v12 = vmax.f32 %v4316_v54, %v4317_v20  ;;  %v4503_v24 = vmax.f32 %v4501_v2, %v4502_v63  ;;  %v4507_v43 = vsel %vm510_vm0, %v10943_v17, -inf  ;;  %v4505_v11 = vsel %vm510_vm0, %v4306_v29, -inf  ;;  %7957 = vmatprep.subr.bf16.mxu1 %v7956_v38  ;;  %v5001_v17 = vld [vmem:[#allocation13 + $0x30] sm:$0xff]  ;;  %v5007_v54 = vld [vmem:[#allocation13 + $0x60] sm:$0xff]  ;;  %v5010_v21 = vld [vmem:[#allocation13 + $0x78] sm:$0xff] }
 0x42e   : > { %4852 = vrot.lane.b32.xlu1 %v10805_v51, %s8748_s1  ;;  %v7958_v57 = vpack.c.bf16 %v5000_v41, %v4999_v34  ;;  %v4506_v23 = vmax.f32 %v4504_v26, %v4505_v11  ;;  %v4508_v22 = vsel %vm510_vm0, %v4313_v16, -inf  ;;  %v7960_v42 = vpack.c.bf16 %v5018_v45, %v5017_v40  ;;  %v5009_v20 = vld [vmem:[#allocation13 + $0x70] sm:$0xff]  ;;  %v5043_v34 = vld [vmem:[#allocation13 + $0x180] sm:$0xff]  ;;  %v5044_v41 = vld [vmem:[#allocation13 + $0x188] sm:$0xff] }
 0x42f   : > { %v4787_v4 = vpop.permute.xlu0 %4786  ;;  %v4319_v37 = vrot.slane %v4318_v12, 1  ;;  %v4661_v6 = vsel %vm4608_vm7, %v4503_v24, %v4660_v32  ;;  %v4509_v8 = vmax.f32 %v4507_v43, %v4508_v22  ;;  %v4510_v1 = vsel %vm510_vm0, %v4264_v28, -inf  ;;  %v11508_v2 = vld [vmem:[#allocation28_spill] sm:$0xff]  ;;  %v5027_v38 = vld [vmem:[#allocation13 + $0x100] sm:$0xff]  ;;  %v5028_v26 = vld [vmem:[#allocation13 + $0x108] sm:$0xff] }
 0x430   : > { %v4725_v51 = vpop.permute.xlu1 %4724  ;;  %4806 = vst.msk [vmem:[#allocation5 + $0xa8] sm:$0xff] %vm813_vm3, %v4787_v4  ;;  %v4662_v46 = vsel %vm4610_vm8, %v4506_v23, %v4661_v6  ;;  %7959 = vmatpush3.bf16.msra.mxu1 %v7958_v57  ;;  %v7962_v49 = vpack.c.bf16 %v5002_v25, %v5001_v17  ;;  %v7964_v48 = vpack.c.bf16 %v5020_v39, %v5019_v9  ;;  %v5045_v16 = vld [vmem:[#allocation13 + $0x190] sm:$0xff]  ;;  %v11509_v24 = vld [vmem:[#allocation30_spill] sm:$0xff]  ;;  %v4961_v45 = vld [vmem:[#allocation5 + $0x30] sm:$0xff] }
 0x431   : > { %4743 = vst.msk [vmem:[#allocation5 + $0xc8] sm:$0xff] %vm813_vm3, %v4725_v51  ;;  %v4320_v13 = vmax.f32 %v4318_v12, %v4319_v37  ;;  %v4663_v60 = vsel %vm4612_vm9, %v4509_v8, %v4662_v46  ;;  %7961 = vmatprep.subr.bf16.mxu1 %v7960_v42  ;;  %v7966_v55 = vpack.c.bf16 %v5004_v33, %v5003_v50  ;;  %v5046_v12 = vld [vmem:[#allocation13 + $0x198] sm:$0xff]  ;;  %v4955_v40 = vld [vmem:[#allocation5] sm:$0xff]  ;;  %v5047_v4 = vld [vmem:[#allocation13 + $0x1a0] sm:$0xff] }
 0x432   : > { %4854 = vrot.lane.b32.xlu1 %v10900_v56, %s8748_s1  ;;  %v5022_v56 = vld [vmem:[#allocation13 + $0xd8] sm:$0xff]  ;;  %v7970_v14 = vpack.c.bf16 %v5006_v36, %v5005_v59  ;;  %v7972_v27 = vpack.c.bf16 %v5024_v3, %v5023_v30  ;;  %v7974_v58 = vpack.c.bf16 %v5008_v52, %v5007_v54  ;;  %v7976_v18 = vpack.c.bf16 %v5026_v10, %v5025_v61  ;;  %v5029_v11 = vld [vmem:[#allocation13 + $0x110] sm:$0xff]  ;;  %v5048_v51 = vld [vmem:[#allocation13 + $0x1a8] sm:$0xff] }
 0x433   : > { %v4511_v7 = vsel %vm510_vm0, %v4320_v13, -inf  ;;  %v7968_v47 = vpack.c.bf16 %v5022_v56, %v5021_v5  ;;  %v7978_v29 = vpack.c.bf16 %v5010_v21, %v5009_v20  ;;  %v7980_v63 = vpack.c.bf16 %v5044_v41, %v5043_v34  ;;  %v5030_v57 = vld [vmem:[#allocation13 + $0x118] sm:$0xff]  ;;  %v4966_v23 = vld [vmem:[#allocation5 + $0x58] sm:$0xff]  ;;  %v5031_v42 = vld [vmem:[#allocation13 + $0x120] sm:$0xff] }
 0x434   : > { %v4512_v53 = vmax.f32 %v4510_v1, %v4511_v7  ;;  %7963 = vmatpush3.bf16.msra.mxu1 %v7962_v49  ;;  %v7982_v28 = vpack.c.bf16 %v5028_v26, %v5027_v38  ;;  %v7984_v43 = vpack.c.bf16 %v5046_v12, %v5045_v16  ;;  %v8485_v37 = vld [vmem:[#allocation4 + $0x41] sm:$0xff]  ;;  %v7986_v22 = vpack.c.bf16 %v5030_v57, %v5029_v11  ;;  %v5032_v17 = vld [vmem:[#allocation13 + $0x128] sm:$0xff]  ;;  %v4882_v46 = vld [vmem:[#allocation4 + $0x90] sm:$0xff] }
 0x435   : > { %7965 = vmatprep.subr.bf16.mxu1 %v7964_v48  ;;  %v4960_v6 = vld [vmem:[#allocation5 + $0x28] sm:$0xff]  ;;  %v7988_v8 = vpack.c.bf16 %v5048_v51, %v5047_v4  ;;  %v5049_v25 = vld [vmem:[#allocation13 + $0x1b0] sm:$0xff]  ;;  %v7990_v39 = vpack.c.bf16 %v5032_v17, %v5031_v42  ;;  %4890 = vst.msk [vmem:[#allocation5 + $0x130] sm:$0xff] %vm510_vm0, %v4882_v46  ;;  %v5052_v48 = vld [vmem:[#allocation13 + $0x1c8] sm:$0xff] }
 0x436   : > { %v4664_v0 = vsel %vm4614_vm10, %v4512_v53, %v4663_v60  ;;  %v5050_v13 = vld [vmem:[#allocation13 + $0x1b8] sm:$0xff]  ;;  %v4971_v9 = vld [vmem:[#allocation5 + $0x80] sm:$0xff]  ;;  %v4965_v60 = vld [vmem:[#allocation5 + $0x50] sm:$0xff] }
 0x437   : > { %4681 = vst.msk [vmem:[#allocation4 + $0x81] sm:$0xff] %vm510_vm0, %v4664_v0  ;;  %v7992_v1 = vpack.c.bf16 %v5050_v13, %v5049_v25  ;;  %v5033_v7 = vld [vmem:[#allocation13 + $0x130] sm:$0xff]  ;;  %v5034_v49 = vld [vmem:[#allocation13 + $0x138] sm:$0xff]  ;;  %v5051_v53 = vld [vmem:[#allocation13 + $0x1c0] sm:$0xff] }
 0x438   : > { %7967 = vmatpush3.bf16.msra.mxu1 %v7966_v55  ;;  %v7994_v50 = vpack.c.bf16 %v5034_v49, %v5033_v7  ;;  %v4970_v33 = vld [vmem:[#allocation5 + $0x78] sm:$0xff]  ;;  %v7996_v5 = vpack.c.bf16 %v5052_v48, %v5051_v53  ;;  %v5035_v56 = vld [vmem:[#allocation13 + $0x140] sm:$0xff]  ;;  %v5053_v55 = vld [vmem:[#allocation13 + $0x1d0] sm:$0xff] }
 0x439   : > { %7969 = vmatprep.subr.bf16.mxu1 %v7968_v47  ;;  %v5036_v0 = vld [vmem:[#allocation13 + $0x148] sm:$0xff]  ;;  %v5054_v47 = vld [vmem:[#allocation13 + $0x1d8] sm:$0xff]  ;;  %v4975_v36 = vld [vmem:[#allocation5 + $0xa0] sm:$0xff] }
 0x43a   : > { %v7998_v59 = vpack.c.bf16 %v5036_v0, %v5035_v56  ;;  %v8000_v3 = vpack.c.bf16 %v5054_v47, %v5053_v55  ;;  %v5055_v54 = vld [vmem:[#allocation13 + $0x1e0] sm:$0xff]  ;;  %v5056_v52 = vld [vmem:[#allocation13 + $0x1e8] sm:$0xff]  ;;  %v4980_v20 = vld [vmem:[#allocation5 + $0xc8] sm:$0xff] }
 0x43b   : > { %v8004_v10 = vpack.c.bf16 %v5056_v52, %v5055_v54  ;;  %v4946_v38 = vld [vmem:[#allocation4 + $0x92] sm:$0xff]  ;;  %v5061_v25 = vld [vmem:[#allocation13 + $0x210] sm:$0xff]  ;;  %v5062_v13 = vld [vmem:[#allocation13 + $0x218] sm:$0xff] }
 0x43c   : > { %7971 = vmatpush3.bf16.msra.mxu1 %v7970_v14  ;;  %v5037_v14 = vld [vmem:[#allocation13 + $0x150] sm:$0xff]  ;;  %4954 = vst.msk [vmem:[#allocation5 + $0x138] sm:$0xff] %vm510_vm0, %v4946_v38  ;;  %v5064_v7 = vld [vmem:[#allocation13 + $0x228] sm:$0xff] }
 0x43d   : > { %7973 = vmatprep.subr.bf16.mxu1 %v7972_v27  ;;  %v5038_v27 = vld [vmem:[#allocation13 + $0x158] sm:$0xff] }
 0x43e   : > { %v4769_v32 = vld [vmem:[#allocation4 + $0x80] sm:$0xff]  ;;  %v8002_v61 = vpack.c.bf16 %v5038_v27, %v5037_v14 }
 0x43f   : > { %v4833_v31 = vld [vmem:[#allocation4 + $0x82] sm:$0xff]  ;;  %4792 = vrot.lane.b32.xlu0 %v4769_v32, %s8748_s1  ;;  %4889 = vst.msk [vmem:[#allocation5 + $0x108] sm:$0xff] %vm510_vm0, %v4769_v32  ;;  %v5039_v32 = vld [vmem:[#allocation13 + $0x160] sm:$0xff] }
 0x440   : > { %v10993_v44 = vld [vmem:[#allocation4 + $0x81] sm:$0xff]  ;;  %4953 = vst.msk [vmem:[#allocation5 + $0x110] sm:$0xff] %vm510_vm0, %v4833_v31  ;;  %4856 = vrot.lane.b32.xlu1 %v4833_v31, %s8748_s1  ;;  %7975 = vmatpush3.bf16.msra.mxu1 %v7974_v58  ;;  %v5040_v31 = vld [vmem:[#allocation13 + $0x168] sm:$0xff] }
 0x441   : > { %4825 = vst.msk [vmem:[#allocation5 + $0x128] sm:$0xff] %vm510_vm0, %v10993_v44  ;;  %7977 = vmatprep.subr.bf16.mxu1 %v7976_v18  ;;  %v5057_v58 = vld [vmem:[#allocation13 + $0x1f0] sm:$0xff]  ;;  %v5058_v18 = vld [vmem:[#allocation13 + $0x1f8] sm:$0xff]  ;;  %v8006_v21 = vpack.c.bf16 %v5040_v31, %v5039_v32 }
 0x442   : > { %v8008_v41 = vpack.c.bf16 %v5058_v18, %v5057_v58  ;;  %v4959_v32 = vld [vmem:[#allocation5 + $0x20] sm:$0xff]  ;;  %v4964_v31 = vld [vmem:[#allocation5 + $0x48] sm:$0xff]  ;;  %v4969_v58 = vld [vmem:[#allocation5 + $0x70] sm:$0xff] }
 0x443   : > { %4907 = vrot.lane.b32.xlu0 %v11508_v2, %s8748_s1  ;;  %v5041_v2 = vld [vmem:[#allocation13 + $0x170] sm:$0xff]  ;;  %v4974_v18 = vld [vmem:[#allocation5 + $0x98] sm:$0xff] }
 0x444   : > { %7979 = vmatpush3.bf16.msra.mxu1 %v7978_v29  ;;  %v5042_v29 = vld [vmem:[#allocation13 + $0x178] sm:$0xff] }
 0x445   : > { %7981 = vmatprep.subr.bf16.mxu1 %v7980_v63  ;;  %v5060_v63 = vld [vmem:[#allocation13 + $0x208] sm:$0xff]  ;;  %v8010_v26 = vpack.c.bf16 %v5042_v29, %v5041_v2 }
 0x447   : > { %4909 = vrot.lane.b32.xlu0 %v11509_v24, %s8748_s1  ;;  %5163 = vmatmul.mubr.f32.vlgmr.msra.gmra.mrb[32].mxu1 %v4955_v40 }
 0x448   : > { %5167 = vmatprep.mubr.f32.mxu1 %v4961_v45  ;;  %7983 = vmatpush3.bf16.msra.mxu1 %v7982_v28 }
 0x449   : > { %7985 = vmatprep.subr.bf16.mxu1 %v7984_v43 }
 0x44b   : > { %4911 = vrot.lane.b32.xlu0 %v8485_v37, %s8748_s1  ;;  %5168 = vmatmul.mubr.f32.gmra.mrb[34].mxu1 %v4960_v6 }
 0x44c   : > { %5172 = vmatprep.mubr.f32.mxu1 %v4966_v23  ;;  %7987 = vmatpush3.bf16.msra.mxu1 %v7986_v22 }
 0x44d   : > { %7989 = vmatprep.subr.bf16.mxu1 %v7988_v8 }
 0x44f   : > { %4913 = vrot.lane.b32.xlu0 %v10693_v15, %s8748_s1  ;;  %5173 = vmatmul.mubr.f32.gmra.mrb[36].mxu1 %v4965_v60  ;;  %v4976_v15 = vld [vmem:[#allocation5 + $0xa8] sm:$0xff] }
 0x450   : > { %5177 = vmatprep.mubr.f32.mxu1 %v4971_v9  ;;  %7991 = vmatpush3.bf16.msra.mxu1 %v7990_v39  ;;  %v8016_v39 = vpack.c.bf16 %v5062_v13, %v5061_v25  ;;  %v6053_v25 = vld [vmem:[#allocation14 + $0x90] sm:$0xff]  ;;  %v6054_v13 = vld [vmem:[#allocation14 + $0x98] sm:$0xff] }
 0x451   : > { %7993 = vmatprep.subr.bf16.mxu1 %v7992_v1  ;;  %v5063_v1 = vld [vmem:[#allocation13 + $0x220] sm:$0xff] }
 0x452   : > { %v8020_v48 = vpack.c.bf16 %v5064_v7, %v5063_v1 }
 0x453   : > { %4915 = vrot.lane.b32.xlu0 %v10803_v62, %s8748_s1  ;;  %5178 = vmatmul.mubr.f32.gmra.mrb[38].mxu1 %v4970_v33  ;;  %v5066_v33 = vld [vmem:[#allocation13 + $0x238] sm:$0xff] }
 0x454   : > { %5182 = vmatprep.mubr.f32.mxu1 %v4976_v15  ;;  %7995 = vmatpush3.bf16.msra.mxu1 %v7994_v50  ;;  %v5065_v50 = vld [vmem:[#allocation13 + $0x230] sm:$0xff] }
 0x455   : > { %7997 = vmatprep.subr.bf16.mxu1 %v7996_v5  ;;  %v8024_v0 = vpack.c.bf16 %v5066_v33, %v5065_v50  ;;  %v6056_v50 = vld [vmem:[#allocation14 + $0xa8] sm:$0xff] }
 0x457   : > { %4917 = vrot.lane.b32.xlu0 %v10898_v35, %s8748_s1  ;;  %5183 = vmatmul.mubr.f32.gmra.mrb[40].mxu1 %v4975_v36  ;;  %v4898_v35 = vld [vmem:[#allocation4 + $0x91] sm:$0xff] }
 0x458   : > { %7999 = vmatpush3.bf16.msra.mxu1 %v7998_v59 }
 0x459   : > { %8001 = vmatprep.subr.bf16.mxu1 %v8000_v3 }
 0x45a   : > { %v4789_v62 = vpop.permute.xlu0 %4788 }
 0x45b   : > { %v4727_v30 = vpop.permute.xlu1 %4726  ;;  %4807 = vst.msk [vmem:[#allocation5 + $0xd0] sm:$0xff] %vm813_vm3, %v4789_v62  ;;  %4919 = vrot.lane.b32.xlu0 %v10993_v44, %s8748_s1  ;;  %v5059_v44 = vld [vmem:[#allocation13 + $0x200] sm:$0xff] }
 0x45c   : > { %4744 = vst.msk [vmem:[#allocation5 + $0xf0] sm:$0xff] %vm813_vm3, %v4727_v30  ;;  %8003 = vmatpush3.bf16.msra.mxu1 %v8002_v61  ;;  %v8012_v16 = vpack.c.bf16 %v5060_v63, %v5059_v44 }
 0x45d   : > { %8005 = vmatprep.subr.bf16.mxu1 %v8004_v10 }
 0x45f   : > { %4921 = vrot.lane.b32.xlu0 %v4898_v35, %s8748_s1  ;;  %s8660_s1 = sshll.u32 %s8751_s25, 4  ;;  %s8661_s1 = int_to_ptr.vmem [resolvable:$false] %s8660_s1 }
 0x460   : > { %8007 = vmatpush3.bf16.msra.mxu1 %v8006_v21  ;;  %v4984_v21 = vld [vmem:[#allocation5 + $0xe8] sm:$0xff]  ;;  %p8663_p13 = scmp.lt.s32.totalorder %s11394_s13, %s8661_s1 }
 0x461   : > { %8009 = vmatprep.subr.bf16.mxu1 %v8008_v41  ;;  %v4994_v41 = vld [vmem:[#allocation5 + $0x138] sm:$0xff] }
 0x462   : > { %v4981_v34 = vld [vmem:[#allocation5 + $0xd0] sm:$0xff] }
 0x463   : > { %5187 = vmatprep.mubr.f32.mxu1 %v4981_v34  ;;  %v4985_v43 = vld [vmem:[#allocation5 + $0xf0] sm:$0xff] }
 0x464   : > { %5188 = vmatmul.mubr.f32.gmra.mrb[42].mxu1 %v4980_v20  ;;  %v4979_v20 = vld [vmem:[#allocation5 + $0xc0] sm:$0xff]  ;;  %v4989_v34 = vld [vmem:[#allocation5 + $0x110] sm:$0xff] }
 0x465   : > { %8011 = vmatpush3.bf16.msra.mxu1 %v8010_v26 }
 0x466   : > { %8013 = vmatprep.subr.bf16.mxu1 %v8012_v16 }
 0x487   : > { %v4791_v12 = vpop.permute.xlu0 %4790 }
 0x488   : > { %v4729_v24 = vpop.permute.xlu1 %4728  ;;  %4808 = vst.msk [vmem:[#allocation5 + $0xf8] sm:$0xff] %vm813_vm3, %v4791_v12 }
 0x489   : > { %4745 = vst.msk [vmem:[#allocation5 + $0x118] sm:$0xff] %vm813_vm3, %v4729_v24 }
 0x48c   : > { %v4843_v40 = vpop.permute.xlu1 %4842 }
 0x48d   : > { %4866 = vst.msk [vmem:[#allocation5 + $0x10] sm:$0xff] %vm813_vm3, %v4843_v40 }
 0x48f   : > { %v4986_v28 = vld [vmem:[#allocation5 + $0xf8] sm:$0xff] }
 0x490   : > { %v4845_v45 = vpop.permute.xlu1 %4844  ;;  %5192 = vmatprep.mubr.f32.mxu1 %v4986_v28  ;;  %v4990_v17 = vld [vmem:[#allocation5 + $0x118] sm:$0xff] }
 0x491   : > { %4867 = vst.msk [vmem:[#allocation5 + $0x38] sm:$0xff] %vm813_vm3, %v4845_v45  ;;  %5193 = vmatmul.mubr.f32.gmra.mrb[44].mxu1 %v4985_v43 }
 0x494   : > { %v4847_v11 = vpop.permute.xlu1 %4846  ;;  %v4957_v60 = vld [vmem:[#allocation5 + $0x10] sm:$0xff] }
 0x495   : > { %4868 = vst.msk [vmem:[#allocation5 + $0x60] sm:$0xff] %vm813_vm3, %v4847_v11 }
 0x498   : > { %v4849_v57 = vpop.permute.xlu1 %4848  ;;  %v4962_v15 = vld [vmem:[#allocation5 + $0x38] sm:$0xff] }
 0x499   : > { %4869 = vst.msk [vmem:[#allocation5 + $0x88] sm:$0xff] %vm813_vm3, %v4849_v57 }
 0x49c   : > { %v4851_v4 = vpop.permute.xlu1 %4850  ;;  %v4967_v55 = vld [vmem:[#allocation5 + $0x60] sm:$0xff] }
 0x49d   : > { %4870 = vst.msk [vmem:[#allocation5 + $0xb0] sm:$0xff] %vm813_vm3, %v4851_v4 }
 0x4a0   : > { %v4853_v51 = vpop.permute.xlu1 %4852  ;;  %v4972_v36 = vld [vmem:[#allocation5 + $0x88] sm:$0xff] }
 0x4a1   : > { %4871 = vst.msk [vmem:[#allocation5 + $0xd8] sm:$0xff] %vm813_vm3, %v4853_v51 }
 0x4a4   : > { %v4855_v37 = vpop.permute.xlu1 %4854  ;;  %v4977_v3 = vld [vmem:[#allocation5 + $0xb0] sm:$0xff] }
 0x4a5   : > { %4872 = vst.msk [vmem:[#allocation5 + $0x100] sm:$0xff] %vm813_vm3, %v4855_v37 }
 0x4a8   : > { %v4982_v54 = vld [vmem:[#allocation5 + $0xd8] sm:$0xff] }
 0x4ac   : > { %v4987_v35 = vld [vmem:[#allocation5 + $0x100] sm:$0xff] }
 0x4b1   : > { %v4793_v23 = vpop.permute.xlu0 %4792 }
 0x4b2   : > { %4809 = vst.msk [vmem:[#allocation5 + $0x120] sm:$0xff] %vm813_vm3, %v4793_v23  ;;  %v4857_v22 = vpop.permute.xlu1 %4856  ;;  %v6051_v23 = vld [vmem:[#allocation14 + $0x80] sm:$0xff] }
 0x4b3   : > { %4873 = vst.msk [vmem:[#allocation5 + $0x128] sm:$0xff] %vm813_vm3, %v4857_v22  ;;  %v6052_v22 = vld [vmem:[#allocation14 + $0x88] sm:$0xff] }
 0x4b5   : > { %v4908_v6 = vpop.permute.xlu0 %4907 }
 0x4b6   : > { %4931 = vst.msk [vmem:[#allocation5 + $0x18] sm:$0xff] %vm813_vm3, %v4908_v6  ;;  %v8028_v6 = vpack.c.bf16 %v6052_v22, %v6051_v23 }
 0x4b9   : > { %v4910_v8 = vpop.permute.xlu0 %4909  ;;  %v4991_v42 = vld [vmem:[#allocation5 + $0x120] sm:$0xff] }
 0x4ba   : > { %4932 = vst.msk [vmem:[#allocation5 + $0x40] sm:$0xff] %vm813_vm3, %v4910_v8  ;;  %5197 = vmatprep.mubr.f32.mxu1 %v4991_v42  ;;  %v4992_v10 = vld [vmem:[#allocation5 + $0x128] sm:$0xff]  ;;  %v6035_v8 = vld [vmem:[#allocation14] sm:$0xff]  ;;  %v6036_v42 = vld [vmem:[#allocation14 + $0x8] sm:$0xff] }
 0x4bb   : > { %5198 = vmatmul.mubr.f32.gmra.mrb[46].mxu1 %v4990_v17  ;;  %v8030_v17 = vpack.c.bf16 %v6036_v42, %v6035_v8 }
 0x4bd   : > { %v4912_v46 = vpop.permute.xlu0 %4911  ;;  %v4958_v9 = vld [vmem:[#allocation5 + $0x18] sm:$0xff] }
 0x4be   : > { %4933 = vst.msk [vmem:[#allocation5 + $0x68] sm:$0xff] %vm813_vm3, %v4912_v46  ;;  %5267 = vmatprep.mubr.f32.mxu1 %v4958_v9  ;;  %v8032_v46 = vpack.c.bf16 %v6054_v13, %v6053_v25  ;;  %v6037_v9 = vld [vmem:[#allocation14 + $0x10] sm:$0xff] }
 0x4bf   : > { %5268 = vmatmul.mubr.f32.vlgmr.msra.gmra.mrb[48].mxu1 %v4957_v60 }
 0x4c0   : > { %8015 = vmatpush3.bf16.msra.mxu1 %v8012_v16 }
 0x4c1   : > { %v4914_v49 = vpop.permute.xlu0 %4913  ;;  %v4963_v53 = vld [vmem:[#allocation5 + $0x40] sm:$0xff]  ;;  %8017 = vmatprep.subr.bf16.mxu1 %v8016_v39 }
 0x4c2   : > { %4934 = vst.msk [vmem:[#allocation5 + $0x90] sm:$0xff] %vm813_vm3, %v4914_v49  ;;  %5272 = vmatprep.mubr.f32.mxu1 %v4963_v53  ;;  %v11061_v53 = vld [vmem:[%s11444_s4] ss:$0 sm:$0xff] }
 0x4c3   : > { %5273 = vmatmul.mubr.f32.gmra.mrb[50].mxu1 %v4962_v15  ;;  %v6055_v15 = vld [vmem:[#allocation14 + $0xa0] sm:$0xff] }
 0x4c4   : > { %8019 = vmatpush3.bf16.msra.mxu1 %v8016_v39  ;;  %v6038_v39 = vld [vmem:[#allocation14 + $0x18] sm:$0xff]  ;;  %v8036_v33 = vpack.c.bf16 %v6056_v50, %v6055_v15 }
 0x4c5   : > { %v4916_v5 = vpop.permute.xlu0 %4915  ;;  %v4968_v56 = vld [vmem:[#allocation5 + $0x68] sm:$0xff]  ;;  %8021 = vmatprep.subr.bf16.mxu1 %v8020_v48  ;;  %v8034_v60 = vpack.c.bf16 %v6038_v39, %v6037_v9 }
 0x4c6   : > { %4935 = vst.msk [vmem:[#allocation5 + $0xb8] sm:$0xff] %vm813_vm3, %v4916_v5  ;;  %5277 = vmatprep.mubr.f32.mxu1 %v4968_v56  ;;  %v6039_v5 = vld [vmem:[#allocation14 + $0x20] sm:$0xff]  ;;  %v6040_v56 = vld [vmem:[#allocation14 + $0x28] sm:$0xff] }
 0x4c7   : > { %5278 = vmatmul.mubr.f32.gmra.mrb[52].mxu1 %v4967_v55  ;;  %v6057_v55 = vld [vmem:[#allocation14 + $0xb0] sm:$0xff] }
 0x4c8   : > { %8023 = vmatpush3.bf16.msra.mxu1 %v8020_v48 }
 0x4c9   : > { %v4918_v47 = vpop.permute.xlu0 %4917  ;;  %v4973_v59 = vld [vmem:[#allocation5 + $0x90] sm:$0xff]  ;;  %8025 = vmatprep.subr.bf16.mxu1 %v8024_v0 }
 0x4ca   : > { %4936 = vst.msk [vmem:[#allocation5 + $0xe0] sm:$0xff] %vm813_vm3, %v4918_v47  ;;  %5282 = vmatprep.mubr.f32.mxu1 %v4973_v59  ;;  %v6058_v47 = vld [vmem:[#allocation14 + $0xb8] sm:$0xff] }
 0x4cb   : > { %5283 = vmatmul.mubr.f32.gmra.mrb[54].mxu1 %v4972_v36  ;;  %v8040_v59 = vpack.c.bf16 %v6058_v47, %v6057_v55  ;;  %v6041_v36 = vld [vmem:[#allocation14 + $0x30] sm:$0xff] }
 0x4cc   : > { %8027 = vmatpush3.bf16.msra.mxu1 %v8024_v0  ;;  %v8038_v0 = vpack.c.bf16 %v6040_v56, %v6039_v5 }
 0x4cd   : > { %v4920_v62 = vpop.permute.xlu0 %4919  ;;  %v4978_v30 = vld [vmem:[#allocation5 + $0xb8] sm:$0xff]  ;;  %8029 = vmatprep.subr.bf16.mxu1 %v8028_v6 }
 0x4ce   : > { %4937 = vst.msk [vmem:[#allocation5 + $0x108] sm:$0xff] %vm813_vm3, %v4920_v62  ;;  %5287 = vmatprep.mubr.f32.mxu1 %v4978_v30  ;;  %v6042_v62 = vld [vmem:[#allocation14 + $0x38] sm:$0xff] }
 0x4cf   : > { %5288 = vmatmul.mubr.f32.gmra.mrb[56].mxu1 %v4977_v3  ;;  %v8042_v30 = vpack.c.bf16 %v6042_v62, %v6041_v36  ;;  %v6059_v3 = vld [vmem:[#allocation14 + $0xc0] sm:$0xff] }
 0x4d1   : > { %v4922_v14 = vpop.permute.xlu0 %4921  ;;  %v4983_v27 = vld [vmem:[#allocation5 + $0xe0] sm:$0xff] }
 0x4d2   : > { %4938 = vst.msk [vmem:[#allocation5 + $0x130] sm:$0xff] %vm813_vm3, %v4922_v14  ;;  %5292 = vmatprep.mubr.f32.mxu1 %v4983_v27  ;;  %v6060_v14 = vld [vmem:[#allocation14 + $0xc8] sm:$0xff] }
 0x4d3   : > { %5293 = vmatmul.mubr.f32.gmra.mrb[58].mxu1 %v4982_v54  ;;  %v8044_v27 = vpack.c.bf16 %v6060_v14, %v6059_v3  ;;  %v6043_v54 = vld [vmem:[#allocation14 + $0x40] sm:$0xff] }
 0x4d5   : > { %v4988_v52 = vld [vmem:[#allocation5 + $0x108] sm:$0xff] }
 0x4d6   : > { %5297 = vmatprep.mubr.f32.mxu1 %v4988_v52  ;;  %v6044_v52 = vld [vmem:[#allocation14 + $0x48] sm:$0xff] }
 0x4d7   : > { %5298 = vmatmul.mubr.f32.gmra.mrb[60].mxu1 %v4987_v35  ;;  %v8046_v35 = vpack.c.bf16 %v6044_v52, %v6043_v54 }
 0x4d9   : > { %v4993_v61 = vld [vmem:[#allocation5 + $0x130] sm:$0xff] }
 0x4da   : > { %5302 = vmatprep.mubr.f32.mxu1 %v4993_v61  ;;  %v6061_v61 = vld [vmem:[#allocation14 + $0xd0] sm:$0xff] }
 0x4db   : > { %5303 = vmatmul.mubr.f32.gmra.mrb[62].mxu1 %v4992_v10  ;;  %v6062_v10 = vld [vmem:[#allocation14 + $0xd8] sm:$0xff] }
 0x4dc   : > { %7789 = vmatprep.mubr.msk.f32.mxu1 %vm510_vm0, %v4959_v32  ;;  %v8048_v32 = vpack.c.bf16 %v6062_v10, %v6061_v61 }
 0x4df   : > { %7790 = vmatmul.mubr.msk.f32.vlgmr.msra.gmra.mrb[64].mxu1 %vm510_vm0, %v4964_v31  ;;  %v6045_v31 = vld [vmem:[#allocation14 + $0x50] sm:$0xff] }
 0x4e0   : > { %7792 = vmatprep.mubr.msk.f32.mxu1 %vm510_vm0, %v4969_v58  ;;  %8031 = vmatpush3.bf16.msra.mxu1 %v8030_v17  ;;  %v6046_v58 = vld [vmem:[#allocation14 + $0x58] sm:$0xff] }
 0x4e1   : > { %8033 = vmatprep.subr.bf16.mxu1 %v8032_v46 }
 0x4e3   : > { %7793 = vmatmul.mubr.msk.f32.gmra.mrb[66].mxu1 %vm510_vm0, %v4974_v18  ;;  %v8050_v18 = vpack.c.bf16 %v6046_v58, %v6045_v31  ;;  %v11092_v31 = vld [vmem:[#allocation14 + $0x190] sm:$0xff]  ;;  %v11094_v58 = vld [vmem:[#allocation14 + $0x198] sm:$0xff] }
 0x4e4   : > { %7795 = vmatprep.mubr.msk.f32.mxu1 %vm510_vm0, %v4979_v20  ;;  %8035 = vmatpush3.bf16.msra.mxu1 %v8034_v60  ;;  %v6063_v20 = vld [vmem:[#allocation14 + $0xe0] sm:$0xff] }
 0x4e5   : > { %8037 = vmatprep.subr.bf16.mxu1 %v8036_v33 }
 0x4e7   : > { %7796 = vmatmul.mubr.msk.f32.gmra.mrb[68].mxu1 %vm510_vm0, %v4984_v21  ;;  %v6064_v21 = vld [vmem:[#allocation14 + $0xe8] sm:$0xff] }
 0x4e8   : > { %7798 = vmatprep.mubr.msk.f32.mxu1 %vm510_vm0, %v4989_v34  ;;  %8039 = vmatpush3.bf16.msra.mxu1 %v8038_v0  ;;  %v8052_v34 = vpack.c.bf16 %v6064_v21, %v6063_v20  ;;  %v11100_v20 = vld [vmem:[#allocation14 + $0x1a0] sm:$0xff]  ;;  %v11102_v21 = vld [vmem:[#allocation14 + $0x1a8] sm:$0xff] }
 0x4e9   : > { %8041 = vmatprep.subr.bf16.mxu1 %v8040_v59 }
 0x4eb   : > { %7799 = vmatmul.mubr.msk.f32.gmra.mrb[70].mxu1 %vm510_vm0, %v4994_v41  ;;  %v6047_v41 = vld [vmem:[#allocation14 + $0x60] sm:$0xff] }
 0x4ec   : > { %8043 = vmatpush3.bf16.msra.mxu1 %v8042_v30 }
 0x4ed   : > { %8045 = vmatprep.subr.bf16.mxu1 %v8044_v27 }
 0x4f0   : > { %8047 = vmatpush3.bf16.msra.mxu1 %v8046_v35 }
 0x4f1   : > { %8049 = vmatprep.subr.bf16.mxu1 %v8048_v32  ;;  %v11090_v32 = vld [vmem:[#allocation14 + $0x108] sm:$0xff] }
 0x4f4   : > { %8051 = vmatpush3.bf16.msra.mxu1 %v8050_v18 }
 0x4f5   : > { %8053 = vmatprep.subr.bf16.mxu1 %v8052_v34  ;;  %v11106_v34 = vld [vmem:[#allocation14 + $0x128] sm:$0xff] }
 0x51a   : > { %v7405_v2 = vpop.f32.mrb[32].mxu1 }
 0x51b   : > { %v7406_v29 = vpop.f32.mrb[33].mxu1 }
 0x51c   : > { %v11046_v44 = vadd.f32 %v7406_v29, %v7405_v2  ;;  %v6048_v2 = vld [vmem:[#allocation14 + $0x68] sm:$0xff] }
 0x51d   : > { %v8054_v29 = vpack.c.bf16 %v6048_v2, %v6047_v41  ;;  %v11108_v41 = vld [vmem:[#allocation14 + $0x1b0] sm:$0xff]  ;;  %v11110_v2 = vld [vmem:[#allocation14 + $0x1b8] sm:$0xff] }
 0x51e   : > { %v7408_v63 = vpop.f32.mrb[34].mxu1  ;;  %v5165_v17 = vadd.f32 %v11046_v44, %v11061_v53 }
 0x51f   : > { %v7409_v38 = vpop.f32.mrb[35].mxu1  ;;  %8055 = vmatpush3.bf16.msra.mxu1 %v8054_v29 }
 0x520   : > { %v11048_v26 = vadd.f32 %v7409_v38, %v7408_v63  ;;  %v6065_v63 = vld [vmem:[#allocation14 + $0xf0] sm:$0xff]  ;;  %v6066_v38 = vld [vmem:[#allocation14 + $0xf8] sm:$0xff] }
 0x522   : > { %v7411_v16 = vpop.f32.mrb[36].mxu1  ;;  %v5170_v39 = vadd.f32 %v11048_v26, %v11061_v53 }
 0x523   : > { %v7412_v12 = vpop.f32.mrb[37].mxu1 }
 0x524   : > { %v11050_v24 = vadd.f32 %v7412_v12, %v7411_v16  ;;  %v8056_v16 = vpack.c.bf16 %v6066_v38, %v6065_v63  ;;  %v6049_v12 = vld [vmem:[#allocation14 + $0x70] sm:$0xff] }
 0x525   : > { %v11114_v38 = vld [vmem:[#allocation14 + $0x130] sm:$0xff] }
 0x526   : > { %v7414_v40 = vpop.f32.mrb[38].mxu1  ;;  %8057 = vmatprep.subr.bf16.mxu1 %v8056_v16  ;;  %v5175_v15 = vadd.f32 %v11050_v24, %v11061_v53  ;;  %v11116_v16 = vld [vmem:[#allocation14 + $0x138] sm:$0xff] }
 0x527   : > { %v7415_v45 = vpop.f32.mrb[39].mxu1 }
 0x528   : > { %v11052_v28 = vadd.f32 %v7415_v45, %v7414_v40  ;;  %v6050_v40 = vld [vmem:[#allocation14 + $0x78] sm:$0xff] }
 0x529   : > { %v8058_v45 = vpack.c.bf16 %v6050_v40, %v6049_v12  ;;  %v11118_v12 = vld [vmem:[#allocation14 + $0x1c0] sm:$0xff] }
 0x52a   : > { %v7417_v43 = vpop.f32.mrb[40].mxu1  ;;  %v5180_v44 = vadd.f32 %v11052_v28, %v11061_v53 }
 0x52b   : > { %v7418_v11 = vpop.f32.mrb[41].mxu1  ;;  %8059 = vmatpush3.bf16.msra.mxu1 %v8058_v45 }
 0x52c   : > { %v11054_v57 = vadd.f32 %v7418_v11, %v7417_v43  ;;  %v6083_v43 = vld [vmem:[#allocation14 + $0x180] sm:$0xff]  ;;  %v6084_v11 = vld [vmem:[#allocation14 + $0x188] sm:$0xff] }
 0x52e   : > { %v5185_v26 = vadd.f32 %v11054_v57, %v11061_v53  ;;  %v11088_v57 = vld [vmem:[#allocation14 + $0x100] sm:$0xff] }
 0x537   : > { %v7420_v4 = vpop.f32.mrb[42].mxu1 }
 0x538   : > { %v7421_v51 = vpop.f32.mrb[43].mxu1 }
 0x539   : > { %v11056_v37 = vadd.f32 %v7421_v51, %v7420_v4  ;;  %v8060_v4 = vpack.c.bf16 %v6084_v11, %v6083_v43  ;;  %v11120_v43 = vld [vmem:[#allocation14 + $0x1c8] sm:$0xff]  ;;  %v11122_v11 = vld [vmem:[#allocation14 + $0x140] sm:$0xff] }
 0x53b   : > { %8061 = vmatprep.subr.bf16.mxu1 %v8060_v4  ;;  %v5190_v3 = vadd.f32 %v11056_v37, %v11061_v53  ;;  %v11096_v37 = vld [vmem:[#allocation14 + $0x110] sm:$0xff]  ;;  %v11124_v4 = vld [vmem:[#allocation14 + $0x148] sm:$0xff] }
 0x564   : > { %v7423_v1 = vpop.f32.mrb[44].mxu1 }
 0x565   : > { %v7424_v7 = vpop.f32.mrb[45].mxu1 }
 0x566   : > { %v7425_v49 = vadd.f32 %v7424_v7, %v7423_v1 }
 0x568   : > { %v11064_v48 = vadd.f32 %v7425_v49, %v11061_v53 }
 0x58e   : > { %v7426_v51 = vpop.f32.mrb[46].mxu1 }
 0x58f   : > { %v7427_v23 = vpop.f32.mrb[47].mxu1 }
 0x590   : > { %v7428_v22 = vadd.f32 %v7427_v23, %v7426_v51 }
 0x592   : > { %v5200_v6 = vadd.f32 %v7428_v22, %v11061_v53  ;;  %v7461_v8 = vpop.f32.mrb[48].mxu1  ;;  %v11098_v53 = vld [vmem:[#allocation14 + $0x118] sm:$0xff] }
 0x593   : > { %v7462_v42 = vpop.f32.mrb[49].mxu1 }
 0x594   : > { %v7463_v25 = vadd.f32 %v7462_v42, %v7461_v8  ;;  %v11132_v8 = vld [vmem:[#allocation14 + $0x1d0] sm:$0xff]  ;;  %v11134_v42 = vld [vmem:[#allocation14 + $0x1d8] sm:$0xff] }
 0x595   : > { %11510 = vst [vmem:[#allocation31_spill] sm:$0xff] %v11132_v8 }
 0x596   : > { %v7464_v13 = vpop.f32.mrb[50].mxu1  ;;  %v5270_v46 = vadd.f32 %v7463_v25, %v5165_v17 }
 0x597   : > { %v7465_v9 = vpop.f32.mrb[51].mxu1 }
 0x598   : > { %v7466_v60 = vadd.f32 %v7465_v9, %v7464_v13  ;;  %v11142_v9 = vld [vmem:[#allocation14 + $0x150] sm:$0xff] }
 0x599   : > { %11511 = vst [vmem:[#allocation26_spill] sm:$0xff] %v11142_v9 }
 0x59a   : > { %v7467_v1 = vpop.f32.mrb[52].mxu1  ;;  %v5275_v7 = vadd.f32 %v7466_v60, %v5170_v39  ;;  %v11144_v39 = vld [vmem:[#allocation14 + $0x158] sm:$0xff] }
 0x59b   : > { %v7468_v49 = vpop.f32.mrb[53].mxu1  ;;  %11512 = vst [vmem:[#allocation27_spill] sm:$0xff] %v11144_v39 }
 0x59c   : > { %v7469_v50 = vadd.f32 %v7468_v49, %v7467_v1 }
 0x59e   : > { %v7470_v33 = vpop.f32.mrb[54].mxu1  ;;  %v11073_v5 = vadd.f32 %v7469_v50, %v5175_v15 }
 0x59f   : > { %v7471_v56 = vpop.f32.mrb[55].mxu1 }
 0x5a0   : > { %v7472_v0 = vadd.f32 %v7471_v56, %v7470_v33 }
 0x5a2   : > { %v7473_v55 = vpop.f32.mrb[56].mxu1  ;;  %v5285_v47 = vadd.f32 %v7472_v0, %v5180_v44 }
 0x5a3   : > { %v7474_v59 = vpop.f32.mrb[57].mxu1 }
 0x5a4   : > { %v7475_v36 = vadd.f32 %v7474_v59, %v7473_v55 }
 0x5a6   : > { %v7476_v62 = vpop.f32.mrb[58].mxu1  ;;  %v11079_v30 = vadd.f32 %v7475_v36, %v5185_v26 }
 0x5a7   : > { %v7477_v24 = vpop.f32.mrb[59].mxu1 }
 0x5a8   : > { %v7478_v14 = vadd.f32 %v7477_v24, %v7476_v62 }
 0x5aa   : > { %v7479_v27 = vpop.f32.mrb[60].mxu1  ;;  %v11083_v54 = vadd.f32 %v7478_v14, %v5190_v3 }
 0x5ab   : > { %v7480_v28 = vpop.f32.mrb[61].mxu1 }
 0x5ac   : > { %v7481_v52 = vadd.f32 %v7480_v28, %v7479_v27 }
 0x5ae   : > { %v7482_v35 = vpop.f32.mrb[62].mxu1  ;;  %v11086_v61 = vadd.f32 %v7481_v52, %v11064_v48  ;;  %v11104_v48 = vld [vmem:[#allocation14 + $0x120] sm:$0xff] }
 0x5af   : > { %v7483_v10 = vpop.f32.mrb[63].mxu1 }
 0x5b0   : > { %v7484_v18 = vadd.f32 %v7483_v10, %v7482_v35 }
 0x5b2   : > { %v7791_v29 = vpop.f32.mrb[64].mxu1  ;;  %v11112_v63 = vadd.f32 %v7484_v18, %v5200_v6 }
 0x5b3   : > { %v5380_v40 = vadd.f32 %v7791_v29, %v5275_v7  ;;  %v5374_v45 = vpop.f32.mrb[65].mxu1 }
 0x5b4   : > { %v5375_v51 = vadd.f32 %v5374_v45, %v5270_v46 }
 0x5b5   : > { %v5414_v17 = vmax.f32 %v5380_v40, 0.0 }
 0x5b6   : > { %v5413_v60 = vmax.f32 %v5375_v51, 0.0  ;;  %v7794_v1 = vpop.f32.mrb[66].mxu1 }
 0x5b7   : > { %v5446_v50 = vcombine.high %v5414_v17, %v5414_v17  ;;  %v5453_v33 = vrot.slane %v5414_v17, %v10069_v19  ;;  %v5390_v56 = vadd.f32 %v7794_v1, %v5285_v47  ;;  %v5384_v44 = vpop.f32.mrb[67].mxu1 }
 0x5b8   : > { %v5429_v55 = vcombine.high %v5413_v60, %v5413_v60  ;;  %v5436_v59 = vrot.slane %v5413_v60, %v10069_v19  ;;  %v11157_v26 = vadd.f32 %v5384_v44, %v11073_v5 }
 0x5b9   : > { %v5460_v62 = vrot.slane %v5446_v50, %v10069_v19  ;;  %v5461_v24 = vcombine.high %v5453_v33, %v5453_v33  ;;  %v5626_v3 = vsel %vm5597_vm11, %v5453_v33, -inf  ;;  %v11163_v14 = vmax.f32 %v5390_v56, 0.0 }
 0x5ba   : > { %v5627_v47 = vrot.slane %v5626_v3, 4  ;;  %v5443_v27 = vrot.slane %v5429_v55, %v10069_v19  ;;  %v5444_v28 = vcombine.high %v5436_v59, %v5436_v59  ;;  %v5598_v52 = vsel %vm5597_vm11, %v5436_v59, -inf  ;;  %v11167_v35 = vpop.f32.mrb[68].mxu1 }
 0x5bb   : > { %v5462_v5 = vcombine.high %v5460_v62, %v5460_v62  ;;  %v5633_v10 = vsel %vm5597_vm11, %v5461_v24, -inf  ;;  %v5640_v18 = vsel %vm5597_vm11, %v5460_v62, -inf  ;;  %v5599_v29 = vrot.slane %v5598_v52, 4  ;;  %v11171_v40 = vpop.f32.mrb[69].mxu1 }
 0x5bc   : > { %v5628_v45 = vmax.f32 %v5626_v3, %v5627_v47  ;;  %v5634_v51 = vrot.slane %v5633_v10, 4  ;;  %v5641_v17 = vrot.slane %v5640_v18, 4  ;;  %v5445_v60 = vcombine.high %v5443_v27, %v5443_v27 }
 0x5bd   : > { %v5647_v1 = vsel %vm5597_vm11, %v5462_v5, -inf  ;;  %v5600_v50 = vmax.f32 %v5598_v52, %v5599_v29  ;;  %v5605_v33 = vsel %vm5597_vm11, %v5444_v28, -inf  ;;  %v5612_v56 = vsel %vm5597_vm11, %v5443_v27, -inf }
 0x5be   : > { %v5629_v44 = vrot.slane %v5628_v45, 2  ;;  %v5635_v55 = vmax.f32 %v5633_v10, %v5634_v51  ;;  %v5642_v59 = vmax.f32 %v5640_v18, %v5641_v17  ;;  %v5648_v24 = vrot.slane %v5647_v1, 4  ;;  %v11176_v36 = vpop.f32.mrb[70].mxu1 }
 0x5bf   : > { %v5601_v62 = vrot.slane %v5600_v50, 2  ;;  %v5606_v0 = vrot.slane %v5605_v33, 4  ;;  %v5613_v15 = vrot.slane %v5612_v56, 4  ;;  %v5619_v3 = vsel %vm5597_vm11, %v5445_v60, -inf  ;;  %v11179_v47 = vpop.f32.mrb[71].mxu1 }
 0x5c0   : > { %v5630_v49 = vmax.f32 %v5628_v45, %v5629_v44  ;;  %v5636_v5 = vrot.slane %v5635_v55, 2  ;;  %v5643_v52 = vrot.slane %v5642_v59, 2  ;;  %v5649_v29 = vmax.f32 %v5647_v1, %v5648_v24 }
 0x5c1   : > { %v5602_v28 = vmax.f32 %v5600_v50, %v5601_v62  ;;  %v5607_v7 = vmax.f32 %v5605_v33, %v5606_v0  ;;  %v5614_v27 = vmax.f32 %v5612_v56, %v5613_v15  ;;  %v5620_v46 = vrot.slane %v5619_v3, 4 }
 0x5c2   : > { %v5631_v10 = vrot.slane %v5630_v49, 1  ;;  %v5637_v18 = vmax.f32 %v5635_v55, %v5636_v5  ;;  %v5644_v51 = vmax.f32 %v5642_v59, %v5643_v52  ;;  %v5650_v17 = vrot.slane %v5649_v29, 2 }
 0x5c3   : > { %v5603_v13 = vrot.slane %v5602_v28, 1  ;;  %v5608_v25 = vrot.slane %v5607_v7, 2  ;;  %v5615_v6 = vrot.slane %v5614_v27, 2  ;;  %v5621_v22 = vmax.f32 %v5619_v3, %v5620_v46 }
 0x5c4   : > { %v5632_v23 = vmax.f32 %v5630_v49, %v5631_v10  ;;  %v5638_v60 = vrot.slane %v5637_v18, 1  ;;  %v5645_v9 = vrot.slane %v5644_v51, 1  ;;  %v5651_v39 = vmax.f32 %v5649_v29, %v5650_v17 }
 0x5c5   : > { %v5604_v45 = vmax.f32 %v5602_v28, %v5603_v13  ;;  %v5609_v44 = vmax.f32 %v5607_v7, %v5608_v25  ;;  %v5616_v8 = vmax.f32 %v5614_v27, %v5615_v6  ;;  %v5622_v1 = vrot.slane %v5621_v22, 2 }
 0x5c6   : > { %v5639_v50 = vmax.f32 %v5637_v18, %v5638_v60  ;;  %v5646_v0 = vmax.f32 %v5644_v51, %v5645_v9  ;;  %v5652_v15 = vrot.slane %v5651_v39, 1  ;;  %v5480_v33 = vcombine.high %v11163_v14, %v11163_v14 }
 0x5c7   : > { %v5610_v56 = vrot.slane %v5609_v44, 1  ;;  %v5617_v55 = vrot.slane %v5616_v8, 1  ;;  %v5623_v59 = vmax.f32 %v5621_v22, %v5622_v1  ;;  %v5822_v24 = vmax.f32 %v5604_v45, %v5632_v23 }
 0x5c8   : > { %v5653_v62 = vmax.f32 %v5651_v39, %v5652_v15  ;;  %v5487_v46 = vrot.slane %v11163_v14, %v10069_v19  ;;  %v5494_v49 = vrot.slane %v5480_v33, %v10069_v19  ;;  %v5415_v25 = vmax.f32 %v11157_v26, 0.0 }
 0x5c9   : > { %v5611_v6 = vmax.f32 %v5609_v44, %v5610_v56  ;;  %v5618_v13 = vmax.f32 %v5616_v8, %v5617_v55  ;;  %v5624_v7 = vrot.slane %v5623_v59, 1  ;;  %v5400_v9 = vadd.f32 %v11167_v35, %v11083_v54 }
 0x5ca   : > { %v5495_v3 = vcombine.high %v5487_v46, %v5487_v46  ;;  %v5496_v5 = vcombine.high %v5494_v49, %v5494_v49  ;;  %v5682_v52 = vsel %vm5597_vm11, %v5487_v46, -inf  ;;  %v5696_v23 = vsel %vm5597_vm11, %v5494_v49, -inf }
 0x5cb   : > { %v5625_v22 = vmax.f32 %v5623_v59, %v5624_v7  ;;  %v5823_v39 = vmax.f32 %v5611_v6, %v5639_v50  ;;  %v5824_v14 = vmax.f32 %v5618_v13, %v5646_v0  ;;  %v5683_v29 = vrot.slane %v5682_v52, 4 }
 0x5cc   : > { %v5689_v28 = vsel %vm5597_vm11, %v5495_v3, -inf  ;;  %v5697_v26 = vrot.slane %v5696_v23, 4  ;;  %v5703_v8 = vsel %vm5597_vm11, %v5496_v5, -inf  ;;  %v5463_v27 = vcombine.high %v5415_v25, %v5415_v25 }
 0x5cd   : > { %v5825_v10 = vmax.f32 %v5625_v22, %v5653_v62  ;;  %v5869_v54 = vsel %vm4602_vm4, %v5823_v39, %v5822_v24  ;;  %v7048_v35 = vcombine.low %v5822_v24, %v5823_v39  ;;  %v5684_v18 = vmax.f32 %v5682_v52, %v5683_v29 }
 0x5ce   : > { %v5870_v51 = vsel %vm4604_vm5, %v5824_v14, %v5869_v54  ;;  %v5690_v17 = vrot.slane %v5689_v28, 4  ;;  %v5698_v60 = vmax.f32 %v5696_v23, %v5697_v26  ;;  %v5704_v45 = vrot.slane %v5703_v8, 4 }
 0x5cf   : > { %v5871_v44 = vsel %vm4606_vm6, %v5825_v10, %v5870_v51  ;;  %v7049_v1 = vcombine.low %v5824_v14, %v5825_v10  ;;  %v7056_v50 = vrot.slane %v7048_v35, %v10069_v19  ;;  %v5685_v0 = vrot.slane %v5684_v18, 2 }
 0x5d0   : > { %5886 = vst [vmem:[#allocation6 + $0x9] sm:$0xf] %v5871_v44  ;;  %v5691_v15 = vmax.f32 %v5689_v28, %v5690_v17  ;;  %v5699_v33 = vrot.slane %v5698_v60, 2  ;;  %v5705_v56 = vmax.f32 %v5703_v8, %v5704_v45  ;;  %v5470_v55 = vrot.slane %v5415_v25, %v10069_v19 }
 0x5d1   : > { %v7063_v59 = vrot.slane %v7049_v1, %v10069_v19  ;;  %v5686_v24 = vmax.f32 %v5684_v18, %v5685_v0  ;;  %v5477_v62 = vrot.slane %v5463_v27, %v10069_v19  ;;  %v5418_v46 = vmax.f32 %v5400_v9, 0.0 }
 0x5d2   : > { %v5692_v49 = vrot.slane %v5691_v15, 2  ;;  %v5700_v6 = vmax.f32 %v5698_v60, %v5699_v33  ;;  %v5706_v13 = vrot.slane %v5705_v56, 2  ;;  %v5478_v7 = vcombine.high %v5470_v55, %v5470_v55 }
 0x5d3   : > { %v7064_v3 = vcombine.low %v7056_v50, %v7063_v59  ;;  %v5687_v5 = vrot.slane %v5686_v24, 1  ;;  %v5479_v52 = vcombine.high %v5477_v62, %v5477_v62  ;;  %v5654_v23 = vsel %vm5597_vm11, %v5470_v55, -inf }
 0x5d4   : > { %v5693_v22 = vmax.f32 %v5691_v15, %v5692_v49  ;;  %v5701_v39 = vrot.slane %v5700_v6, 1  ;;  %v5707_v14 = vmax.f32 %v5705_v56, %v5706_v13  ;;  %v5655_v29 = vrot.slane %v5654_v23, 4 }
 0x5d5   : > { %7120 = vst [vmem:[%s11202_s30 + $0x8] sm:$0xff] %v7064_v3  ;;  %7121 = vst [vmem:[%s11202_s30 + $0x18] sm:$0xff] %v7064_v3  ;;  %v5688_v25 = vmax.f32 %v5686_v24, %v5687_v5  ;;  %v5661_v9 = vsel %vm5597_vm11, %v5478_v7, -inf  ;;  %v5668_v28 = vsel %vm5597_vm11, %v5477_v62, -inf  ;;  %v5675_v26 = vsel %vm5597_vm11, %v5479_v52, -inf }
 0x5d6   : > { %v5694_v8 = vrot.slane %v5693_v22, 1  ;;  %v11209_v27 = vmax.f32 %v5700_v6, %v5701_v39  ;;  %v5708_v10 = vrot.slane %v5707_v14, 1  ;;  %v5656_v54 = vmax.f32 %v5654_v23, %v5655_v29 }
 0x5d7   : > { %v5662_v35 = vrot.slane %v5661_v9, 4  ;;  %v5669_v18 = vrot.slane %v5668_v28, 4  ;;  %v5676_v51 = vrot.slane %v5675_v26, 4  ;;  %v5514_v17 = vcombine.high %v5418_v46, %v5418_v46  ;;  %v8456_v50 = vld [vmem:[#allocation6 + $0x1] ss:$8 sps:$4 sm:$0xff]  }
 0x5d8   : > { %v5695_v60 = vmax.f32 %v5693_v22, %v5694_v8  ;;  %v5709_v45 = vmax.f32 %v5707_v14, %v5708_v10  ;;  %v5657_v44 = vrot.slane %v5656_v54, 2  ;;  %v5521_v1 = vrot.slane %v5418_v46, %v10069_v19  ;;  %v8457_v55 = vld [vmem:[#allocation6] ss:$8 sps:$4 sm:$0xff]   ;;  %6250 = vmatprep.mubr.f32.mxu1 %v8456_v50 }
 0x5d9   : > { %v5663_v0 = vmax.f32 %v5661_v9, %v5662_v35  ;;  %v5670_v15 = vmax.f32 %v5668_v28, %v5669_v18  ;;  %v5677_v33 = vmax.f32 %v5675_v26, %v5676_v51  ;;  %v5528_v56 = vrot.slane %v5514_v17, %v10069_v19  ;;  %6251 = vmatmul.mubr.f32.vlgmr.msra.gmra.mrb[72].mxu1 %v8457_v55  ;;  %v11225_v51 = vld [vmem:[#allocation14 + $0x1e0] sm:$0xff]  ;;  %v11237_v55 = vld [vmem:[#allocation14 + $0x168] sm:$0xff] }
 0x5da   : > { %v5658_v59 = vmax.f32 %v5656_v54, %v5657_v44  ;;  %v5529_v24 = vcombine.high %v5521_v1, %v5521_v1  ;;  %v5738_v62 = vsel %vm5597_vm11, %v5521_v1, -inf  ;;  %v5395_v49 = vadd.f32 %v11171_v40, %v11079_v30 }
 0x5db   : > { %v5664_v6 = vrot.slane %v5663_v0, 2  ;;  %v5671_v13 = vrot.slane %v5670_v15, 2  ;;  %v5678_v7 = vrot.slane %v5677_v33, 2  ;;  %v5530_v3 = vcombine.high %v5528_v56, %v5528_v56 }
 0x5dc   : > { %v5659_v46 = vrot.slane %v5658_v59, 1  ;;  %v5739_v5 = vrot.slane %v5738_v62, 4  ;;  %v5745_v52 = vsel %vm5597_vm11, %v5529_v24, -inf  ;;  %v5752_v23 = vsel %vm5597_vm11, %v5528_v56, -inf  ;;  %v11235_v56 = vld [vmem:[#allocation14 + $0x160] sm:$0xff] }
 0x5dd   : > { %v11513_v22 = vpack.c.bf16 %v11090_v32, %v11088_v57  ;;  %v5665_v39 = vmax.f32 %v5663_v0, %v5664_v6  ;;  %v5672_v14 = vmax.f32 %v5670_v15, %v5671_v13  ;;  %v5679_v29 = vmax.f32 %v5677_v33, %v5678_v7  ;;  %v11227_v57 = vld [vmem:[#allocation14 + $0x1e8] sm:$0xff] }
 0x5de   : > { %v5746_v30 = vrot.slane %v5745_v52, 4  ;;  %v11514_v40 = vpack.c.bf16 %v11094_v58, %v11092_v31  ;;  %v5660_v9 = vmax.f32 %v5658_v59, %v5659_v46  ;;  %v5740_v28 = vmax.f32 %v5738_v62, %v5739_v5 }
 0x5df   : > { %8063 = vmatpush3.bf16.msra.mxu1 %v11513_v22  ;;  %v5753_v26 = vrot.slane %v5752_v23, 4  ;;  %v5759_v8 = vsel %vm5597_vm11, %v5530_v3, -inf  ;;  %v5666_v10 = vrot.slane %v5665_v39, 1  ;;  %v5673_v54 = vrot.slane %v5672_v14, 1  ;;  %v11244_v3 = vld [vmem:[#allocation14 + $0x1f8] sm:$0xff] }
 0x5e0   : > { %8065 = vmatprep.subr.bf16.mxu1 %v11514_v40  ;;  %v5680_v35 = vrot.slane %v5679_v29, 1  ;;  %v5747_v18 = vmax.f32 %v5745_v52, %v5746_v30  ;;  %v5826_v32 = vmax.f32 %v5660_v9, %v5688_v25  ;;  %v5741_v17 = vrot.slane %v5740_v28, 2 }
 0x5e1   : > { %v5754_v44 = vmax.f32 %v5752_v23, %v5753_v26  ;;  %v5760_v1 = vrot.slane %v5759_v8, 4  ;;  %v11515_v31 = vpack.c.bf16 %v11098_v53, %v11096_v37  ;;  %v5667_v58 = vmax.f32 %v5665_v39, %v5666_v10  ;;  %v11241_v37 = vld [vmem:[#allocation14 + $0x1f0] sm:$0xff] }
 0x5e2   : > { %v5674_v50 = vmax.f32 %v5672_v14, %v5673_v54  ;;  %v5681_v0 = vmax.f32 %v5679_v29, %v5680_v35  ;;  %v5748_v15 = vrot.slane %v5747_v18, 2  ;;  %v11516_v33 = vpack.c.bf16 %v11102_v21, %v11100_v20  ;;  %v11246_v20 = vld [vmem:[#allocation14 + $0x170] sm:$0xff]  ;;  %v11248_v21 = vld [vmem:[#allocation14 + $0x178] sm:$0xff]  ;;  %v11259_v14 = vld [vmem:[#allocation14 + $0x280] sm:$0xff] }
 0x5e3   : > { %8067 = vmatpush3.bf16.msra.mxu1 %v11515_v31  ;;  %v5755_v25 = vrot.slane %v5754_v44, 2  ;;  %v5761_v59 = vmax.f32 %v5759_v8, %v5760_v1  ;;  %v5417_v24 = vmax.f32 %v5395_v49, 0.0  ;;  %v8084_v62 = vpack.c.bf16 %v11227_v57, %v11225_v51  ;;  %v11261_v29 = vld [vmem:[#allocation14 + $0x288] sm:$0xff] }
 0x5e4   : > { %8069 = vmatprep.subr.bf16.mxu1 %v11516_v33  ;;  %v5827_v53 = vmax.f32 %v5667_v58, %v5695_v60  ;;  %v5828_v6 = vmax.f32 %v5674_v50, %v11209_v27  ;;  %v5829_v13 = vmax.f32 %v5681_v0, %v5709_v45  ;;  %v5742_v7 = vmax.f32 %v5740_v28, %v5741_v17 }
 0x5e5   : > { %v5749_v46 = vmax.f32 %v5747_v18, %v5748_v15  ;;  %v5762_v5 = vrot.slane %v5761_v59, 2  ;;  %v5497_v52 = vcombine.high %v5417_v24, %v5417_v24  ;;  %v11517_v49 = vpack.c.bf16 %v11106_v34, %v11104_v48 }
 0x5e6   : > { %v8086_v60 = vpack.c.bf16 %v11237_v55, %v11235_v56  ;;  %v5872_v27 = vsel %vm4602_vm4, %v5827_v53, %v5826_v32  ;;  %v7065_v45 = vcombine.low %v5826_v32, %v5827_v53  ;;  %v7066_v23 = vcombine.low %v5828_v6, %v5829_v13  ;;  %v11522_v53 = vld [vmem:[#allocation31_spill] sm:$0xff] }
 0x5e7   : > { %8071 = vmatpush3.bf16.msra.mxu1 %v11517_v49  ;;  %v5756_v22 = vmax.f32 %v5754_v44, %v5755_v25  ;;  %v11518_v39 = vpack.c.bf16 %v11110_v2, %v11108_v41  ;;  %v5873_v30 = vsel %vm4604_vm5, %v5828_v6, %v5872_v27  ;;  %v5763_v48 = vmax.f32 %v5761_v59, %v5762_v5 }
 0x5e8   : > { %v8088_v34 = vpack.c.bf16 %v11244_v3, %v11241_v37  ;;  %v8090_v40 = vpack.c.bf16 %v11248_v21, %v11246_v20  ;;  %v5874_v9 = vsel %vm4606_vm6, %v5829_v13, %v5873_v30  ;;  %v7073_v28 = vrot.slane %v7065_v45, %v10069_v19  ;;  %v11524_v30 = vld [vmem:[#allocation27_spill] sm:$0xff] }
 0x5e9   : > { %8073 = vmatprep.subr.bf16.mxu1 %v11518_v39  ;;  %v7080_v41 = vrot.slane %v7066_v23, %v10069_v19  ;;  %v5743_v2 = vrot.slane %v5742_v7, 1  ;;  %5887 = vst [vmem:[#allocation6 + $0x11] sm:$0xf] %v5874_v9  ;;  %v5750_v26 = vrot.slane %v5749_v46, 1  ;;  %v5504_v8 = vrot.slane %v5417_v24, %v10069_v19  ;;  %v11525_v9 = vld [vmem:[#allocation26_spill] sm:$0xff] }
 0x5ea   : > { %v5511_v10 = vrot.slane %v5497_v52, %v10069_v19  ;;  %v11519_v54 = vpack.c.bf16 %v11116_v16, %v11114_v38  ;;  %v8092_v35 = vpack.c.bf16 %v11261_v29, %v11259_v14  ;;  %v5757_v32 = vrot.slane %v5756_v22, 1 }
 0x5eb   : > { %v7081_v18 = vcombine.low %v7073_v28, %v7080_v41  ;;  %v5410_v17 = vadd.f32 %v11176_v36, %v11112_v63  ;;  %v5405_v44 = vadd.f32 %v11179_v47, %v11086_v61  ;;  %v11520_v1 = vpack.c.bf16 %v11120_v43, %v11118_v12 }
 0x5ec   : > { %8075 = vmatpush3.bf16.msra.mxu1 %v11519_v54  ;;  %v5764_v31 = vrot.slane %v5763_v48, 1  ;;  %v5512_v58 = vcombine.high %v5504_v8, %v5504_v8  ;;  %v5513_v50 = vcombine.high %v5511_v10, %v5511_v10  ;;  %v5710_v38 = vsel %vm5597_vm11, %v5504_v8, -inf }
 0x5ed   : > { %8077 = vmatprep.subr.bf16.mxu1 %v11520_v1  ;;  %7122 = vst [vmem:[%s11202_s30 + $0x28] sm:$0xff] %v7081_v18  ;;  %7123 = vst [vmem:[%s11202_s30 + $0x38] sm:$0xff] %v7081_v18  ;;  %v5744_v16 = vmax.f32 %v5742_v7, %v5743_v2  ;;  %v5711_v0 = vrot.slane %v5710_v38, 4  ;;  %v5724_v15 = vsel %vm5597_vm11, %v5511_v10, -inf  ;;  %v5420_v33 = vmax.f32 %v5410_v17, 0.0 }
 0x5ee   : > { %v5751_v63 = vmax.f32 %v5749_v46, %v5750_v26  ;;  %v5717_v36 = vsel %vm5597_vm11, %v5512_v58, -inf  ;;  %v5725_v61 = vrot.slane %v5724_v15, 4  ;;  %v5731_v47 = vsel %vm5597_vm11, %v5513_v50, -inf }
 0x5ef   : > { %v11521_v12 = vpack.c.bf16 %v11124_v4, %v11122_v11  ;;  %v5712_v43 = vmax.f32 %v5710_v38, %v5711_v0  ;;  %v5718_v25 = vrot.slane %v5717_v36, 4  ;;  %v5732_v59 = vrot.slane %v5731_v47, 4 }
 0x5f0   : > { %v5548_v24 = vcombine.high %v5420_v33, %v5420_v33  ;;  %v11523_v6 = vpack.c.bf16 %v11134_v42, %v11522_v53  ;;  %v5758_v13 = vmax.f32 %v5756_v22, %v5757_v32  ;;  %v5765_v7 = vmax.f32 %v5763_v48, %v5764_v31 }
 0x5f1   : > { %8079 = vmatpush3.bf16.msra.mxu1 %v11521_v12  ;;  %v5726_v46 = vmax.f32 %v5724_v15, %v5725_v61  ;;  %v5555_v5 = vrot.slane %v5420_v33, %v10069_v19  ;;  %v5713_v52 = vrot.slane %v5712_v43, 2  ;;  %v5719_v49 = vmax.f32 %v5717_v36, %v5718_v25 }
 0x5f2   : > { %8081 = vmatprep.subr.bf16.mxu1 %v11523_v6  ;;  %v5733_v27 = vmax.f32 %v5731_v47, %v5732_v59  ;;  %v5562_v45 = vrot.slane %v5548_v24, %v10069_v19  ;;  %v5419_v39 = vmax.f32 %v5405_v44, 0.0  ;;  %v11526_v28 = vpack.c.bf16 %v11524_v30, %v11525_v9 }
 0x5f3   : > { %v5727_v11 = vrot.slane %v5726_v46, 2  ;;  %v5563_v4 = vcombine.high %v5555_v5, %v5555_v5  ;;  %v5794_v23 = vsel %vm5597_vm11, %v5555_v5, -inf  ;;  %v5714_v42 = vmax.f32 %v5712_v43, %v5713_v52 }
 0x5f4   : > { %v5720_v22 = vrot.slane %v5719_v49, 2  ;;  %v5734_v48 = vrot.slane %v5733_v27, 2  ;;  %v5564_v41 = vcombine.high %v5562_v45, %v5562_v45  ;;  %v5795_v26 = vrot.slane %v5794_v23, 4 }
 0x5f5   : > { %8083 = vmatpush3.bf16.msra.mxu1 %v11526_v28  ;;  %v5728_v2 = vmax.f32 %v5726_v46, %v5727_v11  ;;  %v5801_v8 = vsel %vm5597_vm11, %v5563_v4, -inf  ;;  %v5808_v10 = vsel %vm5597_vm11, %v5562_v45, -inf  ;;  %v5715_v54 = vrot.slane %v5714_v42, 1 }
 0x5f6   : > { %8085 = vmatprep.subr.bf16.mxu1 %v8084_v62  ;;  %v5721_v18 = vmax.f32 %v5719_v49, %v5720_v22  ;;  %v5735_v32 = vmax.f32 %v5733_v27, %v5734_v48  ;;  %v5802_v17 = vrot.slane %v5801_v8, 4  ;;  %v5809_v1 = vrot.slane %v5808_v10, 4 }
 0x5f7   : > { %v5729_v44 = vrot.slane %v5728_v2, 1  ;;  %v5815_v31 = vsel %vm5597_vm11, %v5564_v41, -inf  ;;  %v5531_v58 = vcombine.high %v5419_v39, %v5419_v39  ;;  %v5716_v51 = vmax.f32 %v5714_v42, %v5715_v54 }
 0x5f8   : > { %v5722_v57 = vrot.slane %v5721_v18, 1  ;;  %v5736_v62 = vrot.slane %v5735_v32, 1  ;;  %v5538_v50 = vrot.slane %v5419_v39, %v10069_v19  ;;  %v5796_v0 = vmax.f32 %v5794_v23, %v5795_v26 }
 0x5f9   : > { %8087 = vmatpush3.bf16.msra.mxu1 %v8086_v60  ;;  %v5730_v38 = vmax.f32 %v5728_v2, %v5729_v44  ;;  %v5803_v15 = vmax.f32 %v5801_v8, %v5802_v17  ;;  %v5816_v33 = vrot.slane %v5815_v31, 4  ;;  %v5830_v47 = vmax.f32 %v5716_v51, %v5744_v16  ;;  %v6099_v8 = vld [vmem:[#allocation14 + $0x200] sm:$0xff] }
 0x5fa   : > { %8089 = vmatprep.subr.bf16.mxu1 %v8088_v34  ;;  %v5723_v36 = vmax.f32 %v5721_v18, %v5722_v57  ;;  %v5737_v61 = vmax.f32 %v5735_v32, %v5736_v62  ;;  %v5810_v43 = vmax.f32 %v5808_v10, %v5809_v1  ;;  %v5545_v56 = vrot.slane %v5531_v58, %v10069_v19  ;;  %v6100_v10 = vld [vmem:[#allocation14 + $0x208] sm:$0xff]  ;;  %v6117_v1 = vld [vmem:[#allocation14 + $0x290] sm:$0xff] }
 0x5fb   : > { %v5832_v12 = vmax.f32 %v5730_v38, %v5758_v13  ;;  %v5817_v25 = vmax.f32 %v5815_v31, %v5816_v33  ;;  %v5797_v37 = vrot.slane %v5796_v0, 2  ;;  %v5804_v3 = vrot.slane %v5803_v15, 2  ;;  %v6118_v31 = vld [vmem:[#allocation14 + $0x298] sm:$0xff] }
 0x5fc   : > { %v5831_v55 = vmax.f32 %v5723_v36, %v5751_v63  ;;  %v5833_v60 = vmax.f32 %v5737_v61, %v5765_v7  ;;  %v5546_v34 = vcombine.high %v5538_v50, %v5538_v50  ;;  %v5811_v6 = vrot.slane %v5810_v43, 2 }
 0x5fd   : > { %8091 = vmatpush3.bf16.msra.mxu1 %v8090_v40  ;;  %v5547_v13 = vcombine.high %v5545_v56, %v5545_v56  ;;  %v5818_v29 = vrot.slane %v5817_v25, 2  ;;  %v5798_v40 = vmax.f32 %v5796_v0, %v5797_v37  ;;  %v5766_v63 = vsel %vm5597_vm11, %v5538_v50, -inf  ;;  %v8461_v37 = vld [vmem:[#allocation6 + $0x2] ss:$8 sps:$4 sm:$0xff]  }
 0x5fe   : > { %8093 = vmatprep.subr.bf16.mxu1 %v8092_v35  ;;  %v5875_v16 = vsel %vm4602_vm4, %v5831_v55, %v5830_v47  ;;  %v7082_v59 = vcombine.low %v5830_v47, %v5831_v55  ;;  %v7083_v24 = vcombine.low %v5832_v12, %v5833_v60  ;;  %v5805_v35 = vmax.f32 %v5803_v15, %v5804_v3  ;;  %v8460_v15 = vld [vmem:[#allocation6 + $0x8] ss:$8 sps:$4 sm:$0xff]   ;;  %v6101_v55 = vld [vmem:[#allocation14 + $0x210] sm:$0xff] }
 0x5ff   : > { %v5876_v53 = vsel %vm4604_vm5, %v5832_v12, %v5875_v16  ;;  %v5773_v7 = vsel %vm5597_vm11, %v5546_v34, -inf  ;;  %v5767_v5 = vrot.slane %v5766_v63, 4  ;;  %v5780_v49 = vsel %vm5597_vm11, %v5545_v56, -inf }
 0x600   : > { %v5877_v20 = vsel %vm4606_vm6, %v5833_v60, %v5876_v53  ;;  %v7090_v21 = vrot.slane %v7082_v59, %v10069_v19  ;;  %v7097_v14 = vrot.slane %v7083_v24, %v10069_v19  ;;  %v5774_v52 = vrot.slane %v5773_v7, 4  ;;  %v6102_v60 = vld [vmem:[#allocation14 + $0x218] sm:$0xff]  ;;  %v6119_v24 = vld [vmem:[#allocation14 + $0x2a0] sm:$0xff]  ;;  %v6120_v53 = vld [vmem:[#allocation14 + $0x2a8] sm:$0xff] }
 0x601   : > { %5888 = vst [vmem:[#allocation6 + $0x19] sm:$0xf] %v5877_v20  ;;  %v5812_v27 = vmax.f32 %v5810_v43, %v5811_v6  ;;  %v5781_v45 = vrot.slane %v5780_v49, 4  ;;  %v5787_v11 = vsel %vm5597_vm11, %v5547_v13, -inf  ;;  %v5819_v4 = vmax.f32 %v5817_v25, %v5818_v29 }
 0x602   : > { %v7098_v46 = vcombine.low %v7090_v21, %v7097_v14  ;;  %v5768_v23 = vmax.f32 %v5766_v63, %v5767_v5  ;;  %v5775_v39 = vmax.f32 %v5773_v7, %v5774_v52  ;;  %v5788_v30 = vrot.slane %v5787_v11, 4  ;;  %v6104_v63 = vld [vmem:[#allocation14 + $0x228] sm:$0xff]  ;;  %v6121_v5 = vld [vmem:[#allocation14 + $0x2b0] sm:$0xff]  ;;  %v6122_v52 = vld [vmem:[#allocation14 + $0x2b8] sm:$0xff] }
 0x603   : > { %v5799_v9 = vrot.slane %v5798_v40, 1  ;;  %v5782_v28 = vmax.f32 %v5780_v49, %v5781_v45  ;;  %v5806_v42 = vrot.slane %v5805_v35, 1  ;;  %v5813_v2 = vrot.slane %v5812_v27, 1 }
 0x604   : > { %7124 = vst [vmem:[%s11202_s30 + $0x48] sm:$0xff] %v7098_v46  ;;  %7125 = vst [vmem:[%s11202_s30 + $0x58] sm:$0xff] %v7098_v46  ;;  %v5769_v22 = vrot.slane %v5768_v23, 2  ;;  %v5776_v48 = vrot.slane %v5775_v39, 2  ;;  %v5789_v41 = vmax.f32 %v5787_v11, %v5788_v30  ;;  %v5820_v54 = vrot.slane %v5819_v4, 1  ;;  %v6123_v30 = vld [vmem:[#allocation14 + $0x2c0] sm:$0xff] }
 0x605   : > { %v5783_v26 = vrot.slane %v5782_v28, 2  ;;  %v5800_v58 = vmax.f32 %v5798_v40, %v5799_v9  ;;  %v5807_v62 = vmax.f32 %v5805_v35, %v5806_v42  ;;  %v5814_v33 = vmax.f32 %v5812_v27, %v5813_v2  ;;  %v6103_v35 = vld [vmem:[#allocation14 + $0x220] sm:$0xff]  ;;  %v6124_v9 = vld [vmem:[#allocation14 + $0x2c8] sm:$0xff]  ;;  %v6126_v2 = vld [vmem:[#allocation14 + $0x2d8] sm:$0xff] }
 0x606   : > { %v5770_v18 = vmax.f32 %v5768_v23, %v5769_v22  ;;  %v5777_v32 = vmax.f32 %v5775_v39, %v5776_v48  ;;  %v5790_v17 = vrot.slane %v5789_v41, 2  ;;  %v8094_v61 = vpack.c.bf16 %v6100_v10, %v6099_v8  ;;  %v6106_v23 = vld [vmem:[#allocation14 + $0x238] sm:$0xff]  ;;  %v6107_v42 = vld [vmem:[#allocation14 + $0x240] sm:$0xff]  ;;  %v6108_v48 = vld [vmem:[#allocation14 + $0x248] sm:$0xff] }
 0x607   : > { %v5784_v51 = vmax.f32 %v5782_v28, %v5783_v26  ;;  %v5821_v47 = vmax.f32 %v5819_v4, %v5820_v54  ;;  %v8096_v3 = vpack.c.bf16 %v6118_v31, %v6117_v1  ;;  %v8098_v14 = vpack.c.bf16 %v6102_v60, %v6101_v55  ;;  %v6105_v4 = vld [vmem:[#allocation14 + $0x230] sm:$0xff]  ;;  %v8464_v10 = vld [vmem:[#allocation6 + $0xa] ss:$8 sps:$4 sm:$0xff]   ;;  %v6128_v1 = vld [vmem:[#allocation14 + $0x2e8] sm:$0xff] }
 0x608   : > { %v8458_v44 = vld [vmem:[#allocation6 + $0x11] ss:$8 sps:$4 sm:$0xff]   ;;  %v5771_v50 = vrot.slane %v5770_v18, 1  ;;  %v5778_v38 = vrot.slane %v5777_v32, 1  ;;  %v5791_v0 = vmax.f32 %v5789_v41, %v5790_v17  ;;  %v8100_v40 = vpack.c.bf16 %v6120_v53, %v6119_v24  ;;  %v6125_v41 = vld [vmem:[#allocation14 + $0x2d0] sm:$0xff]  ;;  %v6110_v17 = vld [vmem:[#allocation14 + $0x258] sm:$0xff] }
 0x609   : > { %v8459_v57 = vld [vmem:[#allocation6 + $0x10] ss:$8 sps:$4 sm:$0xff]   ;;  %6255 = vmatprep.mubr.f32.mxu1 %v8458_v44  ;;  %v5785_v36 = vrot.slane %v5784_v51, 1  ;;  %v8102_v45 = vpack.c.bf16 %v6104_v63, %v6103_v35  ;;  %v8104_v11 = vpack.c.bf16 %v6122_v52, %v6121_v5  ;;  %v8106_v28 = vpack.c.bf16 %v6106_v23, %v6105_v4  ;;  %v6149_v55 = vld [vmem:[#allocation14 + $0x390] sm:$0xff]  ;;  %v6150_v60 = vld [vmem:[#allocation14 + $0x398] sm:$0xff] }
 0x60a   : > { %6256 = vmatmul.mubr.f32.gmra.mrb[74].mxu1 %v8459_v57  ;;  %v5772_v12 = vmax.f32 %v5770_v18, %v5771_v50  ;;  %v5779_v43 = vmax.f32 %v5777_v32, %v5778_v38  ;;  %v5792_v56 = vrot.slane %v5791_v0, 1  ;;  %v8108_v22 = vpack.c.bf16 %v6124_v9, %v6123_v30  ;;  %v8463_v8 = vld [vmem:[#allocation6 + $0x12] ss:$8 sps:$4 sm:$0xff]   ;;  %v6109_v32 = vld [vmem:[#allocation14 + $0x250] sm:$0xff]  ;;  %v6130_v50 = vld [vmem:[#allocation14 + $0x2f8] sm:$0xff] }
 0x60b   : > { %6325 = vmatprep.mubr.f32.mxu1 %v8460_v15  ;;  %v5786_v25 = vmax.f32 %v5784_v51, %v5785_v36  ;;  %v8110_v54 = vpack.c.bf16 %v6108_v48, %v6107_v42  ;;  %v8112_v18 = vpack.c.bf16 %v6126_v2, %v6125_v41  ;;  %v6127_v44 = vld [vmem:[#allocation14 + $0x2e0] sm:$0xff]  ;;  %v8114_v31 = vpack.c.bf16 %v6110_v17, %v6109_v32  ;;  %v6112_v57 = vld [vmem:[#allocation14 + $0x268] sm:$0xff]  ;;  %v6113_v15 = vld [vmem:[#allocation14 + $0x270] sm:$0xff] }
 0x60c   : > { %v5793_v34 = vmax.f32 %v5791_v0, %v5792_v56  ;;  %v5834_v16 = vmax.f32 %v5772_v12, %v5800_v58  ;;  %v5835_v59 = vmax.f32 %v5779_v43, %v5807_v62  ;;  %v8116_v58 = vpack.c.bf16 %v6128_v1, %v6127_v44  ;;  %v6111_v51 = vld [vmem:[#allocation14 + $0x260] sm:$0xff]  ;;  %v6129_v62 = vld [vmem:[#allocation14 + $0x2f0] sm:$0xff]  ;;  %v6132_v56 = vld [vmem:[#allocation14 + $0x308] sm:$0xff] }
 0x60d   : > { %v5836_v6 = vmax.f32 %v5786_v25, %v5814_v33  ;;  %v8118_v38 = vpack.c.bf16 %v6112_v57, %v6111_v51  ;;  %v8120_v0 = vpack.c.bf16 %v6130_v50, %v6129_v62  ;;  %v6114_v33 = vld [vmem:[#allocation14 + $0x278] sm:$0xff]  ;;  %v6147_v36 = vld [vmem:[#allocation14 + $0x380] sm:$0xff]  ;;  %v6152_v53 = vld [vmem:[#allocation14 + $0x3a8] sm:$0xff] }
 0x60e   : > { %6326 = vmatmul.mubr.f32.vlgmr.msra.gmra.mrb[76].mxu1 %v8461_v37  ;;  %v5837_v13 = vmax.f32 %v5793_v34, %v5821_v47  ;;  %v5878_v20 = vsel %vm4602_vm4, %v5835_v59, %v5834_v16  ;;  %v7099_v21 = vcombine.low %v5834_v16, %v5835_v59  ;;  %v8122_v47 = vpack.c.bf16 %v6114_v33, %v6113_v15  ;;  %v6131_v43 = vld [vmem:[#allocation14 + $0x300] sm:$0xff]  ;;  %v6133_v34 = vld [vmem:[#allocation14 + $0x310] sm:$0xff]  ;;  %v6134_v16 = vld [vmem:[#allocation14 + $0x318] sm:$0xff] }
 0x60f   : > { %8095 = vmatpush3.bf16.msra.mxu1 %v8094_v61  ;;  %v5879_v29 = vsel %vm4604_vm5, %v5836_v6, %v5878_v20  ;;  %v6148_v61 = vld [vmem:[#allocation14 + $0x388] sm:$0xff]  ;;  %v8126_v25 = vpack.c.bf16 %v6132_v56, %v6131_v43  ;;  %v8465_v37 = vld [vmem:[#allocation6 + $0x9] ss:$8 sps:$4 sm:$0xff]   ;;  %v6565_v23 = vld [vmem:[#allocation16 + $0x10] sm:$0xff] }
 0x610   : > { %8097 = vmatprep.subr.bf16.mxu1 %v8096_v3  ;;  %v5880_v7 = vsel %vm4606_vm6, %v5837_v13, %v5879_v29  ;;  %v7100_v46 = vcombine.low %v5836_v6, %v5837_v13  ;;  %v7107_v49 = vrot.slane %v7099_v21, %v10069_v19  ;;  %v8124_v12 = vpack.c.bf16 %v6148_v61, %v6147_v36  ;;  %v6151_v24 = vld [vmem:[#allocation14 + $0x3a0] sm:$0xff]  ;;  %v6154_v35 = vld [vmem:[#allocation14 + $0x3b8] sm:$0xff]  ;;  %v6564_v52 = vld [vmem:[#allocation16 + $0x8] sm:$0xff] }
 0x611   : > { %5889 = vst [vmem:[#allocation6 + $0x21] sm:$0xf] %v5880_v7  ;;  %v8128_v3 = vpack.c.bf16 %v6150_v60, %v6149_v55  ;;  %v8130_v6 = vpack.c.bf16 %v6134_v16, %v6133_v34  ;;  %v8132_v20 = vpack.c.bf16 %v6152_v53, %v6151_v24  ;;  %v6135_v21 = vld [vmem:[#allocation14 + $0x320] sm:$0xff]  ;;  %v6137_v7 = vld [vmem:[#allocation14 + $0x330] sm:$0xff]  ;;  %v6140_v42 = vld [vmem:[#allocation14 + $0x348] sm:$0xff] }
 0x612   : > { %v7114_v27 = vrot.slane %v7100_v46, %v10069_v19  ;;  %v8468_v29 = vld [vmem:[#allocation6 + $0x11] ss:$8 sps:$4 sm:$0xff]   ;;  %v6138_v46 = vld [vmem:[#allocation14 + $0x338] sm:$0xff]  ;;  %v6161_v1 = vld [vmem:[#allocation14 + $0x3f0] sm:$0xff] }
 0x613   : > { %8099 = vmatpush3.bf16.msra.mxu1 %v8098_v14  ;;  %v6136_v14 = vld [vmem:[#allocation14 + $0x328] sm:$0xff]  ;;  %v8138_v30 = vpack.c.bf16 %v6138_v46, %v6137_v7  ;;  %v6158_v48 = vld [vmem:[#allocation14 + $0x3d8] sm:$0xff]  ;;  %v6143_v17 = vld [vmem:[#allocation14 + $0x360] sm:$0xff] }
 0x614   : > { %8101 = vmatprep.subr.bf16.mxu1 %v8100_v40  ;;  %v7115_v39 = vcombine.low %v7107_v49, %v7114_v27  ;;  %v6153_v40 = vld [vmem:[#allocation14 + $0x3b0] sm:$0xff]  ;;  %v8134_v63 = vpack.c.bf16 %v6136_v14, %v6135_v21  ;;  %v6566_v49 = vld [vmem:[#allocation16 + $0x18] sm:$0xff]  ;;  %v6563_v27 = vld [vmem:[#allocation16] sm:$0xff] }
 0x615   : > { %v8136_v5 = vpack.c.bf16 %v6154_v35, %v6153_v40  ;;  %v8188_v4 = vpack.c.bf16 %v6566_v49, %v6564_v52  ;;  %v6144_v44 = vld [vmem:[#allocation14 + $0x368] sm:$0xff]  ;;  %v6145_v57 = vld [vmem:[#allocation14 + $0x370] sm:$0xff]  ;;  %v6146_v62 = vld [vmem:[#allocation14 + $0x378] sm:$0xff] }
 0x616   : > { %7126 = vst [vmem:[%s11202_s30 + $0x68] sm:$0xff] %v7115_v39  ;;  %7127 = vst [vmem:[%s11202_s30 + $0x78] sm:$0xff] %v7115_v39  ;;  %v8190_v39 = vpack.c.bf16 %v6565_v23, %v6563_v27  ;;  %v6163_v50 = vld [vmem:[#allocation14 + $0x400] sm:$0xff]  ;;  %v6165_v33 = vld [vmem:[#allocation14 + $0x410] sm:$0xff] }
 0x617   : > { %8103 = vmatpush3.bf16.msra.mxu1 %v8102_v45  ;;  %v6155_v45 = vld [vmem:[#allocation14 + $0x3c0] sm:$0xff]  ;;  %8189 = vmatprep.subr.bf16.mxu0 %v8188_v4  ;;  %v6166_v36 = vld [vmem:[#allocation14 + $0x418] sm:$0xff]  ;;  %v6168_v56 = vld [vmem:[#allocation14 + $0x428] sm:$0xff] }
 0x618   : > { %8105 = vmatprep.subr.bf16.mxu1 %v8104_v11  ;;  %v8462_v26 = vld [vmem:[#allocation6 + $0x18] ss:$8 sps:$4 sm:$0xff]   ;;  %8191 = vmatpush1.bf16.msra.mxu0 %v8190_v39  ;;  %v6167_v43 = vld [vmem:[#allocation14 + $0x420] sm:$0xff]  ;;  %v6178_v40 = vld [vmem:[#allocation14 + $0x478] sm:$0xff] }
 0x619   : > { %6330 = vmatprep.mubr.f32.mxu1 %v8462_v26  ;;  %v8466_v59 = vld [vmem:[#allocation6 + $0x1a] ss:$8 sps:$4 sm:$0xff]   ;;  %v8164_v60 = vpack.c.bf16 %v6168_v56, %v6167_v43  ;;  %v6171_v16 = vld [vmem:[#allocation14 + $0x440] sm:$0xff] }
 0x61a   : > { %6331 = vmatmul.mubr.f32.gmra.mrb[78].mxu1 %v8463_v8  ;;  %v8467_v13 = vld [vmem:[#allocation6 + $0x19] ss:$8 sps:$4 sm:$0xff]   ;;  %v6142_v8 = vld [vmem:[#allocation14 + $0x358] sm:$0xff]  ;;  %v6567_v7 = vld [vmem:[#allocation16 + $0x20] sm:$0xff] }
 0x61b   : > { %8107 = vmatpush3.bf16.msra.mxu1 %v8106_v28  ;;  %6400 = vmatprep.mubr.f32.mxu1 %v8464_v10  ;;  %v6156_v11 = vld [vmem:[#allocation14 + $0x3c8] sm:$0xff]  ;;  %v6139_v28 = vld [vmem:[#allocation14 + $0x340] sm:$0xff]  ;;  %v6141_v26 = vld [vmem:[#allocation14 + $0x350] sm:$0xff] }
 0x61c   : > { %8109 = vmatprep.subr.bf16.mxu1 %v8108_v22  ;;  %v8140_v9 = vpack.c.bf16 %v6156_v11, %v6155_v45  ;;  %v6157_v22 = vld [vmem:[#allocation14 + $0x3d0] sm:$0xff]  ;;  %v8142_v41 = vpack.c.bf16 %v6140_v42, %v6139_v28  ;;  %v6159_v10 = vld [vmem:[#allocation14 + $0x3e0] sm:$0xff]  ;;  %v6176_v21 = vld [vmem:[#allocation14 + $0x468] sm:$0xff] }
 0x61d   : > { %v8144_v2 = vpack.c.bf16 %v6158_v48, %v6157_v22  ;;  %v8469_v61 = vld [vmem:[#allocation6 + $0x10] ss:$8 sps:$4 sm:$0xff]   ;;  %v8471_v55 = vld [vmem:[#allocation6 + $0x20] ss:$8 sps:$4 sm:$0xff]  }
 0x61e   : > { %v6173_v53 = vld [vmem:[#allocation14 + $0x450] sm:$0xff]  ;;  %v6568_v35 = vld [vmem:[#allocation16 + $0x28] sm:$0xff]  ;;  %v6574_v11 = vld [vmem:[#allocation16 + $0x58] sm:$0xff] }
 0x61f   : > { %8111 = vmatpush3.bf16.msra.mxu1 %v8110_v54  ;;  %v6160_v54 = vld [vmem:[#allocation14 + $0x3e8] sm:$0xff]  ;;  %v8473_v27 = vld [vmem:[#allocation6 + $0x22] ss:$8 sps:$4 sm:$0xff]   ;;  %v6571_v4 = vld [vmem:[#allocation16 + $0x40] sm:$0xff] }
 0x620   : > { %8113 = vmatprep.subr.bf16.mxu1 %v8112_v18  ;;  %v8146_v18 = vpack.c.bf16 %v6142_v8, %v6141_v26  ;;  %v8148_v32 = vpack.c.bf16 %v6160_v54, %v6159_v10  ;;  %v6572_v45 = vld [vmem:[#allocation16 + $0x48] sm:$0xff]  ;;  %v6573_v39 = vld [vmem:[#allocation16 + $0x50] sm:$0xff]  ;;  %v6575_v22 = vld [vmem:[#allocation16 + $0x60] sm:$0xff] }
 0x621   : > { %v8196_v23 = vpack.c.bf16 %v6574_v11, %v6572_v45  ;;  %v8198_v28 = vpack.c.bf16 %v6573_v39, %v6571_v4  ;;  %v6577_v48 = vld [vmem:[#allocation16 + $0x70] sm:$0xff]  ;;  %v6582_v26 = vld [vmem:[#allocation16 + $0x98] sm:$0xff]  ;;  %v6579_v8 = vld [vmem:[#allocation16 + $0x80] sm:$0xff] }
 0x622   : > { %v6581_v54 = vld [vmem:[#allocation16 + $0x90] sm:$0xff]  ;;  %v6713_v45 = vld [vmem:[#allocation17 + $0xc8] sm:$0xff] }
 0x623   : > { %8115 = vmatpush3.bf16.msra.mxu1 %v8114_v31  ;;  %v6162_v31 = vld [vmem:[#allocation14 + $0x3f8] sm:$0xff]  ;;  %v6697_v39 = vld [vmem:[#allocation17 + $0x48] sm:$0xff] }
 0x624   : > { %8117 = vmatprep.subr.bf16.mxu1 %v8116_v58  ;;  %v8150_v58 = vpack.c.bf16 %v6144_v44, %v6143_v17  ;;  %v8152_v51 = vpack.c.bf16 %v6162_v31, %v6161_v1  ;;  %v8206_v17 = vpack.c.bf16 %v6581_v54, %v6579_v8  ;;  %v6583_v1 = vld [vmem:[#allocation16 + $0xa0] sm:$0xff]  ;;  %v6585_v31 = vld [vmem:[#allocation16 + $0xb0] sm:$0xff] }
 0x627   : > { %8119 = vmatpush3.bf16.msra.mxu1 %v8118_v38  ;;  %v6164_v38 = vld [vmem:[#allocation14 + $0x408] sm:$0xff] }
 0x628   : > { %8121 = vmatprep.subr.bf16.mxu1 %v8120_v0  ;;  %v8154_v0 = vpack.c.bf16 %v6146_v62, %v6145_v57  ;;  %v8156_v15 = vpack.c.bf16 %v6164_v38, %v6163_v50  ;;  %v6590_v57 = vld [vmem:[#allocation16 + $0xd8] sm:$0xff]  ;;  %v6587_v62 = vld [vmem:[#allocation16 + $0xc0] sm:$0xff]  ;;  %v6589_v38 = vld [vmem:[#allocation16 + $0xd0] sm:$0xff] }
 0x62b   : > { %8123 = vmatpush3.bf16.msra.mxu1 %v8122_v47  ;;  %v8160_v47 = vpack.c.bf16 %v6166_v36, %v6165_v33  ;;  %v8214_v33 = vpack.c.bf16 %v6589_v38, %v6587_v62 }
 0x62c   : > { %8125 = vmatprep.subr.bf16.mxu1 %v8124_v12  ;;  %v8470_v12 = vld [vmem:[#allocation6 + $0x21] ss:$8 sps:$4 sm:$0xff]  }
 0x62e   : > { %6401 = vmatmul.mubr.f32.vlgmr.msra.gmra.mrb[80].mxu1 %v8465_v37  ;;  %v6169_v37 = vld [vmem:[#allocation14 + $0x430] sm:$0xff] }
 0x62f   : > { %6405 = vmatprep.mubr.f32.mxu1 %v8466_v59  ;;  %8127 = vmatpush3.bf16.msra.mxu1 %v8126_v25  ;;  %v8472_v25 = vld [vmem:[#allocation6 + $0x12] ss:$8 sps:$4 sm:$0xff]  }
 0x630   : > { %8129 = vmatprep.subr.bf16.mxu1 %v8128_v3  ;;  %v6170_v3 = vld [vmem:[#allocation14 + $0x438] sm:$0xff]  ;;  %v6172_v59 = vld [vmem:[#allocation14 + $0x448] sm:$0xff] }
 0x631   : > { %v8168_v34 = vpack.c.bf16 %v6170_v3, %v6169_v37  ;;  %v8172_v24 = vpack.c.bf16 %v6172_v59, %v6171_v16  ;;  %v6688_v37 = vld [vmem:[#allocation17] sm:$0xff]  ;;  %v6706_v16 = vld [vmem:[#allocation17 + $0x90] sm:$0xff]  ;;  %v6707_v59 = vld [vmem:[#allocation17 + $0x98] sm:$0xff] }
 0x632   : > { %6406 = vmatmul.mubr.f32.gmra.mrb[82].mxu1 %v8467_v13 }
 0x633   : > { %8131 = vmatpush3.bf16.msra.mxu1 %v8130_v6  ;;  %6475 = vmatprep.mubr.f32.mxu1 %v8468_v29  ;;  %v6174_v6 = vld [vmem:[#allocation14 + $0x458] sm:$0xff]  ;;  %v6177_v29 = vld [vmem:[#allocation14 + $0x470] sm:$0xff] }
 0x634   : > { %8133 = vmatprep.subr.bf16.mxu1 %v8132_v20  ;;  %v8176_v13 = vpack.c.bf16 %v6174_v6, %v6173_v53  ;;  %v6175_v20 = vld [vmem:[#allocation14 + $0x460] sm:$0xff]  ;;  %v8184_v49 = vpack.c.bf16 %v6178_v40, %v6177_v29  ;;  %v8224_v53 = vpack.c.bf16 %v6707_v59, %v6706_v16  ;;  %v6690_v6 = vld [vmem:[#allocation17 + $0x10] sm:$0xff] }
 0x635   : > { %v8180_v14 = vpack.c.bf16 %v6176_v21, %v6175_v20  ;;  %v6708_v20 = vld [vmem:[#allocation17 + $0xa0] sm:$0xff]  ;;  %v6709_v21 = vld [vmem:[#allocation17 + $0xa8] sm:$0xff] }
 0x636   : > { %v8228_v29 = vpack.c.bf16 %v6709_v21, %v6708_v20  ;;  %v6692_v40 = vld [vmem:[#allocation17 + $0x20] sm:$0xff]  ;;  %v11527_v20 = vmov 0.0  }
 0x637   : > { %8135 = vmatpush3.bf16.msra.mxu1 %v8134_v63  ;;  %v6570_v63 = vld [vmem:[#allocation16 + $0x38] sm:$0xff] }
 0x638   : > { %8137 = vmatprep.subr.bf16.mxu1 %v8136_v5  ;;  %v8192_v46 = vpack.c.bf16 %v6570_v63, %v6568_v35  ;;  %v6569_v5 = vld [vmem:[#allocation16 + $0x30] sm:$0xff]  ;;  %v6693_v35 = vld [vmem:[#allocation17 + $0x28] sm:$0xff] }
 0x639   : > { %v8194_v52 = vpack.c.bf16 %v6569_v5, %v6567_v7  ;;  %v6710_v63 = vld [vmem:[#allocation17 + $0xb0] sm:$0xff]  ;;  %v6711_v7 = vld [vmem:[#allocation17 + $0xb8] sm:$0xff] }
 0x63a   : > { %8193 = vmatprep.subr.bf16.mxu0 %v8192_v46  ;;  %v8230_v46 = vpack.c.bf16 %v6693_v35, %v6692_v40  ;;  %v8232_v5 = vpack.c.bf16 %v6711_v7, %v6710_v63  ;;  %v6718_v35 = vld [vmem:[#allocation17 + $0xf0] sm:$0xff]  ;;  %v6719_v63 = vld [vmem:[#allocation17 + $0xf8] sm:$0xff] }
 0x63b   : > { %8139 = vmatpush3.bf16.msra.mxu1 %v8138_v30  ;;  %8195 = vmatpush1.bf16.msra.mxu0 %v8194_v52  ;;  %v6576_v30 = vld [vmem:[#allocation16 + $0x68] sm:$0xff]  ;;  %v6694_v52 = vld [vmem:[#allocation17 + $0x30] sm:$0xff]  ;;  %v8248_v7 = vpack.c.bf16 %v6719_v63, %v6718_v35 }
 0x63c   : > { %8141 = vmatprep.subr.bf16.mxu1 %v8140_v9  ;;  %v6578_v9 = vld [vmem:[#allocation16 + $0x78] sm:$0xff]  ;;  %8197 = vmatprep.subr.bf16.mxu0 %v8196_v23  ;;  %v6696_v23 = vld [vmem:[#allocation17 + $0x40] sm:$0xff] }
 0x63d   : > { %v8200_v42 = vpack.c.bf16 %v6578_v9, %v6576_v30  ;;  %v6714_v30 = vld [vmem:[#allocation17 + $0xd0] sm:$0xff]  ;;  %v6715_v9 = vld [vmem:[#allocation17 + $0xd8] sm:$0xff] }
 0x63f   : > { %8143 = vmatpush3.bf16.msra.mxu1 %v8142_v41  ;;  %8199 = vmatpush1.bf16.msra.mxu0 %v8198_v28  ;;  %v8202_v41 = vpack.c.bf16 %v6577_v48, %v6575_v22  ;;  %v8238_v28 = vpack.c.bf16 %v6697_v39, %v6696_v23  ;;  %v6698_v22 = vld [vmem:[#allocation17 + $0x50] sm:$0xff]  ;;  %v6699_v48 = vld [vmem:[#allocation17 + $0x58] sm:$0xff] }
 0x640   : > { %8145 = vmatprep.subr.bf16.mxu1 %v8144_v2  ;;  %8201 = vmatprep.subr.bf16.mxu0 %v8200_v42  ;;  %v6580_v2 = vld [vmem:[#allocation16 + $0x88] sm:$0xff]  ;;  %v8240_v42 = vpack.c.bf16 %v6715_v9, %v6714_v30  ;;  %v8242_v54 = vpack.c.bf16 %v6699_v48, %v6698_v22 }
 0x641   : > { %v8204_v10 = vpack.c.bf16 %v6582_v26, %v6580_v2  ;;  %v6716_v2 = vld [vmem:[#allocation17 + $0xe0] sm:$0xff]  ;;  %v6717_v26 = vld [vmem:[#allocation17 + $0xe8] sm:$0xff] }
 0x643   : > { %8147 = vmatpush3.bf16.msra.mxu1 %v8146_v18  ;;  %8203 = vmatpush1.bf16.msra.mxu0 %v8202_v41  ;;  %v6584_v18 = vld [vmem:[#allocation16 + $0xa8] sm:$0xff] }
 0x644   : > { %8149 = vmatprep.subr.bf16.mxu1 %v8148_v32  ;;  %v6586_v32 = vld [vmem:[#allocation16 + $0xb8] sm:$0xff]  ;;  %8205 = vmatprep.subr.bf16.mxu0 %v8204_v10 }
 0x645   : > { %v8208_v44 = vpack.c.bf16 %v6586_v32, %v6584_v18  ;;  %v7324_v18 = vld [vmem:[%s11446_s6] ss:$0 sm:$0xff]  ;;  %v8244_v32 = vpack.c.bf16 %v6717_v26, %v6716_v2 }
 0x647   : > { %8151 = vmatpush3.bf16.msra.mxu1 %v8150_v58  ;;  %8207 = vmatpush1.bf16.msra.mxu0 %v8206_v17  ;;  %v8210_v58 = vpack.c.bf16 %v6585_v31, %v6583_v1 }
 0x648   : > { %8153 = vmatprep.subr.bf16.mxu1 %v8152_v51  ;;  %8209 = vmatprep.subr.bf16.mxu0 %v8208_v44  ;;  %v6588_v51 = vld [vmem:[#allocation16 + $0xc8] sm:$0xff] }
 0x649   : > { %v8212_v50 = vpack.c.bf16 %v6590_v57, %v6588_v51 }
 0x64b   : > { %8155 = vmatpush3.bf16.msra.mxu1 %v8154_v0  ;;  %8211 = vmatpush1.bf16.msra.mxu0 %v8210_v58  ;;  %v6592_v0 = vld [vmem:[#allocation16 + $0xe8] sm:$0xff] }
 0x64c   : > { %8157 = vmatprep.subr.bf16.mxu1 %v8156_v15  ;;  %8213 = vmatprep.subr.bf16.mxu0 %v8212_v50 }
 0x64e   : > { %6476 = vmatmul.mubr.f32.vlgmr.msra.gmra.mrb[84].mxu1 %v8469_v61  ;;  %v6591_v61 = vld [vmem:[#allocation16 + $0xe0] sm:$0xff] }
 0x64f   : > { %6480 = vmatprep.mubr.f32.mxu1 %v8470_v12  ;;  %8159 = vmatpush3.bf16.msra.mxu1 %v8156_v15  ;;  %v6594_v15 = vld [vmem:[#allocation16 + $0xf8] sm:$0xff] }
 0x650   : > { %8161 = vmatprep.subr.bf16.mxu1 %v8160_v47  ;;  %v8216_v36 = vpack.c.bf16 %v6594_v15, %v6592_v0  ;;  %8215 = vmatpush1.bf16.msra.mxu0 %v8214_v33 }
 0x652   : > { %6481 = vmatmul.mubr.f32.gmra.mrb[86].mxu1 %v8471_v55  ;;  %8217 = vmatprep.subr.bf16.mxu0 %v8216_v36 }
 0x653   : > { %8163 = vmatpush3.bf16.msra.mxu1 %v8160_v47  ;;  %7833 = vmatprep.mubr.f32.mxu1 %v8472_v25  ;;  %v6593_v47 = vld [vmem:[#allocation16 + $0xf0] sm:$0xff]  ;;  %v6705_v25 = vld [vmem:[#allocation17 + $0x88] sm:$0xff] }
 0x654   : > { %8165 = vmatprep.subr.bf16.mxu1 %v8164_v60  ;;  %v8218_v12 = vpack.c.bf16 %v6593_v47, %v6591_v61 }
 0x656   : > { %8219 = vmatpush1.bf16.msra.mxu0 %v8218_v12 }
 0x657   : > { %8167 = vmatpush3.bf16.msra.mxu1 %v8164_v60  ;;  %v6704_v60 = vld [vmem:[#allocation17 + $0x80] sm:$0xff] }
 0x658   : > { %8169 = vmatprep.subr.bf16.mxu1 %v8168_v34  ;;  %v8220_v3 = vpack.c.bf16 %v6705_v25, %v6704_v60 }
 0x65b   : > { %8171 = vmatpush3.bf16.msra.mxu1 %v8168_v34  ;;  %v6689_v34 = vld [vmem:[#allocation17 + $0x8] sm:$0xff] }
 0x65c   : > { %8173 = vmatprep.subr.bf16.mxu1 %v8172_v24 }
 0x65f   : > { %8175 = vmatpush3.bf16.msra.mxu1 %v8172_v24  ;;  %v8222_v24 = vpack.c.bf16 %v6689_v34, %v6688_v37 }
 0x660   : > { %8177 = vmatprep.subr.bf16.mxu1 %v8176_v13 }
 0x663   : > { %8179 = vmatpush3.bf16.msra.mxu1 %v8176_v13  ;;  %v6691_v13 = vld [vmem:[#allocation17 + $0x18] sm:$0xff] }
 0x664   : > { %8181 = vmatprep.subr.bf16.mxu1 %v8180_v14 }
 0x667   : > { %8183 = vmatpush3.bf16.msra.mxu1 %v8180_v14  ;;  %v8226_v14 = vpack.c.bf16 %v6691_v13, %v6690_v6 }
 0x668   : > { %8185 = vmatprep.subr.bf16.mxu1 %v8184_v49 }
 0x66b   : > { %8187 = vmatpush3.bf16.msra.mxu1 %v8184_v49  ;;  %v6695_v49 = vld [vmem:[#allocation17 + $0x38] sm:$0xff] }
 0x66c   : > { %8221 = vmatprep.subr.bf16.mxu1 %v8220_v3  ;;  %v8234_v11 = vpack.c.bf16 %v6695_v49, %v6694_v52  ;;  %v11528_v49 = vld [vmem:[#allocation25_spill] sm:$0xff] }
 0x66e   : > { %7834 = vmatmul.mubr.f32.vlgmr.msra.gmra.mrb[88].mxu1 %v8473_v27  ;;  %v6712_v27 = vld [vmem:[#allocation17 + $0xc0] sm:$0xff] }
 0x66f   : > { %8223 = vmatpush3.bf16.msra.mxu1 %v8222_v24  ;;  %v8236_v4 = vpack.c.bf16 %v6713_v45, %v6712_v27  ;;  %v11346_v27 = vsub.s32 0, %v11528_v49  ;;  %v6595_v45 = vld [vmem:[%s11529_s24] sm:$0x3]  ;;  %s8662_s24 = scalar_lea.vmem %s8661_s1, 4096 }
 0x670   : > { %8225 = vmatprep.subr.bf16.mxu1 %v8224_v53  ;;  %p8664_p0 = scmp.lt.s32.totalorder %s8662_s24, %s8656_s10 }
 0x672   : > { %p8665_p2 = por %p8664_p0, %p8663_p13 }
 0x673   : > { %8227 = vmatpush3.bf16.msra.mxu1 %v8226_v14  ;;  %v6700_v14 = vld [vmem:[#allocation17 + $0x60] sm:$0xff] }
 0x674   : > { %8229 = vmatprep.subr.bf16.mxu1 %v8228_v29  ;;  %v6701_v29 = vld [vmem:[#allocation17 + $0x68] sm:$0xff]  ;;  %p8666_p8 = pnand %p8665_p2, %p8659_p1 }
 0x675   : > { %v8246_v40 = vpack.c.bf16 %v6701_v29, %v6700_v14 }
 0x677   : > { %8231 = vmatpush3.bf16.msra.mxu1 %v8230_v46  ;;  %v6702_v46 = vld [vmem:[#allocation17 + $0x70] sm:$0xff] }
 0x678   : > { %8233 = vmatprep.subr.bf16.mxu1 %v8232_v5  ;;  %v6703_v5 = vld [vmem:[#allocation17 + $0x78] sm:$0xff] }
 0x679   : > { %v8250_v52 = vpack.c.bf16 %v6703_v5, %v6702_v46 }
 0x67b   : > { %8235 = vmatpush3.bf16.msra.mxu1 %v8234_v11  ;;  %v6603_v11 = vsub.s32 1, %v11528_v49 }
 0x67c   : > { %8237 = vmatprep.subr.bf16.mxu1 %v8236_v4  ;;  %v6600_v4 = vrot.slane %v6595_v45, %v11346_v27 }
 0x67d   : > { %v6604_v23 = vrot.slane %v6595_v45, %v6603_v11 }
 0x67f   : > { %8239 = vmatpush3.bf16.msra.mxu1 %v8238_v28 }
 0x680   : > { %8241 = vmatprep.subr.bf16.mxu1 %v8240_v42 }
 0x683   : > { %8243 = vmatpush3.bf16.msra.mxu1 %v8242_v54  ;;  %v8750_v54 = vmov 1966171168  }
 0x684   : > { %8245 = vmatprep.subr.bf16.mxu1 %v8244_v32 }
 0x687   : > { %8247 = vmatpush3.bf16.msra.mxu1 %v8246_v40 }
 0x688   : > { %8249 = vmatprep.subr.bf16.mxu1 %v8248_v7 }
 0x68b   : > { %8251 = vmatpush3.bf16.msra.mxu1 %v8250_v52 }
 0x6ac   : > { %v7533_v43 = vpop.f32.mrb[72].mxu1 }
 0x6ad   : > { %v7534_v56 = vpop.f32.mrb[73].mxu1 }
 0x6ae   : > { %v7535_v55 = vadd.f32 %v7534_v56, %v7533_v43 }
 0x6b0   : > { %v6253_v1 = vadd.f32 %v7535_v55, %v7324_v18 }
 0x6dd   : > { %v7536_v41 = vpop.f32.mrb[74].mxu1 }
 0x6de   : > { %v7537_v8 = vpop.f32.mrb[75].mxu1 }
 0x6df   : > { %v7538_v10 = vadd.f32 %v7537_v8, %v7536_v41 }
 0x6e1   : > { %v7571_v17 = vpop.f32.mrb[76].mxu1  ;;  %v6258_v62 = vadd.f32 %v7538_v10, %v7324_v18  ;;  %v6809_v18 = vunpack.c.l.s4 %v8750_v54 }
 0x6e2   : > { %v7572_v44 = vpop.f32.mrb[77].mxu1 }
 0x6e3   : > { %v7573_v31 = vadd.f32 %v7572_v44, %v7571_v17  ;;  %v6810_v17 = vunpack.c.0.s8 %v6809_v18  ;;  %v7325_v44 = vld [vmem:[%s11530_s21] ss:$0 sm:$0xff] }
 0x6e5   : > { %v6328_v58 = vadd.f32 %v7573_v31, %v6253_v1 }
 0x6ed   : > { %v7574_v51 = vpop.f32.mrb[78].mxu1 }
 0x6ee   : > { %v7575_v57 = vpop.f32.mrb[79].mxu1 }
 0x6ef   : > { %v7576_v50 = vadd.f32 %v7575_v57, %v7574_v51  ;;  %v6813_v51 = vsub.s32 %v6810_v17, %v11528_v49 }
 0x6f1   : > { %v6333_v38 = vadd.f32 %v7576_v50, %v6258_v62 }
 0x701   : > { %v7609_v0 = vpop.f32.mrb[80].mxu1 }
 0x702   : > { %v7610_v15 = vpop.f32.mrb[81].mxu1 }
 0x703   : > { %v7611_v33 = vadd.f32 %v7610_v15, %v7609_v0 }
 0x705   : > { %v6403_v36 = vadd.f32 %v7611_v33, %v6328_v58  ;;  %v7612_v61 = vpop.f32.mrb[82].mxu1 }
 0x706   : > { %v7613_v47 = vpop.f32.mrb[83].mxu1 }
 0x707   : > { %v7614_v12 = vadd.f32 %v7613_v47, %v7612_v61 }
 0x709   : > { %v6408_v43 = vadd.f32 %v7614_v12, %v6333_v38 }
 0x721   : > { %v7647_v56 = vpop.f32.mrb[84].mxu1 }
 0x722   : > { %v7648_v60 = vpop.f32.mrb[85].mxu1 }
 0x723   : > { %v7649_v55 = vadd.f32 %v7648_v60, %v7647_v56 }
 0x725   : > { %v7650_v25 = vpop.f32.mrb[86].mxu1  ;;  %v6478_v37 = vadd.f32 %v7649_v55, %v6403_v36 }
 0x726   : > { %v7651_v3 = vpop.f32.mrb[87].mxu1 }
 0x727   : > { %v7652_v34 = vadd.f32 %v7651_v3, %v7650_v25 }
 0x729   : > { %v6483_v16 = vadd.f32 %v7652_v34, %v6408_v43 }
 0x741   : > { %v7835_v59 = vpop.f32.mrb[88].mxu1 }
 0x742   : > { %v6558_v24 = vadd.f32 %v7835_v59, %v6483_v16  ;;  %v6552_v53 = vpop.f32.mrb[89].mxu1 }
 0x743   : > { %v6553_v6 = vadd.f32 %v6552_v53, %v6478_v37 }
 0x744   : > { %v6562_v21 = vmax.f32 %v6558_v24, 0.0 }
 0x745   : > { %v6561_v13 = vmax.f32 %v6553_v6, 0.0 }
 0x747   : > { %6672 = vmatmul.mubr.f32.vlgmr.msra.gmra.mrb[64].mxu0 %v6561_v13 }
 0x748   : > { %6677 = vmatprep.mubr.f32.mxu0 %v11527_v20 }
 0x74b   : > { %6678 = vmatmul.mubr.f32.gmra.mrb[66].mxu0 %v6562_v21 }
 0x81a   : > { %v6673_v39 = vpop.f32.mrb[64].mxu0 }
 0x81b   : > { %v6674_v30 = vadd.f32 %v6673_v39, %v6600_v4  ;;  %v6675_v9 = vpop.f32.mrb[65].mxu0 }
 0x81c   : > { %v6676_v28 = vadd.f32 %v6675_v9, %v6604_v23 }
 0x81d   : > { %v6684_v48 = vmax.f32 %v6674_v30, 0.0 }
 0x81e   : > { %v6685_v42 = vmax.f32 %v6676_v28, 0.0  ;;  %v6679_v22 = vpop.f32.mrb[66].mxu0 }
 0x81f   : > { %v6680_v41 = vadd.f32 %v6679_v22, %v6600_v4  ;;  %v6681_v2 = vpop.f32.mrb[67].mxu0 }
 0x820   : > { %v6682_v26 = vadd.f32 %v6681_v2, %v6604_v23  ;;  %6791 = vmatprep.mubr.f32.mxu1 %v6685_v42 }
 0x821   : > { %6792 = vmatmul.mubr.f32.vlgmr.msra.gmra.mrb[90].mxu1 %v6684_v48  ;;  %v6686_v10 = vmax.f32 %v6680_v41, 0.0 }
 0x822   : > { %v6687_v8 = vmax.f32 %v6682_v26, 0.0 }
 0x824   : > { %6796 = vmatprep.mubr.f32.mxu1 %v6687_v8 }
 0x825   : > { %6797 = vmatmul.mubr.f32.gmra.mrb[92].mxu1 %v6686_v10 }
 0x8f4   : > { %v7703_v32 = vpop.f32.mrb[90].mxu1 }
 0x8f5   : > { %v7704_v1 = vpop.f32.mrb[91].mxu1 }
 0x8f6   : > { %v7705_v31 = vadd.f32 %v7704_v1, %v7703_v32 }
 0x8f8   : > { %v6794_v58 = vadd.f32 %v7705_v31, %v7325_v44  ;;  %v7706_v57 = vpop.f32.mrb[92].mxu1 }
 0x8f9   : > { %v7707_v62 = vpop.f32.mrb[93].mxu1 }
 0x8fa   : > { %v6802_v50 = vmax.f32 %v6794_v58, 0.0  ;;  %v7708_v38 = vadd.f32 %v7707_v62, %v7706_v57 }
 0x8fc   : > { %v6806_v0 = vcombine.high %v6802_v50, %v6802_v50  ;;  %v6814_v15 = vrot.slane %v6802_v50, %v6813_v51  ;;  %v6799_v33 = vadd.f32 %v7708_v38, %v7325_v44 }
 0x8fe   : > { %v6815_v36 = vcombine.high %v6814_v15, %v6814_v15  ;;  %v6822_v61 = vrot.slane %v6814_v15, %v6813_v51  ;;  %v6838_v47 = vrot.slane %v6806_v0, %v6813_v51  ;;  %v6803_v12 = vmax.f32 %v6799_v33, 0.0 }
 0x900   : > { %v6829_v43 = vrot.slane %v6815_v36, %v6813_v51  ;;  %v6830_v56 = vcombine.high %v6822_v61, %v6822_v61  ;;  %v6839_v60 = vcombine.high %v6838_v47, %v6838_v47  ;;  %v6846_v55 = vrot.slane %v6838_v47, %v6813_v51 }
 0x901   : > { %v6807_v25 = vcombine.high %v6803_v12, %v6803_v12  ;;  %v6862_v37 = vrot.slane %v6803_v12, %v6813_v51  ;;  %v6907_v24 = vrot.slane %v6822_v61, %v11346_v27 }
 0x902   : > { %v6831_v3 = vcombine.high %v6829_v43, %v6829_v43  ;;  %v6853_v34 = vrot.slane %v6839_v60, %v6813_v51  ;;  %v6854_v16 = vcombine.high %v6846_v55, %v6846_v55  ;;  %v6911_v59 = vrot.slane %v6829_v43, %v11346_v27 }
 0x903   : > { %v6915_v53 = vrot.slane %v6830_v56, %v11346_v27  ;;  %v6863_v6 = vcombine.high %v6862_v37, %v6862_v37  ;;  %v6870_v13 = vrot.slane %v6862_v37, %v6813_v51  ;;  %v6923_v14 = vrot.slane %v6846_v55, %v11346_v27 }
 0x904   : > { %v6855_v20 = vcombine.high %v6853_v34, %v6853_v34  ;;  %v6919_v21 = vrot.slane %v6831_v3, %v11346_v27  ;;  %v6927_v29 = vrot.slane %v6853_v34, %v11346_v27  ;;  %v6968_v40 = vcombine.low %v6907_v24, %v6911_v59 }
 0x905   : > { %v6877_v35 = vrot.slane %v6863_v6, %v6813_v51  ;;  %v6878_v63 = vcombine.high %v6870_v13, %v6870_v13  ;;  %v6886_v7 = vrot.slane %v6807_v25, %v6813_v51  ;;  %v6931_v46 = vrot.slane %v6854_v16, %v11346_v27 }
 0x906   : > { %v6935_v5 = vrot.slane %v6855_v20, %v11346_v27  ;;  %v6969_v52 = vcombine.low %v6915_v53, %v6919_v21  ;;  %v6985_v49 = vcombine.low %v6923_v14, %v6927_v29  ;;  %v6939_v23 = vrot.slane %v6870_v13, %v11346_v27 }
 0x907   : > { %v6879_v45 = vcombine.high %v6877_v35, %v6877_v35  ;;  %v6887_v11 = vcombine.high %v6886_v7, %v6886_v7  ;;  %v6894_v4 = vrot.slane %v6886_v7, %v6813_v51  ;;  %v6976_v39 = vrot.slane %v6968_v40, %v10069_v19 }
 0x908   : > { %v6983_v30 = vrot.slane %v6969_v52, %v10069_v19  ;;  %v6986_v9 = vcombine.low %v6931_v46, %v6935_v5  ;;  %v6943_v28 = vrot.slane %v6877_v35, %v11346_v27  ;;  %v6947_v48 = vrot.slane %v6878_v63, %v11346_v27 }
 0x909   : > { %v6901_v42 = vrot.slane %v6887_v11, %v6813_v51  ;;  %v6902_v22 = vcombine.high %v6894_v4, %v6894_v4  ;;  %v6951_v41 = vrot.slane %v6879_v45, %v11346_v27  ;;  %v6993_v26 = vrot.slane %v6985_v49, %v10069_v19 }
 0x90a   : > { %v6984_v2 = vcombine.low %v6976_v39, %v6983_v30  ;;  %v7000_v8 = vrot.slane %v6986_v9, %v10069_v19  ;;  %v7002_v10 = vcombine.low %v6939_v23, %v6943_v28  ;;  %v6955_v18 = vrot.slane %v6894_v4, %v11346_v27 }
 0x90b   : > { %v6903_v54 = vcombine.high %v6901_v42, %v6901_v42  ;;  %v6959_v32 = vrot.slane %v6901_v42, %v11346_v27  ;;  %v7003_v17 = vcombine.low %v6947_v48, %v6951_v41  ;;  %v6963_v1 = vrot.slane %v6902_v22, %v11346_v27 }
 0x90c   : > { %v7001_v44 = vcombine.low %v6993_v26, %v7000_v8  ;;  %7040 = vst [vmem:[%s11202_s30] sm:$0xff] %v6984_v2  ;;  %7041 = vst [vmem:[%s11202_s30 + $0x10] sm:$0xff] %v6984_v2  ;;  %v7010_v58 = vrot.slane %v7002_v10, %v10069_v19 }
 0x90d   : > { %v6967_v31 = vrot.slane %v6903_v54, %v11346_v27  ;;  %v7017_v51 = vrot.slane %v7003_v17, %v10069_v19  ;;  %v7019_v57 = vcombine.low %v6955_v18, %v6959_v32 }
 0x90e   : > { %7042 = vst [vmem:[%s11202_s30 + $0x20] sm:$0xff] %v7001_v44  ;;  %7043 = vst [vmem:[%s11202_s30 + $0x30] sm:$0xff] %v7001_v44 }
 0x90f   : > { %v7018_v62 = vcombine.low %v7010_v58, %v7017_v51  ;;  %v7020_v50 = vcombine.low %v6963_v1, %v6967_v31  ;;  %v7027_v38 = vrot.slane %v7019_v57, %v10069_v19 }
 0x911   : > { %v7034_v0 = vrot.slane %v7020_v50, %v10069_v19  ;;  %7044 = vst [vmem:[%s11202_s30 + $0x40] sm:$0xff] %v7018_v62  ;;  %7045 = vst [vmem:[%s11202_s30 + $0x50] sm:$0xff] %v7018_v62 }
 0x913   : > { %v7035_v27 = vcombine.low %v7027_v38, %v7034_v0 }
 0x915   : > { %7046 = vst [vmem:[%s11202_s30 + $0x60] sm:$0xff] %v7035_v27  ;;  %7047 = vst [vmem:[%s11202_s30 + $0x70] sm:$0xff] %v7035_v27 }
 0x916   : > { %8669 = shalt.err (!%p8666_p8)
}
 0x917   : > { %s8670_s30 = scalar_lea.hbm %s11392_s11, 2048  ;;  %s8674_s21 = scalar_lea.hbm %s11531_s29, 4096 }
 0x918   : > { %p8671_p6 = scmp.ne.s32.totalorder %s11392_s11, %s8670_s30  ;;  %p8675_p3 = scmp.lt.u32.totalorder %s11392_s11, %s11531_s29 }
 0x919   : > { %p8676_p5 = scmp.lt.u32.totalorder %s8674_s21, %s8670_s30  ;;  %p8678_p7 = scmp.lt.u32.totalorder %s8670_s30, %s11392_s11 }
 0x91a   : > { %p8672_p10 = pnand %p8671_p6, %p11532_p4 }
 0x91b   : > { %p8677_p9 = por %p8676_p5, %p8675_p3 }
 0x91c   : > { %p8673_p11 = pneg %p8672_p10 }
 0x91d   : > { %p8679_p12 = por %p8678_p7, %p8677_p9 }
 0x91f   : > { %p8680_p1 = pnand %p8679_p12, %p8673_p11 }
 0x921   : > { %8683 = shalt.err (!%p8680_p1)
}
 0x922   : > { %s8752_s26 = smov 256   ;;  %s8753_s10 = smov 16  }
 0x923   : > { %8370 = dma.vmem_to_hbm [thread:$0]  (%p11532_p4), %s11394_s13, 2048, %s11392_s11, %s7129_s23, %s8752_s26, %s8752_s26, %s8753_s10  }
 0x924 PF: > { %s7157_s25 = sand.u32 1, %s8722_s17   ;;  %p11533_p13 = scmp.ne.s32.totalorder %s11487_s28, 0 }
 0x925   : > { %p11534_p0 = scmp.ge.s32.totalorder %s8734_s20, 2  ;;  %s7158_s1 = scalar_lea.sflag [#allocation10], %s7157_s25 }
 0x927   : > { %p8393_p2 = pnand %p11534_p0, %p11533_p13 }
 0x929   : > { %8717 = dma.done.wait (!%p8393_p2), %s7158_s1, 2048  }
 0x92a   : > { %8719 = vsyncadd (!%p8393_p2), %s7158_s1, 4294965248  ;;  %p27_p8 = scmp.ge.s32.totalorder %s8984_s16, 4   ;;  %s11535_s17 = smov %s8726_s18 }
 0x92b   : > { %s11536_s18 = smov %s8730_s19  ;;  %s11537_s19 = smov %s8996_s14 }
 0x92c   : > { %s11538_s20 = smov %s8984_s16  ;;  %29 = sbr.rel (!%p27_p8) target bundleno = 14 (0xe), region = 138 }
 0x933   :  { %7163 = vsyncpa [#allocation9], 1 }
 0x934   :  { %7165 = vsyncpa [#allocation9 + $0x1], 1 }
 0x935   :  { %7166 = vsyncpa [#allocation12], 1 }
 0x936   :  { %7167 = vsyncpa [#allocation15], 1 }
 0x937   :  { %7168 = vsyncpa [#allocation18], 1 }
 0x938   :  { %7169 = vsyncpa [#allocation10], 1 }
 0x939   :  { %7171 = vsyncpa [#allocation10 + $0x1], 1 }

</bundles_post_ra>
